<compile_context>
chip_gen: v6e
topology: v6e:2x2x1
jax: 0.10.0
libtpu: 0.0.40
codegen_flags: <defaults>
</compile_context>

<pallas_src>
import functools

import jax
import jax.numpy as jnp
from jax.experimental import pallas as pl
from jax.experimental.pallas import tpu as pltpu


def _lka_kernel(x_ref, w0_ref, b0_ref, w1_ref, b1_ref, patA_ref, patB_ref,
                b2_ref, o_ref, xpad_ref, pad1_ref, a1pad_ref, *, H, W, C, Bt):
    """Processes Bt batch elements per grid step.
    Layout: rows = H (sublanes), lanes = W*C pixel-interleaved channels.

    x_ref    : (Bt, H, W*C)       unpadded input slab(s)
    w0_ref   : (25, W*C)          5x5 depthwise taps, lane-expanded
    b0_ref   : (1, W*C)
    w1_ref   : (49, W*C)          7x7 (dil 3) depthwise taps, lane-expanded
    b1_ref   : (1, W*C)
    patA_ref : (C, W*C)           1x1-conv mixing patterns (co >= d part)
    patB_ref : (C, W*C)           1x1-conv mixing patterns (co <  d part)
    b2_ref   : (1, W*C)
    o_ref    : (Bt, H, W*C)
    xpad_ref : (H+4,  (W+4)*C)    VMEM scratch: input zero-padded by 2
    pad1_ref : (H+18, (W+18)*C)   VMEM scratch: conv0 output zero-padded by 9
    a1pad_ref: (H,    (W+2)*C)    VMEM scratch: conv_spatial output, 1-px pad
    """
    WC = W * C
    f32 = jnp.float32

    # ---- zero only the narrow halo strips, once per grid step -------------
    # Interior stores below never touch these cells, so they stay valid for
    # every bb iteration of this step.
    xpad_ref[0:2, :] = jnp.zeros((2, (W + 4) * C), f32)
    xpad_ref[2 + H:4 + H, :] = jnp.zeros((2, (W + 4) * C), f32)
    xpad_ref[2:2 + H, 0:2 * C] = jnp.zeros((H, 2 * C), f32)
    xpad_ref[2:2 + H, 2 * C + WC:(W + 4) * C] = jnp.zeros((H, 2 * C), f32)

    pad1_ref[0:9, :] = jnp.zeros((9, (W + 18) * C), f32)
    pad1_ref[9 + H:18 + H, :] = jnp.zeros((9, (W + 18) * C), f32)
    pad1_ref[9:9 + H, 0:9 * C] = jnp.zeros((H, 9 * C), f32)
    pad1_ref[9:9 + H, 9 * C + WC:(W + 18) * C] = jnp.zeros((H, 9 * C), f32)

    a1pad_ref[:, 0:C] = jnp.zeros((H, C), f32)
    a1pad_ref[:, C + WC:(W + 2) * C] = jnp.zeros((H, C), f32)

    for bb in range(Bt):
        u = x_ref[bb]                                       # (H, W*C)

        # ---- stage interior of the conv0 input (padding = 2) --------------
        xpad_ref[2:2 + H, 2 * C:2 * C + WC] = u

        # ---- conv0: depthwise 5x5, padding=2 -------------------------------
        # Output row h, pixel w, tap (kh, kw) reads padded (h+kh, (w+kw)*C).
        acc0 = jnp.zeros((H, WC), f32)
        for kh in range(5):
            for kw in range(5):
                win = xpad_ref[kh:kh + H, kw * C:kw * C + WC]       # (H, WC)
                acc0 = acc0 + win * w0_ref[kh * 5 + kw:kh * 5 + kw + 1, :]
        acc0 = acc0 + b0_ref[...]

        # ---- conv_spatial: depthwise 7x7, dilation=3, padding=9 ------------
        pad1_ref[9:9 + H, 9 * C:9 * C + WC] = acc0
        acc1 = jnp.zeros((H, WC), f32)
        for kh in range(7):
            for kw in range(7):
                win = pad1_ref[3 * kh:3 * kh + H,
                               3 * kw * C:3 * kw * C + WC]          # (H, WC)
                acc1 = acc1 + win * w1_ref[kh * 7 + kw:kh * 7 + kw + 1, :]
        acc1 = acc1 + b1_ref[...]

        # ---- conv1: pointwise 1x1 channel mix on the VPU --------------------
        # attn[., w*C+co] = sum_ci acc1[., w*C+ci] * W2[co, ci] + b2[co]
        # computed as C shifted FMAs; a one-pixel zero margin in VMEM scratch
        # supplies the within-pixel-block shifts.  (MXU path for C >= 32 is a
        # TODO above; for the C=4 demo the VPU path is the right choice.)
        a1pad_ref[:, C:C + WC] = acc1
        attn = acc1 * patA_ref[0:1, :] + b2_ref[...]
        for d in range(1, C):
            s_lo = a1pad_ref[:, C - d:C - d + WC]           # acc1[., l-d]
            s_hi = a1pad_ref[:, 2 * C - d:2 * C - d + WC]   # acc1[., l+C-d]
            attn = attn + s_lo * patA_ref[d:d + 1, :] + s_hi * patB_ref[d:d + 1, :]

        # ---- gating: u * attn ----------------------------------------------
        o_ref[bb] = (u * attn).astype(o_ref.dtype)


def _pick_batch_tile(B, bytes_per_elem, target_bytes=1 << 20):
    """Largest divisor of B whose per-step I/O stays under target_bytes."""
    bt = 1
    for d in range(1, B + 1):
        if B % d == 0 and d * bytes_per_elem <= target_bytes:
            bt = d
    return bt


def lka_forward_nhwc(x_nhwc, w0, b0, w1, b1, w2, b2):
    """Channels-last entry point: x_nhwc (B, H, W, C) -> (B, H, W, C).
    Weights in PyTorch layouts:
       w0: (C,1,5,5)  b0: (C,)   conv0        (depthwise 5x5, pad 2)
       w1: (C,1,7,7)  b1: (C,)   conv_spatial (depthwise 7x7, dil 3, pad 9)
       w2: (C,C,1,1)  b2: (C,)   conv1        (pointwise)
    """
    B, H, W, C = x_nhwc.shape
    WC = W * C

    # (B, H, W, C) -> (B, H, W*C) is a free, contiguous reshape.
    x_lane = x_nhwc.astype(jnp.float32).reshape(B, H, WC)

    # Depthwise weights lane-expanded: row (kh*K + kw) holds the per-channel
    # tap weight tiled across the W pixel blocks (tiny arrays; shipped once).
    w0_lane = jnp.tile(jnp.transpose(w0[:, 0], (1, 2, 0)).reshape(25, C),
                       (1, W)).astype(jnp.float32)
    w1_lane = jnp.tile(jnp.transpose(w1[:, 0], (1, 2, 0)).reshape(49, C),
                       (1, W)).astype(jnp.float32)
    b0_lane = jnp.tile(b0.reshape(1, C), (1, W)).astype(jnp.float32)
    b1_lane = jnp.tile(b1.reshape(1, C), (1, W)).astype(jnp.float32)
    b2_lane = jnp.tile(b2.reshape(1, C), (1, W)).astype(jnp.float32)

    # 1x1-conv mixing patterns: for shift d, lane (w*C + co) carries
    # W2[co, co-d] (patA, active when co >= d) or W2[co, co-d+C] (patB, co<d).
    w2m = w2[:, :, 0, 0].astype(jnp.float32)            # (C_out, C_in)
    d_idx = jnp.arange(C)[:, None]
    co_idx = jnp.arange(C)[None, :]
    ci = co_idx - d_idx
    patA_cc = jnp.where(ci >= 0, w2m[co_idx, jnp.where(ci >= 0, ci, 0)], 0.0)
    patB_cc = jnp.where(ci < 0, w2m[co_idx, jnp.where(ci < 0, ci + C, 0)], 0.0)
    patA = jnp.tile(patA_cc, (1, W))
    patB = jnp.tile(patB_cc, (1, W))

    # Batch-block the grid so small images aren't per-step-overhead bound.
    bytes_per_elem = 2 * H * WC * 4                      # input + output slab
    Bt = _pick_batch_tile(B, bytes_per_elem)
    grid = (B // Bt,)

    kernel = functools.partial(_lka_kernel, H=H, W=W, C=C, Bt=Bt)

    # Generation-aware VMEM budget: actual bytes + headroom, capped at 75% of
    # physical VMEM (v5e/v6e: 128 MiB, v7x: 64 MiB).
    try:
        info = pltpu.get_tpu_info()
        vmem_cap = int(getattr(info, "vmem_capacity_bytes", 64 * 2**20))
    except Exception:
        vmem_cap = 64 * 2**20
    scratch_bytes = 4 * ((H + 4) * (W + 4) * C
                         + (H + 18) * (W + 18) * C
                         + H * (W + 2) * C)
    io_block_bytes = 4 * 2 * (2 * Bt * H * WC)           # in+out, double-buffered
    const_bytes = 4 * 2 * (25 + 49 + 3 + 2 * C) * WC     # constant operands
    needed = scratch_bytes + io_block_bytes + const_bytes
    vmem_limit = int(min(max(needed * 1.25, 16 * 2**20), 0.75 * vmem_cap))

    rep = lambda b: (0, 0)
    out_lane = pl.pallas_call(
        kernel,
        out_shape=jax.ShapeDtypeStruct((B, H, WC), jnp.float32),
        grid_spec=pltpu.PrefetchScalarGridSpec(
            num_scalar_prefetch=0,
            grid=grid,
            in_specs=[
                pl.BlockSpec((Bt, H, WC), lambda b: (b, 0, 0)),
                pl.BlockSpec((25, WC), rep),
                pl.BlockSpec((1, WC), rep),
                pl.BlockSpec((49, WC), rep),
                pl.BlockSpec((1, WC), rep),
                pl.BlockSpec((C, WC), rep),
                pl.BlockSpec((C, WC), rep),
                pl.BlockSpec((1, WC), rep),
            ],
            out_specs=pl.BlockSpec((Bt, H, WC), lambda b: (b, 0, 0)),
            scratch_shapes=[
                pltpu.VMEM((H + 4, (W + 4) * C), jnp.float32),
                pltpu.VMEM((H + 18, (W + 18) * C), jnp.float32),
                pltpu.VMEM((H, (W + 2) * C), jnp.float32),
            ],
        ),
        compiler_params=pltpu.CompilerParams(
            dimension_semantics=("parallel",),
            vmem_limit_bytes=vmem_limit),
    )(x_lane, w0_lane, b0_lane, w1_lane, b1_lane, patA, patB, b2_lane)

    return out_lane.reshape(B, H, W, C)


def lka_forward(x_nchw, w0, b0, w1, b1, w2, b2):
    """NCHW wrapper matching the PyTorch module's layout.  Prefer
    lka_forward_nhwc if the caller already holds channels-last data (saves two
    full HBM transpose round trips)."""
    x_nhwc = jnp.transpose(x_nchw, (0, 2, 3, 1))
    out_nhwc = lka_forward_nhwc(x_nhwc, w0, b0, w1, b1, w2, b2)
    return jnp.transpose(out_nhwc, (0, 3, 1, 2))


def lka_reference(x, w0, b0, w1, b1, w2, b2):
    """Pure-JAX NCHW reference mirroring the PyTorch module."""
    C = x.shape[1]
    dn = ("NCHW", "OIHW", "NCHW")
    a = jax.lax.conv_general_dilated(
        x, w0, window_strides=(1, 1), padding=[(2, 2), (2, 2)],
        dimension_numbers=dn, feature_group_count=C) + b0[None, :, None, None]
    a = jax.lax.conv_general_dilated(
        a, w1, window_strides=(1, 1), padding=[(9, 9), (9, 9)],
        rhs_dilation=(3, 3),
        dimension_numbers=dn, feature_group_count=C) + b1[None, :, None, None]
    a = jax.lax.conv_general_dilated(
        a, w2, window_strides=(1, 1), padding=[(0, 0), (0, 0)],
        dimension_numbers=dn) + b2[None, :, None, None]
    return x * a


if __name__ == "__main__":
    B, C, H, W = 2, 4, 16, 16  # dim = 4

    key = jax.random.PRNGKey(0)
    ks = jax.random.split(key, 7)
    x = jax.random.normal(ks[0], (B, C, H, W), jnp.float32)
    # Deterministic synthetic parameters (shapes from LKA.__init__).
    w0 = 0.1 * jax.random.normal(ks[1], (C, 1, 5, 5), jnp.float32)
    b0 = 0.1 * jax.random.normal(ks[2], (C,), jnp.float32)
    w1 = 0.1 * jax.random.normal(ks[3], (C, 1, 7, 7), jnp.float32)
    b1 = 0.1 * jax.random.normal(ks[4], (C,), jnp.float32)
    w2 = 0.1 * jax.random.normal(ks[5], (C, C, 1, 1), jnp.float32)
    b2 = 0.1 * jax.random.normal(ks[6], (C,), jnp.float32)

    out = lka_forward(x, w0, b0, w1, b1, w2, b2)
    out = jax.block_until_ready(out)

    ref = lka_reference(x, w0, b0, w1, b1, w2, b2)
    assert out.shape == (B, C, H, W)
    assert jnp.allclose(out, ref, rtol=1e-4, atol=1e-4), (
        float(jnp.max(jnp.abs(out - ref))))

    print("KERNEL_OK")
</pallas_src>

<mosaic_0001>
module attributes {stable_mosaic.version = 11 : i64} {
  func.func @_lka_kernel(%arg0: i32, %arg1: memref<2x16x64xf32, #tpu.memory_space<vmem>>, %arg2: memref<25x64xf32, #tpu.memory_space<vmem>>, %arg3: memref<1x64xf32, #tpu.memory_space<vmem>>, %arg4: memref<49x64xf32, #tpu.memory_space<vmem>>, %arg5: memref<1x64xf32, #tpu.memory_space<vmem>>, %arg6: memref<4x64xf32, #tpu.memory_space<vmem>>, %arg7: memref<4x64xf32, #tpu.memory_space<vmem>>, %arg8: memref<1x64xf32, #tpu.memory_space<vmem>>, %arg9: memref<2x16x64xf32, #tpu.memory_space<vmem>>, %arg10: memref<20x80xf32, #tpu.memory_space<vmem>>, %arg11: memref<34x136xf32, #tpu.memory_space<vmem>>, %arg12: memref<16x72xf32, #tpu.memory_space<vmem>>) attributes {dimension_semantics = [#tpu.dimension_semantics<parallel>], iteration_bounds = array<i64: 1>, scalar_prefetch = 0 : i64, scratch_operands = 3 : i64, tpu.core_type = #tpu.core_type<tc>, window_params = [{transform_indices = @transform_0, window_bounds = array<i64: 2, 16, 64>}, {pipeline_mode = #tpu.pipeline_mode<synchronous>, transform_indices = @transform_1, window_bounds = array<i64: 25, 64>}, {pipeline_mode = #tpu.pipeline_mode<synchronous>, transform_indices = @transform_2, window_bounds = array<i64: 1, 64>}, {pipeline_mode = #tpu.pipeline_mode<synchronous>, transform_indices = @transform_3, window_bounds = array<i64: 49, 64>}, {pipeline_mode = #tpu.pipeline_mode<synchronous>, transform_indices = @transform_4, window_bounds = array<i64: 1, 64>}, {pipeline_mode = #tpu.pipeline_mode<synchronous>, transform_indices = @transform_5, window_bounds = array<i64: 4, 64>}, {pipeline_mode = #tpu.pipeline_mode<synchronous>, transform_indices = @transform_6, window_bounds = array<i64: 4, 64>}, {pipeline_mode = #tpu.pipeline_mode<synchronous>, transform_indices = @transform_7, window_bounds = array<i64: 1, 64>}, {transform_indices = @transform_8, window_bounds = array<i64: 2, 16, 64>}]} {
    %cst = arith.constant 0.000000e+00 : f32
    %0 = vector.broadcast %cst : f32 to vector<2x80xf32>
    %c0 = arith.constant 0 : index
    %c0_0 = arith.constant 0 : index
    %1 = vector.load %arg10[%c0, %c0_0] : memref<20x80xf32, #tpu.memory_space<vmem>>, vector<2x80xf32>
    tpu.vector_store %arg10[%c0, %c0_0], %0 {strides = array<i32>} : memref<20x80xf32, #tpu.memory_space<vmem>>, vector<2x80xf32>,
    %cst_1 = arith.constant 0.000000e+00 : f32
    %2 = vector.broadcast %cst_1 : f32 to vector<2x80xf32>
    %c18 = arith.constant 18 : index
    %c0_2 = arith.constant 0 : index
    %3 = vector.load %arg10[%c18, %c0_2] : memref<20x80xf32, #tpu.memory_space<vmem>>, vector<2x80xf32>
    tpu.vector_store %arg10[%c18, %c0_2], %2 {strides = array<i32>} : memref<20x80xf32, #tpu.memory_space<vmem>>, vector<2x80xf32>,
    %cst_3 = arith.constant 0.000000e+00 : f32
    %4 = vector.broadcast %cst_3 : f32 to vector<16x8xf32>
    %c2 = arith.constant 2 : index
    %c0_4 = arith.constant 0 : index
    %5 = vector.load %arg10[%c2, %c0_4] : memref<20x80xf32, #tpu.memory_space<vmem>>, vector<16x8xf32>
    tpu.vector_store %arg10[%c2, %c0_4], %4 {strides = array<i32>} : memref<20x80xf32, #tpu.memory_space<vmem>>, vector<16x8xf32>,
    %cst_5 = arith.constant 0.000000e+00 : f32
    %6 = vector.broadcast %cst_5 : f32 to vector<16x8xf32>
    %c2_6 = arith.constant 2 : index
    %c72 = arith.constant 72 : index
    %7 = vector.load %arg10[%c2_6, %c72] : memref<20x80xf32, #tpu.memory_space<vmem>>, vector<16x8xf32>
    tpu.vector_store %arg10[%c2_6, %c72], %6 {strides = array<i32>} : memref<20x80xf32, #tpu.memory_space<vmem>>, vector<16x8xf32>,
    %cst_7 = arith.constant 0.000000e+00 : f32
    %8 = vector.broadcast %cst_7 : f32 to vector<9x136xf32>
    %c0_8 = arith.constant 0 : index
    %c0_9 = arith.constant 0 : index
    %9 = vector.load %arg11[%c0_8, %c0_9] : memref<34x136xf32, #tpu.memory_space<vmem>>, vector<9x136xf32>
    tpu.vector_store %arg11[%c0_8, %c0_9], %8 {strides = array<i32>} : memref<34x136xf32, #tpu.memory_space<vmem>>, vector<9x136xf32>,
    %cst_10 = arith.constant 0.000000e+00 : f32
    %10 = vector.broadcast %cst_10 : f32 to vector<9x136xf32>
    %c25 = arith.constant 25 : index
    %c0_11 = arith.constant 0 : index
    %11 = vector.load %arg11[%c25, %c0_11] : memref<34x136xf32, #tpu.memory_space<vmem>>, vector<9x136xf32>
    tpu.vector_store %arg11[%c25, %c0_11], %10 {strides = array<i32>} : memref<34x136xf32, #tpu.memory_space<vmem>>, vector<9x136xf32>,
    %cst_12 = arith.constant 0.000000e+00 : f32
    %12 = vector.broadcast %cst_12 : f32 to vector<16x36xf32>
    %c9 = arith.constant 9 : index
    %c0_13 = arith.constant 0 : index
    %13 = vector.load %arg11[%c9, %c0_13] : memref<34x136xf32, #tpu.memory_space<vmem>>, vector<16x36xf32>
    tpu.vector_store %arg11[%c9, %c0_13], %12 {strides = array<i32>} : memref<34x136xf32, #tpu.memory_space<vmem>>, vector<16x36xf32>,
    %cst_14 = arith.constant 0.000000e+00 : f32
    %14 = vector.broadcast %cst_14 : f32 to vector<16x36xf32>
    %c9_15 = arith.constant 9 : index
    %c100 = arith.constant 100 : index
    %15 = vector.load %arg11[%c9_15, %c100] : memref<34x136xf32, #tpu.memory_space<vmem>>, vector<16x36xf32>
    tpu.vector_store %arg11[%c9_15, %c100], %14 {strides = array<i32>} : memref<34x136xf32, #tpu.memory_space<vmem>>, vector<16x36xf32>,
    %cst_16 = arith.constant 0.000000e+00 : f32
    %16 = vector.broadcast %cst_16 : f32 to vector<16x4xf32>
    %c0_17 = arith.constant 0 : index
    %c0_18 = arith.constant 0 : index
    %17 = vector.load %arg12[%c0_17, %c0_18] : memref<16x72xf32, #tpu.memory_space<vmem>>, vector<16x4xf32>
    tpu.vector_store %arg12[%c0_17, %c0_18], %16 {strides = array<i32>} : memref<16x72xf32, #tpu.memory_space<vmem>>, vector<16x4xf32>,
    %cst_19 = arith.constant 0.000000e+00 : f32
    %18 = vector.broadcast %cst_19 : f32 to vector<16x4xf32>
    %c0_20 = arith.constant 0 : index
    %c68 = arith.constant 68 : index
    %19 = vector.load %arg12[%c0_20, %c68] : memref<16x72xf32, #tpu.memory_space<vmem>>, vector<16x4xf32>
    tpu.vector_store %arg12[%c0_20, %c68], %18 {strides = array<i32>} : memref<16x72xf32, #tpu.memory_space<vmem>>, vector<16x4xf32>,
    %c0_21 = arith.constant 0 : index
    %c0_22 = arith.constant 0 : index
    %c0_23 = arith.constant 0 : index
    %20 = vector.load %arg1[%c0_21, %c0_22, %c0_23] : memref<2x16x64xf32, #tpu.memory_space<vmem>>, vector<1x16x64xf32>
    %21 = vector.shape_cast %20 : vector<1x16x64xf32> to vector<16x64xf32>
    %c2_24 = arith.constant 2 : index
    %c8 = arith.constant 8 : index
    %22 = vector.load %arg10[%c2_24, %c8] : memref<20x80xf32, #tpu.memory_space<vmem>>, vector<16x64xf32>
    tpu.vector_store %arg10[%c2_24, %c8], %21 {strides = array<i32>} : memref<20x80xf32, #tpu.memory_space<vmem>>, vector<16x64xf32>,
    %cst_25 = arith.constant 0.000000e+00 : f32
    %23 = vector.broadcast %cst_25 : f32 to vector<16x64xf32>
    %c0_26 = arith.constant 0 : index
    %c0_27 = arith.constant 0 : index
    %24 = vector.load %arg10[%c0_26, %c0_27] : memref<20x80xf32, #tpu.memory_space<vmem>>, vector<16x64xf32>
    %c0_28 = arith.constant 0 : index
    %c0_29 = arith.constant 0 : index
    %25 = vector.load %arg2[%c0_28, %c0_29] : memref<25x64xf32, #tpu.memory_space<vmem>>, vector<1x64xf32>
    %26 = vector.broadcast %25 : vector<1x64xf32> to vector<16x64xf32>
    %27 = arith.mulf %24, %26 : vector<16x64xf32>
    %28 = arith.addf %23, %27 : vector<16x64xf32>
    %c0_30 = arith.constant 0 : index
    %c4 = arith.constant 4 : index
    %29 = vector.load %arg10[%c0_30, %c4] : memref<20x80xf32, #tpu.memory_space<vmem>>, vector<16x64xf32>
    %c1 = arith.constant 1 : index
    %c0_31 = arith.constant 0 : index
    %30 = vector.load %arg2[%c1, %c0_31] : memref<25x64xf32, #tpu.memory_space<vmem>>, vector<1x64xf32>
    %31 = vector.broadcast %30 : vector<1x64xf32> to vector<16x64xf32>
    %32 = arith.mulf %29, %31 : vector<16x64xf32>
    %33 = arith.addf %28, %32 : vector<16x64xf32>
    %c0_32 = arith.constant 0 : index
    %c8_33 = arith.constant 8 : index
    %34 = vector.load %arg10[%c0_32, %c8_33] : memref<20x80xf32, #tpu.memory_space<vmem>>, vector<16x64xf32>
    %c2_34 = arith.constant 2 : index
    %c0_35 = arith.constant 0 : index
    %35 = vector.load %arg2[%c2_34, %c0_35] : memref<25x64xf32, #tpu.memory_space<vmem>>, vector<1x64xf32>
    %36 = vector.broadcast %35 : vector<1x64xf32> to vector<16x64xf32>
    %37 = arith.mulf %34, %36 : vector<16x64xf32>
    %38 = arith.addf %33, %37 : vector<16x64xf32>
    %c0_36 = arith.constant 0 : index
    %c12 = arith.constant 12 : index
    %39 = vector.load %arg10[%c0_36, %c12] : memref<20x80xf32, #tpu.memory_space<vmem>>, vector<16x64xf32>
    %c3 = arith.constant 3 : index
    %c0_37 = arith.constant 0 : index
    %40 = vector.load %arg2[%c3, %c0_37] : memref<25x64xf32, #tpu.memory_space<vmem>>, vector<1x64xf32>
    %41 = vector.broadcast %40 : vector<1x64xf32> to vector<16x64xf32>
    %42 = arith.mulf %39, %41 : vector<16x64xf32>
    %43 = arith.addf %38, %42 : vector<16x64xf32>
    %c0_38 = arith.constant 0 : index
    %c16 = arith.constant 16 : index
    %44 = vector.load %arg10[%c0_38, %c16] : memref<20x80xf32, #tpu.memory_space<vmem>>, vector<16x64xf32>
    %c4_39 = arith.constant 4 : index
    %c0_40 = arith.constant 0 : index
    %45 = vector.load %arg2[%c4_39, %c0_40] : memref<25x64xf32, #tpu.memory_space<vmem>>, vector<1x64xf32>
    %46 = vector.broadcast %45 : vector<1x64xf32> to vector<16x64xf32>
    %47 = arith.mulf %44, %46 : vector<16x64xf32>
    %48 = arith.addf %43, %47 : vector<16x64xf32>
    %c1_41 = arith.constant 1 : index
    %c0_42 = arith.constant 0 : index
    %49 = vector.load %arg10[%c1_41, %c0_42] : memref<20x80xf32, #tpu.memory_space<vmem>>, vector<16x64xf32>
    %c5 = arith.constant 5 : index
    %c0_43 = arith.constant 0 : index
    %50 = vector.load %arg2[%c5, %c0_43] : memref<25x64xf32, #tpu.memory_space<vmem>>, vector<1x64xf32>
    %51 = vector.broadcast %50 : vector<1x64xf32> to vector<16x64xf32>
    %52 = arith.mulf %49, %51 : vector<16x64xf32>
    %53 = arith.addf %48, %52 : vector<16x64xf32>
    %c1_44 = arith.constant 1 : index
    %c4_45 = arith.constant 4 : index
    %54 = vector.load %arg10[%c1_44, %c4_45] : memref<20x80xf32, #tpu.memory_space<vmem>>, vector<16x64xf32>
    %c6 = arith.constant 6 : index
    %c0_46 = arith.constant 0 : index
    %55 = vector.load %arg2[%c6, %c0_46] : memref<25x64xf32, #tpu.memory_space<vmem>>, vector<1x64xf32>
    %56 = vector.broadcast %55 : vector<1x64xf32> to vector<16x64xf32>
    %57 = arith.mulf %54, %56 : vector<16x64xf32>
    %58 = arith.addf %53, %57 : vector<16x64xf32>
    %c1_47 = arith.constant 1 : index
    %c8_48 = arith.constant 8 : index
    %59 = vector.load %arg10[%c1_47, %c8_48] : memref<20x80xf32, #tpu.memory_space<vmem>>, vector<16x64xf32>
    %c7 = arith.constant 7 : index
    %c0_49 = arith.constant 0 : index
    %60 = vector.load %arg2[%c7, %c0_49] : memref<25x64xf32, #tpu.memory_space<vmem>>, vector<1x64xf32>
    %61 = vector.broadcast %60 : vector<1x64xf32> to vector<16x64xf32>
    %62 = arith.mulf %59, %61 : vector<16x64xf32>
    %63 = arith.addf %58, %62 : vector<16x64xf32>
    %c1_50 = arith.constant 1 : index
    %c12_51 = arith.constant 12 : index
    %64 = vector.load %arg10[%c1_50, %c12_51] : memref<20x80xf32, #tpu.memory_space<vmem>>, vector<16x64xf32>
    %c8_52 = arith.constant 8 : index
    %c0_53 = arith.constant 0 : index
    %65 = vector.load %arg2[%c8_52, %c0_53] : memref<25x64xf32, #tpu.memory_space<vmem>>, vector<1x64xf32>
    %66 = vector.broadcast %65 : vector<1x64xf32> to vector<16x64xf32>
    %67 = arith.mulf %64, %66 : vector<16x64xf32>
    %68 = arith.addf %63, %67 : vector<16x64xf32>
    %c1_54 = arith.constant 1 : index
    %c16_55 = arith.constant 16 : index
    %69 = vector.load %arg10[%c1_54, %c16_55] : memref<20x80xf32, #tpu.memory_space<vmem>>, vector<16x64xf32>
    %c9_56 = arith.constant 9 : index
    %c0_57 = arith.constant 0 : index
    %70 = vector.load %arg2[%c9_56, %c0_57] : memref<25x64xf32, #tpu.memory_space<vmem>>, vector<1x64xf32>
    %71 = vector.broadcast %70 : vector<1x64xf32> to vector<16x64xf32>
    %72 = arith.mulf %69, %71 : vector<16x64xf32>
    %73 = arith.addf %68, %72 : vector<16x64xf32>
    %c2_58 = arith.constant 2 : index
    %c0_59 = arith.constant 0 : index
    %74 = vector.load %arg10[%c2_58, %c0_59] : memref<20x80xf32, #tpu.memory_space<vmem>>, vector<16x64xf32>
    %c10 = arith.constant 10 : index
    %c0_60 = arith.constant 0 : index
    %75 = vector.load %arg2[%c10, %c0_60] : memref<25x64xf32, #tpu.memory_space<vmem>>, vector<1x64xf32>
    %76 = vector.broadcast %75 : vector<1x64xf32> to vector<16x64xf32>
    %77 = arith.mulf %74, %76 : vector<16x64xf32>
    %78 = arith.addf %73, %77 : vector<16x64xf32>
    %c2_61 = arith.constant 2 : index
    %c4_62 = arith.constant 4 : index
    %79 = vector.load %arg10[%c2_61, %c4_62] : memref<20x80xf32, #tpu.memory_space<vmem>>, vector<16x64xf32>
    %c11 = arith.constant 11 : index
    %c0_63 = arith.constant 0 : index
    %80 = vector.load %arg2[%c11, %c0_63] : memref<25x64xf32, #tpu.memory_space<vmem>>, vector<1x64xf32>
    %81 = vector.broadcast %80 : vector<1x64xf32> to vector<16x64xf32>
    %82 = arith.mulf %79, %81 : vector<16x64xf32>
    %83 = arith.addf %78, %82 : vector<16x64xf32>
    %c2_64 = arith.constant 2 : index
    %c8_65 = arith.constant 8 : index
    %84 = vector.load %arg10[%c2_64, %c8_65] : memref<20x80xf32, #tpu.memory_space<vmem>>, vector<16x64xf32>
    %c12_66 = arith.constant 12 : index
    %c0_67 = arith.constant 0 : index
    %85 = vector.load %arg2[%c12_66, %c0_67] : memref<25x64xf32, #tpu.memory_space<vmem>>, vector<1x64xf32>
    %86 = vector.broadcast %85 : vector<1x64xf32> to vector<16x64xf32>
    %87 = arith.mulf %84, %86 : vector<16x64xf32>
    %88 = arith.addf %83, %87 : vector<16x64xf32>
    %c2_68 = arith.constant 2 : index
    %c12_69 = arith.constant 12 : index
    %89 = vector.load %arg10[%c2_68, %c12_69] : memref<20x80xf32, #tpu.memory_space<vmem>>, vector<16x64xf32>
    %c13 = arith.constant 13 : index
    %c0_70 = arith.constant 0 : index
    %90 = vector.load %arg2[%c13, %c0_70] : memref<25x64xf32, #tpu.memory_space<vmem>>, vector<1x64xf32>
    %91 = vector.broadcast %90 : vector<1x64xf32> to vector<16x64xf32>
    %92 = arith.mulf %89, %91 : vector<16x64xf32>
    %93 = arith.addf %88, %92 : vector<16x64xf32>
    %c2_71 = arith.constant 2 : index
    %c16_72 = arith.constant 16 : index
    %94 = vector.load %arg10[%c2_71, %c16_72] : memref<20x80xf32, #tpu.memory_space<vmem>>, vector<16x64xf32>
    %c14 = arith.constant 14 : index
    %c0_73 = arith.constant 0 : index
    %95 = vector.load %arg2[%c14, %c0_73] : memref<25x64xf32, #tpu.memory_space<vmem>>, vector<1x64xf32>
    %96 = vector.broadcast %95 : vector<1x64xf32> to vector<16x64xf32>
    %97 = arith.mulf %94, %96 : vector<16x64xf32>
    %98 = arith.addf %93, %97 : vector<16x64xf32>
    %c3_74 = arith.constant 3 : index
    %c0_75 = arith.constant 0 : index
    %99 = vector.load %arg10[%c3_74, %c0_75] : memref<20x80xf32, #tpu.memory_space<vmem>>, vector<16x64xf32>
    %c15 = arith.constant 15 : index
    %c0_76 = arith.constant 0 : index
    %100 = vector.load %arg2[%c15, %c0_76] : memref<25x64xf32, #tpu.memory_space<vmem>>, vector<1x64xf32>
    %101 = vector.broadcast %100 : vector<1x64xf32> to vector<16x64xf32>
    %102 = arith.mulf %99, %101 : vector<16x64xf32>
    %103 = arith.addf %98, %102 : vector<16x64xf32>
    %c3_77 = arith.constant 3 : index
    %c4_78 = arith.constant 4 : index
    %104 = vector.load %arg10[%c3_77, %c4_78] : memref<20x80xf32, #tpu.memory_space<vmem>>, vector<16x64xf32>
    %c16_79 = arith.constant 16 : index
    %c0_80 = arith.constant 0 : index
    %105 = vector.load %arg2[%c16_79, %c0_80] : memref<25x64xf32, #tpu.memory_space<vmem>>, vector<1x64xf32>
    %106 = vector.broadcast %105 : vector<1x64xf32> to vector<16x64xf32>
    %107 = arith.mulf %104, %106 : vector<16x64xf32>
    %108 = arith.addf %103, %107 : vector<16x64xf32>
    %c3_81 = arith.constant 3 : index
    %c8_82 = arith.constant 8 : index
    %109 = vector.load %arg10[%c3_81, %c8_82] : memref<20x80xf32, #tpu.memory_space<vmem>>, vector<16x64xf32>
    %c17 = arith.constant 17 : index
    %c0_83 = arith.constant 0 : index
    %110 = vector.load %arg2[%c17, %c0_83] : memref<25x64xf32, #tpu.memory_space<vmem>>, vector<1x64xf32>
    %111 = vector.broadcast %110 : vector<1x64xf32> to vector<16x64xf32>
    %112 = arith.mulf %109, %111 : vector<16x64xf32>
    %113 = arith.addf %108, %112 : vector<16x64xf32>
    %c3_84 = arith.constant 3 : index
    %c12_85 = arith.constant 12 : index
    %114 = vector.load %arg10[%c3_84, %c12_85] : memref<20x80xf32, #tpu.memory_space<vmem>>, vector<16x64xf32>
    %c18_86 = arith.constant 18 : index
    %c0_87 = arith.constant 0 : index
    %115 = vector.load %arg2[%c18_86, %c0_87] : memref<25x64xf32, #tpu.memory_space<vmem>>, vector<1x64xf32>
    %116 = vector.broadcast %115 : vector<1x64xf32> to vector<16x64xf32>
    %117 = arith.mulf %114, %116 : vector<16x64xf32>
    %118 = arith.addf %113, %117 : vector<16x64xf32>
    %c3_88 = arith.constant 3 : index
    %c16_89 = arith.constant 16 : index
    %119 = vector.load %arg10[%c3_88, %c16_89] : memref<20x80xf32, #tpu.memory_space<vmem>>, vector<16x64xf32>
    %c19 = arith.constant 19 : index
    %c0_90 = arith.constant 0 : index
    %120 = vector.load %arg2[%c19, %c0_90] : memref<25x64xf32, #tpu.memory_space<vmem>>, vector<1x64xf32>
    %121 = vector.broadcast %120 : vector<1x64xf32> to vector<16x64xf32>
    %122 = arith.mulf %119, %121 : vector<16x64xf32>
    %123 = arith.addf %118, %122 : vector<16x64xf32>
    %c4_91 = arith.constant 4 : index
    %c0_92 = arith.constant 0 : index
    %124 = vector.load %arg10[%c4_91, %c0_92] : memref<20x80xf32, #tpu.memory_space<vmem>>, vector<16x64xf32>
    %c20 = arith.constant 20 : index
    %c0_93 = arith.constant 0 : index
    %125 = vector.load %arg2[%c20, %c0_93] : memref<25x64xf32, #tpu.memory_space<vmem>>, vector<1x64xf32>
    %126 = vector.broadcast %125 : vector<1x64xf32> to vector<16x64xf32>
    %127 = arith.mulf %124, %126 : vector<16x64xf32>
    %128 = arith.addf %123, %127 : vector<16x64xf32>
    %c4_94 = arith.constant 4 : index
    %c4_95 = arith.constant 4 : index
    %129 = vector.load %arg10[%c4_94, %c4_95] : memref<20x80xf32, #tpu.memory_space<vmem>>, vector<16x64xf32>
    %c21 = arith.constant 21 : index
    %c0_96 = arith.constant 0 : index
    %130 = vector.load %arg2[%c21, %c0_96] : memref<25x64xf32, #tpu.memory_space<vmem>>, vector<1x64xf32>
    %131 = vector.broadcast %130 : vector<1x64xf32> to vector<16x64xf32>
    %132 = arith.mulf %129, %131 : vector<16x64xf32>
    %133 = arith.addf %128, %132 : vector<16x64xf32>
    %c4_97 = arith.constant 4 : index
    %c8_98 = arith.constant 8 : index
    %134 = vector.load %arg10[%c4_97, %c8_98] : memref<20x80xf32, #tpu.memory_space<vmem>>, vector<16x64xf32>
    %c22 = arith.constant 22 : index
    %c0_99 = arith.constant 0 : index
    %135 = vector.load %arg2[%c22, %c0_99] : memref<25x64xf32, #tpu.memory_space<vmem>>, vector<1x64xf32>
    %136 = vector.broadcast %135 : vector<1x64xf32> to vector<16x64xf32>
    %137 = arith.mulf %134, %136 : vector<16x64xf32>
    %138 = arith.addf %133, %137 : vector<16x64xf32>
    %c4_100 = arith.constant 4 : index
    %c12_101 = arith.constant 12 : index
    %139 = vector.load %arg10[%c4_100, %c12_101] : memref<20x80xf32, #tpu.memory_space<vmem>>, vector<16x64xf32>
    %c23 = arith.constant 23 : index
    %c0_102 = arith.constant 0 : index
    %140 = vector.load %arg2[%c23, %c0_102] : memref<25x64xf32, #tpu.memory_space<vmem>>, vector<1x64xf32>
    %141 = vector.broadcast %140 : vector<1x64xf32> to vector<16x64xf32>
    %142 = arith.mulf %139, %141 : vector<16x64xf32>
    %143 = arith.addf %138, %142 : vector<16x64xf32>
    %c4_103 = arith.constant 4 : index
    %c16_104 = arith.constant 16 : index
    %144 = vector.load %arg10[%c4_103, %c16_104] : memref<20x80xf32, #tpu.memory_space<vmem>>, vector<16x64xf32>
    %c24 = arith.constant 24 : index
    %c0_105 = arith.constant 0 : index
    %145 = vector.load %arg2[%c24, %c0_105] : memref<25x64xf32, #tpu.memory_space<vmem>>, vector<1x64xf32>
    %146 = vector.broadcast %145 : vector<1x64xf32> to vector<16x64xf32>
    %147 = arith.mulf %144, %146 : vector<16x64xf32>
    %148 = arith.addf %143, %147 : vector<16x64xf32>
    %c0_106 = arith.constant 0 : index
    %c0_107 = arith.constant 0 : index
    %149 = vector.load %arg3[%c0_106, %c0_107] : memref<1x64xf32, #tpu.memory_space<vmem>>, vector<1x64xf32>
    %150 = vector.broadcast %149 : vector<1x64xf32> to vector<16x64xf32>
    %151 = arith.addf %148, %150 : vector<16x64xf32>
    %c9_108 = arith.constant 9 : index
    %c36 = arith.constant 36 : index
    %152 = vector.load %arg11[%c9_108, %c36] : memref<34x136xf32, #tpu.memory_space<vmem>>, vector<16x64xf32>
    tpu.vector_store %arg11[%c9_108, %c36], %151 {strides = array<i32>} : memref<34x136xf32, #tpu.memory_space<vmem>>, vector<16x64xf32>,
    %cst_109 = arith.constant 0.000000e+00 : f32
    %153 = vector.broadcast %cst_109 : f32 to vector<16x64xf32>
    %c0_110 = arith.constant 0 : index
    %c0_111 = arith.constant 0 : index
    %154 = vector.load %arg11[%c0_110, %c0_111] : memref<34x136xf32, #tpu.memory_space<vmem>>, vector<16x64xf32>
    %c0_112 = arith.constant 0 : index
    %c0_113 = arith.constant 0 : index
    %155 = vector.load %arg4[%c0_112, %c0_113] : memref<49x64xf32, #tpu.memory_space<vmem>>, vector<1x64xf32>
    %156 = vector.broadcast %155 : vector<1x64xf32> to vector<16x64xf32>
    %157 = arith.mulf %154, %156 : vector<16x64xf32>
    %158 = arith.addf %153, %157 : vector<16x64xf32>
    %c0_114 = arith.constant 0 : index
    %c12_115 = arith.constant 12 : index
    %159 = vector.load %arg11[%c0_114, %c12_115] : memref<34x136xf32, #tpu.memory_space<vmem>>, vector<16x64xf32>
    %c1_116 = arith.constant 1 : index
    %c0_117 = arith.constant 0 : index
    %160 = vector.load %arg4[%c1_116, %c0_117] : memref<49x64xf32, #tpu.memory_space<vmem>>, vector<1x64xf32>
    %161 = vector.broadcast %160 : vector<1x64xf32> to vector<16x64xf32>
    %162 = arith.mulf %159, %161 : vector<16x64xf32>
    %163 = arith.addf %158, %162 : vector<16x64xf32>
    %c0_118 = arith.constant 0 : index
    %c24_119 = arith.constant 24 : index
    %164 = vector.load %arg11[%c0_118, %c24_119] : memref<34x136xf32, #tpu.memory_space<vmem>>, vector<16x64xf32>
    %c2_120 = arith.constant 2 : index
    %c0_121 = arith.constant 0 : index
    %165 = vector.load %arg4[%c2_120, %c0_121] : memref<49x64xf32, #tpu.memory_space<vmem>>, vector<1x64xf32>
    %166 = vector.broadcast %165 : vector<1x64xf32> to vector<16x64xf32>
    %167 = arith.mulf %164, %166 : vector<16x64xf32>
    %168 = arith.addf %163, %167 : vector<16x64xf32>
    %c0_122 = arith.constant 0 : index
    %c36_123 = arith.constant 36 : index
    %169 = vector.load %arg11[%c0_122, %c36_123] : memref<34x136xf32, #tpu.memory_space<vmem>>, vector<16x64xf32>
    %c3_124 = arith.constant 3 : index
    %c0_125 = arith.constant 0 : index
    %170 = vector.load %arg4[%c3_124, %c0_125] : memref<49x64xf32, #tpu.memory_space<vmem>>, vector<1x64xf32>
    %171 = vector.broadcast %170 : vector<1x64xf32> to vector<16x64xf32>
    %172 = arith.mulf %169, %171 : vector<16x64xf32>
    %173 = arith.addf %168, %172 : vector<16x64xf32>
    %c0_126 = arith.constant 0 : index
    %c48 = arith.constant 48 : index
    %174 = vector.load %arg11[%c0_126, %c48] : memref<34x136xf32, #tpu.memory_space<vmem>>, vector<16x64xf32>
    %c4_127 = arith.constant 4 : index
    %c0_128 = arith.constant 0 : index
    %175 = vector.load %arg4[%c4_127, %c0_128] : memref<49x64xf32, #tpu.memory_space<vmem>>, vector<1x64xf32>
    %176 = vector.broadcast %175 : vector<1x64xf32> to vector<16x64xf32>
    %177 = arith.mulf %174, %176 : vector<16x64xf32>
    %178 = arith.addf %173, %177 : vector<16x64xf32>
    %c0_129 = arith.constant 0 : index
    %c60 = arith.constant 60 : index
    %179 = vector.load %arg11[%c0_129, %c60] : memref<34x136xf32, #tpu.memory_space<vmem>>, vector<16x64xf32>
    %c5_130 = arith.constant 5 : index
    %c0_131 = arith.constant 0 : index
    %180 = vector.load %arg4[%c5_130, %c0_131] : memref<49x64xf32, #tpu.memory_space<vmem>>, vector<1x64xf32>
    %181 = vector.broadcast %180 : vector<1x64xf32> to vector<16x64xf32>
    %182 = arith.mulf %179, %181 : vector<16x64xf32>
    %183 = arith.addf %178, %182 : vector<16x64xf32>
    %c0_132 = arith.constant 0 : index
    %c72_133 = arith.constant 72 : index
    %184 = vector.load %arg11[%c0_132, %c72_133] : memref<34x136xf32, #tpu.memory_space<vmem>>, vector<16x64xf32>
    %c6_134 = arith.constant 6 : index
    %c0_135 = arith.constant 0 : index
    %185 = vector.load %arg4[%c6_134, %c0_135] : memref<49x64xf32, #tpu.memory_space<vmem>>, vector<1x64xf32>
    %186 = vector.broadcast %185 : vector<1x64xf32> to vector<16x64xf32>
    %187 = arith.mulf %184, %186 : vector<16x64xf32>
    %188 = arith.addf %183, %187 : vector<16x64xf32>
    %c3_136 = arith.constant 3 : index
    %c0_137 = arith.constant 0 : index
    %189 = vector.load %arg11[%c3_136, %c0_137] : memref<34x136xf32, #tpu.memory_space<vmem>>, vector<16x64xf32>
    %c7_138 = arith.constant 7 : index
    %c0_139 = arith.constant 0 : index
    %190 = vector.load %arg4[%c7_138, %c0_139] : memref<49x64xf32, #tpu.memory_space<vmem>>, vector<1x64xf32>
    %191 = vector.broadcast %190 : vector<1x64xf32> to vector<16x64xf32>
    %192 = arith.mulf %189, %191 : vector<16x64xf32>
    %193 = arith.addf %188, %192 : vector<16x64xf32>
    %c3_140 = arith.constant 3 : index
    %c12_141 = arith.constant 12 : index
    %194 = vector.load %arg11[%c3_140, %c12_141] : memref<34x136xf32, #tpu.memory_space<vmem>>, vector<16x64xf32>
    %c8_142 = arith.constant 8 : index
    %c0_143 = arith.constant 0 : index
    %195 = vector.load %arg4[%c8_142, %c0_143] : memref<49x64xf32, #tpu.memory_space<vmem>>, vector<1x64xf32>
    %196 = vector.broadcast %195 : vector<1x64xf32> to vector<16x64xf32>
    %197 = arith.mulf %194, %196 : vector<16x64xf32>
    %198 = arith.addf %193, %197 : vector<16x64xf32>
    %c3_144 = arith.constant 3 : index
    %c24_145 = arith.constant 24 : index
    %199 = vector.load %arg11[%c3_144, %c24_145] : memref<34x136xf32, #tpu.memory_space<vmem>>, vector<16x64xf32>
    %c9_146 = arith.constant 9 : index
    %c0_147 = arith.constant 0 : index
    %200 = vector.load %arg4[%c9_146, %c0_147] : memref<49x64xf32, #tpu.memory_space<vmem>>, vector<1x64xf32>
    %201 = vector.broadcast %200 : vector<1x64xf32> to vector<16x64xf32>
    %202 = arith.mulf %199, %201 : vector<16x64xf32>
    %203 = arith.addf %198, %202 : vector<16x64xf32>
    %c3_148 = arith.constant 3 : index
    %c36_149 = arith.constant 36 : index
    %204 = vector.load %arg11[%c3_148, %c36_149] : memref<34x136xf32, #tpu.memory_space<vmem>>, vector<16x64xf32>
    %c10_150 = arith.constant 10 : index
    %c0_151 = arith.constant 0 : index
    %205 = vector.load %arg4[%c10_150, %c0_151] : memref<49x64xf32, #tpu.memory_space<vmem>>, vector<1x64xf32>
    %206 = vector.broadcast %205 : vector<1x64xf32> to vector<16x64xf32>
    %207 = arith.mulf %204, %206 : vector<16x64xf32>
    %208 = arith.addf %203, %207 : vector<16x64xf32>
    %c3_152 = arith.constant 3 : index
    %c48_153 = arith.constant 48 : index
    %209 = vector.load %arg11[%c3_152, %c48_153] : memref<34x136xf32, #tpu.memory_space<vmem>>, vector<16x64xf32>
    %c11_154 = arith.constant 11 : index
    %c0_155 = arith.constant 0 : index
    %210 = vector.load %arg4[%c11_154, %c0_155] : memref<49x64xf32, #tpu.memory_space<vmem>>, vector<1x64xf32>
    %211 = vector.broadcast %210 : vector<1x64xf32> to vector<16x64xf32>
    %212 = arith.mulf %209, %211 : vector<16x64xf32>
    %213 = arith.addf %208, %212 : vector<16x64xf32>
    %c3_156 = arith.constant 3 : index
    %c60_157 = arith.constant 60 : index
    %214 = vector.load %arg11[%c3_156, %c60_157] : memref<34x136xf32, #tpu.memory_space<vmem>>, vector<16x64xf32>
    %c12_158 = arith.constant 12 : index
    %c0_159 = arith.constant 0 : index
    %215 = vector.load %arg4[%c12_158, %c0_159] : memref<49x64xf32, #tpu.memory_space<vmem>>, vector<1x64xf32>
    %216 = vector.broadcast %215 : vector<1x64xf32> to vector<16x64xf32>
    %217 = arith.mulf %214, %216 : vector<16x64xf32>
    %218 = arith.addf %213, %217 : vector<16x64xf32>
    %c3_160 = arith.constant 3 : index
    %c72_161 = arith.constant 72 : index
    %219 = vector.load %arg11[%c3_160, %c72_161] : memref<34x136xf32, #tpu.memory_space<vmem>>, vector<16x64xf32>
    %c13_162 = arith.constant 13 : index
    %c0_163 = arith.constant 0 : index
    %220 = vector.load %arg4[%c13_162, %c0_163] : memref<49x64xf32, #tpu.memory_space<vmem>>, vector<1x64xf32>
    %221 = vector.broadcast %220 : vector<1x64xf32> to vector<16x64xf32>
    %222 = arith.mulf %219, %221 : vector<16x64xf32>
    %223 = arith.addf %218, %222 : vector<16x64xf32>
    %c6_164 = arith.constant 6 : index
    %c0_165 = arith.constant 0 : index
    %224 = vector.load %arg11[%c6_164, %c0_165] : memref<34x136xf32, #tpu.memory_space<vmem>>, vector<16x64xf32>
    %c14_166 = arith.constant 14 : index
    %c0_167 = arith.constant 0 : index
    %225 = vector.load %arg4[%c14_166, %c0_167] : memref<49x64xf32, #tpu.memory_space<vmem>>, vector<1x64xf32>
    %226 = vector.broadcast %225 : vector<1x64xf32> to vector<16x64xf32>
    %227 = arith.mulf %224, %226 : vector<16x64xf32>
    %228 = arith.addf %223, %227 : vector<16x64xf32>
    %c6_168 = arith.constant 6 : index
    %c12_169 = arith.constant 12 : index
    %229 = vector.load %arg11[%c6_168, %c12_169] : memref<34x136xf32, #tpu.memory_space<vmem>>, vector<16x64xf32>
    %c15_170 = arith.constant 15 : index
    %c0_171 = arith.constant 0 : index
    %230 = vector.load %arg4[%c15_170, %c0_171] : memref<49x64xf32, #tpu.memory_space<vmem>>, vector<1x64xf32>
    %231 = vector.broadcast %230 : vector<1x64xf32> to vector<16x64xf32>
    %232 = arith.mulf %229, %231 : vector<16x64xf32>
    %233 = arith.addf %228, %232 : vector<16x64xf32>
    %c6_172 = arith.constant 6 : index
    %c24_173 = arith.constant 24 : index
    %234 = vector.load %arg11[%c6_172, %c24_173] : memref<34x136xf32, #tpu.memory_space<vmem>>, vector<16x64xf32>
    %c16_174 = arith.constant 16 : index
    %c0_175 = arith.constant 0 : index
    %235 = vector.load %arg4[%c16_174, %c0_175] : memref<49x64xf32, #tpu.memory_space<vmem>>, vector<1x64xf32>
    %236 = vector.broadcast %235 : vector<1x64xf32> to vector<16x64xf32>
    %237 = arith.mulf %234, %236 : vector<16x64xf32>
    %238 = arith.addf %233, %237 : vector<16x64xf32>
    %c6_176 = arith.constant 6 : index
    %c36_177 = arith.constant 36 : index
    %239 = vector.load %arg11[%c6_176, %c36_177] : memref<34x136xf32, #tpu.memory_space<vmem>>, vector<16x64xf32>
    %c17_178 = arith.constant 17 : index
    %c0_179 = arith.constant 0 : index
    %240 = vector.load %arg4[%c17_178, %c0_179] : memref<49x64xf32, #tpu.memory_space<vmem>>, vector<1x64xf32>
    %241 = vector.broadcast %240 : vector<1x64xf32> to vector<16x64xf32>
    %242 = arith.mulf %239, %241 : vector<16x64xf32>
    %243 = arith.addf %238, %242 : vector<16x64xf32>
    %c6_180 = arith.constant 6 : index
    %c48_181 = arith.constant 48 : index
    %244 = vector.load %arg11[%c6_180, %c48_181] : memref<34x136xf32, #tpu.memory_space<vmem>>, vector<16x64xf32>
    %c18_182 = arith.constant 18 : index
    %c0_183 = arith.constant 0 : index
    %245 = vector.load %arg4[%c18_182, %c0_183] : memref<49x64xf32, #tpu.memory_space<vmem>>, vector<1x64xf32>
    %246 = vector.broadcast %245 : vector<1x64xf32> to vector<16x64xf32>
    %247 = arith.mulf %244, %246 : vector<16x64xf32>
    %248 = arith.addf %243, %247 : vector<16x64xf32>
    %c6_184 = arith.constant 6 : index
    %c60_185 = arith.constant 60 : index
    %249 = vector.load %arg11[%c6_184, %c60_185] : memref<34x136xf32, #tpu.memory_space<vmem>>, vector<16x64xf32>
    %c19_186 = arith.constant 19 : index
    %c0_187 = arith.constant 0 : index
    %250 = vector.load %arg4[%c19_186, %c0_187] : memref<49x64xf32, #tpu.memory_space<vmem>>, vector<1x64xf32>
    %251 = vector.broadcast %250 : vector<1x64xf32> to vector<16x64xf32>
    %252 = arith.mulf %249, %251 : vector<16x64xf32>
    %253 = arith.addf %248, %252 : vector<16x64xf32>
    %c6_188 = arith.constant 6 : index
    %c72_189 = arith.constant 72 : index
    %254 = vector.load %arg11[%c6_188, %c72_189] : memref<34x136xf32, #tpu.memory_space<vmem>>, vector<16x64xf32>
    %c20_190 = arith.constant 20 : index
    %c0_191 = arith.constant 0 : index
    %255 = vector.load %arg4[%c20_190, %c0_191] : memref<49x64xf32, #tpu.memory_space<vmem>>, vector<1x64xf32>
    %256 = vector.broadcast %255 : vector<1x64xf32> to vector<16x64xf32>
    %257 = arith.mulf %254, %256 : vector<16x64xf32>
    %258 = arith.addf %253, %257 : vector<16x64xf32>
    %c9_192 = arith.constant 9 : index
    %c0_193 = arith.constant 0 : index
    %259 = vector.load %arg11[%c9_192, %c0_193] : memref<34x136xf32, #tpu.memory_space<vmem>>, vector<16x64xf32>
    %c21_194 = arith.constant 21 : index
    %c0_195 = arith.constant 0 : index
    %260 = vector.load %arg4[%c21_194, %c0_195] : memref<49x64xf32, #tpu.memory_space<vmem>>, vector<1x64xf32>
    %261 = vector.broadcast %260 : vector<1x64xf32> to vector<16x64xf32>
    %262 = arith.mulf %259, %261 : vector<16x64xf32>
    %263 = arith.addf %258, %262 : vector<16x64xf32>
    %c9_196 = arith.constant 9 : index
    %c12_197 = arith.constant 12 : index
    %264 = vector.load %arg11[%c9_196, %c12_197] : memref<34x136xf32, #tpu.memory_space<vmem>>, vector<16x64xf32>
    %c22_198 = arith.constant 22 : index
    %c0_199 = arith.constant 0 : index
    %265 = vector.load %arg4[%c22_198, %c0_199] : memref<49x64xf32, #tpu.memory_space<vmem>>, vector<1x64xf32>
    %266 = vector.broadcast %265 : vector<1x64xf32> to vector<16x64xf32>
    %267 = arith.mulf %264, %266 : vector<16x64xf32>
    %268 = arith.addf %263, %267 : vector<16x64xf32>
    %c9_200 = arith.constant 9 : index
    %c24_201 = arith.constant 24 : index
    %269 = vector.load %arg11[%c9_200, %c24_201] : memref<34x136xf32, #tpu.memory_space<vmem>>, vector<16x64xf32>
    %c23_202 = arith.constant 23 : index
    %c0_203 = arith.constant 0 : index
    %270 = vector.load %arg4[%c23_202, %c0_203] : memref<49x64xf32, #tpu.memory_space<vmem>>, vector<1x64xf32>
    %271 = vector.broadcast %270 : vector<1x64xf32> to vector<16x64xf32>
    %272 = arith.mulf %269, %271 : vector<16x64xf32>
    %273 = arith.addf %268, %272 : vector<16x64xf32>
    %c9_204 = arith.constant 9 : index
    %c36_205 = arith.constant 36 : index
    %274 = vector.load %arg11[%c9_204, %c36_205] : memref<34x136xf32, #tpu.memory_space<vmem>>, vector<16x64xf32>
    %c24_206 = arith.constant 24 : index
    %c0_207 = arith.constant 0 : index
    %275 = vector.load %arg4[%c24_206, %c0_207] : memref<49x64xf32, #tpu.memory_space<vmem>>, vector<1x64xf32>
    %276 = vector.broadcast %275 : vector<1x64xf32> to vector<16x64xf32>
    %277 = arith.mulf %274, %276 : vector<16x64xf32>
    %278 = arith.addf %273, %277 : vector<16x64xf32>
    %c9_208 = arith.constant 9 : index
    %c48_209 = arith.constant 48 : index
    %279 = vector.load %arg11[%c9_208, %c48_209] : memref<34x136xf32, #tpu.memory_space<vmem>>, vector<16x64xf32>
    %c25_210 = arith.constant 25 : index
    %c0_211 = arith.constant 0 : index
    %280 = vector.load %arg4[%c25_210, %c0_211] : memref<49x64xf32, #tpu.memory_space<vmem>>, vector<1x64xf32>
    %281 = vector.broadcast %280 : vector<1x64xf32> to vector<16x64xf32>
    %282 = arith.mulf %279, %281 : vector<16x64xf32>
    %283 = arith.addf %278, %282 : vector<16x64xf32>
    %c9_212 = arith.constant 9 : index
    %c60_213 = arith.constant 60 : index
    %284 = vector.load %arg11[%c9_212, %c60_213] : memref<34x136xf32, #tpu.memory_space<vmem>>, vector<16x64xf32>
    %c26 = arith.constant 26 : index
    %c0_214 = arith.constant 0 : index
    %285 = vector.load %arg4[%c26, %c0_214] : memref<49x64xf32, #tpu.memory_space<vmem>>, vector<1x64xf32>
    %286 = vector.broadcast %285 : vector<1x64xf32> to vector<16x64xf32>
    %287 = arith.mulf %284, %286 : vector<16x64xf32>
    %288 = arith.addf %283, %287 : vector<16x64xf32>
    %c9_215 = arith.constant 9 : index
    %c72_216 = arith.constant 72 : index
    %289 = vector.load %arg11[%c9_215, %c72_216] : memref<34x136xf32, #tpu.memory_space<vmem>>, vector<16x64xf32>
    %c27 = arith.constant 27 : index
    %c0_217 = arith.constant 0 : index
    %290 = vector.load %arg4[%c27, %c0_217] : memref<49x64xf32, #tpu.memory_space<vmem>>, vector<1x64xf32>
    %291 = vector.broadcast %290 : vector<1x64xf32> to vector<16x64xf32>
    %292 = arith.mulf %289, %291 : vector<16x64xf32>
    %293 = arith.addf %288, %292 : vector<16x64xf32>
    %c12_218 = arith.constant 12 : index
    %c0_219 = arith.constant 0 : index
    %294 = vector.load %arg11[%c12_218, %c0_219] : memref<34x136xf32, #tpu.memory_space<vmem>>, vector<16x64xf32>
    %c28 = arith.constant 28 : index
    %c0_220 = arith.constant 0 : index
    %295 = vector.load %arg4[%c28, %c0_220] : memref<49x64xf32, #tpu.memory_space<vmem>>, vector<1x64xf32>
    %296 = vector.broadcast %295 : vector<1x64xf32> to vector<16x64xf32>
    %297 = arith.mulf %294, %296 : vector<16x64xf32>
    %298 = arith.addf %293, %297 : vector<16x64xf32>
    %c12_221 = arith.constant 12 : index
    %c12_222 = arith.constant 12 : index
    %299 = vector.load %arg11[%c12_221, %c12_222] : memref<34x136xf32, #tpu.memory_space<vmem>>, vector<16x64xf32>
    %c29 = arith.constant 29 : index
    %c0_223 = arith.constant 0 : index
    %300 = vector.load %arg4[%c29, %c0_223] : memref<49x64xf32, #tpu.memory_space<vmem>>, vector<1x64xf32>
    %301 = vector.broadcast %300 : vector<1x64xf32> to vector<16x64xf32>
    %302 = arith.mulf %299, %301 : vector<16x64xf32>
    %303 = arith.addf %298, %302 : vector<16x64xf32>
    %c12_224 = arith.constant 12 : index
    %c24_225 = arith.constant 24 : index
    %304 = vector.load %arg11[%c12_224, %c24_225] : memref<34x136xf32, #tpu.memory_space<vmem>>, vector<16x64xf32>
    %c30 = arith.constant 30 : index
    %c0_226 = arith.constant 0 : index
    %305 = vector.load %arg4[%c30, %c0_226] : memref<49x64xf32, #tpu.memory_space<vmem>>, vector<1x64xf32>
    %306 = vector.broadcast %305 : vector<1x64xf32> to vector<16x64xf32>
    %307 = arith.mulf %304, %306 : vector<16x64xf32>
    %308 = arith.addf %303, %307 : vector<16x64xf32>
    %c12_227 = arith.constant 12 : index
    %c36_228 = arith.constant 36 : index
    %309 = vector.load %arg11[%c12_227, %c36_228] : memref<34x136xf32, #tpu.memory_space<vmem>>, vector<16x64xf32>
    %c31 = arith.constant 31 : index
    %c0_229 = arith.constant 0 : index
    %310 = vector.load %arg4[%c31, %c0_229] : memref<49x64xf32, #tpu.memory_space<vmem>>, vector<1x64xf32>
    %311 = vector.broadcast %310 : vector<1x64xf32> to vector<16x64xf32>
    %312 = arith.mulf %309, %311 : vector<16x64xf32>
    %313 = arith.addf %308, %312 : vector<16x64xf32>
    %c12_230 = arith.constant 12 : index
    %c48_231 = arith.constant 48 : index
    %314 = vector.load %arg11[%c12_230, %c48_231] : memref<34x136xf32, #tpu.memory_space<vmem>>, vector<16x64xf32>
    %c32 = arith.constant 32 : index
    %c0_232 = arith.constant 0 : index
    %315 = vector.load %arg4[%c32, %c0_232] : memref<49x64xf32, #tpu.memory_space<vmem>>, vector<1x64xf32>
    %316 = vector.broadcast %315 : vector<1x64xf32> to vector<16x64xf32>
    %317 = arith.mulf %314, %316 : vector<16x64xf32>
    %318 = arith.addf %313, %317 : vector<16x64xf32>
    %c12_233 = arith.constant 12 : index
    %c60_234 = arith.constant 60 : index
    %319 = vector.load %arg11[%c12_233, %c60_234] : memref<34x136xf32, #tpu.memory_space<vmem>>, vector<16x64xf32>
    %c33 = arith.constant 33 : index
    %c0_235 = arith.constant 0 : index
    %320 = vector.load %arg4[%c33, %c0_235] : memref<49x64xf32, #tpu.memory_space<vmem>>, vector<1x64xf32>
    %321 = vector.broadcast %320 : vector<1x64xf32> to vector<16x64xf32>
    %322 = arith.mulf %319, %321 : vector<16x64xf32>
    %323 = arith.addf %318, %322 : vector<16x64xf32>
    %c12_236 = arith.constant 12 : index
    %c72_237 = arith.constant 72 : index
    %324 = vector.load %arg11[%c12_236, %c72_237] : memref<34x136xf32, #tpu.memory_space<vmem>>, vector<16x64xf32>
    %c34 = arith.constant 34 : index
    %c0_238 = arith.constant 0 : index
    %325 = vector.load %arg4[%c34, %c0_238] : memref<49x64xf32, #tpu.memory_space<vmem>>, vector<1x64xf32>
    %326 = vector.broadcast %325 : vector<1x64xf32> to vector<16x64xf32>
    %327 = arith.mulf %324, %326 : vector<16x64xf32>
    %328 = arith.addf %323, %327 : vector<16x64xf32>
    %c15_239 = arith.constant 15 : index
    %c0_240 = arith.constant 0 : index
    %329 = vector.load %arg11[%c15_239, %c0_240] : memref<34x136xf32, #tpu.memory_space<vmem>>, vector<16x64xf32>
    %c35 = arith.constant 35 : index
    %c0_241 = arith.constant 0 : index
    %330 = vector.load %arg4[%c35, %c0_241] : memref<49x64xf32, #tpu.memory_space<vmem>>, vector<1x64xf32>
    %331 = vector.broadcast %330 : vector<1x64xf32> to vector<16x64xf32>
    %332 = arith.mulf %329, %331 : vector<16x64xf32>
    %333 = arith.addf %328, %332 : vector<16x64xf32>
    %c15_242 = arith.constant 15 : index
    %c12_243 = arith.constant 12 : index
    %334 = vector.load %arg11[%c15_242, %c12_243] : memref<34x136xf32, #tpu.memory_space<vmem>>, vector<16x64xf32>
    %c36_244 = arith.constant 36 : index
    %c0_245 = arith.constant 0 : index
    %335 = vector.load %arg4[%c36_244, %c0_245] : memref<49x64xf32, #tpu.memory_space<vmem>>, vector<1x64xf32>
    %336 = vector.broadcast %335 : vector<1x64xf32> to vector<16x64xf32>
    %337 = arith.mulf %334, %336 : vector<16x64xf32>
    %338 = arith.addf %333, %337 : vector<16x64xf32>
    %c15_246 = arith.constant 15 : index
    %c24_247 = arith.constant 24 : index
    %339 = vector.load %arg11[%c15_246, %c24_247] : memref<34x136xf32, #tpu.memory_space<vmem>>, vector<16x64xf32>
    %c37 = arith.constant 37 : index
    %c0_248 = arith.constant 0 : index
    %340 = vector.load %arg4[%c37, %c0_248] : memref<49x64xf32, #tpu.memory_space<vmem>>, vector<1x64xf32>
    %341 = vector.broadcast %340 : vector<1x64xf32> to vector<16x64xf32>
    %342 = arith.mulf %339, %341 : vector<16x64xf32>
    %343 = arith.addf %338, %342 : vector<16x64xf32>
    %c15_249 = arith.constant 15 : index
    %c36_250 = arith.constant 36 : index
    %344 = vector.load %arg11[%c15_249, %c36_250] : memref<34x136xf32, #tpu.memory_space<vmem>>, vector<16x64xf32>
    %c38 = arith.constant 38 : index
    %c0_251 = arith.constant 0 : index
    %345 = vector.load %arg4[%c38, %c0_251] : memref<49x64xf32, #tpu.memory_space<vmem>>, vector<1x64xf32>
    %346 = vector.broadcast %345 : vector<1x64xf32> to vector<16x64xf32>
    %347 = arith.mulf %344, %346 : vector<16x64xf32>
    %348 = arith.addf %343, %347 : vector<16x64xf32>
    %c15_252 = arith.constant 15 : index
    %c48_253 = arith.constant 48 : index
    %349 = vector.load %arg11[%c15_252, %c48_253] : memref<34x136xf32, #tpu.memory_space<vmem>>, vector<16x64xf32>
    %c39 = arith.constant 39 : index
    %c0_254 = arith.constant 0 : index
    %350 = vector.load %arg4[%c39, %c0_254] : memref<49x64xf32, #tpu.memory_space<vmem>>, vector<1x64xf32>
    %351 = vector.broadcast %350 : vector<1x64xf32> to vector<16x64xf32>
    %352 = arith.mulf %349, %351 : vector<16x64xf32>
    %353 = arith.addf %348, %352 : vector<16x64xf32>
    %c15_255 = arith.constant 15 : index
    %c60_256 = arith.constant 60 : index
    %354 = vector.load %arg11[%c15_255, %c60_256] : memref<34x136xf32, #tpu.memory_space<vmem>>, vector<16x64xf32>
    %c40 = arith.constant 40 : index
    %c0_257 = arith.constant 0 : index
    %355 = vector.load %arg4[%c40, %c0_257] : memref<49x64xf32, #tpu.memory_space<vmem>>, vector<1x64xf32>
    %356 = vector.broadcast %355 : vector<1x64xf32> to vector<16x64xf32>
    %357 = arith.mulf %354, %356 : vector<16x64xf32>
    %358 = arith.addf %353, %357 : vector<16x64xf32>
    %c15_258 = arith.constant 15 : index
    %c72_259 = arith.constant 72 : index
    %359 = vector.load %arg11[%c15_258, %c72_259] : memref<34x136xf32, #tpu.memory_space<vmem>>, vector<16x64xf32>
    %c41 = arith.constant 41 : index
    %c0_260 = arith.constant 0 : index
    %360 = vector.load %arg4[%c41, %c0_260] : memref<49x64xf32, #tpu.memory_space<vmem>>, vector<1x64xf32>
    %361 = vector.broadcast %360 : vector<1x64xf32> to vector<16x64xf32>
    %362 = arith.mulf %359, %361 : vector<16x64xf32>
    %363 = arith.addf %358, %362 : vector<16x64xf32>
    %c18_261 = arith.constant 18 : index
    %c0_262 = arith.constant 0 : index
    %364 = vector.load %arg11[%c18_261, %c0_262] : memref<34x136xf32, #tpu.memory_space<vmem>>, vector<16x64xf32>
    %c42 = arith.constant 42 : index
    %c0_263 = arith.constant 0 : index
    %365 = vector.load %arg4[%c42, %c0_263] : memref<49x64xf32, #tpu.memory_space<vmem>>, vector<1x64xf32>
    %366 = vector.broadcast %365 : vector<1x64xf32> to vector<16x64xf32>
    %367 = arith.mulf %364, %366 : vector<16x64xf32>
    %368 = arith.addf %363, %367 : vector<16x64xf32>
    %c18_264 = arith.constant 18 : index
    %c12_265 = arith.constant 12 : index
    %369 = vector.load %arg11[%c18_264, %c12_265] : memref<34x136xf32, #tpu.memory_space<vmem>>, vector<16x64xf32>
    %c43 = arith.constant 43 : index
    %c0_266 = arith.constant 0 : index
    %370 = vector.load %arg4[%c43, %c0_266] : memref<49x64xf32, #tpu.memory_space<vmem>>, vector<1x64xf32>
    %371 = vector.broadcast %370 : vector<1x64xf32> to vector<16x64xf32>
    %372 = arith.mulf %369, %371 : vector<16x64xf32>
    %373 = arith.addf %368, %372 : vector<16x64xf32>
    %c18_267 = arith.constant 18 : index
    %c24_268 = arith.constant 24 : index
    %374 = vector.load %arg11[%c18_267, %c24_268] : memref<34x136xf32, #tpu.memory_space<vmem>>, vector<16x64xf32>
    %c44 = arith.constant 44 : index
    %c0_269 = arith.constant 0 : index
    %375 = vector.load %arg4[%c44, %c0_269] : memref<49x64xf32, #tpu.memory_space<vmem>>, vector<1x64xf32>
    %376 = vector.broadcast %375 : vector<1x64xf32> to vector<16x64xf32>
    %377 = arith.mulf %374, %376 : vector<16x64xf32>
    %378 = arith.addf %373, %377 : vector<16x64xf32>
    %c18_270 = arith.constant 18 : index
    %c36_271 = arith.constant 36 : index
    %379 = vector.load %arg11[%c18_270, %c36_271] : memref<34x136xf32, #tpu.memory_space<vmem>>, vector<16x64xf32>
    %c45 = arith.constant 45 : index
    %c0_272 = arith.constant 0 : index
    %380 = vector.load %arg4[%c45, %c0_272] : memref<49x64xf32, #tpu.memory_space<vmem>>, vector<1x64xf32>
    %381 = vector.broadcast %380 : vector<1x64xf32> to vector<16x64xf32>
    %382 = arith.mulf %379, %381 : vector<16x64xf32>
    %383 = arith.addf %378, %382 : vector<16x64xf32>
    %c18_273 = arith.constant 18 : index
    %c48_274 = arith.constant 48 : index
    %384 = vector.load %arg11[%c18_273, %c48_274] : memref<34x136xf32, #tpu.memory_space<vmem>>, vector<16x64xf32>
    %c46 = arith.constant 46 : index
    %c0_275 = arith.constant 0 : index
    %385 = vector.load %arg4[%c46, %c0_275] : memref<49x64xf32, #tpu.memory_space<vmem>>, vector<1x64xf32>
    %386 = vector.broadcast %385 : vector<1x64xf32> to vector<16x64xf32>
    %387 = arith.mulf %384, %386 : vector<16x64xf32>
    %388 = arith.addf %383, %387 : vector<16x64xf32>
    %c18_276 = arith.constant 18 : index
    %c60_277 = arith.constant 60 : index
    %389 = vector.load %arg11[%c18_276, %c60_277] : memref<34x136xf32, #tpu.memory_space<vmem>>, vector<16x64xf32>
    %c47 = arith.constant 47 : index
    %c0_278 = arith.constant 0 : index
    %390 = vector.load %arg4[%c47, %c0_278] : memref<49x64xf32, #tpu.memory_space<vmem>>, vector<1x64xf32>
    %391 = vector.broadcast %390 : vector<1x64xf32> to vector<16x64xf32>
    %392 = arith.mulf %389, %391 : vector<16x64xf32>
    %393 = arith.addf %388, %392 : vector<16x64xf32>
    %c18_279 = arith.constant 18 : index
    %c72_280 = arith.constant 72 : index
    %394 = vector.load %arg11[%c18_279, %c72_280] : memref<34x136xf32, #tpu.memory_space<vmem>>, vector<16x64xf32>
    %c48_281 = arith.constant 48 : index
    %c0_282 = arith.constant 0 : index
    %395 = vector.load %arg4[%c48_281, %c0_282] : memref<49x64xf32, #tpu.memory_space<vmem>>, vector<1x64xf32>
    %396 = vector.broadcast %395 : vector<1x64xf32> to vector<16x64xf32>
    %397 = arith.mulf %394, %396 : vector<16x64xf32>
    %398 = arith.addf %393, %397 : vector<16x64xf32>
    %c0_283 = arith.constant 0 : index
    %c0_284 = arith.constant 0 : index
    %399 = vector.load %arg5[%c0_283, %c0_284] : memref<1x64xf32, #tpu.memory_space<vmem>>, vector<1x64xf32>
    %400 = vector.broadcast %399 : vector<1x64xf32> to vector<16x64xf32>
    %401 = arith.addf %398, %400 : vector<16x64xf32>
    %c0_285 = arith.constant 0 : index
    %c4_286 = arith.constant 4 : index
    %402 = vector.load %arg12[%c0_285, %c4_286] : memref<16x72xf32, #tpu.memory_space<vmem>>, vector<16x64xf32>
    tpu.vector_store %arg12[%c0_285, %c4_286], %401 {strides = array<i32>} : memref<16x72xf32, #tpu.memory_space<vmem>>, vector<16x64xf32>,
    %c0_287 = arith.constant 0 : index
    %c0_288 = arith.constant 0 : index
    %403 = vector.load %arg6[%c0_287, %c0_288] : memref<4x64xf32, #tpu.memory_space<vmem>>, vector<1x64xf32>
    %404 = vector.broadcast %403 : vector<1x64xf32> to vector<16x64xf32>
    %405 = arith.mulf %401, %404 : vector<16x64xf32>
    %c0_289 = arith.constant 0 : index
    %c0_290 = arith.constant 0 : index
    %406 = vector.load %arg8[%c0_289, %c0_290] : memref<1x64xf32, #tpu.memory_space<vmem>>, vector<1x64xf32>
    %407 = vector.broadcast %406 : vector<1x64xf32> to vector<16x64xf32>
    %408 = arith.addf %405, %407 : vector<16x64xf32>
    %c0_291 = arith.constant 0 : index
    %c3_292 = arith.constant 3 : index
    %409 = vector.load %arg12[%c0_291, %c3_292] : memref<16x72xf32, #tpu.memory_space<vmem>>, vector<16x64xf32>
    %c0_293 = arith.constant 0 : index
    %c7_294 = arith.constant 7 : index
    %410 = vector.load %arg12[%c0_293, %c7_294] : memref<16x72xf32, #tpu.memory_space<vmem>>, vector<16x64xf32>
    %c1_295 = arith.constant 1 : index
    %c0_296 = arith.constant 0 : index
    %411 = vector.load %arg6[%c1_295, %c0_296] : memref<4x64xf32, #tpu.memory_space<vmem>>, vector<1x64xf32>
    %412 = vector.broadcast %411 : vector<1x64xf32> to vector<16x64xf32>
    %413 = arith.mulf %409, %412 : vector<16x64xf32>
    %414 = arith.addf %408, %413 : vector<16x64xf32>
    %c1_297 = arith.constant 1 : index
    %c0_298 = arith.constant 0 : index
    %415 = vector.load %arg7[%c1_297, %c0_298] : memref<4x64xf32, #tpu.memory_space<vmem>>, vector<1x64xf32>
    %416 = vector.broadcast %415 : vector<1x64xf32> to vector<16x64xf32>
    %417 = arith.mulf %410, %416 : vector<16x64xf32>
    %418 = arith.addf %414, %417 : vector<16x64xf32>
    %c0_299 = arith.constant 0 : index
    %c2_300 = arith.constant 2 : index
    %419 = vector.load %arg12[%c0_299, %c2_300] : memref<16x72xf32, #tpu.memory_space<vmem>>, vector<16x64xf32>
    %c0_301 = arith.constant 0 : index
    %c6_302 = arith.constant 6 : index
    %420 = vector.load %arg12[%c0_301, %c6_302] : memref<16x72xf32, #tpu.memory_space<vmem>>, vector<16x64xf32>
    %c2_303 = arith.constant 2 : index
    %c0_304 = arith.constant 0 : index
    %421 = vector.load %arg6[%c2_303, %c0_304] : memref<4x64xf32, #tpu.memory_space<vmem>>, vector<1x64xf32>
    %422 = vector.broadcast %421 : vector<1x64xf32> to vector<16x64xf32>
    %423 = arith.mulf %419, %422 : vector<16x64xf32>
    %424 = arith.addf %418, %423 : vector<16x64xf32>
    %c2_305 = arith.constant 2 : index
    %c0_306 = arith.constant 0 : index
    %425 = vector.load %arg7[%c2_305, %c0_306] : memref<4x64xf32, #tpu.memory_space<vmem>>, vector<1x64xf32>
    %426 = vector.broadcast %425 : vector<1x64xf32> to vector<16x64xf32>
    %427 = arith.mulf %420, %426 : vector<16x64xf32>
    %428 = arith.addf %424, %427 : vector<16x64xf32>
    %c0_307 = arith.constant 0 : index
    %c1_308 = arith.constant 1 : index
    %429 = vector.load %arg12[%c0_307, %c1_308] : memref<16x72xf32, #tpu.memory_space<vmem>>, vector<16x64xf32>
    %c0_309 = arith.constant 0 : index
    %c5_310 = arith.constant 5 : index
    %430 = vector.load %arg12[%c0_309, %c5_310] : memref<16x72xf32, #tpu.memory_space<vmem>>, vector<16x64xf32>
    %c3_311 = arith.constant 3 : index
    %c0_312 = arith.constant 0 : index
    %431 = vector.load %arg6[%c3_311, %c0_312] : memref<4x64xf32, #tpu.memory_space<vmem>>, vector<1x64xf32>
    %432 = vector.broadcast %431 : vector<1x64xf32> to vector<16x64xf32>
    %433 = arith.mulf %429, %432 : vector<16x64xf32>
    %434 = arith.addf %428, %433 : vector<16x64xf32>
    %c3_313 = arith.constant 3 : index
    %c0_314 = arith.constant 0 : index
    %435 = vector.load %arg7[%c3_313, %c0_314] : memref<4x64xf32, #tpu.memory_space<vmem>>, vector<1x64xf32>
    %436 = vector.broadcast %435 : vector<1x64xf32> to vector<16x64xf32>
    %437 = arith.mulf %430, %436 : vector<16x64xf32>
    %438 = arith.addf %434, %437 : vector<16x64xf32>
    %439 = arith.mulf %21, %438 : vector<16x64xf32>
    %c0_315 = arith.constant 0 : index
    %c0_316 = arith.constant 0 : index
    %c0_317 = arith.constant 0 : index
    %440 = vector.load %arg9[%c0_315, %c0_316, %c0_317] : memref<2x16x64xf32, #tpu.memory_space<vmem>>, vector<1x16x64xf32>
    %441 = vector.shape_cast %440 : vector<1x16x64xf32> to vector<16x64xf32>
    %442 = vector.shape_cast %439 : vector<16x64xf32> to vector<1x16x64xf32>
    tpu.vector_store %arg9[%c0_315, %c0_316, %c0_317], %442 {strides = array<i32>} : memref<2x16x64xf32, #tpu.memory_space<vmem>>, vector<1x16x64xf32>,
    %c1_318 = arith.constant 1 : index
    %c0_319 = arith.constant 0 : index
    %c0_320 = arith.constant 0 : index
    %443 = vector.load %arg1[%c1_318, %c0_319, %c0_320] : memref<2x16x64xf32, #tpu.memory_space<vmem>>, vector<1x16x64xf32>
    %444 = vector.shape_cast %443 : vector<1x16x64xf32> to vector<16x64xf32>
    %c2_321 = arith.constant 2 : index
    %c8_322 = arith.constant 8 : index
    %445 = vector.load %arg10[%c2_321, %c8_322] : memref<20x80xf32, #tpu.memory_space<vmem>>, vector<16x64xf32>
    tpu.vector_store %arg10[%c2_321, %c8_322], %444 {strides = array<i32>} : memref<20x80xf32, #tpu.memory_space<vmem>>, vector<16x64xf32>,
    %cst_323 = arith.constant 0.000000e+00 : f32
    %446 = vector.broadcast %cst_323 : f32 to vector<16x64xf32>
    %c0_324 = arith.constant 0 : index
    %c0_325 = arith.constant 0 : index
    %447 = vector.load %arg10[%c0_324, %c0_325] : memref<20x80xf32, #tpu.memory_space<vmem>>, vector<16x64xf32>
    %c0_326 = arith.constant 0 : index
    %c0_327 = arith.constant 0 : index
    %448 = vector.load %arg2[%c0_326, %c0_327] : memref<25x64xf32, #tpu.memory_space<vmem>>, vector<1x64xf32>
    %449 = vector.broadcast %448 : vector<1x64xf32> to vector<16x64xf32>
    %450 = arith.mulf %447, %449 : vector<16x64xf32>
    %451 = arith.addf %446, %450 : vector<16x64xf32>
    %c0_328 = arith.constant 0 : index
    %c4_329 = arith.constant 4 : index
    %452 = vector.load %arg10[%c0_328, %c4_329] : memref<20x80xf32, #tpu.memory_space<vmem>>, vector<16x64xf32>
    %c1_330 = arith.constant 1 : index
    %c0_331 = arith.constant 0 : index
    %453 = vector.load %arg2[%c1_330, %c0_331] : memref<25x64xf32, #tpu.memory_space<vmem>>, vector<1x64xf32>
    %454 = vector.broadcast %453 : vector<1x64xf32> to vector<16x64xf32>
    %455 = arith.mulf %452, %454 : vector<16x64xf32>
    %456 = arith.addf %451, %455 : vector<16x64xf32>
    %c0_332 = arith.constant 0 : index
    %c8_333 = arith.constant 8 : index
    %457 = vector.load %arg10[%c0_332, %c8_333] : memref<20x80xf32, #tpu.memory_space<vmem>>, vector<16x64xf32>
    %c2_334 = arith.constant 2 : index
    %c0_335 = arith.constant 0 : index
    %458 = vector.load %arg2[%c2_334, %c0_335] : memref<25x64xf32, #tpu.memory_space<vmem>>, vector<1x64xf32>
    %459 = vector.broadcast %458 : vector<1x64xf32> to vector<16x64xf32>
    %460 = arith.mulf %457, %459 : vector<16x64xf32>
    %461 = arith.addf %456, %460 : vector<16x64xf32>
    %c0_336 = arith.constant 0 : index
    %c12_337 = arith.constant 12 : index
    %462 = vector.load %arg10[%c0_336, %c12_337] : memref<20x80xf32, #tpu.memory_space<vmem>>, vector<16x64xf32>
    %c3_338 = arith.constant 3 : index
    %c0_339 = arith.constant 0 : index
    %463 = vector.load %arg2[%c3_338, %c0_339] : memref<25x64xf32, #tpu.memory_space<vmem>>, vector<1x64xf32>
    %464 = vector.broadcast %463 : vector<1x64xf32> to vector<16x64xf32>
    %465 = arith.mulf %462, %464 : vector<16x64xf32>
    %466 = arith.addf %461, %465 : vector<16x64xf32>
    %c0_340 = arith.constant 0 : index
    %c16_341 = arith.constant 16 : index
    %467 = vector.load %arg10[%c0_340, %c16_341] : memref<20x80xf32, #tpu.memory_space<vmem>>, vector<16x64xf32>
    %c4_342 = arith.constant 4 : index
    %c0_343 = arith.constant 0 : index
    %468 = vector.load %arg2[%c4_342, %c0_343] : memref<25x64xf32, #tpu.memory_space<vmem>>, vector<1x64xf32>
    %469 = vector.broadcast %468 : vector<1x64xf32> to vector<16x64xf32>
    %470 = arith.mulf %467, %469 : vector<16x64xf32>
    %471 = arith.addf %466, %470 : vector<16x64xf32>
    %c1_344 = arith.constant 1 : index
    %c0_345 = arith.constant 0 : index
    %472 = vector.load %arg10[%c1_344, %c0_345] : memref<20x80xf32, #tpu.memory_space<vmem>>, vector<16x64xf32>
    %c5_346 = arith.constant 5 : index
    %c0_347 = arith.constant 0 : index
    %473 = vector.load %arg2[%c5_346, %c0_347] : memref<25x64xf32, #tpu.memory_space<vmem>>, vector<1x64xf32>
    %474 = vector.broadcast %473 : vector<1x64xf32> to vector<16x64xf32>
    %475 = arith.mulf %472, %474 : vector<16x64xf32>
    %476 = arith.addf %471, %475 : vector<16x64xf32>
    %c1_348 = arith.constant 1 : index
    %c4_349 = arith.constant 4 : index
    %477 = vector.load %arg10[%c1_348, %c4_349] : memref<20x80xf32, #tpu.memory_space<vmem>>, vector<16x64xf32>
    %c6_350 = arith.constant 6 : index
    %c0_351 = arith.constant 0 : index
    %478 = vector.load %arg2[%c6_350, %c0_351] : memref<25x64xf32, #tpu.memory_space<vmem>>, vector<1x64xf32>
    %479 = vector.broadcast %478 : vector<1x64xf32> to vector<16x64xf32>
    %480 = arith.mulf %477, %479 : vector<16x64xf32>
    %481 = arith.addf %476, %480 : vector<16x64xf32>
    %c1_352 = arith.constant 1 : index
    %c8_353 = arith.constant 8 : index
    %482 = vector.load %arg10[%c1_352, %c8_353] : memref<20x80xf32, #tpu.memory_space<vmem>>, vector<16x64xf32>
    %c7_354 = arith.constant 7 : index
    %c0_355 = arith.constant 0 : index
    %483 = vector.load %arg2[%c7_354, %c0_355] : memref<25x64xf32, #tpu.memory_space<vmem>>, vector<1x64xf32>
    %484 = vector.broadcast %483 : vector<1x64xf32> to vector<16x64xf32>
    %485 = arith.mulf %482, %484 : vector<16x64xf32>
    %486 = arith.addf %481, %485 : vector<16x64xf32>
    %c1_356 = arith.constant 1 : index
    %c12_357 = arith.constant 12 : index
    %487 = vector.load %arg10[%c1_356, %c12_357] : memref<20x80xf32, #tpu.memory_space<vmem>>, vector<16x64xf32>
    %c8_358 = arith.constant 8 : index
    %c0_359 = arith.constant 0 : index
    %488 = vector.load %arg2[%c8_358, %c0_359] : memref<25x64xf32, #tpu.memory_space<vmem>>, vector<1x64xf32>
    %489 = vector.broadcast %488 : vector<1x64xf32> to vector<16x64xf32>
    %490 = arith.mulf %487, %489 : vector<16x64xf32>
    %491 = arith.addf %486, %490 : vector<16x64xf32>
    %c1_360 = arith.constant 1 : index
    %c16_361 = arith.constant 16 : index
    %492 = vector.load %arg10[%c1_360, %c16_361] : memref<20x80xf32, #tpu.memory_space<vmem>>, vector<16x64xf32>
    %c9_362 = arith.constant 9 : index
    %c0_363 = arith.constant 0 : index
    %493 = vector.load %arg2[%c9_362, %c0_363] : memref<25x64xf32, #tpu.memory_space<vmem>>, vector<1x64xf32>
    %494 = vector.broadcast %493 : vector<1x64xf32> to vector<16x64xf32>
    %495 = arith.mulf %492, %494 : vector<16x64xf32>
    %496 = arith.addf %491, %495 : vector<16x64xf32>
    %c2_364 = arith.constant 2 : index
    %c0_365 = arith.constant 0 : index
    %497 = vector.load %arg10[%c2_364, %c0_365] : memref<20x80xf32, #tpu.memory_space<vmem>>, vector<16x64xf32>
    %c10_366 = arith.constant 10 : index
    %c0_367 = arith.constant 0 : index
    %498 = vector.load %arg2[%c10_366, %c0_367] : memref<25x64xf32, #tpu.memory_space<vmem>>, vector<1x64xf32>
    %499 = vector.broadcast %498 : vector<1x64xf32> to vector<16x64xf32>
    %500 = arith.mulf %497, %499 : vector<16x64xf32>
    %501 = arith.addf %496, %500 : vector<16x64xf32>
    %c2_368 = arith.constant 2 : index
    %c4_369 = arith.constant 4 : index
    %502 = vector.load %arg10[%c2_368, %c4_369] : memref<20x80xf32, #tpu.memory_space<vmem>>, vector<16x64xf32>
    %c11_370 = arith.constant 11 : index
    %c0_371 = arith.constant 0 : index
    %503 = vector.load %arg2[%c11_370, %c0_371] : memref<25x64xf32, #tpu.memory_space<vmem>>, vector<1x64xf32>
    %504 = vector.broadcast %503 : vector<1x64xf32> to vector<16x64xf32>
    %505 = arith.mulf %502, %504 : vector<16x64xf32>
    %506 = arith.addf %501, %505 : vector<16x64xf32>
    %c2_372 = arith.constant 2 : index
    %c8_373 = arith.constant 8 : index
    %507 = vector.load %arg10[%c2_372, %c8_373] : memref<20x80xf32, #tpu.memory_space<vmem>>, vector<16x64xf32>
    %c12_374 = arith.constant 12 : index
    %c0_375 = arith.constant 0 : index
    %508 = vector.load %arg2[%c12_374, %c0_375] : memref<25x64xf32, #tpu.memory_space<vmem>>, vector<1x64xf32>
    %509 = vector.broadcast %508 : vector<1x64xf32> to vector<16x64xf32>
    %510 = arith.mulf %507, %509 : vector<16x64xf32>
    %511 = arith.addf %506, %510 : vector<16x64xf32>
    %c2_376 = arith.constant 2 : index
    %c12_377 = arith.constant 12 : index
    %512 = vector.load %arg10[%c2_376, %c12_377] : memref<20x80xf32, #tpu.memory_space<vmem>>, vector<16x64xf32>
    %c13_378 = arith.constant 13 : index
    %c0_379 = arith.constant 0 : index
    %513 = vector.load %arg2[%c13_378, %c0_379] : memref<25x64xf32, #tpu.memory_space<vmem>>, vector<1x64xf32>
    %514 = vector.broadcast %513 : vector<1x64xf32> to vector<16x64xf32>
    %515 = arith.mulf %512, %514 : vector<16x64xf32>
    %516 = arith.addf %511, %515 : vector<16x64xf32>
    %c2_380 = arith.constant 2 : index
    %c16_381 = arith.constant 16 : index
    %517 = vector.load %arg10[%c2_380, %c16_381] : memref<20x80xf32, #tpu.memory_space<vmem>>, vector<16x64xf32>
    %c14_382 = arith.constant 14 : index
    %c0_383 = arith.constant 0 : index
    %518 = vector.load %arg2[%c14_382, %c0_383] : memref<25x64xf32, #tpu.memory_space<vmem>>, vector<1x64xf32>
    %519 = vector.broadcast %518 : vector<1x64xf32> to vector<16x64xf32>
    %520 = arith.mulf %517, %519 : vector<16x64xf32>
    %521 = arith.addf %516, %520 : vector<16x64xf32>
    %c3_384 = arith.constant 3 : index
    %c0_385 = arith.constant 0 : index
    %522 = vector.load %arg10[%c3_384, %c0_385] : memref<20x80xf32, #tpu.memory_space<vmem>>, vector<16x64xf32>
    %c15_386 = arith.constant 15 : index
    %c0_387 = arith.constant 0 : index
    %523 = vector.load %arg2[%c15_386, %c0_387] : memref<25x64xf32, #tpu.memory_space<vmem>>, vector<1x64xf32>
    %524 = vector.broadcast %523 : vector<1x64xf32> to vector<16x64xf32>
    %525 = arith.mulf %522, %524 : vector<16x64xf32>
    %526 = arith.addf %521, %525 : vector<16x64xf32>
    %c3_388 = arith.constant 3 : index
    %c4_389 = arith.constant 4 : index
    %527 = vector.load %arg10[%c3_388, %c4_389] : memref<20x80xf32, #tpu.memory_space<vmem>>, vector<16x64xf32>
    %c16_390 = arith.constant 16 : index
    %c0_391 = arith.constant 0 : index
    %528 = vector.load %arg2[%c16_390, %c0_391] : memref<25x64xf32, #tpu.memory_space<vmem>>, vector<1x64xf32>
    %529 = vector.broadcast %528 : vector<1x64xf32> to vector<16x64xf32>
    %530 = arith.mulf %527, %529 : vector<16x64xf32>
    %531 = arith.addf %526, %530 : vector<16x64xf32>
    %c3_392 = arith.constant 3 : index
    %c8_393 = arith.constant 8 : index
    %532 = vector.load %arg10[%c3_392, %c8_393] : memref<20x80xf32, #tpu.memory_space<vmem>>, vector<16x64xf32>
    %c17_394 = arith.constant 17 : index
    %c0_395 = arith.constant 0 : index
    %533 = vector.load %arg2[%c17_394, %c0_395] : memref<25x64xf32, #tpu.memory_space<vmem>>, vector<1x64xf32>
    %534 = vector.broadcast %533 : vector<1x64xf32> to vector<16x64xf32>
    %535 = arith.mulf %532, %534 : vector<16x64xf32>
    %536 = arith.addf %531, %535 : vector<16x64xf32>
    %c3_396 = arith.constant 3 : index
    %c12_397 = arith.constant 12 : index
    %537 = vector.load %arg10[%c3_396, %c12_397] : memref<20x80xf32, #tpu.memory_space<vmem>>, vector<16x64xf32>
    %c18_398 = arith.constant 18 : index
    %c0_399 = arith.constant 0 : index
    %538 = vector.load %arg2[%c18_398, %c0_399] : memref<25x64xf32, #tpu.memory_space<vmem>>, vector<1x64xf32>
    %539 = vector.broadcast %538 : vector<1x64xf32> to vector<16x64xf32>
    %540 = arith.mulf %537, %539 : vector<16x64xf32>
    %541 = arith.addf %536, %540 : vector<16x64xf32>
    %c3_400 = arith.constant 3 : index
    %c16_401 = arith.constant 16 : index
    %542 = vector.load %arg10[%c3_400, %c16_401] : memref<20x80xf32, #tpu.memory_space<vmem>>, vector<16x64xf32>
    %c19_402 = arith.constant 19 : index
    %c0_403 = arith.constant 0 : index
    %543 = vector.load %arg2[%c19_402, %c0_403] : memref<25x64xf32, #tpu.memory_space<vmem>>, vector<1x64xf32>
    %544 = vector.broadcast %543 : vector<1x64xf32> to vector<16x64xf32>
    %545 = arith.mulf %542, %544 : vector<16x64xf32>
    %546 = arith.addf %541, %545 : vector<16x64xf32>
    %c4_404 = arith.constant 4 : index
    %c0_405 = arith.constant 0 : index
    %547 = vector.load %arg10[%c4_404, %c0_405] : memref<20x80xf32, #tpu.memory_space<vmem>>, vector<16x64xf32>
    %c20_406 = arith.constant 20 : index
    %c0_407 = arith.constant 0 : index
    %548 = vector.load %arg2[%c20_406, %c0_407] : memref<25x64xf32, #tpu.memory_space<vmem>>, vector<1x64xf32>
    %549 = vector.broadcast %548 : vector<1x64xf32> to vector<16x64xf32>
    %550 = arith.mulf %547, %549 : vector<16x64xf32>
    %551 = arith.addf %546, %550 : vector<16x64xf32>
    %c4_408 = arith.constant 4 : index
    %c4_409 = arith.constant 4 : index
    %552 = vector.load %arg10[%c4_408, %c4_409] : memref<20x80xf32, #tpu.memory_space<vmem>>, vector<16x64xf32>
    %c21_410 = arith.constant 21 : index
    %c0_411 = arith.constant 0 : index
    %553 = vector.load %arg2[%c21_410, %c0_411] : memref<25x64xf32, #tpu.memory_space<vmem>>, vector<1x64xf32>
    %554 = vector.broadcast %553 : vector<1x64xf32> to vector<16x64xf32>
    %555 = arith.mulf %552, %554 : vector<16x64xf32>
    %556 = arith.addf %551, %555 : vector<16x64xf32>
    %c4_412 = arith.constant 4 : index
    %c8_413 = arith.constant 8 : index
    %557 = vector.load %arg10[%c4_412, %c8_413] : memref<20x80xf32, #tpu.memory_space<vmem>>, vector<16x64xf32>
    %c22_414 = arith.constant 22 : index
    %c0_415 = arith.constant 0 : index
    %558 = vector.load %arg2[%c22_414, %c0_415] : memref<25x64xf32, #tpu.memory_space<vmem>>, vector<1x64xf32>
    %559 = vector.broadcast %558 : vector<1x64xf32> to vector<16x64xf32>
    %560 = arith.mulf %557, %559 : vector<16x64xf32>
    %561 = arith.addf %556, %560 : vector<16x64xf32>
    %c4_416 = arith.constant 4 : index
    %c12_417 = arith.constant 12 : index
    %562 = vector.load %arg10[%c4_416, %c12_417] : memref<20x80xf32, #tpu.memory_space<vmem>>, vector<16x64xf32>
    %c23_418 = arith.constant 23 : index
    %c0_419 = arith.constant 0 : index
    %563 = vector.load %arg2[%c23_418, %c0_419] : memref<25x64xf32, #tpu.memory_space<vmem>>, vector<1x64xf32>
    %564 = vector.broadcast %563 : vector<1x64xf32> to vector<16x64xf32>
    %565 = arith.mulf %562, %564 : vector<16x64xf32>
    %566 = arith.addf %561, %565 : vector<16x64xf32>
    %c4_420 = arith.constant 4 : index
    %c16_421 = arith.constant 16 : index
    %567 = vector.load %arg10[%c4_420, %c16_421] : memref<20x80xf32, #tpu.memory_space<vmem>>, vector<16x64xf32>
    %c24_422 = arith.constant 24 : index
    %c0_423 = arith.constant 0 : index
    %568 = vector.load %arg2[%c24_422, %c0_423] : memref<25x64xf32, #tpu.memory_space<vmem>>, vector<1x64xf32>
    %569 = vector.broadcast %568 : vector<1x64xf32> to vector<16x64xf32>
    %570 = arith.mulf %567, %569 : vector<16x64xf32>
    %571 = arith.addf %566, %570 : vector<16x64xf32>
    %c0_424 = arith.constant 0 : index
    %c0_425 = arith.constant 0 : index
    %572 = vector.load %arg3[%c0_424, %c0_425] : memref<1x64xf32, #tpu.memory_space<vmem>>, vector<1x64xf32>
    %573 = vector.broadcast %572 : vector<1x64xf32> to vector<16x64xf32>
    %574 = arith.addf %571, %573 : vector<16x64xf32>
    %c9_426 = arith.constant 9 : index
    %c36_427 = arith.constant 36 : index
    %575 = vector.load %arg11[%c9_426, %c36_427] : memref<34x136xf32, #tpu.memory_space<vmem>>, vector<16x64xf32>
    tpu.vector_store %arg11[%c9_426, %c36_427], %574 {strides = array<i32>} : memref<34x136xf32, #tpu.memory_space<vmem>>, vector<16x64xf32>,
    %cst_428 = arith.constant 0.000000e+00 : f32
    %576 = vector.broadcast %cst_428 : f32 to vector<16x64xf32>
    %c0_429 = arith.constant 0 : index
    %c0_430 = arith.constant 0 : index
    %577 = vector.load %arg11[%c0_429, %c0_430] : memref<34x136xf32, #tpu.memory_space<vmem>>, vector<16x64xf32>
    %c0_431 = arith.constant 0 : index
    %c0_432 = arith.constant 0 : index
    %578 = vector.load %arg4[%c0_431, %c0_432] : memref<49x64xf32, #tpu.memory_space<vmem>>, vector<1x64xf32>
    %579 = vector.broadcast %578 : vector<1x64xf32> to vector<16x64xf32>
    %580 = arith.mulf %577, %579 : vector<16x64xf32>
    %581 = arith.addf %576, %580 : vector<16x64xf32>
    %c0_433 = arith.constant 0 : index
    %c12_434 = arith.constant 12 : index
    %582 = vector.load %arg11[%c0_433, %c12_434] : memref<34x136xf32, #tpu.memory_space<vmem>>, vector<16x64xf32>
    %c1_435 = arith.constant 1 : index
    %c0_436 = arith.constant 0 : index
    %583 = vector.load %arg4[%c1_435, %c0_436] : memref<49x64xf32, #tpu.memory_space<vmem>>, vector<1x64xf32>
    %584 = vector.broadcast %583 : vector<1x64xf32> to vector<16x64xf32>
    %585 = arith.mulf %582, %584 : vector<16x64xf32>
    %586 = arith.addf %581, %585 : vector<16x64xf32>
    %c0_437 = arith.constant 0 : index
    %c24_438 = arith.constant 24 : index
    %587 = vector.load %arg11[%c0_437, %c24_438] : memref<34x136xf32, #tpu.memory_space<vmem>>, vector<16x64xf32>
    %c2_439 = arith.constant 2 : index
    %c0_440 = arith.constant 0 : index
    %588 = vector.load %arg4[%c2_439, %c0_440] : memref<49x64xf32, #tpu.memory_space<vmem>>, vector<1x64xf32>
    %589 = vector.broadcast %588 : vector<1x64xf32> to vector<16x64xf32>
    %590 = arith.mulf %587, %589 : vector<16x64xf32>
    %591 = arith.addf %586, %590 : vector<16x64xf32>
    %c0_441 = arith.constant 0 : index
    %c36_442 = arith.constant 36 : index
    %592 = vector.load %arg11[%c0_441, %c36_442] : memref<34x136xf32, #tpu.memory_space<vmem>>, vector<16x64xf32>
    %c3_443 = arith.constant 3 : index
    %c0_444 = arith.constant 0 : index
    %593 = vector.load %arg4[%c3_443, %c0_444] : memref<49x64xf32, #tpu.memory_space<vmem>>, vector<1x64xf32>
    %594 = vector.broadcast %593 : vector<1x64xf32> to vector<16x64xf32>
    %595 = arith.mulf %592, %594 : vector<16x64xf32>
    %596 = arith.addf %591, %595 : vector<16x64xf32>
    %c0_445 = arith.constant 0 : index
    %c48_446 = arith.constant 48 : index
    %597 = vector.load %arg11[%c0_445, %c48_446] : memref<34x136xf32, #tpu.memory_space<vmem>>, vector<16x64xf32>
    %c4_447 = arith.constant 4 : index
    %c0_448 = arith.constant 0 : index
    %598 = vector.load %arg4[%c4_447, %c0_448] : memref<49x64xf32, #tpu.memory_space<vmem>>, vector<1x64xf32>
    %599 = vector.broadcast %598 : vector<1x64xf32> to vector<16x64xf32>
    %600 = arith.mulf %597, %599 : vector<16x64xf32>
    %601 = arith.addf %596, %600 : vector<16x64xf32>
    %c0_449 = arith.constant 0 : index
    %c60_450 = arith.constant 60 : index
    %602 = vector.load %arg11[%c0_449, %c60_450] : memref<34x136xf32, #tpu.memory_space<vmem>>, vector<16x64xf32>
    %c5_451 = arith.constant 5 : index
    %c0_452 = arith.constant 0 : index
    %603 = vector.load %arg4[%c5_451, %c0_452] : memref<49x64xf32, #tpu.memory_space<vmem>>, vector<1x64xf32>
    %604 = vector.broadcast %603 : vector<1x64xf32> to vector<16x64xf32>
    %605 = arith.mulf %602, %604 : vector<16x64xf32>
    %606 = arith.addf %601, %605 : vector<16x64xf32>
    %c0_453 = arith.constant 0 : index
    %c72_454 = arith.constant 72 : index
    %607 = vector.load %arg11[%c0_453, %c72_454] : memref<34x136xf32, #tpu.memory_space<vmem>>, vector<16x64xf32>
    %c6_455 = arith.constant 6 : index
    %c0_456 = arith.constant 0 : index
    %608 = vector.load %arg4[%c6_455, %c0_456] : memref<49x64xf32, #tpu.memory_space<vmem>>, vector<1x64xf32>
    %609 = vector.broadcast %608 : vector<1x64xf32> to vector<16x64xf32>
    %610 = arith.mulf %607, %609 : vector<16x64xf32>
    %611 = arith.addf %606, %610 : vector<16x64xf32>
    %c3_457 = arith.constant 3 : index
    %c0_458 = arith.constant 0 : index
    %612 = vector.load %arg11[%c3_457, %c0_458] : memref<34x136xf32, #tpu.memory_space<vmem>>, vector<16x64xf32>
    %c7_459 = arith.constant 7 : index
    %c0_460 = arith.constant 0 : index
    %613 = vector.load %arg4[%c7_459, %c0_460] : memref<49x64xf32, #tpu.memory_space<vmem>>, vector<1x64xf32>
    %614 = vector.broadcast %613 : vector<1x64xf32> to vector<16x64xf32>
    %615 = arith.mulf %612, %614 : vector<16x64xf32>
    %616 = arith.addf %611, %615 : vector<16x64xf32>
    %c3_461 = arith.constant 3 : index
    %c12_462 = arith.constant 12 : index
    %617 = vector.load %arg11[%c3_461, %c12_462] : memref<34x136xf32, #tpu.memory_space<vmem>>, vector<16x64xf32>
    %c8_463 = arith.constant 8 : index
    %c0_464 = arith.constant 0 : index
    %618 = vector.load %arg4[%c8_463, %c0_464] : memref<49x64xf32, #tpu.memory_space<vmem>>, vector<1x64xf32>
    %619 = vector.broadcast %618 : vector<1x64xf32> to vector<16x64xf32>
    %620 = arith.mulf %617, %619 : vector<16x64xf32>
    %621 = arith.addf %616, %620 : vector<16x64xf32>
    %c3_465 = arith.constant 3 : index
    %c24_466 = arith.constant 24 : index
    %622 = vector.load %arg11[%c3_465, %c24_466] : memref<34x136xf32, #tpu.memory_space<vmem>>, vector<16x64xf32>
    %c9_467 = arith.constant 9 : index
    %c0_468 = arith.constant 0 : index
    %623 = vector.load %arg4[%c9_467, %c0_468] : memref<49x64xf32, #tpu.memory_space<vmem>>, vector<1x64xf32>
    %624 = vector.broadcast %623 : vector<1x64xf32> to vector<16x64xf32>
    %625 = arith.mulf %622, %624 : vector<16x64xf32>
    %626 = arith.addf %621, %625 : vector<16x64xf32>
    %c3_469 = arith.constant 3 : index
    %c36_470 = arith.constant 36 : index
    %627 = vector.load %arg11[%c3_469, %c36_470] : memref<34x136xf32, #tpu.memory_space<vmem>>, vector<16x64xf32>
    %c10_471 = arith.constant 10 : index
    %c0_472 = arith.constant 0 : index
    %628 = vector.load %arg4[%c10_471, %c0_472] : memref<49x64xf32, #tpu.memory_space<vmem>>, vector<1x64xf32>
    %629 = vector.broadcast %628 : vector<1x64xf32> to vector<16x64xf32>
    %630 = arith.mulf %627, %629 : vector<16x64xf32>
    %631 = arith.addf %626, %630 : vector<16x64xf32>
    %c3_473 = arith.constant 3 : index
    %c48_474 = arith.constant 48 : index
    %632 = vector.load %arg11[%c3_473, %c48_474] : memref<34x136xf32, #tpu.memory_space<vmem>>, vector<16x64xf32>
    %c11_475 = arith.constant 11 : index
    %c0_476 = arith.constant 0 : index
    %633 = vector.load %arg4[%c11_475, %c0_476] : memref<49x64xf32, #tpu.memory_space<vmem>>, vector<1x64xf32>
    %634 = vector.broadcast %633 : vector<1x64xf32> to vector<16x64xf32>
    %635 = arith.mulf %632, %634 : vector<16x64xf32>
    %636 = arith.addf %631, %635 : vector<16x64xf32>
    %c3_477 = arith.constant 3 : index
    %c60_478 = arith.constant 60 : index
    %637 = vector.load %arg11[%c3_477, %c60_478] : memref<34x136xf32, #tpu.memory_space<vmem>>, vector<16x64xf32>
    %c12_479 = arith.constant 12 : index
    %c0_480 = arith.constant 0 : index
    %638 = vector.load %arg4[%c12_479, %c0_480] : memref<49x64xf32, #tpu.memory_space<vmem>>, vector<1x64xf32>
    %639 = vector.broadcast %638 : vector<1x64xf32> to vector<16x64xf32>
    %640 = arith.mulf %637, %639 : vector<16x64xf32>
    %641 = arith.addf %636, %640 : vector<16x64xf32>
    %c3_481 = arith.constant 3 : index
    %c72_482 = arith.constant 72 : index
    %642 = vector.load %arg11[%c3_481, %c72_482] : memref<34x136xf32, #tpu.memory_space<vmem>>, vector<16x64xf32>
    %c13_483 = arith.constant 13 : index
    %c0_484 = arith.constant 0 : index
    %643 = vector.load %arg4[%c13_483, %c0_484] : memref<49x64xf32, #tpu.memory_space<vmem>>, vector<1x64xf32>
    %644 = vector.broadcast %643 : vector<1x64xf32> to vector<16x64xf32>
    %645 = arith.mulf %642, %644 : vector<16x64xf32>
    %646 = arith.addf %641, %645 : vector<16x64xf32>
    %c6_485 = arith.constant 6 : index
    %c0_486 = arith.constant 0 : index
    %647 = vector.load %arg11[%c6_485, %c0_486] : memref<34x136xf32, #tpu.memory_space<vmem>>, vector<16x64xf32>
    %c14_487 = arith.constant 14 : index
    %c0_488 = arith.constant 0 : index
    %648 = vector.load %arg4[%c14_487, %c0_488] : memref<49x64xf32, #tpu.memory_space<vmem>>, vector<1x64xf32>
    %649 = vector.broadcast %648 : vector<1x64xf32> to vector<16x64xf32>
    %650 = arith.mulf %647, %649 : vector<16x64xf32>
    %651 = arith.addf %646, %650 : vector<16x64xf32>
    %c6_489 = arith.constant 6 : index
    %c12_490 = arith.constant 12 : index
    %652 = vector.load %arg11[%c6_489, %c12_490] : memref<34x136xf32, #tpu.memory_space<vmem>>, vector<16x64xf32>
    %c15_491 = arith.constant 15 : index
    %c0_492 = arith.constant 0 : index
    %653 = vector.load %arg4[%c15_491, %c0_492] : memref<49x64xf32, #tpu.memory_space<vmem>>, vector<1x64xf32>
    %654 = vector.broadcast %653 : vector<1x64xf32> to vector<16x64xf32>
    %655 = arith.mulf %652, %654 : vector<16x64xf32>
    %656 = arith.addf %651, %655 : vector<16x64xf32>
    %c6_493 = arith.constant 6 : index
    %c24_494 = arith.constant 24 : index
    %657 = vector.load %arg11[%c6_493, %c24_494] : memref<34x136xf32, #tpu.memory_space<vmem>>, vector<16x64xf32>
    %c16_495 = arith.constant 16 : index
    %c0_496 = arith.constant 0 : index
    %658 = vector.load %arg4[%c16_495, %c0_496] : memref<49x64xf32, #tpu.memory_space<vmem>>, vector<1x64xf32>
    %659 = vector.broadcast %658 : vector<1x64xf32> to vector<16x64xf32>
    %660 = arith.mulf %657, %659 : vector<16x64xf32>
    %661 = arith.addf %656, %660 : vector<16x64xf32>
    %c6_497 = arith.constant 6 : index
    %c36_498 = arith.constant 36 : index
    %662 = vector.load %arg11[%c6_497, %c36_498] : memref<34x136xf32, #tpu.memory_space<vmem>>, vector<16x64xf32>
    %c17_499 = arith.constant 17 : index
    %c0_500 = arith.constant 0 : index
    %663 = vector.load %arg4[%c17_499, %c0_500] : memref<49x64xf32, #tpu.memory_space<vmem>>, vector<1x64xf32>
    %664 = vector.broadcast %663 : vector<1x64xf32> to vector<16x64xf32>
    %665 = arith.mulf %662, %664 : vector<16x64xf32>
    %666 = arith.addf %661, %665 : vector<16x64xf32>
    %c6_501 = arith.constant 6 : index
    %c48_502 = arith.constant 48 : index
    %667 = vector.load %arg11[%c6_501, %c48_502] : memref<34x136xf32, #tpu.memory_space<vmem>>, vector<16x64xf32>
    %c18_503 = arith.constant 18 : index
    %c0_504 = arith.constant 0 : index
    %668 = vector.load %arg4[%c18_503, %c0_504] : memref<49x64xf32, #tpu.memory_space<vmem>>, vector<1x64xf32>
    %669 = vector.broadcast %668 : vector<1x64xf32> to vector<16x64xf32>
    %670 = arith.mulf %667, %669 : vector<16x64xf32>
    %671 = arith.addf %666, %670 : vector<16x64xf32>
    %c6_505 = arith.constant 6 : index
    %c60_506 = arith.constant 60 : index
    %672 = vector.load %arg11[%c6_505, %c60_506] : memref<34x136xf32, #tpu.memory_space<vmem>>, vector<16x64xf32>
    %c19_507 = arith.constant 19 : index
    %c0_508 = arith.constant 0 : index
    %673 = vector.load %arg4[%c19_507, %c0_508] : memref<49x64xf32, #tpu.memory_space<vmem>>, vector<1x64xf32>
    %674 = vector.broadcast %673 : vector<1x64xf32> to vector<16x64xf32>
    %675 = arith.mulf %672, %674 : vector<16x64xf32>
    %676 = arith.addf %671, %675 : vector<16x64xf32>
    %c6_509 = arith.constant 6 : index
    %c72_510 = arith.constant 72 : index
    %677 = vector.load %arg11[%c6_509, %c72_510] : memref<34x136xf32, #tpu.memory_space<vmem>>, vector<16x64xf32>
    %c20_511 = arith.constant 20 : index
    %c0_512 = arith.constant 0 : index
    %678 = vector.load %arg4[%c20_511, %c0_512] : memref<49x64xf32, #tpu.memory_space<vmem>>, vector<1x64xf32>
    %679 = vector.broadcast %678 : vector<1x64xf32> to vector<16x64xf32>
    %680 = arith.mulf %677, %679 : vector<16x64xf32>
    %681 = arith.addf %676, %680 : vector<16x64xf32>
    %c9_513 = arith.constant 9 : index
    %c0_514 = arith.constant 0 : index
    %682 = vector.load %arg11[%c9_513, %c0_514] : memref<34x136xf32, #tpu.memory_space<vmem>>, vector<16x64xf32>
    %c21_515 = arith.constant 21 : index
    %c0_516 = arith.constant 0 : index
    %683 = vector.load %arg4[%c21_515, %c0_516] : memref<49x64xf32, #tpu.memory_space<vmem>>, vector<1x64xf32>
    %684 = vector.broadcast %683 : vector<1x64xf32> to vector<16x64xf32>
    %685 = arith.mulf %682, %684 : vector<16x64xf32>
    %686 = arith.addf %681, %685 : vector<16x64xf32>
    %c9_517 = arith.constant 9 : index
    %c12_518 = arith.constant 12 : index
    %687 = vector.load %arg11[%c9_517, %c12_518] : memref<34x136xf32, #tpu.memory_space<vmem>>, vector<16x64xf32>
    %c22_519 = arith.constant 22 : index
    %c0_520 = arith.constant 0 : index
    %688 = vector.load %arg4[%c22_519, %c0_520] : memref<49x64xf32, #tpu.memory_space<vmem>>, vector<1x64xf32>
    %689 = vector.broadcast %688 : vector<1x64xf32> to vector<16x64xf32>
    %690 = arith.mulf %687, %689 : vector<16x64xf32>
    %691 = arith.addf %686, %690 : vector<16x64xf32>
    %c9_521 = arith.constant 9 : index
    %c24_522 = arith.constant 24 : index
    %692 = vector.load %arg11[%c9_521, %c24_522] : memref<34x136xf32, #tpu.memory_space<vmem>>, vector<16x64xf32>
    %c23_523 = arith.constant 23 : index
    %c0_524 = arith.constant 0 : index
    %693 = vector.load %arg4[%c23_523, %c0_524] : memref<49x64xf32, #tpu.memory_space<vmem>>, vector<1x64xf32>
    %694 = vector.broadcast %693 : vector<1x64xf32> to vector<16x64xf32>
    %695 = arith.mulf %692, %694 : vector<16x64xf32>
    %696 = arith.addf %691, %695 : vector<16x64xf32>
    %c9_525 = arith.constant 9 : index
    %c36_526 = arith.constant 36 : index
    %697 = vector.load %arg11[%c9_525, %c36_526] : memref<34x136xf32, #tpu.memory_space<vmem>>, vector<16x64xf32>
    %c24_527 = arith.constant 24 : index
    %c0_528 = arith.constant 0 : index
    %698 = vector.load %arg4[%c24_527, %c0_528] : memref<49x64xf32, #tpu.memory_space<vmem>>, vector<1x64xf32>
    %699 = vector.broadcast %698 : vector<1x64xf32> to vector<16x64xf32>
    %700 = arith.mulf %697, %699 : vector<16x64xf32>
    %701 = arith.addf %696, %700 : vector<16x64xf32>
    %c9_529 = arith.constant 9 : index
    %c48_530 = arith.constant 48 : index
    %702 = vector.load %arg11[%c9_529, %c48_530] : memref<34x136xf32, #tpu.memory_space<vmem>>, vector<16x64xf32>
    %c25_531 = arith.constant 25 : index
    %c0_532 = arith.constant 0 : index
    %703 = vector.load %arg4[%c25_531, %c0_532] : memref<49x64xf32, #tpu.memory_space<vmem>>, vector<1x64xf32>
    %704 = vector.broadcast %703 : vector<1x64xf32> to vector<16x64xf32>
    %705 = arith.mulf %702, %704 : vector<16x64xf32>
    %706 = arith.addf %701, %705 : vector<16x64xf32>
    %c9_533 = arith.constant 9 : index
    %c60_534 = arith.constant 60 : index
    %707 = vector.load %arg11[%c9_533, %c60_534] : memref<34x136xf32, #tpu.memory_space<vmem>>, vector<16x64xf32>
    %c26_535 = arith.constant 26 : index
    %c0_536 = arith.constant 0 : index
    %708 = vector.load %arg4[%c26_535, %c0_536] : memref<49x64xf32, #tpu.memory_space<vmem>>, vector<1x64xf32>
    %709 = vector.broadcast %708 : vector<1x64xf32> to vector<16x64xf32>
    %710 = arith.mulf %707, %709 : vector<16x64xf32>
    %711 = arith.addf %706, %710 : vector<16x64xf32>
    %c9_537 = arith.constant 9 : index
    %c72_538 = arith.constant 72 : index
    %712 = vector.load %arg11[%c9_537, %c72_538] : memref<34x136xf32, #tpu.memory_space<vmem>>, vector<16x64xf32>
    %c27_539 = arith.constant 27 : index
    %c0_540 = arith.constant 0 : index
    %713 = vector.load %arg4[%c27_539, %c0_540] : memref<49x64xf32, #tpu.memory_space<vmem>>, vector<1x64xf32>
    %714 = vector.broadcast %713 : vector<1x64xf32> to vector<16x64xf32>
    %715 = arith.mulf %712, %714 : vector<16x64xf32>
    %716 = arith.addf %711, %715 : vector<16x64xf32>
    %c12_541 = arith.constant 12 : index
    %c0_542 = arith.constant 0 : index
    %717 = vector.load %arg11[%c12_541, %c0_542] : memref<34x136xf32, #tpu.memory_space<vmem>>, vector<16x64xf32>
    %c28_543 = arith.constant 28 : index
    %c0_544 = arith.constant 0 : index
    %718 = vector.load %arg4[%c28_543, %c0_544] : memref<49x64xf32, #tpu.memory_space<vmem>>, vector<1x64xf32>
    %719 = vector.broadcast %718 : vector<1x64xf32> to vector<16x64xf32>
    %720 = arith.mulf %717, %719 : vector<16x64xf32>
    %721 = arith.addf %716, %720 : vector<16x64xf32>
    %c12_545 = arith.constant 12 : index
    %c12_546 = arith.constant 12 : index
    %722 = vector.load %arg11[%c12_545, %c12_546] : memref<34x136xf32, #tpu.memory_space<vmem>>, vector<16x64xf32>
    %c29_547 = arith.constant 29 : index
    %c0_548 = arith.constant 0 : index
    %723 = vector.load %arg4[%c29_547, %c0_548] : memref<49x64xf32, #tpu.memory_space<vmem>>, vector<1x64xf32>
    %724 = vector.broadcast %723 : vector<1x64xf32> to vector<16x64xf32>
    %725 = arith.mulf %722, %724 : vector<16x64xf32>
    %726 = arith.addf %721, %725 : vector<16x64xf32>
    %c12_549 = arith.constant 12 : index
    %c24_550 = arith.constant 24 : index
    %727 = vector.load %arg11[%c12_549, %c24_550] : memref<34x136xf32, #tpu.memory_space<vmem>>, vector<16x64xf32>
    %c30_551 = arith.constant 30 : index
    %c0_552 = arith.constant 0 : index
    %728 = vector.load %arg4[%c30_551, %c0_552] : memref<49x64xf32, #tpu.memory_space<vmem>>, vector<1x64xf32>
    %729 = vector.broadcast %728 : vector<1x64xf32> to vector<16x64xf32>
    %730 = arith.mulf %727, %729 : vector<16x64xf32>
    %731 = arith.addf %726, %730 : vector<16x64xf32>
    %c12_553 = arith.constant 12 : index
    %c36_554 = arith.constant 36 : index
    %732 = vector.load %arg11[%c12_553, %c36_554] : memref<34x136xf32, #tpu.memory_space<vmem>>, vector<16x64xf32>
    %c31_555 = arith.constant 31 : index
    %c0_556 = arith.constant 0 : index
    %733 = vector.load %arg4[%c31_555, %c0_556] : memref<49x64xf32, #tpu.memory_space<vmem>>, vector<1x64xf32>
    %734 = vector.broadcast %733 : vector<1x64xf32> to vector<16x64xf32>
    %735 = arith.mulf %732, %734 : vector<16x64xf32>
    %736 = arith.addf %731, %735 : vector<16x64xf32>
    %c12_557 = arith.constant 12 : index
    %c48_558 = arith.constant 48 : index
    %737 = vector.load %arg11[%c12_557, %c48_558] : memref<34x136xf32, #tpu.memory_space<vmem>>, vector<16x64xf32>
    %c32_559 = arith.constant 32 : index
    %c0_560 = arith.constant 0 : index
    %738 = vector.load %arg4[%c32_559, %c0_560] : memref<49x64xf32, #tpu.memory_space<vmem>>, vector<1x64xf32>
    %739 = vector.broadcast %738 : vector<1x64xf32> to vector<16x64xf32>
    %740 = arith.mulf %737, %739 : vector<16x64xf32>
    %741 = arith.addf %736, %740 : vector<16x64xf32>
    %c12_561 = arith.constant 12 : index
    %c60_562 = arith.constant 60 : index
    %742 = vector.load %arg11[%c12_561, %c60_562] : memref<34x136xf32, #tpu.memory_space<vmem>>, vector<16x64xf32>
    %c33_563 = arith.constant 33 : index
    %c0_564 = arith.constant 0 : index
    %743 = vector.load %arg4[%c33_563, %c0_564] : memref<49x64xf32, #tpu.memory_space<vmem>>, vector<1x64xf32>
    %744 = vector.broadcast %743 : vector<1x64xf32> to vector<16x64xf32>
    %745 = arith.mulf %742, %744 : vector<16x64xf32>
    %746 = arith.addf %741, %745 : vector<16x64xf32>
    %c12_565 = arith.constant 12 : index
    %c72_566 = arith.constant 72 : index
    %747 = vector.load %arg11[%c12_565, %c72_566] : memref<34x136xf32, #tpu.memory_space<vmem>>, vector<16x64xf32>
    %c34_567 = arith.constant 34 : index
    %c0_568 = arith.constant 0 : index
    %748 = vector.load %arg4[%c34_567, %c0_568] : memref<49x64xf32, #tpu.memory_space<vmem>>, vector<1x64xf32>
    %749 = vector.broadcast %748 : vector<1x64xf32> to vector<16x64xf32>
    %750 = arith.mulf %747, %749 : vector<16x64xf32>
    %751 = arith.addf %746, %750 : vector<16x64xf32>
    %c15_569 = arith.constant 15 : index
    %c0_570 = arith.constant 0 : index
    %752 = vector.load %arg11[%c15_569, %c0_570] : memref<34x136xf32, #tpu.memory_space<vmem>>, vector<16x64xf32>
    %c35_571 = arith.constant 35 : index
    %c0_572 = arith.constant 0 : index
    %753 = vector.load %arg4[%c35_571, %c0_572] : memref<49x64xf32, #tpu.memory_space<vmem>>, vector<1x64xf32>
    %754 = vector.broadcast %753 : vector<1x64xf32> to vector<16x64xf32>
    %755 = arith.mulf %752, %754 : vector<16x64xf32>
    %756 = arith.addf %751, %755 : vector<16x64xf32>
    %c15_573 = arith.constant 15 : index
    %c12_574 = arith.constant 12 : index
    %757 = vector.load %arg11[%c15_573, %c12_574] : memref<34x136xf32, #tpu.memory_space<vmem>>, vector<16x64xf32>
    %c36_575 = arith.constant 36 : index
    %c0_576 = arith.constant 0 : index
    %758 = vector.load %arg4[%c36_575, %c0_576] : memref<49x64xf32, #tpu.memory_space<vmem>>, vector<1x64xf32>
    %759 = vector.broadcast %758 : vector<1x64xf32> to vector<16x64xf32>
    %760 = arith.mulf %757, %759 : vector<16x64xf32>
    %761 = arith.addf %756, %760 : vector<16x64xf32>
    %c15_577 = arith.constant 15 : index
    %c24_578 = arith.constant 24 : index
    %762 = vector.load %arg11[%c15_577, %c24_578] : memref<34x136xf32, #tpu.memory_space<vmem>>, vector<16x64xf32>
    %c37_579 = arith.constant 37 : index
    %c0_580 = arith.constant 0 : index
    %763 = vector.load %arg4[%c37_579, %c0_580] : memref<49x64xf32, #tpu.memory_space<vmem>>, vector<1x64xf32>
    %764 = vector.broadcast %763 : vector<1x64xf32> to vector<16x64xf32>
    %765 = arith.mulf %762, %764 : vector<16x64xf32>
    %766 = arith.addf %761, %765 : vector<16x64xf32>
    %c15_581 = arith.constant 15 : index
    %c36_582 = arith.constant 36 : index
    %767 = vector.load %arg11[%c15_581, %c36_582] : memref<34x136xf32, #tpu.memory_space<vmem>>, vector<16x64xf32>
    %c38_583 = arith.constant 38 : index
    %c0_584 = arith.constant 0 : index
    %768 = vector.load %arg4[%c38_583, %c0_584] : memref<49x64xf32, #tpu.memory_space<vmem>>, vector<1x64xf32>
    %769 = vector.broadcast %768 : vector<1x64xf32> to vector<16x64xf32>
    %770 = arith.mulf %767, %769 : vector<16x64xf32>
    %771 = arith.addf %766, %770 : vector<16x64xf32>
    %c15_585 = arith.constant 15 : index
    %c48_586 = arith.constant 48 : index
    %772 = vector.load %arg11[%c15_585, %c48_586] : memref<34x136xf32, #tpu.memory_space<vmem>>, vector<16x64xf32>
    %c39_587 = arith.constant 39 : index
    %c0_588 = arith.constant 0 : index
    %773 = vector.load %arg4[%c39_587, %c0_588] : memref<49x64xf32, #tpu.memory_space<vmem>>, vector<1x64xf32>
    %774 = vector.broadcast %773 : vector<1x64xf32> to vector<16x64xf32>
    %775 = arith.mulf %772, %774 : vector<16x64xf32>
    %776 = arith.addf %771, %775 : vector<16x64xf32>
    %c15_589 = arith.constant 15 : index
    %c60_590 = arith.constant 60 : index
    %777 = vector.load %arg11[%c15_589, %c60_590] : memref<34x136xf32, #tpu.memory_space<vmem>>, vector<16x64xf32>
    %c40_591 = arith.constant 40 : index
    %c0_592 = arith.constant 0 : index
    %778 = vector.load %arg4[%c40_591, %c0_592] : memref<49x64xf32, #tpu.memory_space<vmem>>, vector<1x64xf32>
    %779 = vector.broadcast %778 : vector<1x64xf32> to vector<16x64xf32>
    %780 = arith.mulf %777, %779 : vector<16x64xf32>
    %781 = arith.addf %776, %780 : vector<16x64xf32>
    %c15_593 = arith.constant 15 : index
    %c72_594 = arith.constant 72 : index
    %782 = vector.load %arg11[%c15_593, %c72_594] : memref<34x136xf32, #tpu.memory_space<vmem>>, vector<16x64xf32>
    %c41_595 = arith.constant 41 : index
    %c0_596 = arith.constant 0 : index
    %783 = vector.load %arg4[%c41_595, %c0_596] : memref<49x64xf32, #tpu.memory_space<vmem>>, vector<1x64xf32>
    %784 = vector.broadcast %783 : vector<1x64xf32> to vector<16x64xf32>
    %785 = arith.mulf %782, %784 : vector<16x64xf32>
    %786 = arith.addf %781, %785 : vector<16x64xf32>
    %c18_597 = arith.constant 18 : index
    %c0_598 = arith.constant 0 : index
    %787 = vector.load %arg11[%c18_597, %c0_598] : memref<34x136xf32, #tpu.memory_space<vmem>>, vector<16x64xf32>
    %c42_599 = arith.constant 42 : index
    %c0_600 = arith.constant 0 : index
    %788 = vector.load %arg4[%c42_599, %c0_600] : memref<49x64xf32, #tpu.memory_space<vmem>>, vector<1x64xf32>
    %789 = vector.broadcast %788 : vector<1x64xf32> to vector<16x64xf32>
    %790 = arith.mulf %787, %789 : vector<16x64xf32>
    %791 = arith.addf %786, %790 : vector<16x64xf32>
    %c18_601 = arith.constant 18 : index
    %c12_602 = arith.constant 12 : index
    %792 = vector.load %arg11[%c18_601, %c12_602] : memref<34x136xf32, #tpu.memory_space<vmem>>, vector<16x64xf32>
    %c43_603 = arith.constant 43 : index
    %c0_604 = arith.constant 0 : index
    %793 = vector.load %arg4[%c43_603, %c0_604] : memref<49x64xf32, #tpu.memory_space<vmem>>, vector<1x64xf32>
    %794 = vector.broadcast %793 : vector<1x64xf32> to vector<16x64xf32>
    %795 = arith.mulf %792, %794 : vector<16x64xf32>
    %796 = arith.addf %791, %795 : vector<16x64xf32>
    %c18_605 = arith.constant 18 : index
    %c24_606 = arith.constant 24 : index
    %797 = vector.load %arg11[%c18_605, %c24_606] : memref<34x136xf32, #tpu.memory_space<vmem>>, vector<16x64xf32>
    %c44_607 = arith.constant 44 : index
    %c0_608 = arith.constant 0 : index
    %798 = vector.load %arg4[%c44_607, %c0_608] : memref<49x64xf32, #tpu.memory_space<vmem>>, vector<1x64xf32>
    %799 = vector.broadcast %798 : vector<1x64xf32> to vector<16x64xf32>
    %800 = arith.mulf %797, %799 : vector<16x64xf32>
    %801 = arith.addf %796, %800 : vector<16x64xf32>
    %c18_609 = arith.constant 18 : index
    %c36_610 = arith.constant 36 : index
    %802 = vector.load %arg11[%c18_609, %c36_610] : memref<34x136xf32, #tpu.memory_space<vmem>>, vector<16x64xf32>
    %c45_611 = arith.constant 45 : index
    %c0_612 = arith.constant 0 : index
    %803 = vector.load %arg4[%c45_611, %c0_612] : memref<49x64xf32, #tpu.memory_space<vmem>>, vector<1x64xf32>
    %804 = vector.broadcast %803 : vector<1x64xf32> to vector<16x64xf32>
    %805 = arith.mulf %802, %804 : vector<16x64xf32>
    %806 = arith.addf %801, %805 : vector<16x64xf32>
    %c18_613 = arith.constant 18 : index
    %c48_614 = arith.constant 48 : index
    %807 = vector.load %arg11[%c18_613, %c48_614] : memref<34x136xf32, #tpu.memory_space<vmem>>, vector<16x64xf32>
    %c46_615 = arith.constant 46 : index
    %c0_616 = arith.constant 0 : index
    %808 = vector.load %arg4[%c46_615, %c0_616] : memref<49x64xf32, #tpu.memory_space<vmem>>, vector<1x64xf32>
    %809 = vector.broadcast %808 : vector<1x64xf32> to vector<16x64xf32>
    %810 = arith.mulf %807, %809 : vector<16x64xf32>
    %811 = arith.addf %806, %810 : vector<16x64xf32>
    %c18_617 = arith.constant 18 : index
    %c60_618 = arith.constant 60 : index
    %812 = vector.load %arg11[%c18_617, %c60_618] : memref<34x136xf32, #tpu.memory_space<vmem>>, vector<16x64xf32>
    %c47_619 = arith.constant 47 : index
    %c0_620 = arith.constant 0 : index
    %813 = vector.load %arg4[%c47_619, %c0_620] : memref<49x64xf32, #tpu.memory_space<vmem>>, vector<1x64xf32>
    %814 = vector.broadcast %813 : vector<1x64xf32> to vector<16x64xf32>
    %815 = arith.mulf %812, %814 : vector<16x64xf32>
    %816 = arith.addf %811, %815 : vector<16x64xf32>
    %c18_621 = arith.constant 18 : index
    %c72_622 = arith.constant 72 : index
    %817 = vector.load %arg11[%c18_621, %c72_622] : memref<34x136xf32, #tpu.memory_space<vmem>>, vector<16x64xf32>
    %c48_623 = arith.constant 48 : index
    %c0_624 = arith.constant 0 : index
    %818 = vector.load %arg4[%c48_623, %c0_624] : memref<49x64xf32, #tpu.memory_space<vmem>>, vector<1x64xf32>
    %819 = vector.broadcast %818 : vector<1x64xf32> to vector<16x64xf32>
    %820 = arith.mulf %817, %819 : vector<16x64xf32>
    %821 = arith.addf %816, %820 : vector<16x64xf32>
    %c0_625 = arith.constant 0 : index
    %c0_626 = arith.constant 0 : index
    %822 = vector.load %arg5[%c0_625, %c0_626] : memref<1x64xf32, #tpu.memory_space<vmem>>, vector<1x64xf32>
    %823 = vector.broadcast %822 : vector<1x64xf32> to vector<16x64xf32>
    %824 = arith.addf %821, %823 : vector<16x64xf32>
    %c0_627 = arith.constant 0 : index
    %c4_628 = arith.constant 4 : index
    %825 = vector.load %arg12[%c0_627, %c4_628] : memref<16x72xf32, #tpu.memory_space<vmem>>, vector<16x64xf32>
    tpu.vector_store %arg12[%c0_627, %c4_628], %824 {strides = array<i32>} : memref<16x72xf32, #tpu.memory_space<vmem>>, vector<16x64xf32>,
    %c0_629 = arith.constant 0 : index
    %c0_630 = arith.constant 0 : index
    %826 = vector.load %arg6[%c0_629, %c0_630] : memref<4x64xf32, #tpu.memory_space<vmem>>, vector<1x64xf32>
    %827 = vector.broadcast %826 : vector<1x64xf32> to vector<16x64xf32>
    %828 = arith.mulf %824, %827 : vector<16x64xf32>
    %c0_631 = arith.constant 0 : index
    %c0_632 = arith.constant 0 : index
    %829 = vector.load %arg8[%c0_631, %c0_632] : memref<1x64xf32, #tpu.memory_space<vmem>>, vector<1x64xf32>
    %830 = vector.broadcast %829 : vector<1x64xf32> to vector<16x64xf32>
    %831 = arith.addf %828, %830 : vector<16x64xf32>
    %c0_633 = arith.constant 0 : index
    %c3_634 = arith.constant 3 : index
    %832 = vector.load %arg12[%c0_633, %c3_634] : memref<16x72xf32, #tpu.memory_space<vmem>>, vector<16x64xf32>
    %c0_635 = arith.constant 0 : index
    %c7_636 = arith.constant 7 : index
    %833 = vector.load %arg12[%c0_635, %c7_636] : memref<16x72xf32, #tpu.memory_space<vmem>>, vector<16x64xf32>
    %c1_637 = arith.constant 1 : index
    %c0_638 = arith.constant 0 : index
    %834 = vector.load %arg6[%c1_637, %c0_638] : memref<4x64xf32, #tpu.memory_space<vmem>>, vector<1x64xf32>
    %835 = vector.broadcast %834 : vector<1x64xf32> to vector<16x64xf32>
    %836 = arith.mulf %832, %835 : vector<16x64xf32>
    %837 = arith.addf %831, %836 : vector<16x64xf32>
    %c1_639 = arith.constant 1 : index
    %c0_640 = arith.constant 0 : index
    %838 = vector.load %arg7[%c1_639, %c0_640] : memref<4x64xf32, #tpu.memory_space<vmem>>, vector<1x64xf32>
    %839 = vector.broadcast %838 : vector<1x64xf32> to vector<16x64xf32>
    %840 = arith.mulf %833, %839 : vector<16x64xf32>
    %841 = arith.addf %837, %840 : vector<16x64xf32>
    %c0_641 = arith.constant 0 : index
    %c2_642 = arith.constant 2 : index
    %842 = vector.load %arg12[%c0_641, %c2_642] : memref<16x72xf32, #tpu.memory_space<vmem>>, vector<16x64xf32>
    %c0_643 = arith.constant 0 : index
    %c6_644 = arith.constant 6 : index
    %843 = vector.load %arg12[%c0_643, %c6_644] : memref<16x72xf32, #tpu.memory_space<vmem>>, vector<16x64xf32>
    %c2_645 = arith.constant 2 : index
    %c0_646 = arith.constant 0 : index
    %844 = vector.load %arg6[%c2_645, %c0_646] : memref<4x64xf32, #tpu.memory_space<vmem>>, vector<1x64xf32>
    %845 = vector.broadcast %844 : vector<1x64xf32> to vector<16x64xf32>
    %846 = arith.mulf %842, %845 : vector<16x64xf32>
    %847 = arith.addf %841, %846 : vector<16x64xf32>
    %c2_647 = arith.constant 2 : index
    %c0_648 = arith.constant 0 : index
    %848 = vector.load %arg7[%c2_647, %c0_648] : memref<4x64xf32, #tpu.memory_space<vmem>>, vector<1x64xf32>
    %849 = vector.broadcast %848 : vector<1x64xf32> to vector<16x64xf32>
    %850 = arith.mulf %843, %849 : vector<16x64xf32>
    %851 = arith.addf %847, %850 : vector<16x64xf32>
    %c0_649 = arith.constant 0 : index
    %c1_650 = arith.constant 1 : index
    %852 = vector.load %arg12[%c0_649, %c1_650] : memref<16x72xf32, #tpu.memory_space<vmem>>, vector<16x64xf32>
    %c0_651 = arith.constant 0 : index
    %c5_652 = arith.constant 5 : index
    %853 = vector.load %arg12[%c0_651, %c5_652] : memref<16x72xf32, #tpu.memory_space<vmem>>, vector<16x64xf32>
    %c3_653 = arith.constant 3 : index
    %c0_654 = arith.constant 0 : index
    %854 = vector.load %arg6[%c3_653, %c0_654] : memref<4x64xf32, #tpu.memory_space<vmem>>, vector<1x64xf32>
    %855 = vector.broadcast %854 : vector<1x64xf32> to vector<16x64xf32>
    %856 = arith.mulf %852, %855 : vector<16x64xf32>
    %857 = arith.addf %851, %856 : vector<16x64xf32>
    %c3_655 = arith.constant 3 : index
    %c0_656 = arith.constant 0 : index
    %858 = vector.load %arg7[%c3_655, %c0_656] : memref<4x64xf32, #tpu.memory_space<vmem>>, vector<1x64xf32>
    %859 = vector.broadcast %858 : vector<1x64xf32> to vector<16x64xf32>
    %860 = arith.mulf %853, %859 : vector<16x64xf32>
    %861 = arith.addf %857, %860 : vector<16x64xf32>
    %862 = arith.mulf %444, %861 : vector<16x64xf32>
    %c1_657 = arith.constant 1 : index
    %c0_658 = arith.constant 0 : index
    %c0_659 = arith.constant 0 : index
    %863 = vector.load %arg9[%c1_657, %c0_658, %c0_659] : memref<2x16x64xf32, #tpu.memory_space<vmem>>, vector<1x16x64xf32>
    %864 = vector.shape_cast %863 : vector<1x16x64xf32> to vector<16x64xf32>
    %865 = vector.shape_cast %862 : vector<16x64xf32> to vector<1x16x64xf32>
    tpu.vector_store %arg9[%c1_657, %c0_658, %c0_659], %865 {strides = array<i32>} : memref<2x16x64xf32, #tpu.memory_space<vmem>>, vector<1x16x64xf32>,
    return
  }
  func.func @transform_0(%arg0: i32) -> (i32, i32, i32) {
    %c0_i32 = arith.constant 0 : i32
    %c0_i32_0 = arith.constant 0 : i32
    %c0_i32_1 = arith.constant 0 : i32
    return %arg0, %c0_i32, %c0_i32_0 : i32, i32, i32
  }
  func.func @transform_1(%arg0: i32) -> (i32, i32) {
    %c0_i32 = arith.constant 0 : i32
    %c0_i32_0 = arith.constant 0 : i32
    %c0_i32_1 = arith.constant 0 : i32
    return %c0_i32, %c0_i32_0 : i32, i32
  }
  func.func @transform_2(%arg0: i32) -> (i32, i32) {
    %c0_i32 = arith.constant 0 : i32
    %c0_i32_0 = arith.constant 0 : i32
    %c0_i32_1 = arith.constant 0 : i32
    return %c0_i32, %c0_i32_0 : i32, i32
  }
  func.func @transform_3(%arg0: i32) -> (i32, i32) {
    %c0_i32 = arith.constant 0 : i32
    %c0_i32_0 = arith.constant 0 : i32
    %c0_i32_1 = arith.constant 0 : i32
    return %c0_i32, %c0_i32_0 : i32, i32
  }
  func.func @transform_4(%arg0: i32) -> (i32, i32) {
    %c0_i32 = arith.constant 0 : i32
    %c0_i32_0 = arith.constant 0 : i32
    %c0_i32_1 = arith.constant 0 : i32
    return %c0_i32, %c0_i32_0 : i32, i32
  }
  func.func @transform_5(%arg0: i32) -> (i32, i32) {
    %c0_i32 = arith.constant 0 : i32
    %c0_i32_0 = arith.constant 0 : i32
    %c0_i32_1 = arith.constant 0 : i32
    return %c0_i32, %c0_i32_0 : i32, i32
  }
  func.func @transform_6(%arg0: i32) -> (i32, i32) {
    %c0_i32 = arith.constant 0 : i32
    %c0_i32_0 = arith.constant 0 : i32
    %c0_i32_1 = arith.constant 0 : i32
    return %c0_i32, %c0_i32_0 : i32, i32
  }
  func.func @transform_7(%arg0: i32) -> (i32, i32) {
    %c0_i32 = arith.constant 0 : i32
    %c0_i32_0 = arith.constant 0 : i32
    %c0_i32_1 = arith.constant 0 : i32
    return %c0_i32, %c0_i32_0 : i32, i32
  }
  func.func @transform_8(%arg0: i32) -> (i32, i32, i32) {
    %c0_i32 = arith.constant 0 : i32
    %c0_i32_0 = arith.constant 0 : i32
    %c0_i32_1 = arith.constant 0 : i32
    return %arg0, %c0_i32, %c0_i32_0 : i32, i32, i32
  }
}

</mosaic_0001>

<bundles_post_ra>
// kernel: tpu_custom_call.1
= control target key start
LH: loop header
LB: loop body
LE: loop exit
PB: predicated region body
PF: predicated region fallthrough
CT: control target
= control target key end

     0   :  { %13 = vsyncpa [#allocation6], 0  ;;  %s7270_s0 = inlined_call_operand.hbm [shape: f32[2,16,64], index: 0, kind: input, shape index: {}]   ;;  %s7271_s1 = inlined_call_operand.hbm [shape: f32[25,64], index: 1, kind: input, shape index: {}]   ;;  %s7272_s2 = inlined_call_operand.vmem [shape: f32[1,64], index: 2, kind: input, shape index: {}]   ;;  %s7273_s3 = inlined_call_operand.hbm [shape: f32[49,64], index: 3, kind: input, shape index: {}]   ;;  %s7274_s4 = inlined_call_operand.hbm [shape: f32[1,64], index: 4, kind: input, shape index: {}]   ;;  %s7275_s5 = inlined_call_operand.vmem [shape: f32[4,64], index: 5, kind: input, shape index: {}]   ;;  %s7276_s6 = inlined_call_operand.vmem [shape: f32[4,64], index: 6, kind: input, shape index: {}]   ;;  %s7277_s7 = inlined_call_operand.vmem [shape: f32[1,64], index: 7, kind: input, shape index: {}]   ;;  %s7278_s8 = inlined_call_operand.hbm [shape: f32[2,16,64], index: 8, kind: output, shape index: {}]  }
   0x1   :  { %14 = vsyncpa [#allocation9], 0 }
   0x2   :  { %15 = vsyncpa [#allocation12], 0 }
   0x3   :  { %16 = vsyncpa [#allocation7], 0  ;;  %s4671_s27 = smov [#allocation8]   ;;  %s4672_s29 = smov [#allocation5]  }
   0x4   :  { %s34_s28 = sshll.u32 %s4671_s27, 4  ;;  %s22_s30 = sshll.u32 %s4672_s29, 4  ;;  %s35_s28 = int_to_ptr.vmem [resolvable:$true] %s34_s28  ;;  %s23_s30 = int_to_ptr.vmem [resolvable:$true] %s22_s30 }
   0x5   :  { %s4571_s9 = scalar_lea.vmem %s35_s28, 512  ;;  %p4576_p1 = scmp.lt.s32.totalorder %s35_s28, %s35_s28 }
   0x6   :  { %p4572_p0 = scmp.ne.s32.totalorder %s35_s28, %s4571_s9  ;;  %p4577_p2 = scmp.lt.s32.totalorder %s4571_s9, %s4571_s9 }
   0x8   :  { %p4578_p3 = por %p4577_p2, %p4576_p1 }
   0xa   :  { %p4579_p4 = pnand %p4578_p3, %p4572_p0 }
   0xc   :  { %4582 = shalt.err (!%p4579_p4)
}
   0xd   :  { %s4673_s10 = smov 128   ;;  %s4674_s11 = smov 8  }
   0xe   :  { %40 = dma.hbm_to_vmem [thread:$0]  %s7271_s1, 512, %s35_s28, [#allocation9], %s4673_s10, %s4673_s10, %s4674_s11  }
   0xf   :  { %s4591_s14 = scalar_lea.vmem %s23_s30, 512  ;;  %p4596_p6 = scmp.lt.s32.totalorder %s23_s30, %s23_s30 }
  0x10   :  { %p4592_p5 = scmp.ne.s32.totalorder %s23_s30, %s4591_s14  ;;  %p4597_p7 = scmp.lt.s32.totalorder %s4591_s14, %s4591_s14 }
  0x12   :  { %p4598_p8 = por %p4597_p7, %p4596_p6 }
  0x14   :  { %p4599_p9 = pnand %p4598_p8, %p4592_p5 }
  0x16   :  { %4602 = shalt.err (!%p4599_p9)
}
  0x17   :  { %28 = dma.hbm_to_vmem [thread:$0]  %s7270_s0, 512, %s23_s30, [#allocation6], %s4673_s10, %s4673_s10, %s4674_s11  }
  0x18   :  { %s4675_s17 = smov [#allocation10]   ;;  %s4676_s19 = smov [#allocation11]  }
  0x19   :  { %s48_s18 = sshll.u32 %s4675_s17, 4  ;;  %s61_s20 = sshll.u32 %s4676_s19, 4  ;;  %s49_s18 = int_to_ptr.vmem [resolvable:$true] %s48_s18  ;;  %s62_s20 = int_to_ptr.vmem [resolvable:$true] %s61_s20 }
  0x1a   :  { %s4611_s1 = scalar_lea.vmem %s49_s18, 896  ;;  %p4616_p11 = scmp.lt.s32.totalorder %s49_s18, %s49_s18 }
  0x1b   :  { %p4612_p10 = scmp.ne.s32.totalorder %s49_s18, %s4611_s1  ;;  %p4617_p12 = scmp.lt.s32.totalorder %s4611_s1, %s4611_s1 }
  0x1d   :  { %p4618_p13 = por %p4617_p12, %p4616_p11 }
  0x1f   :  { %p4619_p0 = pnand %p4618_p13, %p4612_p10 }
  0x21   :  { %4622 = shalt.err (!%p4619_p0)
}
  0x22   :  { %54 = dma.hbm_to_vmem [thread:$0]  %s7273_s3, 896, %s49_s18, [#allocation9], %s4673_s10, %s4673_s10, %s4674_s11  }
  0x23   :  { %s4631_s0 = scalar_lea.vmem %s62_s20, 16  ;;  %s4635_s23 = scalar_lea.vmem %s62_s20, 32 }
  0x24   :  { %p4632_p1 = scmp.ne.s32.totalorder %s62_s20, %s4631_s0  ;;  %p4636_p2 = scmp.lt.s32.totalorder %s62_s20, %s62_s20 }
  0x25   :  { %p4637_p3 = scmp.lt.s32.totalorder %s4635_s23, %s4631_s0 }
  0x27   :  { %p4638_p4 = por %p4637_p3, %p4636_p2 }
  0x29   :  { %p4639_p5 = pnand %p4638_p4, %p4632_p1 }
  0x2b   :  { %4642 = shalt.err (!%p4639_p5)
}
  0x2c   :  { %64 = dma.hbm_to_vmem [thread:$0]  %s7274_s4, 16, %s62_s20, [#allocation12]  }
  0x2d   :  { %4663 = dma.done.wait [#allocation6], 512  }
  0x2e   :  { %4664 = vsyncadd [#allocation6], 4294966784 }
  0x2f   :  { %4665 = dma.done.wait [#allocation9], 1408  }
  0x30   :  { %4666 = vsyncadd [#allocation9], 4294965888 }
  0x31   :  { %4667 = dma.done.wait [#allocation12], 16  }
  0x32   :  { %4668 = vsyncadd [#allocation12], 4294967280  ;;  %vm86_vm0 = vcmask 64512   ;;  %vm89_vm1 = vcmask 654912   ;;  %v7279_v0 = vmov 0.0   ;;  %vm83_vm2 = vcmask 648192  }
  0x33   :  { %87 = vst.msk [vmem:[#allocation2 + $0x2] sm:$0xff] %vm86_vm0, %v7279_v0  ;;  %93 = vst.msk [vmem:[#allocation3 + $0x8] sm:$0xff] %vm86_vm0, %v7279_v0  ;;  %v4786_v1 = vld [vmem:[#allocation8 + $0x1] ss:$0 sm:$0xff]  ;;  %s4678_s3 = smov 4   ;;  %v125_v4 = vld [vmem:[#allocation5 + $0x8] sm:$0xff] }
  0x34   :  { %114 = vst.msk [vmem:[#allocation3 + $0x28] sm:$0xff] %vm86_vm0, %v7279_v0  ;;  %88 = vst.msk [vmem:[#allocation2 + $0xa] sm:$0xff] %vm86_vm0, %v7279_v0  ;;  %v124_v2 = vld [vmem:[#allocation5] sm:$0xff]  ;;  %154 = vrot.lane.b32.xlu1 %v4786_v1, %s4678_s3  ;;  %s4679_s4 = smov 16   ;;  %s4680_s26 = smov 12   ;;  %vm134_vm3 = vcmask 588864  }
  0x35   :  { %92 = vst [vmem:[#allocation3] sm:$0xff] %v7279_v0  ;;  %94 = vst [vmem:[#allocation3 + $0x10] sm:$0x1] %v7279_v0  ;;  %128 = vrot.lane.b32.xlu0 %v124_v2, %s4674_s11  ;;  %v4791_v3 = vld [vmem:[#allocation8 + $0x2] ss:$0 sm:$0xff]  ;;  %s4681_s27 = smov 24  }
  0x36   :  { %97 = vst [vmem:[#allocation3 + $0x30] sm:$0xfe] %v7279_v0  ;;  %100 = vst [vmem:[#allocation3 + $0x40] sm:$0x3] %v7279_v0  ;;  %v4796_v5 = vld [vmem:[#allocation8 + $0x4] ss:$0 sm:$0xff] }
  0x37   :  { %90 = vst.msk [vmem:[#allocation2 + $0x2] sm:$0xff] %vm89_vm1, %v7279_v0  ;;  %91 = vst.msk [vmem:[#allocation2 + $0xa] sm:$0xff] %vm89_vm1, %v7279_v0  ;;  %v4335_v6 = vld [vmem:[#allocation8 + $0x3] ss:$0 sm:$0xff]  ;;  %v4801_v7 = vld [vmem:[#allocation8 + $0x7] ss:$0 sm:$0xff] }
  0x38   :  { %84 = vst.msk [vmem:[#allocation2] sm:$0x3] %vm83_vm2, %v7279_v0  ;;  %85 = vst.msk [vmem:[#allocation2 + $0x12] sm:$0x3] %vm83_vm2, %v7279_v0  ;;  %175 = vrot.lane.b32.xlu1 %v4791_v3, %s4674_s11  ;;  %v4338_v8 = vld [vmem:[#allocation8 + $0x6] ss:$0 sm:$0xff] }
  0x39   :  { %130 = vrot.lane.b32.xlu0 %v125_v4, %s4674_s11  ;;  %v4806_v9 = vld [vmem:[#allocation8 + $0x9] ss:$0 sm:$0xff]  ;;  %v4340_v10 = vld [vmem:[#allocation8 + $0x8] ss:$0 sm:$0xff]  ;;  %v4344_v11 = vld [vmem:[#allocation8 + $0xc] ss:$0 sm:$0xff] }
  0x3a   :  { %v4811_v12 = vld [vmem:[#allocation8 + $0xb] ss:$0 sm:$0xff]  ;;  %v4346_v13 = vld [vmem:[#allocation8 + $0xe] ss:$0 sm:$0xff]  ;;  %v4816_v14 = vld [vmem:[#allocation8 + $0xd] ss:$0 sm:$0xff] }
  0x3b   :  { %v4821_v15 = vld [vmem:[#allocation8 + $0x11] ss:$0 sm:$0xff]  ;;  %v4348_v16 = vld [vmem:[#allocation8 + $0x10] ss:$0 sm:$0xff]  ;;  %v4826_v17 = vld [vmem:[#allocation8 + $0x13] ss:$0 sm:$0xff] }
  0x3c   :  { %217 = vrot.lane.b32.xlu1 %v4796_v5, %s4679_s4  ;;  %v4350_v18 = vld [vmem:[#allocation8 + $0x12] ss:$0 sm:$0xff]  ;;  %v4354_v19 = vld [vmem:[#allocation8 + $0x16] ss:$0 sm:$0xff]  ;;  %v4831_v20 = vld [vmem:[#allocation8 + $0x15] ss:$0 sm:$0xff] }
  0x3d   :  { %196 = vrot.lane.b32.xlu0 %v4335_v6, %s4680_s26  ;;  %v4356_v21 = vld [vmem:[#allocation8 + $0x18] ss:$0 sm:$0xff]  ;;  %v4836_v22 = vld [vmem:[#allocation8 + $0x17] ss:$0 sm:$0xff]  ;;  %v4359_v23 = vld [vmem:[#allocation10 + $0x1] ss:$0 sm:$0xff] }
  0x3e   :  { %v4360_v24 = vld [vmem:[#allocation10 + $0x2] ss:$0 sm:$0xff]  ;;  %v4361_v25 = vld [vmem:[#allocation10 + $0x3] ss:$0 sm:$0xff]  ;;  %s4682_s28 = smov 36   ;;  %s4683_s29 = smov 104  }
  0x3f   :  { %s4684_s30 = smov 116   ;;  %s4685_s9 = smov 92   ;;  %vm95_vm4 = vcmask 57344   ;;  %vm98_vm5 = vcmask 64513   ;;  %vm805_vm6 = vcmask 1044480   ;;  %vm1015_vm7 = vcmask 1041408  }
  0x40   :  { %270 = vrot.lane.b32.xlu1 %v4801_v7, %s4674_s11  ;;  %s4686_s12 = smov 124   ;;  %s4687_s13 = smov 120   ;;  %vm1226_vm8 = vcmask 1046528   ;;  %vm1437_vm9 = vcmask 1043456   ;;  %vm623_vm10 = vcmask 1040384   ;;  %vm103_vm11 = vcmask 293889  }
  0x41   :  { %249 = vrot.lane.b32.xlu0 %v4338_v8, %s4678_s3  ;;  %s4688_s14 = smov 112   ;;  %s4689_s15 = smov 48   ;;  %vm109_vm12 = vcmask 1048353   ;;  %vm107_vm13 = vcmask 286720   ;;  %vm115_vm14 = vcmask 1041184   ;;  %vm105_vm15 = vcmask 293888  }
  0x42   :  { %s4690_s16 = smov 80   ;;  %s4691_s17 = smov 60   ;;  %vm112_vm0 = vcmask 1048352   ;;  %vm636_vm1 = vcmask 818465   ;;  %vm640_vm2 = vcmask 811296  }
  0x43   :  { %s4692_s18 = smov 68   ;;  %s4693_s19 = smov 72  }
  0x44   :  { %312 = vrot.lane.b32.xlu1 %v4806_v9, %s4679_s4  ;;  %s4694_s20 = smov 56   ;;  %s4695_s24 = smov 3  }
  0x45   :  { %291 = vrot.lane.b32.xlu0 %v4340_v10, %s4680_s26  ;;  %s4696_s25 = smov 125   ;;  %s4701_s22 = smov 5  }
  0x46   :  { %s4704_s0 = smov 122   ;;  %s4706_s23 = smov 123  }
  0x48   :  { %365 = vrot.lane.b32.xlu1 %v4344_v11, %s4674_s11 }
  0x49   :  { %344 = vrot.lane.b32.xlu0 %v4811_v12, %s4678_s3 }
  0x4c   :  { %407 = vrot.lane.b32.xlu1 %v4346_v13, %s4679_s4 }
  0x4d   :  { %386 = vrot.lane.b32.xlu0 %v4816_v14, %s4680_s26 }
  0x50   :  { %460 = vrot.lane.b32.xlu1 %v4821_v15, %s4674_s11 }
  0x51   :  { %439 = vrot.lane.b32.xlu0 %v4348_v16, %s4678_s3 }
  0x54   :  { %502 = vrot.lane.b32.xlu1 %v4826_v17, %s4679_s4 }
  0x55   :  { %481 = vrot.lane.b32.xlu0 %v4350_v18, %s4680_s26 }
  0x58   :  { %555 = vrot.lane.b32.xlu1 %v4354_v19, %s4674_s11 }
  0x59   :  { %534 = vrot.lane.b32.xlu0 %v4831_v20, %s4678_s3 }
  0x5c   :  { %597 = vrot.lane.b32.xlu1 %v4356_v21, %s4679_s4 }
  0x5d   :  { %576 = vrot.lane.b32.xlu0 %v4836_v22, %s4680_s26 }
  0x60   :  { %659 = vrot.lane.b32.xlu1 %v4359_v23, %s4680_s26 }
  0x61   :  { %680 = vrot.lane.b32.xlu0 %v4360_v24, %s4681_s27 }
  0x64   :  { %701 = vrot.lane.b32.xlu1 %v4361_v25, %s4682_s28 }
  0xa6   :  { %v155_v26 = vpop.permute.xlu1 %154 }
  0xa7   :  { %v129_v27 = vpop.permute.xlu0 %128 }
  0xa8   :  { %135 = vst.msk [vmem:[#allocation2 + $0x2] sm:$0xff] %vm134_vm3, %v129_v27 }
  0xaa   :  { %v176_v28 = vpop.permute.xlu1 %175 }
  0xab   :  { %v131_v29 = vpop.permute.xlu0 %130 }
  0xac   :  { %136 = vst.msk [vmem:[#allocation2 + $0xa] sm:$0xff] %vm134_vm3, %v131_v29 }
  0xae   :  { %v218_v30 = vpop.permute.xlu1 %217 }
  0xaf   :  { %v197_v31 = vpop.permute.xlu0 %196  ;;  %v4878_v52 = vld [vmem:[#allocation2] sm:$0xff] }
  0xb0   :  { %v157_v55 = vmul.f32 %v155_v26, %v4878_v52  ;;  %v178_v59 = vmul.f32 %v176_v28, %v4878_v52  ;;  %v199_v60 = vmul.f32 %v197_v31, %v4878_v52  ;;  %v4902_v63 = vld [vmem:[#allocation2 + $0x1] sm:$0xff]  ;;  %v220_v2 = vmul.f32 %v218_v30, %v4878_v52 }
  0xb1   :  { %v4923_v19 = vld [vmem:[#allocation2 + $0x2] sm:$0xff] }
  0xb2   :  { %v271_v32 = vpop.permute.xlu1 %270 }
  0xb3   :  { %v250_v33 = vpop.permute.xlu0 %249  ;;  %v4886_v56 = vld [vmem:[#allocation2 + $0x8] sm:$0xff]  ;;  %v273_v11 = vmul.f32 %v271_v32, %v4902_v63 }
  0xb4   :  { %v158_v57 = vmul.f32 %v155_v26, %v4886_v56  ;;  %v179_v58 = vmul.f32 %v176_v28, %v4886_v56  ;;  %v221_v61 = vmul.f32 %v218_v30, %v4886_v56  ;;  %v200_v62 = vmul.f32 %v197_v31, %v4886_v56  ;;  %v4906_v6 = vld [vmem:[#allocation2 + $0x9] sm:$0xff] }
  0xb5   :  { %v252_v4 = vmul.f32 %v250_v33, %v4902_v63  ;;  %v274_v8 = vmul.f32 %v271_v32, %v4906_v6  ;;  %v253_v10 = vmul.f32 %v250_v33, %v4906_v6  ;;  %v4929_v24 = vld [vmem:[#allocation2 + $0xa] sm:$0xff] }
  0xb6   :  { %v4846_v34 = vpop.permute.xlu1 %312  ;;  %v4951_v31 = vld [vmem:[#allocation2 + $0x3] sm:$0xff] }
  0xb7   :  { %v292_v35 = vpop.permute.xlu0 %291  ;;  %v316_v16 = vmul.f32 %v4846_v34, %v4906_v6  ;;  %v315_v21 = vmul.f32 %v4846_v34, %v4902_v63  ;;  %v4957_v34 = vld [vmem:[#allocation2 + $0xb] sm:$0xff] }
  0xb8   :  { %v294_v13 = vmul.f32 %v292_v35, %v4902_v63  ;;  %v295_v18 = vmul.f32 %v292_v35, %v4906_v6 }
  0xba   :  { %v4848_v36 = vpop.permute.xlu1 %365 }
  0xbb   :  { %v4850_v37 = vpop.permute.xlu0 %344  ;;  %v369_v25 = vmul.f32 %v4848_v36, %v4929_v24  ;;  %v368_v27 = vmul.f32 %v4848_v36, %v4923_v19 }
  0xbc   :  { %v347_v23 = vmul.f32 %v4850_v37, %v4923_v19  ;;  %v348_v26 = vmul.f32 %v4850_v37, %v4929_v24 }
  0xbe   :  { %v4852_v38 = vpop.permute.xlu1 %407 }
  0xbf   :  { %v4854_v39 = vpop.permute.xlu0 %386  ;;  %v411_v29 = vmul.f32 %v4852_v38, %v4929_v24  ;;  %v410_v32 = vmul.f32 %v4852_v38, %v4923_v19 }
  0xc0   :  { %v389_v28 = vmul.f32 %v4854_v39, %v4923_v19  ;;  %v390_v30 = vmul.f32 %v4854_v39, %v4929_v24 }
  0xc2   :  { %v4856_v40 = vpop.permute.xlu1 %460 }
  0xc3   :  { %v4858_v41 = vpop.permute.xlu0 %439  ;;  %v464_v35 = vmul.f32 %v4856_v40, %v4957_v34  ;;  %v463_v37 = vmul.f32 %v4856_v40, %v4951_v31 }
  0xc4   :  { %v442_v33 = vmul.f32 %v4858_v41, %v4951_v31  ;;  %v443_v36 = vmul.f32 %v4858_v41, %v4957_v34 }
  0xc6   :  { %v4860_v42 = vpop.permute.xlu1 %502 }
  0xc7   :  { %v4862_v43 = vpop.permute.xlu0 %481  ;;  %v506_v39 = vmul.f32 %v4860_v42, %v4957_v34  ;;  %v505_v40 = vmul.f32 %v4860_v42, %v4951_v31 }
  0xc8   :  { %v484_v38 = vmul.f32 %v4862_v43, %v4951_v31  ;;  %v485_v41 = vmul.f32 %v4862_v43, %v4957_v34 }
  0xca   :  { %v4864_v44 = vpop.permute.xlu1 %555 }
  0xcb   :  { %v4866_v45 = vpop.permute.xlu0 %534 }
  0xce   :  { %v4868_v46 = vpop.permute.xlu1 %597 }
  0xcf   :  { %v4870_v47 = vpop.permute.xlu0 %576 }
  0xd2   :  { %v4872_v48 = vpop.permute.xlu1 %659 }
  0xd3   :  { %7324 = vst [vmem:[#allocation18_spill] sm:$0xff] %v4872_v48  ;;  %v4874_v49 = vpop.permute.xlu0 %680  ;;  %v662_v50 = vmul.f32 0.0, %v4872_v48 }
  0xd4   :  { %7325 = vst [vmem:[#allocation19_spill] sm:$0xff] %v4874_v49  ;;  %v683_v51 = vmul.f32 0.0, %v4874_v49 }
  0xd5   :  { %666 = vrot.lane.b32.xlu0 %v662_v50, %s4684_s30  ;;  %v4979_v50 = vld [vmem:[#allocation2 + $0x4] sm:$0xff] }
  0xd6   :  { %687 = vrot.lane.b32.xlu1 %v683_v51, %s4683_s29  ;;  %v4882_v53 = vpop.permute.xlu1 %701  ;;  %7327 = vst [vmem:[#allocation21_spill] sm:$0xff] %v4979_v50  ;;  %v537_v51 = vmul.f32 %v4866_v45, %v4979_v50  ;;  %v558_v42 = vmul.f32 %v4864_v44, %v4979_v50 }
  0xd7   :  { %7326 = vst [vmem:[#allocation20_spill] sm:$0xff] %v4882_v53  ;;  %v704_v54 = vmul.f32 0.0, %v4882_v53  ;;  %v7341_v53 = vmov 0.0  }
  0xd8   :  { %96 = vst.msk [vmem:[#allocation3 + $0x18] sm:$0x1] %vm95_vm4, %v7341_v53  ;;  %117 = vst.msk [vmem:[#allocation3 + $0x38] sm:$0x1] %vm95_vm4, %v7341_v53  ;;  %vm638_vm4 = vcmask 818464  }
  0xd9   :  { %708 = vrot.lane.b32.xlu0 %v704_v54, %s4685_s9  ;;  %v4985_v54 = vld [vmem:[#allocation2 + $0xc] sm:$0xff]  ;;  %111 = vst.msk [vmem:[#allocation3 + $0x18] sm:$0xfe] %vm98_vm5, %v7341_v53  ;;  %99 = vst.msk [vmem:[#allocation3 + $0x38] sm:$0xfe] %vm98_vm5, %v7341_v53  ;;  %vm101_vm5 = vcmask 58368  }
  0xda   :  { %161 = vrot.lane.b32.xlu1 %v157_v55, %s4686_s12  ;;  %7328 = vst [vmem:[#allocation22_spill] sm:$0xff] %v4985_v54  ;;  %v559_v43 = vmul.f32 %v4864_v44, %v4985_v54  ;;  %v538_v55 = vmul.f32 %v4866_v45, %v4985_v54  ;;  %v580_v45 = vmul.f32 %v4870_v47, %v4985_v54 }
  0xdb   :  { %v600_v44 = vmul.f32 %v4868_v46, %v4979_v50 }
  0xdd   :  { %163 = vrot.lane.b32.xlu0 %v158_v57, %s4686_s12  ;;  %v579_v57 = vmul.f32 %v4870_v47, %v4979_v50  ;;  %v4378_v50 = vld [vmem:[#allocation10 + $0x14] ss:$0 sm:$0xff] }
  0xde   :  { %184 = vrot.lane.b32.xlu1 %v179_v58, %s4687_s13  ;;  %v601_v58 = vmul.f32 %v4868_v46, %v4985_v54 }
  0xe1   :  { %182 = vrot.lane.b32.xlu0 %v178_v59, %s4687_s13  ;;  %v4362_v59 = vld [vmem:[#allocation10 + $0x4] ss:$0 sm:$0xff] }
  0xe2   :  { %203 = vrot.lane.b32.xlu1 %v199_v60, %s4684_s30 }
  0xe5   :  { %205 = vrot.lane.b32.xlu0 %v200_v62, %s4684_s30 }
  0xe6   :  { %226 = vrot.lane.b32.xlu1 %v221_v61, %s4688_s14 }
  0xe9   :  { %224 = vrot.lane.b32.xlu0 %v220_v2, %s4688_s14 }
  0xea   :  { %256 = vrot.lane.b32.xlu1 %v252_v4, %s4686_s12 }
  0xed   :  { %258 = vrot.lane.b32.xlu0 %v253_v10, %s4686_s12 }
  0xee   :  { %279 = vrot.lane.b32.xlu1 %v274_v8, %s4687_s13 }
  0xf1   :  { %277 = vrot.lane.b32.xlu0 %v273_v11, %s4687_s13 }
  0xf2   :  { %298 = vrot.lane.b32.xlu1 %v294_v13, %s4684_s30 }
  0xf5   :  { %300 = vrot.lane.b32.xlu0 %v295_v18, %s4684_s30 }
  0xf6   :  { %321 = vrot.lane.b32.xlu1 %v316_v16, %s4688_s14 }
  0xf9   :  { %319 = vrot.lane.b32.xlu0 %v315_v21, %s4688_s14 }
  0xfa   :  { %351 = vrot.lane.b32.xlu1 %v347_v23, %s4686_s12 }
  0xfd   :  { %353 = vrot.lane.b32.xlu0 %v348_v26, %s4686_s12 }
  0xfe   :  { %374 = vrot.lane.b32.xlu1 %v369_v25, %s4687_s13 }
 0x101   :  { %372 = vrot.lane.b32.xlu0 %v368_v27, %s4687_s13 }
 0x102   :  { %393 = vrot.lane.b32.xlu1 %v389_v28, %s4684_s30 }
 0x105   :  { %395 = vrot.lane.b32.xlu0 %v390_v30, %s4684_s30 }
 0x106   :  { %416 = vrot.lane.b32.xlu1 %v411_v29, %s4688_s14 }
 0x109   :  { %414 = vrot.lane.b32.xlu0 %v410_v32, %s4688_s14 }
 0x10a   :  { %446 = vrot.lane.b32.xlu1 %v442_v33, %s4686_s12 }
 0x10d   :  { %448 = vrot.lane.b32.xlu0 %v443_v36, %s4686_s12 }
 0x10e   :  { %469 = vrot.lane.b32.xlu1 %v464_v35, %s4687_s13 }
 0x111   :  { %467 = vrot.lane.b32.xlu0 %v463_v37, %s4687_s13 }
 0x112   :  { %488 = vrot.lane.b32.xlu1 %v484_v38, %s4684_s30  ;;  %v4363_v38 = vld [vmem:[#allocation10 + $0x5] ss:$0 sm:$0xff] }
 0x115   :  { %490 = vrot.lane.b32.xlu0 %v485_v41, %s4684_s30 }
 0x116   :  { %511 = vrot.lane.b32.xlu1 %v506_v39, %s4688_s14 }
 0x119   :  { %509 = vrot.lane.b32.xlu0 %v505_v40, %s4688_s14 }
 0x11a   :  { %541 = vrot.lane.b32.xlu1 %v537_v51, %s4686_s12 }
 0x11d   :  { %543 = vrot.lane.b32.xlu0 %v538_v55, %s4686_s12 }
 0x11e   :  { %564 = vrot.lane.b32.xlu1 %v559_v43, %s4687_s13 }
 0x121   :  { %562 = vrot.lane.b32.xlu0 %v558_v42, %s4687_s13 }
 0x122   :  { %583 = vrot.lane.b32.xlu1 %v579_v57, %s4684_s30 }
 0x125   :  { %585 = vrot.lane.b32.xlu0 %v580_v45, %s4684_s30 }
 0x126   :  { %606 = vrot.lane.b32.xlu1 %v601_v58, %s4688_s14 }
 0x129   :  { %604 = vrot.lane.b32.xlu0 %v600_v44, %s4688_s14 }
 0x12d   :  { %722 = vrot.lane.b32.xlu0 %v4362_v59, %s4689_s15 }
 0x147   :  { %v5011_v60 = vpop.permute.xlu0 %666 }
 0x148   :  { %7329 = vst [vmem:[#allocation23_spill] sm:$0xff] %v5011_v60  ;;  %v5053_v32 = vpop.permute.xlu1 %687 }
 0x149   :  { %7334 = vst [vmem:[#allocation28_spill] sm:$0xff] %v5053_v32 }
 0x14b   :  { %v5013_v61 = vpop.permute.xlu0 %708 }
 0x14c   :  { %7330 = vst [vmem:[#allocation24_spill] sm:$0xff] %v5013_v61  ;;  %v5057_v35 = vpop.permute.xlu1 %161 }
 0x14f   :  { %v5015_v62 = vpop.permute.xlu0 %163 }
 0x150   :  { %v5063_v39 = vpop.permute.xlu1 %184 }
 0x153   :  { %v5017_v47 = vpop.permute.xlu0 %182 }
 0x154   :  { %v5066_v41 = vpop.permute.xlu1 %203 }
 0x157   :  { %v5019_v2 = vpop.permute.xlu0 %205 }
 0x158   :  { %v5068_v40 = vpop.permute.xlu1 %226 }
 0x15b   :  { %v5021_v4 = vpop.permute.xlu0 %224 }
 0x15c   :  { %v5070_v51 = vpop.permute.xlu1 %256 }
 0x15f   :  { %v5023_v8 = vpop.permute.xlu0 %258 }
 0x160   :  { %v5072_v43 = vpop.permute.xlu1 %279 }
 0x163   :  { %v5025_v46 = vpop.permute.xlu0 %277 }
 0x164   :  { %v5074_v55 = vpop.permute.xlu1 %298 }
 0x167   :  { %v5027_v10 = vpop.permute.xlu0 %300 }
 0x168   :  { %v5076_v42 = vpop.permute.xlu1 %321 }
 0x16b   :  { %v5029_v11 = vpop.permute.xlu0 %319 }
 0x16c   :  { %v5078_v57 = vpop.permute.xlu1 %351 }
 0x16f   :  { %v5031_v13 = vpop.permute.xlu0 %353 }
 0x170   :  { %v5080_v58 = vpop.permute.xlu1 %374 }
 0x173   :  { %v5033_v16 = vpop.permute.xlu0 %372 }
 0x174   :  { %v5082_v45 = vpop.permute.xlu1 %393 }
 0x177   :  { %v5035_v18 = vpop.permute.xlu0 %395 }
 0x178   :  { %v5084_v44 = vpop.permute.xlu1 %416 }
 0x17b   :  { %v5037_v21 = vpop.permute.xlu0 %414 }
 0x17c   :  { %v5086_v59 = vpop.permute.xlu1 %446 }
 0x17f   :  { %v5039_v23 = vpop.permute.xlu0 %448 }
 0x183   :  { %v5041_v25 = vpop.permute.xlu0 %467 }
 0x187   :  { %v5043_v26 = vpop.permute.xlu0 %490 }
 0x18b   :  { %v5045_v27 = vpop.permute.xlu0 %509 }
 0x18f   :  { %v5047_v28 = vpop.permute.xlu0 %543 }
 0x190   :  { %7331 = vst [vmem:[#allocation25_spill] sm:$0xff] %v5047_v28 }
 0x193   :  { %v5049_v29 = vpop.permute.xlu0 %562 }
 0x194   :  { %7332 = vst [vmem:[#allocation26_spill] sm:$0xff] %v5049_v29 }
 0x197   :  { %v5051_v30 = vpop.permute.xlu0 %585 }
 0x198   :  { %7333 = vst [vmem:[#allocation27_spill] sm:$0xff] %v5051_v30  ;;  %v4364_v30 = vld [vmem:[#allocation10 + $0x6] ss:$0 sm:$0xff] }
 0x19b   :  { %v5055_v33 = vpop.permute.xlu0 %604 }
 0x19c   :  { %7335 = vst [vmem:[#allocation29_spill] sm:$0xff] %v5055_v33 }
 0x19f   :  { %v5059_v36 = vpop.permute.xlu0 %722 }
 0x1a0   :  { %7336 = vst [vmem:[#allocation30_spill] sm:$0xff] %v5059_v36  ;;  %v725_v37 = vmul.f32 0.0, %v5059_v36 }
 0x1a2   :  { %729 = vrot.lane.b32.xlu1 %v725_v37, %s4690_s16  ;;  %v5088_v37 = vpop.permute.xlu1 %469 }
 0x1a6   :  { %743 = vrot.lane.b32.xlu1 %v4363_v38, %s4691_s17  ;;  %v5090_v38 = vpop.permute.xlu1 %488 }
 0x1aa   :  { %v5092_v0 = vpop.permute.xlu1 %511 }
 0x1ab   :  { %7337 = vst [vmem:[#allocation31_spill] sm:$0xff] %v5092_v0 }
 0x1ae   :  { %v5094_v61 = vpop.permute.xlu1 %541 }
 0x1af   :  { %7338 = vst [vmem:[#allocation32_spill] sm:$0xff] %v5094_v61  ;;  %v956_v61 = vld [vmem:[#allocation3 + $0x28] sm:$0x7] }
 0x1b2   :  { %v5096_v32 = vpop.permute.xlu1 %564 }
 0x1b3   :  { %7339 = vst [vmem:[#allocation33_spill] sm:$0xff] %v5096_v32  ;;  %v758_v32 = vld [vmem:[#allocation3 + $0x8] sm:$0xff] }
 0x1b6   :  { %v5098_v60 = vpop.permute.xlu1 %583 }
 0x1b7   :  { %7340 = vst [vmem:[#allocation34_spill] sm:$0xff] %v5098_v60 }
 0x1ba   :  { %v5104_v36 = vpop.permute.xlu1 %606 }
 0x1bb   :  { %7342 = vst [vmem:[#allocation35_spill] sm:$0xff] %v5104_v36  ;;  %v5119_v36 = vld [vmem:[#allocation3 + $0x18] sm:$0xff] }
 0x214   :  { %v5106_v48 = vpop.permute.xlu1 %729 }
 0x215   :  { %7343 = vst [vmem:[#allocation36_spill] sm:$0xff] %v5106_v48 }
 0x218   :  { %v5108_v49 = vpop.permute.xlu1 %743 }
 0x219   :  { %7344 = vst [vmem:[#allocation37_spill] sm:$0xff] %v5108_v49  ;;  %v746_v33 = vmul.f32 0.0, %v5108_v49 }
 0x21b   :  { %750 = vrot.lane.b32.xlu0 %v746_v33, %s4692_s18 }
 0x21f   :  { %766 = vrot.lane.b32.xlu0 %v4364_v30, %s4693_s19  ;;  %v4367_v30 = vld [vmem:[#allocation10 + $0x9] ss:$0 sm:$0xff] }
 0x28d   :  { %v5113_v60 = vpop.permute.xlu0 %750 }
 0x28e   :  { %7345 = vst [vmem:[#allocation38_spill] sm:$0xff] %v5113_v60  ;;  %v4369_v60 = vld [vmem:[#allocation10 + $0xb] ss:$0 sm:$0xff] }
 0x291   :  { %v5115_v29 = vpop.permute.xlu0 %766 }
 0x292   :  { %7346 = vst [vmem:[#allocation39_spill] sm:$0xff] %v5115_v29  ;;  %v770_v53 = vmul.f32 %v5115_v29, %v758_v32  ;;  %v769_v48 = vmul.f32 0.0, %v5115_v29  ;;  %v772_v33 = vmul.f32 %v5115_v29, %v5119_v36  ;;  %v4371_v32 = vld [vmem:[#allocation10 + $0xd] ss:$0 sm:$0xff] }
 0x293   :  { %v955_v29 = vld [vmem:[#allocation3 + $0x8] sm:$0xf8] }
 0x294   :  { %779 = vrot.lane.b32.xlu0 %v770_v53, %s4694_s20  ;;  %777 = vrot.lane.b32.xlu1 %v769_v48, %s4694_s20 }
 0x298   :  { %783 = vrot.lane.b32.xlu0 %v772_v33, %s4694_s20 }
 0x29c   :  { %849 = vrot.lane.b32.xlu0 %v4367_v30, %s4681_s27 }
 0x2a0   :  { %905 = vrot.lane.b32.xlu0 %v4369_v60, %s4689_s15 }
 0x2a4   :  { %963 = vrot.lane.b32.xlu0 %v4371_v32, %s4693_s19 }
 0x306   :  { %v5129_v49 = vpop.permute.xlu0 %779 }
 0x307   :  { %7347 = vst [vmem:[#allocation40_spill] sm:$0xff] %v5129_v49 }
 0x30a   :  { %v5131_v28 = vpop.permute.xlu0 %783 }
 0x30b   :  { %7348 = vst [vmem:[#allocation41_spill] sm:$0xff] %v5131_v28 }
 0x30e   :  { %v5133_v53 = vpop.permute.xlu0 %849 }
 0x30f   :  { %7349 = vst [vmem:[#allocation42_spill] sm:$0xff] %v5133_v53  ;;  %v4374_v53 = vld [vmem:[#allocation10 + $0x10] ss:$0 sm:$0xff] }
 0x312   :  { %v5135_v48 = vpop.permute.xlu0 %905 }
 0x313   :  { %7350 = vst [vmem:[#allocation43_spill] sm:$0xff] %v5135_v48 }
 0x316   :  { %v5137_v33 = vpop.permute.xlu0 %963 }
 0x317   :  { %v967_v30 = vmul.f32 %v5137_v33, %v955_v29  ;;  %v969_v60 = vmul.f32 %v5137_v33, %v5119_v36  ;;  %v971_v54 = vmul.f32 %v5137_v33, %v956_v61  ;;  %v4376_v29 = vld [vmem:[#allocation10 + $0x12] ss:$0 sm:$0xff]  ;;  %v4366_v61 = vld [vmem:[#allocation10 + $0x8] ss:$0 sm:$0xff] }
 0x318   :  { %821 = vrot.lane.b32.xlu1 %v4366_v61, %s4680_s26  ;;  %v4394_v61 = vld [vmem:[#allocation10 + $0x24] ss:$0 sm:$0xff] }
 0x319   :  { %v981_v32 = vrot.slane %v967_v30, 3  ;;  %v982_v49 = vrot.slane %v969_v60, 3  ;;  %v986_v0 = vrot.slane %v971_v54, 3  ;;  %v4368_v30 = vld [vmem:[#allocation10 + $0xa] ss:$0 sm:$0xff] }
 0x31a   :  { %v4370_v54 = vld [vmem:[#allocation10 + $0xc] ss:$0 sm:$0xff]  ;;  %v4387_v60 = vld [vmem:[#allocation10 + $0x1d] ss:$0 sm:$0xff] }
 0x31b   :  { %v983_v28 = vsel %vm805_vm6, %v981_v32, %v982_v49  ;;  %v987_v48 = vsel %vm805_vm6, %v982_v49, %v986_v0  ;;  %v4373_v0 = vld [vmem:[#allocation10 + $0xf] ss:$0 sm:$0xff]  ;;  %v4375_v49 = vld [vmem:[#allocation10 + $0x11] ss:$0 sm:$0xff]  ;;  %v4389_v32 = vld [vmem:[#allocation10 + $0x1f] ss:$0 sm:$0xff] }
 0x31c   :  { %990 = vrot.lane.b32.xlu0 %v983_v28, %s4694_s20  ;;  %877 = vrot.lane.b32.xlu1 %v4368_v30, %s4682_s28  ;;  %v4377_v28 = vld [vmem:[#allocation10 + $0x13] ss:$0 sm:$0xff]  ;;  %v4396_v30 = vld [vmem:[#allocation10 + $0x26] ss:$0 sm:$0xff] }
 0x320   :  { %994 = vrot.lane.b32.xlu0 %v987_v48, %s4694_s20  ;;  %933 = vrot.lane.b32.xlu1 %v4370_v54, %s4691_s17  ;;  %v4384_v48 = vld [vmem:[#allocation10 + $0x1a] ss:$0 sm:$0xff]  ;;  %v4398_v54 = vld [vmem:[#allocation10 + $0x28] ss:$0 sm:$0xff] }
 0x324   :  { %1059 = vrot.lane.b32.xlu0 %v4374_v53, %s4681_s27  ;;  %1031 = vrot.lane.b32.xlu1 %v4373_v0, %s4680_s26  ;;  %v4380_v53 = vld [vmem:[#allocation10 + $0x16] ss:$0 sm:$0xff] }
 0x325   :  { %v2225_v0 = vld [vmem:[#allocation5 + $0x10] sm:$0xff] }
 0x328   :  { %1115 = vrot.lane.b32.xlu0 %v4376_v29, %s4689_s15  ;;  %1087 = vrot.lane.b32.xlu1 %v4375_v49, %s4682_s28  ;;  %v4391_v29 = vld [vmem:[#allocation10 + $0x21] ss:$0 sm:$0xff]  ;;  %v4399_v49 = vld [vmem:[#allocation10 + $0x29] ss:$0 sm:$0xff] }
 0x32c   :  { %1173 = vrot.lane.b32.xlu0 %v4378_v50, %s4693_s19  ;;  %1143 = vrot.lane.b32.xlu1 %v4377_v28, %s4691_s17  ;;  %v4382_v50 = vld [vmem:[#allocation10 + $0x18] ss:$0 sm:$0xff] }
 0x330   :  { %1242 = vrot.lane.b32.xlu1 %v4380_v53, %s4680_s26 }
 0x334   :  { %1298 = vrot.lane.b32.xlu1 %v4382_v50, %s4682_s28 }
 0x338   :  { %1354 = vrot.lane.b32.xlu1 %v4384_v48, %s4691_s17 }
 0x33c   :  { %1453 = vrot.lane.b32.xlu1 %v4387_v60, %s4680_s26 }
 0x340   :  { %1509 = vrot.lane.b32.xlu1 %v4389_v32, %s4682_s28  ;;  %v4381_v32 = vld [vmem:[#allocation10 + $0x17] ss:$0 sm:$0xff] }
 0x344   :  { %1565 = vrot.lane.b32.xlu1 %v4391_v29, %s4691_s17  ;;  %v4385_v29 = vld [vmem:[#allocation10 + $0x1b] ss:$0 sm:$0xff] }
 0x348   :  { %1662 = vrot.lane.b32.xlu1 %v4394_v61, %s4680_s26  ;;  %v5209_v61 = vpop.permute.xlu1 %777 }
 0x349   :  { %7354 = vst [vmem:[#allocation47_spill] sm:$0xff] %v5209_v61 }
 0x34c   :  { %1718 = vrot.lane.b32.xlu1 %v4396_v30, %s4682_s28 }
 0x350   :  { %1774 = vrot.lane.b32.xlu1 %v4398_v54, %s4691_s17  ;;  %v4401_v54 = vld [vmem:[#allocation10 + $0x2b] ss:$0 sm:$0xff] }
 0x354   :  { %2229 = vrot.lane.b32.xlu1 %v2225_v0, %s4674_s11 }
 0x358   :  { %1804 = vrot.lane.b32.xlu1 %v4399_v49, %s4693_s19 }
 0x35c   :  { %2254 = vrot.lane.b32.xlu1 %v4786_v1, %s4678_s3 }
 0x360   :  { %2275 = vrot.lane.b32.xlu1 %v4791_v3, %s4674_s11 }
 0x364   :  { %2317 = vrot.lane.b32.xlu1 %v4796_v5, %s4679_s4 }
 0x368   :  { %2370 = vrot.lane.b32.xlu1 %v4801_v7, %s4674_s11  ;;  %v1165_v7 = vld [vmem:[#allocation3 + $0x8] sm:$0xc0] }
 0x36c   :  { %2412 = vrot.lane.b32.xlu1 %v4806_v9, %s4679_s4  ;;  %v1166_v9 = vld [vmem:[#allocation3 + $0x28] sm:$0x3f] }
 0x370   :  { %2444 = vrot.lane.b32.xlu1 %v4811_v12, %s4678_s3 }
 0x374   :  { %2486 = vrot.lane.b32.xlu1 %v4816_v14, %s4680_s26 }
 0x378   :  { %2560 = vrot.lane.b32.xlu1 %v4821_v15, %s4674_s11 }
 0x37c   :  { %2602 = vrot.lane.b32.xlu1 %v4826_v17, %s4679_s4 }
 0x380   :  { %2634 = vrot.lane.b32.xlu1 %v4831_v20, %s4678_s3 }
 0x384   :  { %2676 = vrot.lane.b32.xlu1 %v4836_v22, %s4680_s26 }
 0x388   :  { %1873 = vrot.lane.b32.xlu1 %v4401_v54, %s4680_s26 }
 0x38a   :  { %v5212_v22 = vpop.permute.xlu1 %821 }
 0x38e   :  { %v5179_v28 = vpop.permute.xlu0 %990  ;;  %v5214_v30 = vpop.permute.xlu1 %877 }
 0x38f   :  { %7351 = vst [vmem:[#allocation44_spill] sm:$0xff] %v5179_v28 }
 0x392   :  { %v5183_v1 = vpop.permute.xlu0 %994  ;;  %v5217_v0 = vpop.permute.xlu1 %933 }
 0x393   :  { %7352 = vst [vmem:[#allocation45_spill] sm:$0xff] %v5183_v1 }
 0x396   :  { %v5187_v3 = vpop.permute.xlu0 %1059  ;;  %v5219_v49 = vpop.permute.xlu1 %1031 }
 0x39a   :  { %v5191_v5 = vpop.permute.xlu0 %1115 }
 0x39e   :  { %v5195_v12 = vpop.permute.xlu0 %1173 }
 0x39f   :  { %7353 = vst [vmem:[#allocation46_spill] sm:$0xff] %v5195_v12  ;;  %v1177_v14 = vmul.f32 %v5195_v12, %v1165_v7  ;;  %v1179_v53 = vmul.f32 %v5195_v12, %v5119_v36  ;;  %v1181_v15 = vmul.f32 %v5195_v12, %v1166_v9  ;;  %v4383_v36 = vld [vmem:[#allocation10 + $0x19] ss:$0 sm:$0xff]  ;;  %v5221_v7 = vpop.permute.xlu1 %1087  ;;  %v4392_v12 = vld [vmem:[#allocation10 + $0x22] ss:$0 sm:$0xff] }
 0x3a1   :  { %v1191_v50 = vrot.slane %v1177_v14, 6  ;;  %v1192_v48 = vrot.slane %v1179_v53, 6  ;;  %v1196_v60 = vrot.slane %v1181_v15, 6 }
 0x3a3   :  { %v1193_v17 = vsel %vm1015_vm7, %v1191_v50, %v1192_v48  ;;  %v1197_v20 = vsel %vm1015_vm7, %v1192_v48, %v1196_v60  ;;  %v5223_v9 = vpop.permute.xlu1 %1143 }
 0x3a4   :  { %1200 = vrot.lane.b32.xlu0 %v1193_v17, %s4694_s20 }
 0x3a7   :  { %v5225_v14 = vpop.permute.xlu1 %1242 }
 0x3a8   :  { %1204 = vrot.lane.b32.xlu0 %v1197_v20, %s4694_s20  ;;  %7355 = vst [vmem:[#allocation48_spill] sm:$0xff] %v5225_v14  ;;  %v4388_v14 = vld [vmem:[#allocation10 + $0x1e] ss:$0 sm:$0xff] }
 0x3ab   :  { %v5227_v53 = vpop.permute.xlu1 %1298 }
 0x3ac   :  { %1270 = vrot.lane.b32.xlu0 %v4381_v32, %s4681_s27  ;;  %7356 = vst [vmem:[#allocation49_spill] sm:$0xff] %v5227_v53 }
 0x3af   :  { %v5229_v15 = vpop.permute.xlu1 %1354 }
 0x3b0   :  { %1326 = vrot.lane.b32.xlu0 %v4383_v36, %s4689_s15  ;;  %7357 = vst [vmem:[#allocation50_spill] sm:$0xff] %v5229_v15 }
 0x3b3   :  { %v5231_v50 = vpop.permute.xlu1 %1453 }
 0x3b4   :  { %1385 = vrot.lane.b32.xlu0 %v4385_v29, %s4693_s19  ;;  %7358 = vst [vmem:[#allocation51_spill] sm:$0xff] %v5231_v50 }
 0x3b7   :  { %v5233_v48 = vpop.permute.xlu1 %1509 }
 0x3b8   :  { %7359 = vst [vmem:[#allocation52_spill] sm:$0xff] %v5233_v48  ;;  %v1378_v48 = vld [vmem:[#allocation3 + $0x38] sm:$0x1] }
 0x3bb   :  { %v5235_v17 = vpop.permute.xlu1 %1565 }
 0x3bc   :  { %7360 = vst [vmem:[#allocation53_spill] sm:$0xff] %v5235_v17  ;;  %v5261_v17 = vld [vmem:[#allocation3 + $0x28] sm:$0xff] }
 0x3bf   :  { %v5237_v60 = vpop.permute.xlu1 %1662 }
 0x3c0   :  { %7361 = vst [vmem:[#allocation54_spill] sm:$0xff] %v5237_v60 }
 0x3c3   :  { %v5239_v20 = vpop.permute.xlu1 %1718 }
 0x3c4   :  { %7362 = vst [vmem:[#allocation55_spill] sm:$0xff] %v5239_v20 }
 0x3c7   :  { %v5241_v32 = vpop.permute.xlu1 %1774 }
 0x3c8   :  { %7363 = vst [vmem:[#allocation56_spill] sm:$0xff] %v5241_v32 }
 0x3cb   :  { %v2230_v36 = vpop.permute.xlu1 %2229 }
 0x3cc   :  { %2235 = vst.msk [vmem:[#allocation2 + $0x2] sm:$0xff] %vm134_vm3, %v2230_v36  ;;  %v1376_v36 = vld [vmem:[#allocation3 + $0x18] sm:$0xfe] }
 0x3cf   :  { %v5244_v29 = vpop.permute.xlu1 %1804 }
 0x3d3   :  { %v5246_v54 = vld [vmem:[#allocation2] sm:$0xff]  ;;  %v5248_v1 = vpop.permute.xlu1 %2254 }
 0x3d4   :  { %7364 = vst [vmem:[#allocation57_spill] sm:$0xff] %v5248_v1  ;;  %v2257_v28 = vmul.f32 %v5248_v1, %v5246_v54 }
 0x3d6   :  { %2261 = vrot.lane.b32.xlu1 %v2257_v28, %s4686_s12 }
 0x416   :  { %v5253_v61 = vpop.permute.xlu0 %1200 }
 0x417   :  { %7365 = vst [vmem:[#allocation58_spill] sm:$0xff] %v5253_v61 }
 0x41a   :  { %v5255_v60 = vpop.permute.xlu0 %1204 }
 0x41b   :  { %7366 = vst [vmem:[#allocation59_spill] sm:$0xff] %v5255_v60 }
 0x41e   :  { %v5257_v20 = vpop.permute.xlu0 %1270 }
 0x41f   :  { %7367 = vst [vmem:[#allocation60_spill] sm:$0xff] %v5257_v20 }
 0x422   :  { %v5259_v32 = vpop.permute.xlu0 %1326 }
 0x423   :  { %7368 = vst [vmem:[#allocation61_spill] sm:$0xff] %v5259_v32 }
 0x426   :  { %v5263_v50 = vpop.permute.xlu0 %1385 }
 0x427   :  { %7369 = vst [vmem:[#allocation62_spill] sm:$0xff] %v5263_v50  ;;  %v1389_v15 = vmul.f32 %v5263_v50, %v1376_v36  ;;  %v1391_v1 = vmul.f32 %v5263_v50, %v5261_v17  ;;  %v1393_v28 = vmul.f32 %v5263_v50, %v1378_v48  ;;  %v4390_v36 = vld [vmem:[#allocation10 + $0x20] ss:$0 sm:$0xff]  ;;  %v4337_v50 = vld [vmem:[#allocation8 + $0x5] ss:$0 sm:$0xff] }
 0x429   :  { %v1403_v61 = vrot.slane %v1389_v15, 1  ;;  %v1404_v60 = vrot.slane %v1391_v1, 1  ;;  %v1408_v20 = vrot.slane %v1393_v28, 1  ;;  %v4332_v1 = vld [vmem:[#allocation8] ss:$0 sm:$0xff] }
 0x42b   :  { %v1405_v53 = vsel %vm1226_vm8, %v1403_v61, %v1404_v60  ;;  %v1409_v32 = vsel %vm1226_vm8, %v1404_v60, %v1408_v20  ;;  %v145_v60 = vmul.f32 %v4332_v1, %v4886_v56 }
 0x42c   :  { %1412 = vrot.lane.b32.xlu0 %v1405_v53, %s4694_s20  ;;  %v144_v53 = vmul.f32 %v4332_v1, %v4878_v52 }
 0x42e   :  { %v167_v48 = vadd.f32 %v5057_v35, %v144_v53 }
 0x430   :  { %1416 = vrot.lane.b32.xlu0 %v1409_v32, %s4694_s20  ;;  %v188_v32 = vadd.f32 %v5017_v47, %v167_v48 }
 0x434   :  { %1481 = vrot.lane.b32.xlu0 %v4388_v14, %s4681_s27  ;;  %v168_v14 = vadd.f32 %v5015_v62, %v145_v60 }
 0x438   :  { %1537 = vrot.lane.b32.xlu0 %v4390_v36, %s4689_s15  ;;  %v209_v36 = vadd.f32 %v5066_v41, %v188_v32 }
 0x43a   :  { %v230_v35 = vadd.f32 %v5021_v4, %v209_v36 }
 0x43c   :  { %1595 = vrot.lane.b32.xlu0 %v4392_v12, %s4693_s19  ;;  %v189_v12 = vadd.f32 %v5063_v39, %v168_v14  ;;  %v239_v39 = vmul.f32 %v4337_v50, %v4902_v63  ;;  %v240_v14 = vmul.f32 %v4337_v50, %v4906_v6  ;;  %v4342_v6 = vld [vmem:[#allocation8 + $0xa] ss:$0 sm:$0xff]  ;;  %v4397_v50 = vld [vmem:[#allocation10 + $0x27] ss:$0 sm:$0xff] }
 0x43e   :  { %v210_v52 = vadd.f32 %v5019_v2, %v189_v12  ;;  %v241_v60 = vadd.f32 %v239_v39, %v230_v35 }
 0x440   :  { %v231_v48 = vadd.f32 %v5068_v40, %v210_v52  ;;  %v4395_v40 = vld [vmem:[#allocation10 + $0x25] ss:$0 sm:$0xff] }
 0x442   :  { %v242_v32 = vadd.f32 %v240_v14, %v231_v48 }
 0x444   :  { %v263_v63 = vadd.f32 %v5023_v8, %v242_v32  ;;  %v2226_v8 = vld [vmem:[#allocation5 + $0x18] sm:$0xff]  ;;  %v4428_v32 = vld [vmem:[#allocation8 + $0xc] ss:$0 sm:$0xff] }
 0x446   :  { %v284_v36 = vadd.f32 %v5072_v43, %v263_v63  ;;  %v335_v43 = vmul.f32 %v4342_v6, %v4929_v24  ;;  %v4430_v63 = vld [vmem:[#allocation8 + $0xe] ss:$0 sm:$0xff] }
 0x49e   :  { %v5276_v15 = vpop.permute.xlu0 %1412 }
 0x49f   :  { %7370 = vst [vmem:[#allocation63_spill] sm:$0xff] %v5276_v15  ;;  %v1587_v15 = vld [vmem:[#allocation3 + $0x18] sm:$0xf0] }
 0x4a2   :  { %v5278_v61 = vpop.permute.xlu0 %1416 }
 0x4a3   :  { %7371 = vst [vmem:[#allocation64_spill] sm:$0xff] %v5278_v61  ;;  %v1588_v61 = vld [vmem:[#allocation3 + $0x38] sm:$0xf] }
 0x4a6   :  { %v5283_v20 = vpop.permute.xlu0 %1481 }
 0x4aa   :  { %v5287_v28 = vpop.permute.xlu0 %1537 }
 0x4ae   :  { %v5293_v56 = vpop.permute.xlu0 %1595 }
 0x4af   :  { %v1599_v1 = vmul.f32 %v5293_v56, %v1587_v15  ;;  %v1601_v62 = vmul.f32 %v5293_v56, %v5261_v17  ;;  %v1603_v47 = vmul.f32 %v5293_v56, %v1588_v61  ;;  %v262_v15 = vadd.f32 %v5070_v51, %v241_v60  ;;  %v4424_v60 = vld [vmem:[#allocation8 + $0x8] ss:$0 sm:$0xff] }
 0x4b0   :  { %v305_v51 = vadd.f32 %v5027_v10, %v284_v36  ;;  %v4432_v36 = vld [vmem:[#allocation8 + $0x10] ss:$0 sm:$0xff] }
 0x4b1   :  { %v1613_v41 = vrot.slane %v1599_v1, 4  ;;  %v1614_v53 = vrot.slane %v1601_v62, 4  ;;  %v1618_v4 = vrot.slane %v1603_v47, 4  ;;  %v283_v12 = vadd.f32 %v5025_v46, %v262_v15 }
 0x4b2   :  { %v334_v1 = vmul.f32 %v4342_v6, %v4923_v19  ;;  %v326_v46 = vadd.f32 %v5076_v42, %v305_v51  ;;  %v4422_v19 = vld [vmem:[#allocation8 + $0x6] ss:$0 sm:$0xff]  ;;  %v1810_v42 = vmul.f32 %v5244_v29, %v5261_v17  ;;  %v7372_v6 = vld [vmem:[#allocation21_spill] sm:$0xff] }
 0x4b3   :  { %v1615_v2 = vsel %vm1437_vm9, %v1613_v41, %v1614_v53  ;;  %v1619_v61 = vsel %vm1437_vm9, %v1614_v53, %v1618_v4  ;;  %v304_v52 = vadd.f32 %v5074_v55, %v283_v12  ;;  %v4419_v55 = vld [vmem:[#allocation8 + $0x3] ss:$0 sm:$0xff]  ;;  %v1796_v41 = vld [vmem:[#allocation3 + $0x18] sm:$0x80]  ;;  %v1797_v12 = vld [vmem:[#allocation3 + $0x38] sm:$0x7f] }
 0x4b4   :  { %1622 = vrot.lane.b32.xlu0 %v1615_v2, %s4694_s20  ;;  %v337_v39 = vadd.f32 %v335_v43, %v326_v46  ;;  %v1808_v53 = vmul.f32 %v5244_v29, %v1796_v41  ;;  %v4438_v41 = vld [vmem:[#allocation8 + $0x16] ss:$0 sm:$0xff] }
 0x4b5   :  { %v325_v35 = vadd.f32 %v5029_v11, %v304_v52  ;;  %v1812_v52 = vmul.f32 %v5244_v29, %v1797_v12 }
 0x4b6   :  { %v358_v10 = vadd.f32 %v5031_v13, %v337_v39  ;;  %v1822_v2 = vrot.slane %v1808_v53, 7  ;;  %v1823_v13 = vrot.slane %v1810_v42, 7  ;;  %v7379_v53 = vld [vmem:[#allocation34_spill] sm:$0xff] }
 0x4b7   :  { %v336_v62 = vadd.f32 %v334_v1, %v325_v35  ;;  %v1827_v51 = vrot.slane %v1812_v52, 7  ;;  %v7373_v35 = vld [vmem:[#allocation31_spill] sm:$0xff] }
 0x4b8   :  { %1626 = vrot.lane.b32.xlu0 %v1619_v61, %s4694_s20  ;;  %v379_v24 = vadd.f32 %v5080_v58, %v358_v10  ;;  %v1824_v17 = vsel %vm623_vm10, %v1822_v2, %v1823_v13  ;;  %v4537_v10 = vld [vmem:[#allocation3] sm:$0xff] }
 0x4b9   :  { %v357_v47 = vadd.f32 %v5078_v57, %v336_v62  ;;  %v4347_v57 = vld [vmem:[#allocation8 + $0xf] ss:$0 sm:$0xff]  ;;  %v1828_v46 = vsel %vm623_vm10, %v1823_v13, %v1827_v51  ;;  %104 = vst.msk [vmem:[#allocation3 + $0x10] sm:$0xfe] %vm103_vm11, %v4537_v10  ;;  %v4357_v13 = vld [vmem:[%s7272_s2] ss:$0 sm:$0xff] }
 0x4ba   :  { %v429_v14 = vmul.f32 %v4347_v57, %v4951_v31  ;;  %v430_v15 = vmul.f32 %v4347_v57, %v4957_v34  ;;  %v4352_v34 = vld [vmem:[#allocation8 + $0x14] ss:$0 sm:$0xff]  ;;  %v7375_v62 = vld [vmem:[#allocation32_spill] sm:$0xff]  ;;  %110 = vst.msk [vmem:[#allocation3 + $0x10] sm:$0xfe] %vm109_vm12, %v4537_v10  ;;  %vm785_vm11 = vcmask 457728  }
 0x4bb   :  { %v378_v11 = vadd.f32 %v5033_v16, %v357_v47  ;;  %v400_v16 = vadd.f32 %v5035_v18, %v379_v24  ;;  %v7377_v47 = vld [vmem:[#allocation26_spill] sm:$0xff]  ;;  %v4440_v24 = vld [vmem:[#allocation8 + $0x18] ss:$0 sm:$0xff]  ;;  %108 = vst.msk [vmem:[#allocation3 + $0x30] sm:$0x1] %vm107_vm13, %v4537_v10  ;;  %vm118_vm12 = vcmask 31744  }
 0x4bc   :  { %1690 = vrot.lane.b32.xlu0 %v4395_v40, %s4681_s27  ;;  %116 = vst.msk [vmem:[#allocation3 + $0x30] sm:$0x1] %vm115_vm14, %v4537_v10  ;;  %vm121_vm13 = vcmask 589344   ;;  %vm2072_vm14 = vcmask 556064  }
 0x4bd   :  { %v399_v48 = vadd.f32 %v5082_v45, %v378_v11  ;;  %v421_v58 = vadd.f32 %v5084_v44, %v400_v16  ;;  %v7378_v11 = vld [vmem:[#allocation33_spill] sm:$0xff]  ;;  %v4402_v16 = vld [vmem:[#allocation10 + $0x2c] ss:$0 sm:$0xff]  ;;  %106 = vst.msk [vmem:[#allocation3 + $0x20] sm:$0xff] %vm105_vm15, %v4537_v10 }
 0x4be   :  { %113 = vst.msk [vmem:[#allocation3 + $0x20] sm:$0xff] %vm112_vm0, %v4537_v10 }
 0x4bf   :  { %v420_v4 = vadd.f32 %v5037_v21, %v399_v48  ;;  %v432_v18 = vadd.f32 %v430_v15, %v421_v58  ;;  %v7380_v48 = vld [vmem:[#allocation27_spill] sm:$0xff] }
 0x4c0   :  { %1746 = vrot.lane.b32.xlu0 %v4397_v50, %s4689_s15  ;;  %v4434_v50 = vld [vmem:[#allocation8 + $0x12] ss:$0 sm:$0xff] }
 0x4c1   :  { %v431_v45 = vadd.f32 %v429_v14, %v420_v4  ;;  %v453_v21 = vadd.f32 %v5039_v23, %v432_v18  ;;  %v7382_v4 = vld [vmem:[#allocation35_spill] sm:$0xff] }
 0x4c3   :  { %v452_v61 = vadd.f32 %v5086_v59, %v431_v45  ;;  %v474_v40 = vadd.f32 %v5088_v37, %v453_v21 }
 0x4c4   :  { %2231 = vrot.lane.b32.xlu0 %v2226_v8, %s4674_s11 }
 0x4c5   :  { %v473_v31 = vadd.f32 %v5041_v25, %v452_v61  ;;  %v495_v59 = vadd.f32 %v5043_v26, %v474_v40  ;;  %v524_v25 = vmul.f32 %v4352_v34, %v7372_v6 }
 0x4c7   :  { %v494_v44 = vadd.f32 %v5090_v38, %v473_v31  ;;  %v516_v37 = vadd.f32 %v7373_v35, %v495_v59  ;;  %v7374_v38 = vld [vmem:[#allocation22_spill] sm:$0xff] }
 0x4c8   :  { %2296 = vrot.lane.b32.xlu0 %v4419_v55, %s4680_s26  ;;  %v525_v8 = vmul.f32 %v4352_v34, %v7374_v38  ;;  %v7376_v55 = vld [vmem:[#allocation25_spill] sm:$0xff] }
 0x4c9   :  { %v515_v23 = vadd.f32 %v5045_v27, %v494_v44 }
 0x4ca   :  { %v527_v26 = vadd.f32 %v525_v8, %v516_v37 }
 0x4cb   :  { %v526_v1 = vadd.f32 %v524_v25, %v515_v23 }
 0x4cc   :  { %2349 = vrot.lane.b32.xlu0 %v4422_v19, %s4678_s3  ;;  %v548_v27 = vadd.f32 %v7376_v55, %v527_v26  ;;  %v7389_v55 = vld [vmem:[#allocation19_spill] sm:$0xff] }
 0x4cd   :  { %v547_v43 = vadd.f32 %v7375_v62, %v526_v1 }
 0x4ce   :  { %v569_v19 = vadd.f32 %v7378_v11, %v548_v27  ;;  %v792_v11 = vld [vmem:[#allocation3] sm:$0xf8] }
 0x4cf   :  { %v568_v39 = vadd.f32 %v7377_v47, %v547_v43  ;;  %v7390_v47 = vld [vmem:[#allocation18_spill] sm:$0xff] }
 0x4d0   :  { %2391 = vrot.lane.b32.xlu0 %v4424_v60, %s4680_s26  ;;  %v590_v57 = vadd.f32 %v7380_v48, %v569_v19  ;;  %v7381_v60 = vld [vmem:[#allocation29_spill] sm:$0xff]  ;;  %v824_v19 = vmul.f32 %v5212_v22, %v792_v11 }
 0x4d1   :  { %v589_v42 = vadd.f32 %v7379_v53, %v568_v39  ;;  %v7391_v53 = vld [vmem:[#allocation30_spill] sm:$0xff] }
 0x4d2   :  { %v611_v14 = vadd.f32 %v7382_v4, %v590_v57  ;;  %v7393_v4 = vld [vmem:[#allocation37_spill] sm:$0xff] }
 0x4d3   :  { %v610_v2 = vadd.f32 %v7381_v60, %v589_v42 }
 0x4d4   :  { %1831 = vrot.lane.b32.xlu0 %v1824_v17, %s4694_s20  ;;  %v620_v58 = vadd.f32 %v4357_v13, %v611_v14 }
 0x4d5   :  { %v619_v17 = vadd.f32 %v4357_v13, %v610_v2  ;;  %v830_v2 = vrot.slane %v824_v19, 3  ;;  %v880_v13 = vmul.f32 %v5214_v30, %v792_v11 }
 0x4d6   :  { %v625_v15 = vrot.slane %v620_v58, 7 }
 0x4d7   :  { %v624_v45 = vrot.slane %v619_v17, 7 }
 0x4d8   :  { %2465 = vrot.lane.b32.xlu0 %v4428_v32, %s4674_s11  ;;  %v5370_v32 = vpop.permute.xlu1 %2275 }
 0x4d9   :  { %v2278_v61 = vmul.f32 %v5370_v32, %v5246_v54 }
 0x4dc   :  { %2507 = vrot.lane.b32.xlu0 %v4430_v63, %s4679_s4  ;;  %v5407_v51 = vpop.permute.xlu1 %2317 }
 0x4e0   :  { %2539 = vrot.lane.b32.xlu0 %v4432_v36, %s4678_s3  ;;  %v626_v36 = vsel %vm623_vm10, %v624_v45, %v625_v15  ;;  %v5411_v37 = vpop.permute.xlu1 %2370 }
 0x4e4   :  { %2581 = vrot.lane.b32.xlu0 %v4434_v50, %s4680_s26  ;;  %v5417_v8 = vpop.permute.xlu1 %2412 }
 0x4e8   :  { %1835 = vrot.lane.b32.xlu0 %v1828_v46, %s4694_s20  ;;  %v5420_v62 = vpop.permute.xlu1 %2444 }
 0x4ec   :  { %2655 = vrot.lane.b32.xlu0 %v4438_v41, %s4674_s11  ;;  %v5429_v41 = vpop.permute.xlu1 %2486 }
 0x4f0   :  { %2697 = vrot.lane.b32.xlu0 %v4440_v24, %s4679_s4  ;;  %v7392_v24 = vld [vmem:[#allocation20_spill] sm:$0xff] }
 0x4f4   :  { %1901 = vrot.lane.b32.xlu0 %v4402_v16, %s4681_s27  ;;  %v5450_v16 = vpop.permute.xlu1 %2560 }
 0x4f8   :  { %627 = vrot.lane.b32.xlu0 %v624_v45, %s4682_s28 }
 0x4fc   :  { %631 = vrot.lane.b32.xlu0 %v625_v15, %s4682_s28  ;;  %v7394_v15 = vld [vmem:[#allocation42_spill] sm:$0xff] }
 0x500   :  { %2282 = vrot.lane.b32.xlu0 %v2278_v61, %s4687_s13 }
 0x526   :  { %v5375_v18 = vpop.permute.xlu0 %1622 }
 0x527   :  { %7383 = vst [vmem:[#allocation21_spill] sm:$0xff] %v5375_v18 }
 0x52a   :  { %v5377_v21 = vpop.permute.xlu0 %1626 }
 0x52b   :  { %7384 = vst [vmem:[#allocation31_spill] sm:$0xff] %v5377_v21 }
 0x52e   :  { %v5379_v31 = vpop.permute.xlu0 %1690 }
 0x532   :  { %v5381_v63 = vpop.permute.xlu0 %1746 }
 0x536   :  { %v2232_v12 = vpop.permute.xlu0 %2231 }
 0x537   :  { %2236 = vst.msk [vmem:[#allocation2 + $0xa] sm:$0xff] %vm134_vm3, %v2232_v12  ;;  %v852_v12 = vmul.f32 %v7394_v15, %v792_v11  ;;  %vm1857_vm3 = vcmask 1045504  }
 0x53a   :  { %v5384_v40 = vpop.permute.xlu0 %2296 }
 0x53b   :  { %v2299_v44 = vmul.f32 %v5384_v40, %v5246_v54 }
 0x53d   :  { %2303 = vrot.lane.b32.xlu1 %v2299_v44, %s4684_s30  ;;  %v886_v44 = vrot.slane %v880_v13, 3 }
 0x53e   :  { %v5389_v34 = vpop.permute.xlu0 %2349 }
 0x541   :  { %629 = vrot.lane.b32.xlu1 %v626_v36, %s4682_s28  ;;  %v936_v36 = vmul.f32 %v5217_v0, %v792_v11 }
 0x542   :  { %v5393_v52 = vpop.permute.xlu0 %2391 }
 0x543   :  { %v942_v13 = vrot.slane %v936_v36, 3 }
 0x546   :  { %v5395_v59 = vpop.permute.xlu0 %1831 }
 0x547   :  { %7385 = vst [vmem:[#allocation22_spill] sm:$0xff] %v5395_v59 }
 0x54a   :  { %v5397_v23 = vpop.permute.xlu0 %2465 }
 0x54e   :  { %v5399_v6 = vpop.permute.xlu0 %2507 }
 0x552   :  { %v5401_v25 = vpop.permute.xlu0 %2539 }
 0x556   :  { %v5403_v50 = vpop.permute.xlu0 %2581 }
 0x55a   :  { %v5405_v54 = vpop.permute.xlu0 %1835 }
 0x55b   :  { %7386 = vst [vmem:[#allocation32_spill] sm:$0xff] %v5405_v54 }
 0x55e   :  { %v5409_v35 = vpop.permute.xlu0 %2655 }
 0x55f   :  { %7387 = vst [vmem:[#allocation25_spill] sm:$0xff] %v5409_v35 }
 0x562   :  { %v5413_v1 = vpop.permute.xlu0 %2697 }
 0x563   :  { %7388 = vst [vmem:[#allocation26_spill] sm:$0xff] %v5413_v1 }
 0x566   :  { %v5415_v38 = vpop.permute.xlu0 %1901 }
 0x56a   :  { %v628_v46 = vpop.permute.xlu0 %627 }
 0x56b   :  { %637 = vst.msk [vmem:[#allocation3 + $0x10] sm:$0xfe] %vm636_vm1, %v628_v46  ;;  %v7395_v46 = vld [vmem:[#allocation39_spill] sm:$0xff] }
 0x56e   :  { %v632_v43 = vpop.permute.xlu0 %631 }
 0x56f   :  { %641 = vst.msk [vmem:[#allocation3 + $0x30] sm:$0x1] %vm640_vm2, %v632_v43 }
 0x572   :  { %v5423_v26 = vld [vmem:[#allocation3 + $0x10] sm:$0xff] }
 0x573   :  { %v684_v27 = vmul.f32 %v7389_v55, %v5423_v26  ;;  %v663_v39 = vmul.f32 %v7390_v47, %v5423_v26  ;;  %v5433_v10 = vmul.f32 %v5212_v22, %v5423_v26  ;;  %v726_v42 = vmul.f32 %v7391_v53, %v5423_v26  ;;  %v7396_v53 = vld [vmem:[#allocation43_spill] sm:$0xff] }
 0x574   :  { %v705_v48 = vmul.f32 %v7392_v24, %v5423_v26  ;;  %v5445_v60 = vmul.f32 %v5214_v30, %v5423_v26  ;;  %v747_v14 = vmul.f32 %v7393_v4, %v5423_v26  ;;  %v5460_v45 = vmul.f32 %v5217_v0, %v5423_v26  ;;  %v1002_v24 = vld [vmem:[#allocation3] sm:$0xc0] }
 0x575   :  { %689 = vrot.lane.b32.xlu0 %v684_v27, %s4683_s29  ;;  %668 = vrot.lane.b32.xlu1 %v663_v39, %s4684_s30  ;;  %v7308_v57 = vrot.slane %v5433_v10, 3  ;;  %v5464_v61 = vmul.f32 %v7394_v15, %v5423_v26  ;;  %v771_v43 = vmul.f32 %v7395_v46, %v5423_v26  ;;  %v5474_v55 = vmul.f32 %v5219_v49, %v5423_v26  ;;  %v5476_v27 = vpop.permute.xlu1 %2602 }
 0x576   :  { %v7307_v58 = vrot.slane %v5445_v60, 3  ;;  %v7309_v39 = vrot.slane %v5460_v45, 3  ;;  %v1034_v4 = vmul.f32 %v5219_v49, %v1002_v24  ;;  %v5555_v18 = vmul.f32 %v5191_v5, %v5423_v26 }
 0x577   :  { %v832_v17 = vsel %vm805_vm6, %v830_v2, %v7308_v57  ;;  %v7310_v19 = vrot.slane %v5464_v61, 3  ;;  %v908_v2 = vmul.f32 %v7396_v53, %v792_v11  ;;  %v7311_v36 = vrot.slane %v5474_v55, 6 }
 0x578   :  { %v888_v47 = vsel %vm805_vm6, %v886_v44, %v7307_v58  ;;  %v944_v44 = vsel %vm805_vm6, %v942_v13, %v7309_v39  ;;  %v1040_v57 = vrot.slane %v1034_v4, 6  ;;  %v5515_v39 = vld [vmem:[#allocation3 + $0x40] sm:$0x3] }
 0x579   :  { %731 = vrot.lane.b32.xlu0 %v726_v42, %s4690_s16  ;;  %710 = vrot.lane.b32.xlu1 %v705_v48, %s4685_s9  ;;  %v5485_v42 = vmul.f32 %v7396_v53, %v5423_v26  ;;  %v858_v48 = vrot.slane %v852_v12, 3  ;;  %v914_v58 = vrot.slane %v908_v2, 3  ;;  %v5511_v54 = vpop.permute.xlu1 %2634  ;;  %7398 = vst [vmem:[#allocation34_spill] sm:$0xff] %v5515_v39  ;;  %v5529_v2 = vmul.f32 %v5187_v3, %v5423_v26 }
 0x57a   :  { %7397 = vst [vmem:[#allocation33_spill] sm:$0xff] %v5511_v54 }
 0x57b   :  { %v860_v12 = vsel %vm805_vm6, %v858_v48, %v7310_v19  ;;  %v7312_v46 = vrot.slane %v5485_v42, 3  ;;  %v1042_v19 = vsel %vm1015_vm7, %v1040_v57, %v7311_v36  ;;  %v5533_v48 = vld [vmem:[#allocation3 + $0x30] sm:$0xff]  ;;  %v1062_v57 = vmul.f32 %v5187_v3, %v1002_v24 }
 0x57c   :  { %v1906_v36 = vmul.f32 %v5415_v38, %v5515_v39  ;;  %v5551_v21 = vmul.f32 %v5415_v38, %v5533_v48 }
 0x57d   :  { %835 = vrot.lane.b32.xlu0 %v832_v17, %s4684_s30  ;;  %752 = vrot.lane.b32.xlu1 %v747_v14, %s4692_s18  ;;  %v5493_v14 = vmul.f32 %v5221_v7, %v5423_v26  ;;  %v5497_v17 = vmul.f32 %v5137_v33, %v5423_v26  ;;  %v5545_v59 = vpop.permute.xlu1 %2676 }
 0x57e   :  { %7400 = vst [vmem:[#allocation27_spill] sm:$0xff] %v5545_v59  ;;  %v7403_v59 = vrot.slane %v5529_v2, 6 }
 0x57f   :  { %v7313_v13 = vrot.slane %v5493_v14, 6 }
 0x581   :  { %891 = vrot.lane.b32.xlu0 %v888_v47, %s4685_s9  ;;  %781 = vrot.lane.b32.xlu1 %v771_v43, %s4694_s20  ;;  %v1090_v43 = vmul.f32 %v5221_v7, %v1002_v24  ;;  %v966_v47 = vmul.f32 %v5137_v33, %v792_v11  ;;  %v5525_v11 = vmul.f32 %v5223_v9, %v5423_v26 }
 0x583   :  { %v1096_v4 = vrot.slane %v1090_v43, 6  ;;  %v7399_v43 = vrot.slane %v5497_v17, 3  ;;  %v7402_v1 = vrot.slane %v5525_v11, 6 }
 0x585   :  { %947 = vrot.lane.b32.xlu0 %v944_v44, %s4692_s18  ;;  %863 = vrot.lane.b32.xlu1 %v860_v12, %s4683_s29  ;;  %v916_v44 = vsel %vm805_vm6, %v914_v58, %v7312_v46  ;;  %v978_v12 = vrot.slane %v966_v47, 3  ;;  %v1146_v58 = vmul.f32 %v5223_v9, %v1002_v24  ;;  %v1098_v46 = vsel %vm1015_vm7, %v1096_v4, %v7313_v13  ;;  %v7401_v47 = vld [vmem:[#allocation46_spill] sm:$0xff] }
 0x586   :  { %v1068_v4 = vrot.slane %v1062_v57, 6  ;;  %v1913_v13 = vrot.slane %v1906_v36, 2  ;;  %v1125_v57 = vrot.slane %v5555_v18, 6 }
 0x588   :  { %v1070_v54 = vsel %vm1015_vm7, %v1068_v4, %v7403_v59 }
 0x589   :  { %1045 = vrot.lane.b32.xlu0 %v1042_v19, %s4684_s30  ;;  %919 = vrot.lane.b32.xlu1 %v916_v44, %s4690_s16  ;;  %v980_v19 = vsel %vm805_vm6, %v978_v12, %v7399_v43  ;;  %v1118_v12 = vmul.f32 %v5191_v5, %v1002_v24  ;;  %v1152_v43 = vrot.slane %v1146_v58, 6  ;;  %v5562_v44 = vmul.f32 %v7401_v47, %v5423_v26  ;;  %v5574_v26 = vpop.permute.xlu1 %1873 }
 0x58a   :  { %v1176_v58 = vmul.f32 %v7401_v47, %v1002_v24 }
 0x58b   :  { %v1154_v35 = vsel %vm1015_vm7, %v1152_v43, %v7402_v1  ;;  %v1124_v36 = vrot.slane %v1118_v12, 6  ;;  %v1878_v1 = vmul.f32 %v5574_v26, %v5515_v39  ;;  %v7320_v18 = vrot.slane %v5562_v44, 6 }
 0x58d   :  { %1101 = vrot.lane.b32.xlu0 %v1098_v46, %s4685_s9  ;;  %988 = vrot.lane.b32.xlu1 %v980_v19, %s4694_s20  ;;  %v7318_v46 = vrot.slane %v5551_v21, 2  ;;  %v1126_v19 = vsel %vm1015_vm7, %v1124_v36, %v1125_v57  ;;  %v1885_v24 = vrot.slane %v1878_v1, 2  ;;  %v5599_v43 = vpop.permute.xlu1 %2261 }
 0x58e   :  { %7404 = vst [vmem:[#allocation29_spill] sm:$0xff] %v5599_v43  ;;  %v7407_v43 = vrot.slane %v5433_v10, 3 }
 0x58f   :  { %v1914_v59 = vsel %vm1857_vm3, %v7318_v46, %v1913_v13 }
 0x591   :  { %1157 = vrot.lane.b32.xlu0 %v1154_v35, %s4692_s18  ;;  %1073 = vrot.lane.b32.xlu1 %v1070_v54, %s4683_s29  ;;  %v5586_v54 = vmul.f32 %v5574_v26, %v5533_v48  ;;  %v1188_v35 = vrot.slane %v1176_v58, 6 }
 0x593   :  { %v1190_v4 = vsel %vm1015_vm7, %v1188_v35, %v7320_v18  ;;  %v7319_v13 = vrot.slane %v5586_v54, 2 }
 0x595   :  { %1917 = vrot.lane.b32.xlu0 %v1914_v59, %s4683_s29  ;;  %1129 = vrot.lane.b32.xlu1 %v1126_v19, %s4690_s16  ;;  %v1886_v12 = vsel %vm1857_vm3, %v7319_v13, %v1885_v24 }
 0x599   :  { %1198 = vrot.lane.b32.xlu1 %v1190_v4, %s4694_s20 }
 0x59d   :  { %1889 = vrot.lane.b32.xlu1 %v1886_v12, %s4684_s30 }
 0x5af   :  { %v5601_v36 = vpop.permute.xlu1 %2303 }
 0x5b0   :  { %7405 = vst [vmem:[#allocation35_spill] sm:$0xff] %v5601_v36  ;;  %v7406_v36 = vrot.slane %v5464_v61, 3 }
 0x5b3   :  { %v630_v58 = vpop.permute.xlu1 %629 }
 0x5b4   :  { %639 = vst.msk [vmem:[#allocation3 + $0x20] sm:$0xff] %vm638_vm4, %v630_v58 }
 0x5bb   :  { %v793_v1 = vld [vmem:[#allocation3 + $0x20] sm:$0x7] }
 0x5bc   :  { %v854_v59 = vmul.f32 %v7394_v15, %v793_v1  ;;  %v826_v19 = vmul.f32 %v5212_v22, %v793_v1  ;;  %v910_v35 = vmul.f32 %v7396_v53, %v793_v1  ;;  %v882_v4 = vmul.f32 %v5214_v30, %v793_v1  ;;  %v1003_v24 = vld [vmem:[#allocation3 + $0x20] sm:$0x3f] }
 0x5bd   :  { %v1064_v13 = vmul.f32 %v5187_v3, %v1003_v24  ;;  %v938_v18 = vmul.f32 %v5217_v0, %v793_v1  ;;  %v1120_v30 = vmul.f32 %v5191_v5, %v1003_v24  ;;  %v970_v3 = vmul.f32 %v5137_v33, %v793_v1 }
 0x5be   :  { %v861_v46 = vrot.slane %v854_v59, 3  ;;  %v833_v12 = vrot.slane %v826_v19, 3  ;;  %v917_v22 = vrot.slane %v910_v35, 3  ;;  %v889_v39 = vrot.slane %v882_v4, 3  ;;  %v5630_v19 = vld [vmem:[#allocation3 + $0x10] sm:$0xfe] }
 0x5bf   :  { %v7408_v0 = vrot.slane %v5485_v42, 3  ;;  %v7409_v53 = vrot.slane %v5445_v60, 3  ;;  %v1127_v59 = vrot.slane %v1120_v30, 6  ;;  %v984_v5 = vrot.slane %v970_v3, 3 }
 0x5c0   :  { %v862_v58 = vsel %vm805_vm6, %v7406_v36, %v861_v46  ;;  %v834_v15 = vsel %vm805_vm6, %v7407_v43, %v833_v12  ;;  %v1071_v46 = vrot.slane %v1064_v13, 6  ;;  %v945_v43 = vrot.slane %v938_v18, 3  ;;  %v5626_v36 = vld [vmem:[#allocation3 + $0x20] sm:$0xff]  ;;  %v7412_v18 = vld [vmem:[#allocation48_spill] sm:$0xff] }
 0x5c1   :  { %865 = vrot.lane.b32.xlu0 %v862_v58, %s4683_s29  ;;  %837 = vrot.lane.b32.xlu1 %v834_v15, %s4684_s30  ;;  %v918_v61 = vsel %vm805_vm6, %v7408_v0, %v917_v22  ;;  %v890_v10 = vsel %vm805_vm6, %v7409_v53, %v889_v39  ;;  %v7410_v33 = vrot.slane %v5529_v2, 6  ;;  %v7411_v60 = vrot.slane %v5460_v45, 3  ;;  %v5649_v12 = vld [vmem:[#allocation3 + $0x30] sm:$0x1] }
 0x5c2   :  { %v1246_v13 = vmul.f32 %v7412_v18, %v5626_v36  ;;  %v1036_v1 = vmul.f32 %v5219_v49, %v1003_v24  ;;  %v1245_v35 = vmul.f32 %v7412_v18, %v5630_v19  ;;  %v1128_v2 = vsel %vm1015_vm7, %v1125_v57, %v1127_v59  ;;  %v7414_v22 = vld [vmem:[#allocation60_spill] sm:$0xff] }
 0x5c3   :  { %v1072_v42 = vsel %vm1015_vm7, %v7410_v33, %v1071_v46  ;;  %v946_v39 = vsel %vm805_vm6, %v7411_v60, %v945_v43  ;;  %v7413_v4 = vrot.slane %v5497_v17, 3  ;;  %v1274_v49 = vmul.f32 %v7414_v22, %v5626_v36  ;;  %v7415_v17 = vld [vmem:[#allocation49_spill] sm:$0xff] }
 0x5c4   :  { %v1252_v58 = vrot.slane %v1246_v13, 1  ;;  %v1043_v15 = vrot.slane %v1036_v1, 6  ;;  %v1092_v30 = vmul.f32 %v5221_v7, %v1003_v24  ;;  %v1251_v3 = vrot.slane %v1245_v35, 1  ;;  %v7417_v33 = vld [vmem:[#allocation61_spill] sm:$0xff] }
 0x5c5   :  { %921 = vrot.lane.b32.xlu0 %v918_v61, %s4690_s16  ;;  %893 = vrot.lane.b32.xlu1 %v890_v10, %s4685_s9  ;;  %v985_v45 = vsel %vm805_vm6, %v7413_v4, %v984_v5  ;;  %v1275_v57 = vmul.f32 %v7414_v22, %v5649_v12  ;;  %v5660_v0 = vmul.f32 %v7415_v17, %v5626_v36  ;;  %v7416_v10 = vrot.slane %v5474_v55, 6 }
 0x5c6   :  { %v1148_v61 = vmul.f32 %v5223_v9, %v1003_v24  ;;  %v1253_v53 = vsel %vm1226_vm8, %v1251_v3, %v1252_v58  ;;  %v1280_v46 = vrot.slane %v1274_v49, 1  ;;  %v1099_v43 = vrot.slane %v1092_v30, 6 }
 0x5c7   :  { %v1044_v7 = vsel %vm1015_vm7, %v7416_v10, %v1043_v15  ;;  %v1282_v59 = vrot.slane %v1275_v57, 1  ;;  %v1301_v5 = vmul.f32 %v7415_v17, %v5630_v19  ;;  %v1180_v9 = vmul.f32 %v7401_v47, %v1003_v24  ;;  %v7420_v15 = vld [vmem:[#allocation50_spill] sm:$0xff] }
 0x5c8   :  { %v7418_v60 = vrot.slane %v5493_v14, 6  ;;  %v1308_v13 = vrot.slane %v5660_v0, 1  ;;  %v1155_v1 = vrot.slane %v1148_v61, 6  ;;  %v7419_v24 = vrot.slane %v5525_v11, 6  ;;  %v5698_v0 = vld [vmem:[#allocation3 + $0x10] sm:$0xf0] }
 0x5c9   :  { %1075 = vrot.lane.b32.xlu0 %v1072_v42, %s4683_s29  ;;  %949 = vrot.lane.b32.xlu1 %v946_v39, %s4692_s18  ;;  %v5673_v42 = vmul.f32 %v7417_v33, %v5626_v36  ;;  %v1283_v55 = vsel %vm1226_vm8, %v1280_v46, %v1282_v59  ;;  %v1307_v35 = vrot.slane %v1301_v5, 1  ;;  %v1358_v49 = vmul.f32 %v7420_v15, %v5626_v36 }
 0x5ca   :  { %v1100_v39 = vsel %vm1015_vm7, %v7418_v60, %v1099_v43  ;;  %v1156_v14 = vsel %vm1015_vm7, %v7419_v24, %v1155_v1  ;;  %v1357_v3 = vmul.f32 %v7420_v15, %v5630_v19  ;;  %v1247_v57 = vmul.f32 %v7412_v18, %v5649_v12 }
 0x5cb   :  { %v1336_v4 = vrot.slane %v5673_v42, 1  ;;  %v1309_v47 = vsel %vm1226_vm8, %v1307_v35, %v1308_v13  ;;  %v7421_v61 = vrot.slane %v5562_v44, 6  ;;  %v1364_v10 = vrot.slane %v1358_v49, 1  ;;  %v5714_v44 = vld [vmem:[#allocation3 + $0x30] sm:$0xf] }
 0x5cc   :  { %v1363_v59 = vrot.slane %v1357_v3, 1  ;;  %v1254_v5 = vrot.slane %v1247_v57, 1  ;;  %v1273_v42 = vmul.f32 %v7414_v22, %v5630_v19  ;;  %v1486_v22 = vmul.f32 %v5283_v20, %v5714_v44 }
 0x5cd   :  { %1131 = vrot.lane.b32.xlu0 %v1128_v2, %s4690_s16  ;;  %992 = vrot.lane.b32.xlu1 %v985_v45, %s4694_s20  ;;  %v1331_v2 = vmul.f32 %v7417_v33, %v5649_v12  ;;  %v1194_v45 = vrot.slane %v1180_v9, 6  ;;  %v1329_v49 = vmul.f32 %v7417_v33, %v5630_v19 }
 0x5ce   :  { %v1365_v9 = vsel %vm1226_vm8, %v1363_v59, %v1364_v10  ;;  %v1279_v35 = vrot.slane %v1273_v42, 1 }
 0x5cf   :  { %v1338_v30 = vrot.slane %v1331_v2, 1  ;;  %v1303_v2 = vmul.f32 %v7415_v17, %v5649_v12  ;;  %v1493_v17 = vrot.slane %v1486_v22, 4  ;;  %v1335_v33 = vrot.slane %v1329_v49, 1 }
 0x5d1   :  { %1256 = vrot.lane.b32.xlu0 %v1253_v53, %s4684_s30  ;;  %1047 = vrot.lane.b32.xlu1 %v1044_v7, %s4684_s30  ;;  %v1339_v11 = vsel %vm1226_vm8, %v1336_v4, %v1338_v30  ;;  %v1195_v53 = vsel %vm1015_vm7, %v7421_v61, %v1194_v45  ;;  %v7422_v7 = vld [vmem:[#allocation51_spill] sm:$0xff]  ;;  %v1310_v30 = vrot.slane %v1303_v2, 1  ;;  %v5751_v61 = vmul.f32 %v5287_v28, %v5626_v36 }
 0x5d2   :  { %v5706_v43 = vmul.f32 %v7422_v7, %v5626_v36  ;;  %v1456_v18 = vmul.f32 %v7422_v7, %v5698_v0 }
 0x5d3   :  { %v1311_v57 = vsel %vm1226_vm8, %v1308_v13, %v1310_v30  ;;  %v1337_v13 = vsel %vm1226_vm8, %v1335_v33, %v1336_v4  ;;  %v1547_v42 = vrot.slane %v5751_v61, 4 }
 0x5d4   :  { %v1463_v60 = vrot.slane %v5706_v43, 4  ;;  %v1462_v1 = vrot.slane %v1456_v18, 4 }
 0x5d5   :  { %1286 = vrot.lane.b32.xlu0 %v1283_v55, %s4683_s29  ;;  %1103 = vrot.lane.b32.xlu1 %v1100_v39, %s4685_s9  ;;  %v1255_v55 = vsel %vm1226_vm8, %v1252_v58, %v1254_v5  ;;  %v5721_v39 = vmul.f32 %v5283_v20, %v5626_v36  ;;  %v1542_v5 = vmul.f32 %v5287_v28, %v5714_v44 }
 0x5d6   :  { %v1464_v58 = vsel %vm1437_vm9, %v1462_v1, %v1463_v60  ;;  %v7425_v1 = vld [vmem:[#allocation62_spill] sm:$0xff] }
 0x5d7   :  { %v1491_v24 = vrot.slane %v5721_v39, 4  ;;  %v1549_v22 = vrot.slane %v1542_v5, 4  ;;  %v1388_v2 = vmul.f32 %v7425_v1, %v5630_v19  ;;  %v1392_v33 = vmul.f32 %v7425_v1, %v5649_v12 }
 0x5d9   :  { %1312 = vrot.lane.b32.xlu0 %v1309_v47, %s4685_s9  ;;  %1159 = vrot.lane.b32.xlu1 %v1156_v14, %s4692_s18  ;;  %v1281_v47 = vsel %vm1226_vm8, %v1279_v35, %v1280_v46  ;;  %v7423_v14 = vld [vmem:[#allocation52_spill] sm:$0xff]  ;;  %v1494_v46 = vsel %vm1437_vm9, %v1491_v24, %v1493_v17  ;;  %v1390_v35 = vmul.f32 %v7425_v1, %v5626_v36  ;;  %v1406_v1 = vrot.slane %v1392_v33, 1 }
 0x5da   :  { %v5736_v45 = vmul.f32 %v7423_v14, %v5626_v36  ;;  %v1512_v3 = vmul.f32 %v7423_v14, %v5698_v0  ;;  %v1550_v49 = vsel %vm1437_vm9, %v1547_v42, %v1549_v22  ;;  %v1458_v22 = vmul.f32 %v7422_v7, %v5714_v44 }
 0x5db   :  { %v1401_v30 = vrot.slane %v1390_v35, 1  ;;  %v5804_v35 = vmul.f32 %v5379_v31, %v5626_v36  ;;  %v1514_v43 = vmul.f32 %v7423_v14, %v5714_v44 }
 0x5dc   :  { %v1518_v59 = vrot.slane %v1512_v3, 4  ;;  %v7426_v3 = vld [vmem:[#allocation54_spill] sm:$0xff]  ;;  %v1465_v7 = vrot.slane %v1458_v22, 4 }
 0x5dd   :  { %1342 = vrot.lane.b32.xlu0 %v1339_v11, %s4690_s16  ;;  %1202 = vrot.lane.b32.xlu1 %v1195_v53, %s4694_s20  ;;  %v1519_v11 = vrot.slane %v5736_v45, 4  ;;  %v1359_v53 = vmul.f32 %v7420_v15, %v5649_v12 }
 0x5df   :  { %v1520_v18 = vsel %vm1437_vm9, %v1518_v59, %v1519_v11  ;;  %v1366_v15 = vrot.slane %v1359_v53, 1  ;;  %v5795_v59 = vld [vmem:[#allocation3 + $0x30] sm:$0x7f] }
 0x5e1   :  { %1368 = vrot.lane.b32.xlu0 %v1365_v9, %s4692_s18  ;;  %1258 = vrot.lane.b32.xlu1 %v1255_v55, %s4684_s30  ;;  %v7424_v9 = vld [vmem:[#allocation53_spill] sm:$0xff] }
 0x5e2   :  { %v5766_v55 = vmul.f32 %v7424_v9, %v5626_v36  ;;  %v1568_v4 = vmul.f32 %v7424_v9, %v5698_v0 }
 0x5e4   :  { %v1575_v17 = vrot.slane %v5766_v55, 4  ;;  %v1574_v19 = vrot.slane %v1568_v4, 4 }
 0x5e5   :  { %1467 = vrot.lane.b32.xlu0 %v1464_v58, %s4684_s30  ;;  %1284 = vrot.lane.b32.xlu1 %v1281_v47, %s4683_s29  ;;  %v1367_v58 = vsel %vm1226_vm8, %v1364_v10, %v1366_v15  ;;  %v5777_v47 = vld [vmem:[#allocation3 + $0x10] sm:$0x80]  ;;  %v1695_v15 = vmul.f32 %v5379_v31, %v5795_v59 }
 0x5e6   :  { %v1665_v10 = vmul.f32 %v7426_v3, %v5777_v47  ;;  %v1576_v5 = vsel %vm1437_vm9, %v1574_v19, %v1575_v17  ;;  %v1807_v61 = vmul.f32 %v5244_v29, %v5777_v47 }
 0x5e7   :  { %v5793_v53 = vpop.permute.xlu1 %668 }
 0x5e8   :  { %v1671_v12 = vrot.slane %v1665_v10, 7  ;;  %v1702_v10 = vrot.slane %v1695_v15, 7  ;;  %v5840_v15 = vmul.f32 %v5381_v63, %v5626_v36 }
 0x5e9   :  { %1497 = vrot.lane.b32.xlu0 %v1494_v46, %s4683_s29  ;;  %1314 = vrot.lane.b32.xlu1 %v1311_v57, %s4685_s9  ;;  %v5785_v46 = vmul.f32 %v7426_v3, %v5626_v36  ;;  %v1400_v57 = vrot.slane %v1388_v2, 1  ;;  %v1407_v2 = vsel %vm1226_vm8, %v1401_v30, %v1406_v1 }
 0x5ed   :  { %1523 = vrot.lane.b32.xlu0 %v1520_v18, %s4685_s9  ;;  %1340 = vrot.lane.b32.xlu1 %v1337_v13, %s4690_s16  ;;  %v1402_v13 = vsel %vm1226_vm8, %v1400_v57, %v1401_v30  ;;  %v1672_v18 = vrot.slane %v5785_v46, 7  ;;  %v5821_v57 = vpop.permute.xlu1 %710  ;;  %v1484_v30 = vmul.f32 %v5283_v20, %v5698_v0 }
 0x5ef   :  { %v1673_v4 = vsel %vm623_vm10, %v1671_v12, %v1672_v18  ;;  %v1466_v12 = vsel %vm1437_vm9, %v1463_v60, %v1465_v7  ;;  %v1490_v22 = vrot.slane %v1484_v30, 4  ;;  %v7428_v30 = vld [vmem:[#allocation56_spill] sm:$0xff] }
 0x5f1   :  { %1553 = vrot.lane.b32.xlu0 %v1550_v49, %s4690_s16  ;;  %1370 = vrot.lane.b32.xlu1 %v1367_v58, %s4692_s18  ;;  %v7322_v58 = vrot.slane %v5804_v35, 7  ;;  %v7427_v49 = vld [vmem:[#allocation55_spill] sm:$0xff]  ;;  %v5850_v60 = vpop.permute.xlu1 %752  ;;  %v1492_v7 = vsel %vm1437_vm9, %v1490_v22, %v1491_v24 }
 0x5f2   :  { %v5819_v19 = vmul.f32 %v7427_v49, %v5626_v36  ;;  %v1721_v33 = vmul.f32 %v7427_v49, %v5777_v47 }
 0x5f4   :  { %v1728_v1 = vrot.slane %v5819_v19, 7  ;;  %v1727_v20 = vrot.slane %v1721_v33, 7  ;;  %v1756_v33 = vrot.slane %v5840_v15, 7 }
 0x5f5   :  { %1579 = vrot.lane.b32.xlu0 %v1576_v5, %s4692_s18  ;;  %1410 = vrot.lane.b32.xlu1 %v1402_v13, %s4694_s20  ;;  %v5829_v5 = vpop.permute.xlu0 %2282  ;;  %v1703_v13 = vsel %vm623_vm10, %v7322_v58, %v1702_v10  ;;  %v1777_v58 = vmul.f32 %v7428_v30, %v5777_v47 }
 0x5f6   :  { %v1729_v10 = vsel %vm623_vm10, %v1727_v20, %v1728_v1  ;;  %v1540_v20 = vmul.f32 %v5287_v28, %v5698_v0  ;;  %v1570_v28 = vmul.f32 %v7424_v9, %v5714_v44 }
 0x5f8   :  { %v1577_v9 = vrot.slane %v1570_v28, 4 }
 0x5f9   :  { %1676 = vrot.lane.b32.xlu0 %v1673_v4, %s4684_s30  ;;  %1414 = vrot.lane.b32.xlu1 %v1407_v2, %s4694_s20  ;;  %v1751_v4 = vmul.f32 %v5381_v63, %v5795_v59  ;;  %v5848_v2 = vpop.permute.xlu0 %689 }
 0x5fb   :  { %v1758_v14 = vrot.slane %v1751_v4, 7  ;;  %v1783_v4 = vrot.slane %v1777_v58, 7  ;;  %v5895_v58 = vld [vmem:[#allocation3 + $0x20] sm:$0xfc] }
 0x5fd   :  { %1706 = vrot.lane.b32.xlu0 %v1703_v13, %s4683_s29  ;;  %1469 = vrot.lane.b32.xlu1 %v1466_v12, %s4684_s30  ;;  %v1778_v13 = vmul.f32 %v7428_v30, %v5626_v36  ;;  %v1521_v12 = vrot.slane %v1514_v43, 4  ;;  %v1759_v39 = vsel %vm623_vm10, %v1756_v33, %v1758_v14  ;;  %v1546_v43 = vrot.slane %v1540_v20, 4 }
 0x5fe   :  { %v1779_v14 = vmul.f32 %v7428_v30, %v5795_v59 }
 0x5ff   :  { %v1522_v24 = vsel %vm1437_vm9, %v1519_v11, %v1521_v12  ;;  %v1784_v22 = vrot.slane %v1778_v13, 7  ;;  %v1548_v11 = vsel %vm1437_vm9, %v1546_v43, %v1547_v42  ;;  %v5889_v13 = vmul.f32 %v5244_v29, %v5626_v36 }
 0x600   :  { %v1600_v12 = vmul.f32 %v5293_v56, %v5626_v36  ;;  %v1786_v30 = vrot.slane %v1779_v14, 7  ;;  %v1598_v42 = vmul.f32 %v5293_v56, %v5698_v0  ;;  %v1578_v36 = vsel %vm1437_vm9, %v1575_v17, %v1577_v9 }
 0x601   :  { %1732 = vrot.lane.b32.xlu0 %v1729_v10, %s4685_s9  ;;  %1495 = vrot.lane.b32.xlu1 %v1492_v7, %s4683_s29  ;;  %v5873_v10 = vpop.permute.xlu0 %731  ;;  %v5875_v7 = vpop.permute.xlu1 %781  ;;  %v1785_v45 = vsel %vm623_vm10, %v1783_v4, %v1784_v22  ;;  %v1820_v28 = vrot.slane %v5889_v13, 7  ;;  %v1876_v43 = vmul.f32 %v5574_v26, %v5895_v58  ;;  %v1819_v0 = vrot.slane %v1807_v61, 7 }
 0x602   :  { %v1611_v4 = vrot.slane %v1600_v12, 4  ;;  %v1610_v14 = vrot.slane %v1598_v42, 4  ;;  %v1667_v12 = vmul.f32 %v7426_v3, %v5795_v59  ;;  %v7429_v9 = vrot.slane %v5586_v54, 2  ;;  %v5934_v42 = vld [vmem:[#allocation2] sm:$0xff] }
 0x603   :  { %v1821_v55 = vsel %vm623_vm10, %v1819_v0, %v1820_v28  ;;  %v1693_v61 = vmul.f32 %v5379_v31, %v5777_v47  ;;  %v7430_v0 = vld [vmem:[#allocation57_spill] sm:$0xff] }
 0x604   :  { %v1612_v17 = vsel %vm1437_vm9, %v1610_v14, %v1611_v4 }
 0x605   :  { %1762 = vrot.lane.b32.xlu0 %v1759_v39, %s4690_s16  ;;  %1525 = vrot.lane.b32.xlu1 %v1522_v24, %s4685_s9  ;;  %v5901_v20 = vpop.permute.xlu0 %835  ;;  %v5903_v39 = vpop.permute.xlu1 %863  ;;  %v1787_v24 = vsel %vm623_vm10, %v1784_v22, %v1786_v30  ;;  %v1882_v22 = vrot.slane %v1876_v43, 2  ;;  %v1674_v30 = vrot.slane %v1667_v12, 7  ;;  %v1699_v31 = vrot.slane %v1693_v61, 7 }
 0x606   :  { %v1723_v43 = vmul.f32 %v7427_v49, %v5795_v59  ;;  %v1811_v12 = vmul.f32 %v5244_v29, %v5795_v59 }
 0x608   :  { %v1825_v19 = vrot.slane %v1811_v12, 7 }
 0x609   :  { %1788 = vrot.lane.b32.xlu0 %v1785_v45, %s4692_s18  ;;  %1551 = vrot.lane.b32.xlu1 %v1548_v11, %s4690_s16  ;;  %v1602_v45 = vmul.f32 %v5293_v56, %v5714_v44  ;;  %v5918_v11 = vpop.permute.xlu0 %891  ;;  %v5920_v13 = vpop.permute.xlu1 %919  ;;  %v1884_v56 = vsel %vm1857_vm3, %v1882_v22, %v7429_v9  ;;  %v1749_v22 = vmul.f32 %v5381_v63, %v5777_v47 }
 0x60a   :  { %v1904_v47 = vmul.f32 %v5415_v38, %v5895_v58  ;;  %v1826_v59 = vsel %vm623_vm10, %v1820_v28, %v1825_v19  ;;  %v4403_v28 = vld [vmem:[#allocation10 + $0x2d] ss:$0 sm:$0xff] }
 0x60b   :  { %v1616_v26 = vrot.slane %v1602_v45, 4  ;;  %v7431_v45 = vrot.slane %v5804_v35, 7 }
 0x60d   :  { %1790 = vrot.lane.b32.xlu0 %v1787_v24, %s4692_s18  ;;  %1581 = vrot.lane.b32.xlu1 %v1578_v36, %s4692_s18  ;;  %v1617_v44 = vsel %vm1437_vm9, %v1611_v4, %v1616_v26  ;;  %v2320_v36 = vmul.f32 %v5934_v42, %v5407_v51  ;;  %v5938_v3 = vpop.permute.xlu0 %947  ;;  %v5940_v54 = vpop.permute.xlu1 %988  ;;  %v5942_v24 = vld [vmem:[#allocation2 + $0x8] sm:$0xff]  ;;  %v1675_v4 = vsel %vm623_vm10, %v1672_v18, %v1674_v30  ;;  %v1730_v18 = vrot.slane %v1723_v43, 7 }
 0x60e   :  { %v2258_v14 = vmul.f32 %v7430_v0, %v5942_v24  ;;  %v2279_v49 = vmul.f32 %v5370_v32, %v5942_v24  ;;  %v1755_v26 = vrot.slane %v1749_v22, 7  ;;  %v2300_v9 = vmul.f32 %v5384_v40, %v5942_v24  ;;  %v5988_v40 = vld [vmem:[#allocation2 + $0x9] sm:$0xff] }
 0x60f   :  { %v1731_v35 = vsel %vm623_vm10, %v1728_v1, %v1730_v18  ;;  %v2321_v29 = vmul.f32 %v5407_v51, %v5942_v24  ;;  %v1910_v1 = vrot.slane %v1904_v47, 2  ;;  %v2353_v38 = vmul.f32 %v5389_v34, %v5988_v40  ;;  %v6032_v18 = vld [vmem:[#allocation2 + $0xa] sm:$0xff] }
 0x610   :  { %v1757_v32 = vsel %vm623_vm10, %v1755_v26, %v1756_v33  ;;  %v7432_v33 = vrot.slane %v5551_v21, 2  ;;  %v2469_v12 = vmul.f32 %v5397_v23, %v6032_v18 }
 0x611   :  { %1829 = vrot.lane.b32.xlu0 %v1821_v55, %s4694_s20  ;;  %1620 = vrot.lane.b32.xlu1 %v1612_v17, %s4694_s20  ;;  %v1701_v55 = vsel %vm623_vm10, %v1699_v31, %v7431_v45  ;;  %v5956_v17 = vpop.permute.xlu0 %1045  ;;  %v5958_v46 = vpop.permute.xlu1 %1073  ;;  %v2395_v31 = vmul.f32 %v5393_v52, %v5988_v40 }
 0x612   :  { %v1912_v51 = vsel %vm1857_vm3, %v1910_v1, %v7432_v33  ;;  %v2511_v1 = vmul.f32 %v5399_v6, %v6032_v18  ;;  %v6078_v33 = vld [vmem:[#allocation2 + $0xb] sm:$0xff] }
 0x615   :  { %1887 = vrot.lane.b32.xlu0 %v1884_v56, %s4684_s30  ;;  %1624 = vrot.lane.b32.xlu1 %v1617_v44, %s4694_s20  ;;  %v5975_v56 = vpop.permute.xlu0 %1101  ;;  %v5977_v63 = vpop.permute.xlu1 %1129 }
 0x619   :  { %2324 = vrot.lane.b32.xlu0 %v2320_v36, %s4688_s14  ;;  %1678 = vrot.lane.b32.xlu1 %v1675_v4, %s4684_s30  ;;  %v5991_v44 = vpop.permute.xlu0 %1157  ;;  %v5993_v15 = vpop.permute.xlu1 %1198  ;;  %v2374_v36 = vmul.f32 %v5411_v37, %v5988_v40  ;;  %v6012_v4 = vld [vmem:[#allocation2 + $0x1] sm:$0xff] }
 0x61a   :  { %v2352_v21 = vmul.f32 %v5389_v34, %v6012_v4  ;;  %v2416_v34 = vmul.f32 %v5417_v8, %v5988_v40  ;;  %v2394_v22 = vmul.f32 %v5393_v52, %v6012_v4  ;;  %v2415_v26 = vmul.f32 %v5417_v8, %v6012_v4 }
 0x61b   :  { %v2490_v8 = vmul.f32 %v5429_v41, %v6032_v18 }
 0x61d   :  { %2263 = vrot.lane.b32.xlu0 %v2258_v14, %s4686_s12  ;;  %1704 = vrot.lane.b32.xlu1 %v1701_v55, %s4683_s29  ;;  %v6004_v30 = vpop.permute.xlu0 %1917  ;;  %v6006_v61 = vpop.permute.xlu1 %1889  ;;  %v2373_v14 = vmul.f32 %v5411_v37, %v6012_v4  ;;  %v2448_v37 = vmul.f32 %v5420_v62, %v6032_v18 }
 0x61e   :  { %7433 = vst [vmem:[#allocation19_spill] sm:$0xff] %v6004_v30  ;;  %7434 = vst [vmem:[#allocation18_spill] sm:$0xff] %v6006_v61  ;;  %v7450_v61 = vld [vmem:[#allocation25_spill] sm:$0xff] }
 0x621   :  { %2284 = vrot.lane.b32.xlu0 %v2279_v49, %s4687_s13  ;;  %1734 = vrot.lane.b32.xlu1 %v1731_v35, %s4685_s9 }
 0x625   :  { %2305 = vrot.lane.b32.xlu0 %v2300_v9, %s4684_s30  ;;  %1760 = vrot.lane.b32.xlu1 %v1757_v32, %s4690_s16  ;;  %v6054_v32 = vld [vmem:[#allocation2 + $0x2] sm:$0xff] }
 0x626   :  { %v2447_v47 = vmul.f32 %v5420_v62, %v6054_v32 }
 0x629   :  { %2326 = vrot.lane.b32.xlu0 %v2321_v29, %s4688_s14  ;;  %1833 = vrot.lane.b32.xlu1 %v1826_v59, %s4694_s20  ;;  %v2468_v59 = vmul.f32 %v5397_v23, %v6054_v32 }
 0x62d   :  { %2358 = vrot.lane.b32.xlu0 %v2353_v38, %s4686_s12  ;;  %1915 = vrot.lane.b32.xlu1 %v1912_v51, %s4683_s29  ;;  %v2489_v51 = vmul.f32 %v5429_v41, %v6054_v32  ;;  %v2564_v41 = vmul.f32 %v5450_v16, %v6078_v33 }
 0x631   :  { %2379 = vrot.lane.b32.xlu0 %v2374_v36, %s4687_s13  ;;  %1929 = vrot.lane.b32.xlu1 %v4403_v28, %s4682_s28  ;;  %v2543_v28 = vmul.f32 %v5401_v25, %v6078_v33 }
 0x633   :  { %v6018_v43 = vpop.permute.xlu0 %865  ;;  %v6020_v0 = vpop.permute.xlu1 %837 }
 0x635   :  { %2400 = vrot.lane.b32.xlu0 %v2395_v31, %s4684_s30  ;;  %2356 = vrot.lane.b32.xlu1 %v2352_v21, %s4686_s12  ;;  %v2510_v21 = vmul.f32 %v5399_v6, %v6054_v32 }
 0x637   :  { %v6026_v45 = vpop.permute.xlu0 %921  ;;  %v6028_v55 = vpop.permute.xlu1 %893 }
 0x639   :  { %2421 = vrot.lane.b32.xlu0 %v2416_v34, %s4688_s14  ;;  %2377 = vrot.lane.b32.xlu1 %v2373_v14, %s4687_s13  ;;  %v6100_v34 = vld [vmem:[#allocation2 + $0x3] sm:$0xff] }
 0x63b   :  { %v6038_v49 = vpop.permute.xlu0 %1075  ;;  %v6040_v35 = vpop.permute.xlu1 %949 }
 0x63d   :  { %2453 = vrot.lane.b32.xlu0 %v2448_v37, %s4686_s12  ;;  %2398 = vrot.lane.b32.xlu1 %v2394_v22, %s4684_s30  ;;  %v2542_v22 = vmul.f32 %v5401_v25, %v6100_v34  ;;  %v2585_v37 = vmul.f32 %v5403_v50, %v6078_v33  ;;  %v2563_v25 = vmul.f32 %v5450_v16, %v6100_v34 }
 0x63f   :  { %v6050_v9 = vpop.permute.xlu0 %1131  ;;  %v6052_v52 = vpop.permute.xlu1 %992 }
 0x641   :  { %2474 = vrot.lane.b32.xlu0 %v2469_v12, %s4687_s13  ;;  %2419 = vrot.lane.b32.xlu1 %v2415_v26, %s4688_s14 }
 0x643   :  { %v6060_v19 = vpop.permute.xlu0 %1256  ;;  %v6062_v29 = vpop.permute.xlu1 %1047 }
 0x645   :  { %2495 = vrot.lane.b32.xlu0 %v2490_v8, %s4684_s30  ;;  %2451 = vrot.lane.b32.xlu1 %v2447_v47, %s4686_s12  ;;  %v2606_v8 = vmul.f32 %v5476_v27, %v6078_v33 }
 0x647   :  { %v6072_v38 = vpop.permute.xlu0 %1286  ;;  %v6074_v62 = vpop.permute.xlu1 %1103 }
 0x648   :  { %7435 = vst [vmem:[#allocation30_spill] sm:$0xff] %v6072_v38 }
 0x649   :  { %2516 = vrot.lane.b32.xlu0 %v2511_v1, %s4688_s14  ;;  %2472 = vrot.lane.b32.xlu1 %v2468_v59, %s4687_s13  ;;  %v6120_v59 = vld [vmem:[#allocation2 + $0xc] sm:$0xff]  ;;  %v2584_v1 = vmul.f32 %v5403_v50, %v6100_v34  ;;  %v2605_v50 = vmul.f32 %v5476_v27, %v6100_v34 }
 0x64b   :  { %v6084_v23 = vpop.permute.xlu0 %1312  ;;  %v6086_v36 = vpop.permute.xlu1 %1159 }
 0x64c   :  { %7436 = vst [vmem:[#allocation20_spill] sm:$0xff] %v6084_v23 }
 0x64d   :  { %2548 = vrot.lane.b32.xlu0 %v2543_v28, %s4686_s12  ;;  %2493 = vrot.lane.b32.xlu1 %v2489_v51, %s4684_s30 }
 0x64f   :  { %v6092_v31 = vpop.permute.xlu0 %1342  ;;  %v6094_v14 = vpop.permute.xlu1 %1202 }
 0x650   :  { %7437 = vst [vmem:[#allocation37_spill] sm:$0xff] %v6092_v31 }
 0x651   :  { %2569 = vrot.lane.b32.xlu0 %v2564_v41, %s4687_s13  ;;  %2514 = vrot.lane.b32.xlu1 %v2510_v21, %s4688_s14  ;;  %v7444_v21 = vld [vmem:[#allocation33_spill] sm:$0xff] }
 0x652   :  { %v2638_v41 = vmul.f32 %v7444_v21, %v6120_v59 }
 0x653   :  { %v6106_v6 = vpop.permute.xlu0 %1368  ;;  %v6108_v26 = vpop.permute.xlu1 %1258 }
 0x654   :  { %7438 = vst [vmem:[#allocation42_spill] sm:$0xff] %v6106_v6  ;;  %7439 = vst [vmem:[#allocation39_spill] sm:$0xff] %v6108_v26  ;;  %v4421_v26 = vld [vmem:[#allocation8 + $0x5] ss:$0 sm:$0xff] }
 0x655   :  { %2590 = vrot.lane.b32.xlu0 %v2585_v37, %s4684_s30  ;;  %2546 = vrot.lane.b32.xlu1 %v2542_v22, %s4686_s12  ;;  %v7447_v37 = vld [vmem:[#allocation27_spill] sm:$0xff] }
 0x657   :  { %v6112_v12 = vpop.permute.xlu0 %1467  ;;  %v6114_v47 = vpop.permute.xlu1 %1284 }
 0x658   :  { %7440 = vst [vmem:[#allocation43_spill] sm:$0xff] %v6112_v12  ;;  %7441 = vst [vmem:[#allocation46_spill] sm:$0xff] %v6114_v47 }
 0x659   :  { %2611 = vrot.lane.b32.xlu0 %v2606_v8, %s4688_s14  ;;  %2567 = vrot.lane.b32.xlu1 %v2563_v25, %s4687_s13  ;;  %v2680_v8 = vmul.f32 %v7447_v37, %v6120_v59  ;;  %v6142_v25 = vld [vmem:[#allocation2 + $0x4] sm:$0xff] }
 0x65b   :  { %v6126_v51 = vpop.permute.xlu0 %1497  ;;  %v6128_v28 = vpop.permute.xlu1 %1314 }
 0x65c   :  { %7442 = vst [vmem:[#allocation48_spill] sm:$0xff] %v6126_v51  ;;  %7443 = vst [vmem:[#allocation60_spill] sm:$0xff] %v6128_v28  ;;  %v2658_v51 = vmul.f32 %v7450_v61, %v6142_v25 }
 0x65d   :  { %2643 = vrot.lane.b32.xlu0 %v2638_v41, %s4686_s12  ;;  %2588 = vrot.lane.b32.xlu1 %v2584_v1, %s4684_s30  ;;  %v2637_v1 = vmul.f32 %v7444_v21, %v6142_v25  ;;  %v7455_v21 = vld [vmem:[#allocation26_spill] sm:$0xff] }
 0x65f   :  { %v6134_v16 = vpop.permute.xlu0 %1523  ;;  %v6136_v22 = vpop.permute.xlu1 %1340 }
 0x660   :  { %7445 = vst [vmem:[#allocation49_spill] sm:$0xff] %v6134_v16  ;;  %7446 = vst [vmem:[#allocation61_spill] sm:$0xff] %v6136_v22 }
 0x661   :  { %2685 = vrot.lane.b32.xlu0 %v2680_v8, %s4684_s30  ;;  %2609 = vrot.lane.b32.xlu1 %v2605_v50, %s4688_s14 }
 0x663   :  { %v6146_v30 = vpop.permute.xlu0 %1553  ;;  %v6148_v41 = vpop.permute.xlu1 %1370 }
 0x664   :  { %7448 = vst [vmem:[#allocation50_spill] sm:$0xff] %v6146_v30  ;;  %7449 = vst [vmem:[#allocation51_spill] sm:$0xff] %v6148_v41  ;;  %v2679_v30 = vmul.f32 %v7447_v37, %v6142_v25 }
 0x665   :  { %2641 = vrot.lane.b32.xlu1 %v2637_v1, %s4686_s12  ;;  %v2700_v1 = vmul.f32 %v7455_v21, %v6142_v25  ;;  %s4697_s12 = smov 7  }
 0x667   :  { %v6155_v16 = vpop.permute.xlu0 %1579  ;;  %v6157_v27 = vpop.permute.xlu1 %1410 }
 0x668   :  { %7451 = vst [vmem:[#allocation52_spill] sm:$0xff] %v6155_v16  ;;  %7452 = vst [vmem:[#allocation53_spill] sm:$0xff] %v6157_v27  ;;  %v2340_v27 = vmul.f32 %v4421_v26, %v5988_v40 }
 0x669   :  { %2662 = vrot.lane.b32.xlu1 %v2658_v51, %s4687_s13  ;;  %v2659_v51 = vmul.f32 %v7450_v61, %v6120_v59 }
 0x66b   :  { %v6160_v8 = vpop.permute.xlu0 %1676  ;;  %v6162_v50 = vpop.permute.xlu1 %1414 }
 0x66c   :  { %7453 = vst [vmem:[#allocation62_spill] sm:$0xff] %v6160_v8  ;;  %7454 = vst [vmem:[#allocation54_spill] sm:$0xff] %v6162_v50 }
 0x66d   :  { %2683 = vrot.lane.b32.xlu1 %v2679_v30, %s4684_s30  ;;  %v2701_v30 = vmul.f32 %v7455_v21, %v6120_v59 }
 0x66f   :  { %v6169_v41 = vpop.permute.xlu0 %1706  ;;  %v6171_v12 = vpop.permute.xlu1 %1469 }
 0x670   :  { %7456 = vst [vmem:[#allocation55_spill] sm:$0xff] %v6169_v41  ;;  %7457 = vst [vmem:[#allocation56_spill] sm:$0xff] %v6171_v12 }
 0x671   :  { %2704 = vrot.lane.b32.xlu1 %v2700_v1, %s4688_s14 }
 0x673   :  { %v6176_v8 = vpop.permute.xlu0 %1732  ;;  %v6178_v16 = vpop.permute.xlu1 %1495 }
 0x674   :  { %7458 = vst [vmem:[#allocation57_spill] sm:$0xff] %v6176_v8  ;;  %7459 = vst [vmem:[#allocation33_spill] sm:$0xff] %v6178_v16 }
 0x675   :  { %2664 = vrot.lane.b32.xlu1 %v2659_v51, %s4687_s13 }
 0x677   :  { %v6183_v37 = vpop.permute.xlu0 %1762  ;;  %v6185_v50 = vpop.permute.xlu1 %1525 }
 0x678   :  { %7460 = vst [vmem:[#allocation27_spill] sm:$0xff] %v6183_v37  ;;  %7461 = vst [vmem:[#allocation25_spill] sm:$0xff] %v6185_v50 }
 0x679   :  { %2706 = vrot.lane.b32.xlu1 %v2701_v30, %s4688_s14 }
 0x67b   :  { %v6188_v41 = vpop.permute.xlu0 %1788  ;;  %v6190_v1 = vpop.permute.xlu1 %1551 }
 0x67c   :  { %7462 = vst [vmem:[#allocation26_spill] sm:$0xff] %v6188_v41  ;;  %7463 = vst [vmem:[#allocation65_spill] sm:$0xff] %v6190_v1 }
 0x67f   :  { %v6192_v61 = vpop.permute.xlu0 %1790  ;;  %v6194_v8 = vpop.permute.xlu1 %1581 }
 0x680   :  { %7464 = vst [vmem:[#allocation66_spill] sm:$0xff] %v6192_v61  ;;  %7465 = vst [vmem:[#allocation67_spill] sm:$0xff] %v6194_v8  ;;  %v4539_v61 = vld [vmem:[#allocation8] ss:$0 sm:$0xff] }
 0x681   :  { %v2245_v8 = vmul.f32 %v4539_v61, %v5942_v24 }
 0x683   :  { %v6196_v12 = vpop.permute.xlu0 %1829  ;;  %v6198_v51 = vpop.permute.xlu1 %1620 }
 0x684   :  { %7466 = vst [vmem:[#allocation68_spill] sm:$0xff] %v6196_v12  ;;  %7467 = vst [vmem:[#allocation69_spill] sm:$0xff] %v6198_v51 }
 0x687   :  { %v6200_v16 = vpop.permute.xlu0 %1887  ;;  %v6202_v21 = vpop.permute.xlu1 %1624 }
 0x688   :  { %7468 = vst [vmem:[#allocation70_spill] sm:$0xff] %v6200_v16  ;;  %7469 = vst [vmem:[#allocation71_spill] sm:$0xff] %v6202_v21 }
 0x68b   :  { %v2325_v37 = vpop.permute.xlu0 %2324  ;;  %v6204_v50 = vpop.permute.xlu1 %1678 }
 0x68c   :  { %7470 = vst [vmem:[#allocation72_spill] sm:$0xff] %v6204_v50 }
 0x68f   :  { %v2264_v30 = vpop.permute.xlu0 %2263  ;;  %v6206_v31 = vpop.permute.xlu1 %1704 }
 0x690   :  { %7471 = vst [vmem:[#allocation73_spill] sm:$0xff] %v6206_v31  ;;  %v2268_v28 = vadd.f32 %v2264_v30, %v2245_v8 }
 0x693   :  { %v2285_v41 = vpop.permute.xlu0 %2284  ;;  %v6208_v1 = vpop.permute.xlu1 %1734 }
 0x694   :  { %7472 = vst [vmem:[#allocation74_spill] sm:$0xff] %v6208_v1  ;;  %v2289_v51 = vadd.f32 %v2285_v41, %v2268_v28  ;;  %v2244_v1 = vmul.f32 %v4539_v61, %v5934_v42 }
 0x697   :  { %v2306_v12 = vpop.permute.xlu0 %2305  ;;  %v6211_v38 = vpop.permute.xlu1 %1760 }
 0x698   :  { %7473 = vst [vmem:[#allocation75_spill] sm:$0xff] %v6211_v38  ;;  %v2310_v16 = vadd.f32 %v2306_v12, %v2289_v51  ;;  %v7476_v12 = vld [vmem:[#allocation34_spill] sm:$0xff]  ;;  %v7477_v51 = vld [vmem:[#allocation29_spill] sm:$0xff] }
 0x69b   :  { %v2327_v6 = vpop.permute.xlu0 %2326  ;;  %v6213_v21 = vpop.permute.xlu1 %1833 }
 0x69c   :  { %7474 = vst [vmem:[#allocation76_spill] sm:$0xff] %v6213_v21  ;;  %v2331_v50 = vadd.f32 %v2327_v6, %v2310_v16  ;;  %v2267_v21 = vadd.f32 %v7477_v51, %v2244_v1 }
 0x69e   :  { %v2342_v31 = vadd.f32 %v2340_v27, %v2331_v50 }
 0x69f   :  { %v2359_v22 = vpop.permute.xlu0 %2358  ;;  %v6216_v23 = vpop.permute.xlu1 %1915 }
 0x6a0   :  { %7475 = vst [vmem:[#allocation77_spill] sm:$0xff] %v6216_v23  ;;  %v2363_v38 = vadd.f32 %v2359_v22, %v2342_v31  ;;  %v2288_v23 = vadd.f32 %v5829_v5, %v2267_v21  ;;  %v4404_v31 = vld [vmem:[#allocation10 + $0x2e] ss:$0 sm:$0xff] }
 0x6a3   :  { %v2380_v24 = vpop.permute.xlu0 %2379  ;;  %v1930_v8 = vpop.permute.xlu1 %1929 }
 0x6a4   :  { %v1932_v30 = vmul.f32 %v1930_v8, %v5895_v58  ;;  %v1933_v28 = vmul.f32 %v1930_v8, %v5533_v48  ;;  %v1934_v41 = vmul.f32 %v1930_v8, %v7476_v12  ;;  %v2384_v47 = vadd.f32 %v2380_v24, %v2363_v38  ;;  %v7478_v48 = vld [vmem:[#allocation35_spill] sm:$0xff] }
 0x6a5   :  { %v2309_v8 = vadd.f32 %v7478_v48, %v2288_v23  ;;  %v2339_v38 = vmul.f32 %v4421_v26, %v6012_v4 }
 0x6a6   :  { %v1938_v6 = vrot.slane %v1932_v30, 2  ;;  %v1939_v16 = vrot.slane %v1933_v28, 2  ;;  %v1941_v40 = vrot.slane %v1934_v41, 2  ;;  %v4426_v28 = vld [vmem:[#allocation8 + $0xa] ss:$0 sm:$0xff] }
 0x6a7   :  { %v2401_v27 = vpop.permute.xlu0 %2400  ;;  %v2357_v50 = vpop.permute.xlu1 %2356  ;;  %v2330_v12 = vadd.f32 %v2325_v37, %v2309_v8  ;;  %v2435_v5 = vmul.f32 %v4426_v28, %v6032_v18 }
 0x6a8   :  { %v1942_v42 = vsel %vm1857_vm3, %v1939_v16, %v1941_v40  ;;  %v1940_v61 = vsel %vm1857_vm3, %v1938_v6, %v1939_v16  ;;  %v2405_v1 = vadd.f32 %v2401_v27, %v2384_v47 }
 0x6a9   :  { %1945 = vrot.lane.b32.xlu1 %v1942_v42, %s4685_s9  ;;  %1943 = vrot.lane.b32.xlu0 %v1940_v61, %s4685_s9  ;;  %v2341_v6 = vadd.f32 %v2339_v38, %v2330_v12 }
 0x6ab   :  { %v2422_v22 = vpop.permute.xlu0 %2421  ;;  %v2378_v30 = vpop.permute.xlu1 %2377  ;;  %v2362_v16 = vadd.f32 %v2357_v50, %v2341_v6 }
 0x6ac   :  { %v2426_v41 = vadd.f32 %v2422_v22, %v2405_v1  ;;  %v4431_v1 = vld [vmem:[#allocation8 + $0xf] ss:$0 sm:$0xff] }
 0x6ad   :  { %1957 = vrot.lane.b32.xlu0 %v4404_v31, %s4689_s15  ;;  %v2383_v47 = vadd.f32 %v2378_v30, %v2362_v16  ;;  %v2434_v31 = vmul.f32 %v4426_v28, %v6054_v32  ;;  %v2530_v12 = vmul.f32 %v4431_v1, %v6078_v33  ;;  %v2529_v32 = vmul.f32 %v4431_v1, %v6100_v34  ;;  %v4436_v28 = vld [vmem:[#allocation8 + $0x14] ss:$0 sm:$0xff] }
 0x6ae   :  { %v2437_v21 = vadd.f32 %v2435_v5, %v2426_v41 }
 0x6af   :  { %v2454_v24 = vpop.permute.xlu0 %2453  ;;  %v2399_v51 = vpop.permute.xlu1 %2398 }
 0x6b0   :  { %v2458_v27 = vadd.f32 %v2454_v24, %v2437_v21  ;;  %v2404_v42 = vadd.f32 %v2399_v51, %v2383_v47 }
 0x6b3   :  { %v2475_v40 = vpop.permute.xlu0 %2474  ;;  %v2420_v23 = vpop.permute.xlu1 %2419 }
 0x6b4   :  { %v2479_v37 = vadd.f32 %v2475_v40, %v2458_v27  ;;  %v2425_v8 = vadd.f32 %v2420_v23, %v2404_v42 }
 0x6b6   :  { %v2436_v26 = vadd.f32 %v2434_v31, %v2425_v8 }
 0x6b7   :  { %v2496_v61 = vpop.permute.xlu0 %2495  ;;  %v2452_v48 = vpop.permute.xlu1 %2451 }
 0x6b8   :  { %v2500_v18 = vadd.f32 %v2496_v61, %v2479_v37  ;;  %v2457_v30 = vadd.f32 %v2452_v48, %v2436_v26 }
 0x6bb   :  { %v2517_v22 = vpop.permute.xlu0 %2516  ;;  %v2473_v4 = vpop.permute.xlu1 %2472 }
 0x6bc   :  { %v2521_v41 = vadd.f32 %v2517_v22, %v2500_v18  ;;  %v2478_v21 = vadd.f32 %v2473_v4, %v2457_v30  ;;  %v2625_v18 = vmul.f32 %v4436_v28, %v6120_v59 }
 0x6be   :  { %v2532_v50 = vadd.f32 %v2530_v12, %v2521_v41 }
 0x6bf   :  { %v2549_v5 = vpop.permute.xlu0 %2548  ;;  %v2494_v38 = vpop.permute.xlu1 %2493 }
 0x6c0   :  { %v2499_v6 = vadd.f32 %v2494_v38, %v2478_v21  ;;  %v2553_v16 = vadd.f32 %v2549_v5, %v2532_v50  ;;  %v2624_v50 = vmul.f32 %v4436_v28, %v6142_v25 }
 0x6c3   :  { %v2570_v24 = vpop.permute.xlu0 %2569  ;;  %v2515_v51 = vpop.permute.xlu1 %2514 }
 0x6c4   :  { %v2520_v40 = vadd.f32 %v2515_v51, %v2499_v6  ;;  %v2574_v27 = vadd.f32 %v2570_v24, %v2553_v16 }
 0x6c6   :  { %v2531_v61 = vadd.f32 %v2529_v32, %v2520_v40 }
 0x6c7   :  { %v2591_v23 = vpop.permute.xlu0 %2590  ;;  %v2547_v47 = vpop.permute.xlu1 %2546 }
 0x6c8   :  { %v2595_v42 = vadd.f32 %v2591_v23, %v2574_v27  ;;  %v2552_v48 = vadd.f32 %v2547_v47, %v2531_v61  ;;  %v4441_v27 = vld [vmem:[%s7272_s2] ss:$0 sm:$0xff]  ;;  %s4705_s2 = smov 127  }
 0x6cb   :  { %v2612_v37 = vpop.permute.xlu0 %2611  ;;  %v2568_v33 = vpop.permute.xlu1 %2567 }
 0x6cc   :  { %v2616_v8 = vadd.f32 %v2612_v37, %v2595_v42  ;;  %v2573_v4 = vadd.f32 %v2568_v33, %v2552_v48 }
 0x6ce   :  { %v2627_v31 = vadd.f32 %v2625_v18, %v2616_v8 }
 0x6cf   :  { %v2589_v22 = vpop.permute.xlu1 %2588  ;;  %v2644_v21 = vpop.permute.xlu0 %2643 }
 0x6d0   :  { %v2594_v26 = vadd.f32 %v2589_v22, %v2573_v4  ;;  %v2648_v6 = vadd.f32 %v2644_v21, %v2627_v31  ;;  %v6256_v22 = vld [vmem:[#allocation3 + $0x30] sm:$0xff] }
 0x6d3   :  { %v2610_v41 = vpop.permute.xlu1 %2609  ;;  %v2686_v47 = vpop.permute.xlu0 %2685 }
 0x6d4   :  { %v2615_v12 = vadd.f32 %v2610_v41, %v2594_v26  ;;  %v6259_v26 = vld [vmem:[#allocation3 + $0x40] sm:$0x3] }
 0x6d6   :  { %v2626_v5 = vadd.f32 %v2624_v50, %v2615_v12 }
 0x6d7   :  { %v2642_v38 = vpop.permute.xlu1 %2641 }
 0x6d8   :  { %v2647_v30 = vadd.f32 %v2642_v38, %v2626_v5 }
 0x6db   :  { %v2663_v34 = vpop.permute.xlu1 %2662 }
 0x6dc   :  { %v2668_v51 = vadd.f32 %v2663_v34, %v2647_v30 }
 0x6df   :  { %v2684_v1 = vpop.permute.xlu1 %2683 }
 0x6e0   :  { %v2689_v16 = vadd.f32 %v2684_v1, %v2668_v51  ;;  %v6266_v1 = vld [vmem:[#allocation10 + $0x2f] ss:$0 sm:$0xff] }
 0x6e3   :  { %v2705_v24 = vpop.permute.xlu1 %2704 }
 0x6e4   :  { %v2710_v40 = vadd.f32 %v2705_v24, %v2689_v16 }
 0x6e6   :  { %v6240_v28 = vadd.f32 %v4441_v27, %v2710_v40 }
 0x6e7   :  { %v2665_v59 = vpop.permute.xlu1 %2664 }
 0x6e8   :  { %v2669_v23 = vadd.f32 %v2665_v59, %v2648_v6  ;;  %v2723_v37 = vrot.slane %v6240_v28, 7 }
 0x6ea   :  { %v2690_v32 = vadd.f32 %v2686_v47, %v2669_v23  ;;  %v6277_v47 = vld [vmem:[#allocation3] sm:$0xff] }
 0x6eb   :  { %v2707_v25 = vpop.permute.xlu1 %2706  ;;  %102 = vst.msk [vmem:[#allocation3 + $0x48] sm:$0x3] %vm101_vm5, %v6277_v47 }
 0x6ec   :  { %v2711_v42 = vadd.f32 %v2707_v25, %v2690_v32  ;;  %v6284_v25 = vld [vmem:[#allocation10 + $0x30] ss:$0 sm:$0xff]  ;;  %119 = vst.msk [vmem:[#allocation4] sm:$0xff] %vm118_vm12, %v6277_v47  ;;  %120 = vst.msk [vmem:[#allocation4 + $0x8] sm:$0xff] %vm118_vm12, %v6277_v47 }
 0x6ed   :  { %122 = vst.msk [vmem:[#allocation4] sm:$0xff] %vm121_vm13, %v6277_v47  ;;  %123 = vst.msk [vmem:[#allocation4 + $0x8] sm:$0xff] %vm121_vm13, %v6277_v47 }
 0x6ee   :  { %v6242_v61 = vadd.f32 %v4441_v27, %v2711_v42 }
 0x6f0   :  { %v7323_v33 = vrot.slane %v6242_v61, 7 }
 0x6f2   :  { %v6251_v8 = vsel %vm623_vm10, %v2723_v37, %v7323_v33 }
 0x71b   :  { %v6253_v18 = vpop.permute.xlu0 %1943  ;;  %v6270_v30 = vpop.permute.xlu1 %1945 }
 0x71f   :  { %v1958_v48 = vpop.permute.xlu0 %1957 }
 0x720   :  { %v1960_v31 = vmul.f32 %v1958_v48, %v5895_v58  ;;  %v1961_v4 = vmul.f32 %v6256_v22, %v1958_v48  ;;  %v1962_v41 = vmul.f32 %v6259_v26, %v1958_v48 }
 0x722   :  { %v1966_v12 = vrot.slane %v1960_v31, 2  ;;  %v1967_v50 = vrot.slane %v1961_v4, 2  ;;  %v1969_v5 = vrot.slane %v1962_v41, 2  ;;  %v2007_v31 = vld [vmem:[#allocation3 + $0x28] sm:$0xfc]  ;;  %v2008_v4 = vld [vmem:[#allocation3 + $0x38] sm:$0xff] }
 0x723   :  { %v2009_v41 = vld [vmem:[#allocation3 + $0x48] sm:$0x3] }
 0x724   :  { %v1970_v38 = vsel %vm1857_vm3, %v1967_v50, %v1969_v5  ;;  %v1968_v34 = vsel %vm1857_vm3, %v1966_v12, %v1967_v50 }
 0x725   :  { %1973 = vrot.lane.b32.xlu0 %v1970_v38, %s4690_s16  ;;  %1971 = vrot.lane.b32.xlu1 %v1968_v34, %s4690_s16 }
 0x729   :  { %1985 = vrot.lane.b32.xlu1 %v6266_v1, %s4691_s17 }
 0x797   :  { %v6272_v21 = vpop.permute.xlu1 %1971  ;;  %v6288_v42 = vpop.permute.xlu0 %1973 }
 0x79b   :  { %v1986_v24 = vpop.permute.xlu1 %1985 }
 0x79c   :  { %v1988_v51 = vmul.f32 %v1986_v24, %v5895_v58  ;;  %v1989_v6 = vmul.f32 %v6256_v22, %v1986_v24  ;;  %v1990_v16 = vmul.f32 %v6259_v26, %v1986_v24 }
 0x79e   :  { %v1994_v59 = vrot.slane %v1988_v51, 2  ;;  %v1995_v40 = vrot.slane %v1989_v6, 2  ;;  %v1997_v23 = vrot.slane %v1990_v16, 2 }
 0x7a0   :  { %v1998_v27 = vsel %vm1857_vm3, %v1995_v40, %v1997_v23  ;;  %v1996_v32 = vsel %vm1857_vm3, %v1994_v59, %v1995_v40 }
 0x7a1   :  { %2001 = vrot.lane.b32.xlu1 %v1998_v27, %s4692_s18  ;;  %1999 = vrot.lane.b32.xlu0 %v1996_v32, %s4692_s18 }
 0x7a5   :  { %2016 = vrot.lane.b32.xlu0 %v6284_v25, %s4693_s19 }
 0x813   :  { %v6290_v48 = vpop.permute.xlu0 %1999 }
 0x817   :  { %v2017_v12 = vpop.permute.xlu0 %2016 }
 0x818   :  { %v2020_v50 = vmul.f32 %v2017_v12, %v2007_v31  ;;  %v2022_v5 = vmul.f32 %v2017_v12, %v2008_v4  ;;  %v2019_v38 = vmul.f32 %v2017_v12, %v5895_v58  ;;  %v2021_v34 = vmul.f32 %v6256_v22, %v2017_v12  ;;  %v4358_v58 = vld [vmem:[#allocation10] ss:$0 sm:$0xff] }
 0x819   :  { %v2024_v24 = vmul.f32 %v2017_v12, %v2009_v41  ;;  %v2023_v51 = vmul.f32 %v6259_v26, %v2017_v12  ;;  %v649_v41 = vmul.f32 %v6277_v47, %v4358_v58  ;;  %v4444_v12 = vld [vmem:[#allocation10 + $0x2] ss:$0 sm:$0xff] }
 0x81a   :  { %v2034_v6 = vrot.slane %v2020_v50, 2  ;;  %v2035_v16 = vrot.slane %v2022_v5, 2  ;;  %v2031_v59 = vrot.slane %v2019_v38, 2  ;;  %v2032_v40 = vrot.slane %v2021_v34, 2  ;;  %v7479_v50 = vld [vmem:[#allocation23_spill] sm:$0xff] }
 0x81b   :  { %v2039_v32 = vrot.slane %v2024_v24, 2  ;;  %v2037_v33 = vrot.slane %v2023_v51, 2  ;;  %v672_v5 = vadd.f32 %v7479_v50, %v649_v41  ;;  %v4410_v38 = vld [vmem:[%s7275_s5 + $0x1] ss:$0 sm:$0xff]  ;;  %v4365_v34 = vld [vmem:[#allocation10 + $0x7] ss:$0 sm:$0xff] }
 0x81c   :  { %v2036_v23 = vsel %vm1857_vm3, %v2034_v6, %v2035_v16  ;;  %v2033_v27 = vsel %vm1857_vm3, %v2031_v59, %v2032_v40  ;;  %v7480_v24 = vld [vmem:[#allocation28_spill] sm:$0xff]  ;;  %v4544_v59 = vld [vmem:[#allocation3] sm:$0xf8] }
 0x81d   :  { %2043 = vrot.lane.b32.xlu0 %v2036_v23, %s4694_s20  ;;  %2041 = vrot.lane.b32.xlu1 %v2033_v27, %s4694_s20  ;;  %v2040_v31 = vsel %vm1857_vm3, %v2035_v16, %v2039_v32  ;;  %v2038_v4 = vsel %vm1857_vm3, %v2032_v40, %v2037_v33  ;;  %v4445_v33 = vld [vmem:[#allocation10 + $0x3] ss:$0 sm:$0xff]  ;;  %v693_v51 = vadd.f32 %v7480_v24, %v672_v5  ;;  %v4543_v6 = vld [vmem:[#allocation3 + $0x10] sm:$0xff]  ;;  %v4447_v16 = vld [vmem:[#allocation10 + $0x5] ss:$0 sm:$0xff] }
 0x81e   :  { %v650_v28 = vmul.f32 %v4543_v6, %v4358_v58  ;;  %v799_v40 = vmul.f32 %v4544_v59, %v4365_v34  ;;  %v800_v23 = vmul.f32 %v4543_v6, %v4365_v34  ;;  %v7481_v32 = vld [vmem:[#allocation24_spill] sm:$0xff] }
 0x81f   :  { %v7482_v50 = vld [vmem:[#allocation36_spill] sm:$0xff] }
 0x820   :  { %v673_v27 = vadd.f32 %v5793_v53, %v650_v28  ;;  %v806_v41 = vrot.slane %v799_v40, 3  ;;  %v7485_v53 = vld [vmem:[#allocation38_spill] sm:$0xff] }
 0x821   :  { %2047 = vrot.lane.b32.xlu0 %v2040_v31, %s4694_s20  ;;  %2045 = vrot.lane.b32.xlu1 %v2038_v4, %s4694_s20  ;;  %v714_v31 = vadd.f32 %v7481_v32, %v693_v51  ;;  %v4450_v4 = vld [vmem:[#allocation10 + $0x8] ss:$0 sm:$0xff]  ;;  %v4446_v51 = vld [vmem:[#allocation10 + $0x4] ss:$0 sm:$0xff] }
 0x822   :  { %v694_v58 = vadd.f32 %v5848_v2, %v673_v27  ;;  %v4454_v27 = vld [vmem:[#allocation10 + $0xc] ss:$0 sm:$0xff] }
 0x823   :  { %v735_v5 = vadd.f32 %v7482_v50, %v714_v31  ;;  %v4545_v31 = vld [vmem:[#allocation3 + $0x20] sm:$0x7]  ;;  %v4457_v50 = vld [vmem:[#allocation10 + $0xf] ss:$0 sm:$0xff] }
 0x824   :  { %v715_v40 = vadd.f32 %v5821_v57, %v694_v58  ;;  %v4451_v57 = vld [vmem:[#allocation10 + $0x9] ss:$0 sm:$0xff] }
 0x825   :  { %2726 = vrot.lane.b32.xlu0 %v2723_v37, %s4682_s28  ;;  %2776 = vrot.lane.b32.xlu1 %v4444_v12, %s4681_s27  ;;  %v4443_v37 = vld [vmem:[#allocation10 + $0x1] ss:$0 sm:$0xff]  ;;  %v807_v12 = vrot.slane %v800_v23, 3  ;;  %v756_v28 = vadd.f32 %v7485_v53, %v735_v5  ;;  %v4448_v23 = vld [vmem:[#allocation10 + $0x6] ss:$0 sm:$0xff]  ;;  %v7486_v5 = vld [vmem:[#allocation41_spill] sm:$0xff] }
 0x826   :  { %v736_v32 = vadd.f32 %v5873_v10, %v715_v40  ;;  %v787_v58 = vsel %vm785_vm11, %v5875_v7, %v7486_v5  ;;  %v4372_v53 = vld [vmem:[#allocation10 + $0xe] ss:$0 sm:$0xff] }
 0x827   :  { %v1010_v40 = vmul.f32 %v4543_v6, %v4372_v53  ;;  %v4465_v6 = vld [vmem:[#allocation10 + $0x17] ss:$0 sm:$0xff] }
 0x829   :  { %2099 = vrot.lane.b32.xlu0 %v4410_v38, %s4695_s24  ;;  %2797 = vrot.lane.b32.xlu1 %v4445_v33, %s4682_s28  ;;  %v7483_v38 = vld [vmem:[#allocation40_spill] sm:$0xff]  ;;  %v7484_v33 = vld [vmem:[#allocation47_spill] sm:$0xff] }
 0x82a   :  { %v786_v24 = vsel %vm785_vm11, %v7484_v33, %v7483_v38  ;;  %v757_v38 = vadd.f32 %v5850_v60, %v736_v32  ;;  %v1017_v32 = vrot.slane %v1010_v40, 6  ;;  %v4473_v40 = vld [vmem:[#allocation10 + $0x1f] ss:$0 sm:$0xff] }
 0x82b   :  { %v790_v59 = vadd.f32 %v786_v24, %v756_v28  ;;  %v4459_v24 = vld [vmem:[#allocation10 + $0x11] ss:$0 sm:$0xff]  ;;  %v4455_v28 = vld [vmem:[#allocation10 + $0xd] ss:$0 sm:$0xff] }
 0x82c   :  { %v791_v10 = vadd.f32 %v787_v58, %v757_v38  ;;  %v4464_v58 = vld [vmem:[#allocation10 + $0x16] ss:$0 sm:$0xff]  ;;  %v4469_v38 = vld [vmem:[#allocation10 + $0x1b] ss:$0 sm:$0xff] }
 0x82d   :  { %2755 = vrot.lane.b32.xlu0 %v4443_v37, %s4680_s26  ;;  %2839 = vrot.lane.b32.xlu1 %v4447_v16, %s4691_s17  ;;  %v4452_v37 = vld [vmem:[#allocation10 + $0xa] ss:$0 sm:$0xff]  ;;  %v808_v16 = vsel %vm805_vm6, %v806_v41, %v807_v12 }
 0x82e   :  { %v813_v2 = vadd.f32 %v808_v16, %v790_v59  ;;  %v4546_v16 = vld [vmem:[#allocation3] sm:$0xc0] }
 0x82f   :  { %v1009_v59 = vmul.f32 %v4546_v16, %v4372_v53 }
 0x831   :  { %2728 = vrot.lane.b32.xlu0 %v6251_v8, %s4682_s28  ;;  %2915 = vrot.lane.b32.xlu1 %v4450_v4, %s4680_s26  ;;  %v841_v8 = vadd.f32 %v5901_v20, %v813_v2  ;;  %v801_v4 = vmul.f32 %v4545_v31, %v4365_v34  ;;  %v4453_v34 = vld [vmem:[#allocation10 + $0xb] ss:$0 sm:$0xff]  ;;  %v4462_v2 = vld [vmem:[#allocation10 + $0x14] ss:$0 sm:$0xff] }
 0x833   :  { %v869_v41 = vadd.f32 %v5903_v39, %v841_v8  ;;  %v809_v33 = vrot.slane %v801_v4, 3  ;;  %v1016_v8 = vrot.slane %v1009_v59, 6  ;;  %v7488_v4 = vrot.slane %v6242_v61, 7 }
 0x835   :  { %2818 = vrot.lane.b32.xlu0 %v4446_v51, %s4689_s15  ;;  %2971 = vrot.lane.b32.xlu1 %v4452_v37, %s4682_s28  ;;  %v897_v20 = vadd.f32 %v5918_v11, %v869_v41  ;;  %v810_v39 = vsel %vm805_vm6, %v807_v12, %v809_v33  ;;  %v4460_v51 = vld [vmem:[#allocation10 + $0x12] ss:$0 sm:$0xff]  ;;  %v4458_v12 = vld [vmem:[#allocation10 + $0x10] ss:$0 sm:$0xff]  ;;  %v4467_v41 = vld [vmem:[#allocation10 + $0x19] ss:$0 sm:$0xff] }
 0x836   :  { %v814_v60 = vadd.f32 %v810_v39, %v791_v10  ;;  %v7489_v33 = vld [vmem:[#allocation45_spill] sm:$0xff]  ;;  %v4472_v39 = vld [vmem:[#allocation10 + $0x1e] ss:$0 sm:$0xff] }
 0x837   :  { %v925_v7 = vadd.f32 %v5920_v13, %v897_v20  ;;  %v997_v61 = vsel %vm785_vm11, %v6052_v52, %v7489_v33 }
 0x838   :  { %v842_v37 = vadd.f32 %v6020_v0, %v814_v60 }
 0x839   :  { %2862 = vrot.lane.b32.xlu0 %v4448_v23, %s4693_s19  ;;  %3027 = vrot.lane.b32.xlu1 %v4454_v27, %s4691_s17  ;;  %v953_v11 = vadd.f32 %v5938_v3, %v925_v7  ;;  %v7487_v23 = vld [vmem:[#allocation44_spill] sm:$0xff]  ;;  %v1018_v3 = vsel %vm1015_vm7, %v1016_v8, %v1017_v32 }
 0x83a   :  { %v996_v13 = vsel %vm785_vm11, %v5940_v54, %v7487_v23  ;;  %v870_v27 = vadd.f32 %v6018_v43, %v842_v37  ;;  %v4461_v43 = vld [vmem:[#allocation10 + $0x13] ss:$0 sm:$0xff]  ;;  %v4548_v37 = vld [vmem:[#allocation3 + $0x20] sm:$0xff] }
 0x83b   :  { %v1000_v0 = vadd.f32 %v996_v13, %v953_v11  ;;  %v4549_v11 = vld [vmem:[#allocation3 + $0x10] sm:$0xfe] }
 0x83c   :  { %v898_v31 = vadd.f32 %v6028_v55, %v870_v27 }
 0x83d   :  { %2943 = vrot.lane.b32.xlu0 %v4451_v57, %s4681_s27  ;;  %3124 = vrot.lane.b32.xlu1 %v4457_v50, %s4680_s26  ;;  %v1023_v54 = vadd.f32 %v1018_v3, %v1000_v0  ;;  %v4547_v50 = vld [vmem:[#allocation3 + $0x20] sm:$0x3f] }
 0x83e   :  { %v926_v57 = vadd.f32 %v6026_v45, %v898_v31  ;;  %v1011_v5 = vmul.f32 %v4547_v50, %v4372_v53  ;;  %v4474_v53 = vld [vmem:[#allocation10 + $0x20] ss:$0 sm:$0xff]  ;;  %v7491_v0 = vld [vmem:[#allocation59_spill] sm:$0xff]  ;;  %v4550_v31 = vld [vmem:[#allocation3 + $0x30] sm:$0x1] }
 0x83f   :  { %v1051_v55 = vadd.f32 %v5956_v17, %v1023_v54 }
 0x840   :  { %v954_v10 = vadd.f32 %v6040_v35, %v926_v57  ;;  %v1019_v20 = vrot.slane %v1011_v5, 6  ;;  %v4468_v35 = vld [vmem:[#allocation10 + $0x1a] ss:$0 sm:$0xff] }
 0x841   :  { %2999 = vrot.lane.b32.xlu0 %v4453_v34, %s4689_s15  ;;  %3180 = vrot.lane.b32.xlu1 %v4459_v24, %s4682_s28  ;;  %v1079_v45 = vadd.f32 %v5958_v46, %v1051_v55  ;;  %v4466_v24 = vld [vmem:[#allocation10 + $0x18] ss:$0 sm:$0xff] }
 0x842   :  { %v1001_v34 = vadd.f32 %v997_v61, %v954_v10  ;;  %v1020_v17 = vsel %vm1015_vm7, %v1017_v32, %v1019_v20  ;;  %v7496_v61 = vld [vmem:[#allocation53_spill] sm:$0xff] }
 0x843   :  { %v1107_v52 = vadd.f32 %v5975_v56, %v1079_v45  ;;  %v7498_v45 = vld [vmem:[#allocation42_spill] sm:$0xff] }
 0x844   :  { %v1024_v7 = vadd.f32 %v1020_v17, %v1001_v34 }
 0x845   :  { %3057 = vrot.lane.b32.xlu0 %v4455_v28, %s4693_s19  ;;  %3208 = vrot.lane.b32.xlu1 %v4460_v51, %s4689_s15  ;;  %v1135_v46 = vadd.f32 %v5977_v63, %v1107_v52  ;;  %v4471_v28 = vld [vmem:[#allocation10 + $0x1d] ss:$0 sm:$0xff]  ;;  %v4379_v51 = vld [vmem:[#allocation10 + $0x15] ss:$0 sm:$0xff] }
 0x846   :  { %v1052_v60 = vadd.f32 %v6062_v29, %v1024_v7  ;;  %v1221_v16 = vmul.f32 %v4548_v37, %v4379_v51  ;;  %v7499_v52 = vld [vmem:[#allocation30_spill] sm:$0xff] }
 0x847   :  { %v1163_v59 = vadd.f32 %v5991_v44, %v1135_v46 }
 0x848   :  { %v1080_v56 = vadd.f32 %v6038_v49, %v1052_v60  ;;  %v1228_v63 = vrot.slane %v1221_v16, 1  ;;  %v7502_v16 = vld [vmem:[#allocation43_spill] sm:$0xff] }
 0x849   :  { %3152 = vrot.lane.b32.xlu0 %v4458_v12, %s4681_s27  ;;  %3266 = vrot.lane.b32.xlu1 %v4462_v2, %s4693_s19  ;;  %v1220_v12 = vmul.f32 %v4549_v11, %v4379_v51  ;;  %v7490_v2 = vld [vmem:[#allocation58_spill] sm:$0xff] }
 0x84a   :  { %v1206_v23 = vsel %vm785_vm11, %v5993_v15, %v7490_v2  ;;  %v1108_v13 = vadd.f32 %v6074_v62, %v1080_v56  ;;  %v1222_v15 = vmul.f32 %v4550_v31, %v4379_v51  ;;  %v7503_v56 = vld [vmem:[#allocation64_spill] sm:$0xff] }
 0x84b   :  { %v1210_v29 = vadd.f32 %v1206_v23, %v1163_v59  ;;  %v1227_v27 = vrot.slane %v1220_v12, 1  ;;  %v4552_v12 = vld [vmem:[#allocation3 + $0x30] sm:$0xf]  ;;  %v7505_v23 = vld [vmem:[#allocation51_spill] sm:$0xff] }
 0x84c   :  { %v1136_v44 = vadd.f32 %v6050_v9, %v1108_v13  ;;  %v1230_v62 = vrot.slane %v1222_v15, 1  ;;  %v7494_v9 = vld [vmem:[#allocation61_spill] sm:$0xff]  ;;  %v4393_v15 = vld [vmem:[#allocation10 + $0x23] ss:$0 sm:$0xff] }
 0x84d   :  { %2730 = vrot.lane.b32.xlu0 %v7488_v4, %s4682_s28  ;;  %3362 = vrot.lane.b32.xlu1 %v4465_v6, %s4681_s27  ;;  %v1229_v8 = vsel %vm1226_vm8, %v1227_v27, %v1228_v63  ;;  %v1207_v6 = vsel %vm785_vm11, %v6094_v14, %v7491_v0  ;;  %v7492_v4 = vld [vmem:[#allocation46_spill] sm:$0xff]  ;;  %v7495_v14 = vld [vmem:[#allocation63_spill] sm:$0xff] }
 0x84e   :  { %v1234_v32 = vadd.f32 %v1229_v8, %v1210_v29  ;;  %v1164_v3 = vadd.f32 %v6086_v36, %v1136_v44  ;;  %v1231_v50 = vsel %vm1226_vm8, %v1228_v63, %v1230_v62  ;;  %v1418_v10 = vsel %vm785_vm11, %v7496_v61, %v7495_v14  ;;  %v7497_v36 = vld [vmem:[#allocation39_spill] sm:$0xff]  ;;  %v7506_v29 = vld [vmem:[#allocation33_spill] sm:$0xff]  ;;  %v7513_v14 = vld [vmem:[#allocation48_spill] sm:$0xff] }
 0x84f   :  { %v7510_v62 = vld [vmem:[#allocation69_spill] sm:$0xff] }
 0x850   :  { %v1262_v49 = vadd.f32 %v6060_v19, %v1234_v32  ;;  %v4386_v19 = vld [vmem:[#allocation10 + $0x1c] ss:$0 sm:$0xff]  ;;  %v7507_v32 = vld [vmem:[#allocation49_spill] sm:$0xff] }
 0x851   :  { %3236 = vrot.lane.b32.xlu0 %v4461_v43, %s4691_s17  ;;  %3418 = vrot.lane.b32.xlu1 %v4467_v41, %s4689_s15  ;;  %v1211_v43 = vadd.f32 %v1207_v6, %v1164_v3  ;;  %v7493_v41 = vld [vmem:[#allocation20_spill] sm:$0xff]  ;;  %v1433_v2 = vmul.f32 %v4552_v12, %v4386_v19  ;;  %v7508_v6 = vld [vmem:[#allocation65_spill] sm:$0xff]  ;;  %v1642_v3 = vmul.f32 %v4548_v37, %v4393_v15 }
 0x852   :  { %v1290_v54 = vadd.f32 %v7492_v4, %v1262_v49  ;;  %v4553_v4 = vld [vmem:[#allocation3 + $0x10] sm:$0x80] }
 0x853   :  { %v1235_v5 = vadd.f32 %v1231_v50, %v1211_v43  ;;  %v1441_v8 = vrot.slane %v1433_v2, 4  ;;  %v7509_v43 = vld [vmem:[#allocation21_spill] sm:$0xff] }
 0x854   :  { %v1318_v57 = vadd.f32 %v7493_v41, %v1290_v54  ;;  %v1641_v54 = vmul.f32 %v4553_v4, %v4393_v15  ;;  %v1628_v41 = vsel %vm785_vm11, %v7510_v62, %v7509_v43  ;;  %v4475_v43 = vld [vmem:[#allocation10 + $0x21] ss:$0 sm:$0xff]  ;;  %v7523_v62 = vld [vmem:[#allocation72_spill] sm:$0xff] }
 0x855   :  { %3334 = vrot.lane.b32.xlu0 %v4464_v58, %s4680_s26  ;;  %3477 = vrot.lane.b32.xlu1 %v4469_v38, %s4693_s19  ;;  %v1432_v58 = vmul.f32 %v4548_v37, %v4386_v19  ;;  %v4551_v38 = vld [vmem:[#allocation3 + $0x10] sm:$0xf0]  ;;  %v1263_v20 = vadd.f32 %v7497_v36, %v1235_v5  ;;  %v7512_v5 = vld [vmem:[#allocation52_spill] sm:$0xff] }
 0x856   :  { %v1346_v55 = vadd.f32 %v7494_v9, %v1318_v57  ;;  %v1431_v33 = vmul.f32 %v4551_v38, %v4386_v19  ;;  %v7511_v57 = vld [vmem:[#allocation56_spill] sm:$0xff]  ;;  %v1647_v38 = vrot.slane %v1641_v54, 7  ;;  %v7514_v36 = vld [vmem:[#allocation25_spill] sm:$0xff] }
 0x857   :  { %v1291_v7 = vadd.f32 %v7499_v52, %v1263_v20  ;;  %v7516_v52 = vld [vmem:[#allocation62_spill] sm:$0xff] }
 0x858   :  { %v1374_v34 = vadd.f32 %v7498_v45, %v1346_v55  ;;  %v1438_v17 = vrot.slane %v1431_v33, 4  ;;  %v1648_v55 = vrot.slane %v1642_v3, 7  ;;  %v6427_v33 = vpop.permute.xlu1 %2001  ;;  %v4555_v3 = vld [vmem:[#allocation3 + $0x20] sm:$0xfc] }
 0x859   :  { %3390 = vrot.lane.b32.xlu0 %v4466_v24, %s4682_s28  ;;  %3572 = vrot.lane.b32.xlu1 %v4472_v39, %s4681_s27  ;;  %v1439_v24 = vrot.slane %v1432_v58, 4 }
 0x85a   :  { %v1422_v39 = vadd.f32 %v1418_v10, %v1374_v34  ;;  %v1649_v37 = vsel %vm623_vm10, %v1647_v38, %v1648_v55 }
 0x85b   :  { %v1442_v49 = vsel %vm1437_vm9, %v1439_v24, %v1441_v8 }
 0x85d   :  { %3446 = vrot.lane.b32.xlu0 %v4468_v35, %s4691_s17  ;;  %3628 = vrot.lane.b32.xlu1 %v4474_v53, %s4689_s15  ;;  %v1440_v35 = vsel %vm1437_vm9, %v1438_v17, %v1439_v24  ;;  %v7500_v53 = vld [vmem:[#allocation60_spill] sm:$0xff] }
 0x85e   :  { %v1319_v46 = vadd.f32 %v7500_v53, %v1291_v7  ;;  %v1445_v60 = vadd.f32 %v1440_v35, %v1422_v39  ;;  %v7515_v39 = vld [vmem:[#allocation50_spill] sm:$0xff]  ;;  %v7517_v35 = vld [vmem:[#allocation31_spill] sm:$0xff] }
 0x85f   :  { %v7518_v53 = vld [vmem:[#allocation71_spill] sm:$0xff] }
 0x860   :  { %v1473_v59 = vadd.f32 %v7502_v16, %v1445_v60  ;;  %v4554_v60 = vld [vmem:[#allocation3 + $0x30] sm:$0x7f] }
 0x861   :  { %3544 = vrot.lane.b32.xlu0 %v4471_v28, %s4680_s26  ;;  %v7501_v28 = vld [vmem:[#allocation37_spill] sm:$0xff] }
 0x862   :  { %v1347_v51 = vadd.f32 %v7501_v28, %v1319_v46  ;;  %v1501_v13 = vadd.f32 %v7506_v29, %v1473_v59  ;;  %v1629_v46 = vsel %vm785_vm11, %v7518_v53, %v7517_v35  ;;  %v1643_v28 = vmul.f32 %v4554_v60, %v4393_v15  ;;  %v7520_v59 = vld [vmem:[#allocation73_spill] sm:$0xff]  ;;  %v7529_v60 = vld [vmem:[#allocation27_spill] sm:$0xff] }
 0x864   :  { %v1375_v63 = vadd.f32 %v7505_v23, %v1347_v51  ;;  %v1529_v44 = vadd.f32 %v7507_v32, %v1501_v13  ;;  %v7519_v51 = vld [vmem:[#allocation67_spill] sm:$0xff]  ;;  %v1650_v2 = vrot.slane %v1643_v28, 7  ;;  %v7521_v23 = vld [vmem:[#allocation57_spill] sm:$0xff] }
 0x865   :  { %3600 = vrot.lane.b32.xlu0 %v4473_v40, %s4682_s28  ;;  %v7504_v40 = vld [vmem:[#allocation54_spill] sm:$0xff]  ;;  %v7522_v32 = vld [vmem:[#allocation75_spill] sm:$0xff] }
 0x866   :  { %v1419_v11 = vsel %vm785_vm11, %v7504_v40, %v7503_v56  ;;  %v1557_v31 = vadd.f32 %v7508_v6, %v1529_v44  ;;  %v1651_v29 = vsel %vm623_vm10, %v1648_v55, %v1650_v2  ;;  %v7526_v55 = vld [vmem:[#allocation68_spill] sm:$0xff] }
 0x867   :  { %v1423_v27 = vadd.f32 %v1419_v11, %v1375_v63 }
 0x868   :  { %v1585_v9 = vadd.f32 %v7512_v5, %v1557_v31  ;;  %v4400_v31 = vld [vmem:[#allocation10 + $0x2a] ss:$0 sm:$0xff] }
 0x869   :  { %v1446_v0 = vadd.f32 %v1442_v49, %v1423_v27  ;;  %v1851_v4 = vmul.f32 %v4555_v3, %v4400_v31  ;;  %v1852_v5 = vmul.f32 %v6256_v22, %v4400_v31 }
 0x86a   :  { %v1632_v58 = vadd.f32 %v1628_v41, %v1585_v9  ;;  %v7525_v9 = vld [vmem:[#allocation22_spill] sm:$0xff] }
 0x86b   :  { %v1474_v50 = vadd.f32 %v7511_v57, %v1446_v0  ;;  %v7524_v57 = vld [vmem:[#allocation26_spill] sm:$0xff]  ;;  %v1858_v38 = vrot.slane %v1851_v4, 2 }
 0x86c   :  { %v1654_v45 = vadd.f32 %v1649_v37, %v1632_v58  ;;  %v1837_v58 = vsel %vm785_vm11, %v7526_v55, %v7525_v9  ;;  %v7527_v37 = vld [vmem:[#allocation55_spill] sm:$0xff]  ;;  %v7535_v55 = vld [vmem:[#allocation18_spill] sm:$0xff] }
 0x86d   :  { %v1502_v61 = vadd.f32 %v7513_v14, %v1474_v50 }
 0x86e   :  { %v1682_v7 = vadd.f32 %v7516_v52, %v1654_v45 }
 0x86f   :  { %v1530_v20 = vadd.f32 %v7514_v36, %v1502_v61  ;;  %v4476_v61 = vld [vmem:[#allocation10 + $0x22] ss:$0 sm:$0xff] }
 0x870   :  { %v1710_v56 = vadd.f32 %v7520_v59, %v1682_v7 }
 0x871   :  { %v1558_v17 = vadd.f32 %v7515_v39, %v1530_v20 }
 0x872   :  { %v1738_v63 = vadd.f32 %v7521_v23, %v1710_v56  ;;  %v7530_v56 = vld [vmem:[#allocation70_spill] sm:$0xff]  ;;  %v7531_v23 = vld [vmem:[#allocation32_spill] sm:$0xff] }
 0x873   :  { %v1586_v16 = vadd.f32 %v7519_v51, %v1558_v17  ;;  %v7528_v17 = vld [vmem:[#allocation74_spill] sm:$0xff] }
 0x874   :  { %v1766_v44 = vadd.f32 %v7522_v32, %v1738_v63  ;;  %v7532_v63 = vld [vmem:[#allocation76_spill] sm:$0xff] }
 0x875   :  { %v1633_v12 = vadd.f32 %v1629_v46, %v1586_v16  ;;  %v1853_v16 = vmul.f32 %v6259_v26, %v4400_v31  ;;  %v7534_v31 = vld [vmem:[#allocation77_spill] sm:$0xff] }
 0x876   :  { %v1794_v50 = vadd.f32 %v7524_v57, %v1766_v44 }
 0x877   :  { %v1655_v8 = vadd.f32 %v1651_v29, %v1633_v12  ;;  %v1838_v29 = vsel %vm785_vm11, %v7532_v63, %v7531_v23  ;;  %v1861_v26 = vrot.slane %v1853_v16, 2 }
 0x878   :  { %v1841_v20 = vadd.f32 %v1837_v58, %v1794_v50 }
 0x879   :  { %v1683_v41 = vadd.f32 %v7523_v62, %v1655_v8  ;;  %v7533_v8 = vld [vmem:[#allocation66_spill] sm:$0xff] }
 0x87b   :  { %v1711_v36 = vadd.f32 %v7527_v37, %v1683_v41  ;;  %v6513_v37 = vld [vmem:[#allocation3 + $0x18] sm:$0xff] }
 0x87d   :  { %v1739_v22 = vadd.f32 %v7528_v17, %v1711_v36 }
 0x87f   :  { %v1767_v28 = vadd.f32 %v7529_v60, %v1739_v22 }
 0x881   :  { %v1795_v32 = vadd.f32 %v7533_v8, %v1767_v28 }
 0x88f   :  { %v6425_v19 = vpop.permute.xlu0 %2043  ;;  %v6434_v34 = vpop.permute.xlu1 %2041 }
 0x890   :  { %v2049_v50 = vsel %vm785_vm11, %v6434_v34, %v6425_v19  ;;  %v7536_v19 = vld [vmem:[#allocation19_spill] sm:$0xff] }
 0x893   :  { %v6431_v10 = vpop.permute.xlu0 %2047  ;;  %v6444_v40 = vpop.permute.xlu1 %2045 }
 0x897   :  { %v2727_v24 = vpop.permute.xlu0 %2726  ;;  %v2777_v6 = vpop.permute.xlu1 %2776 }
 0x898   :  { %2735 = vst.msk [vmem:[#allocation3 + $0x10] sm:$0xfe] %vm636_vm1, %v2727_v24  ;;  %v2779_v15 = vmul.f32 %v6277_v47, %v2777_v6  ;;  %v1859_v24 = vrot.slane %v1852_v5, 2 }
 0x89a   :  { %v1860_v7 = vsel %vm1857_vm3, %v1858_v38, %v1859_v24 }
 0x89b   :  { %v6446_v11 = vpop.permute.xlu0 %2099  ;;  %v2798_v39 = vpop.permute.xlu1 %2797  ;;  %v1865_v53 = vadd.f32 %v1860_v7, %v1841_v20  ;;  %v4479_v7 = vld [vmem:[#allocation10 + $0x25] ss:$0 sm:$0xff] }
 0x89c   :  { %v2800_v52 = vmul.f32 %v6277_v47, %v2798_v39 }
 0x89d   :  { %v1893_v12 = vadd.f32 %v7530_v56, %v1865_v53 }
 0x89f   :  { %v6450_v13 = vld [vmem:[#allocation3 + $0x10] sm:$0xff]  ;;  %v2756_v27 = vpop.permute.xlu0 %2755 }
 0x8a0   :  { %v2758_v49 = vmul.f32 %v6277_v47, %v2756_v27  ;;  %v2759_v0 = vmul.f32 %v2756_v27, %v6450_v13  ;;  %v2780_v45 = vmul.f32 %v2777_v6, %v6450_v13  ;;  %v2801_v46 = vmul.f32 %v2798_v39, %v6450_v13  ;;  %v2840_v27 = vpop.permute.xlu1 %2839 }
 0x8a1   :  { %v2842_v44 = vmul.f32 %v6277_v47, %v2840_v27  ;;  %v1842_v6 = vadd.f32 %v1838_v29, %v1795_v32  ;;  %v2843_v57 = vmul.f32 %v2840_v27, %v6450_v13 }
 0x8a2   :  { %2762 = vrot.lane.b32.xlu0 %v2758_v49, %s4684_s30  ;;  %2764 = vrot.lane.b32.xlu1 %v2759_v0, %s4684_s30  ;;  %v4478_v0 = vld [vmem:[#allocation10 + $0x24] ss:$0 sm:$0xff] }
 0x8a3   :  { %v2729_v54 = vpop.permute.xlu0 %2728 }
 0x8a4   :  { %2736 = vst.msk [vmem:[#allocation3 + $0x20] sm:$0xff] %vm638_vm4, %v2729_v54  ;;  %v1862_v54 = vsel %vm1857_vm3, %v1859_v24, %v1861_v26  ;;  %v2916_v36 = vpop.permute.xlu1 %2915 }
 0x8a5   :  { %v1866_v62 = vadd.f32 %v1862_v54, %v1842_v6  ;;  %v2919_v17 = vmul.f32 %v2916_v36, %v6450_v13 }
 0x8a6   :  { %3656 = vrot.lane.b32.xlu0 %v4475_v43, %s4691_s17  ;;  %2783 = vrot.lane.b32.xlu1 %v2779_v15, %s4683_s29  ;;  %v1921_v15 = vadd.f32 %v7534_v31, %v1893_v12 }
 0x8a7   :  { %v2819_v14 = vpop.permute.xlu0 %2818  ;;  %v1894_v58 = vadd.f32 %v7535_v55, %v1866_v62  ;;  %v2925_v28 = vrot.slane %v2919_v17, 3 }
 0x8a8   :  { %v2821_v51 = vmul.f32 %v6277_v47, %v2819_v14  ;;  %v2822_v2 = vmul.f32 %v2819_v14, %v6450_v13  ;;  %v1949_v3 = vadd.f32 %v6253_v18, %v1921_v15  ;;  %v2854_v18 = vld [vmem:[#allocation3 + $0x8] sm:$0xff]  ;;  %v2972_v12 = vpop.permute.xlu1 %2971 }
 0x8a9   :  { %v1922_v34 = vadd.f32 %v7536_v19, %v1894_v58  ;;  %v2975_v29 = vmul.f32 %v2972_v12, %v6450_v13  ;;  %v3049_v58 = vld [vmem:[#allocation3 + $0x8] sm:$0xf8] }
 0x8aa   :  { %2785 = vrot.lane.b32.xlu0 %v2780_v45, %s4683_s29  ;;  %3686 = vrot.lane.b32.xlu1 %v4476_v61, %s4693_s19  ;;  %v1977_v41 = vadd.f32 %v6272_v21, %v1949_v3  ;;  %v4407_v61 = vld [vmem:[#allocation11] ss:$0 sm:$0xff]  ;;  %v6520_v45 = vld [vmem:[#allocation3] sm:$0xf8] }
 0x8ab   :  { %v2863_v35 = vpop.permute.xlu0 %2862  ;;  %v2918_v39 = vmul.f32 %v2916_v36, %v6520_v45  ;;  %v1950_v22 = vadd.f32 %v6270_v30, %v1922_v34  ;;  %v4481_v30 = vld [vmem:[#allocation10 + $0x27] ss:$0 sm:$0xff]  ;;  %v2974_v63 = vmul.f32 %v2972_v12, %v6520_v45  ;;  %v2981_v26 = vrot.slane %v2975_v29, 3  ;;  %v6586_v19 = vld [vmem:[#allocation3 + $0x20] sm:$0x3f] }
 0x8ac   :  { %v2865_v4 = vmul.f32 %v6277_v47, %v2863_v35  ;;  %v2005_v5 = vadd.f32 %v6290_v48, %v1977_v41  ;;  %v2866_v14 = vmul.f32 %v2863_v35, %v2854_v18  ;;  %v2867_v21 = vmul.f32 %v2863_v35, %v6450_v13  ;;  %v4483_v18 = vld [vmem:[#allocation10 + $0x29] ss:$0 sm:$0xff]  ;;  %v4485_v34 = vld [vmem:[#allocation10 + $0x2b] ss:$0 sm:$0xff] }
 0x8ad   :  { %v2868_v24 = vmul.f32 %v2863_v35, %v6513_v37  ;;  %v1978_v53 = vadd.f32 %v6288_v42, %v1950_v22  ;;  %v6534_v35 = vld [vmem:[#allocation3 + $0x20] sm:$0x7]  ;;  %v2924_v60 = vrot.slane %v2918_v39, 3  ;;  %v3050_v22 = vld [vmem:[#allocation3 + $0x28] sm:$0x7] }
 0x8ae   :  { %2806 = vrot.lane.b32.xlu1 %v2801_v46, %s4685_s9  ;;  %2804 = vrot.lane.b32.xlu0 %v2800_v52, %s4685_s9  ;;  %v2053_v38 = vadd.f32 %v2049_v50, %v2005_v5  ;;  %v4480_v52 = vld [vmem:[#allocation10 + $0x26] ss:$0 sm:$0xff]  ;;  %v2050_v46 = vsel %vm785_vm11, %v6444_v40, %v6431_v10  ;;  %v2920_v56 = vmul.f32 %v2916_v36, %v6534_v35  ;;  %v6567_v50 = vld [vmem:[#allocation10 + $0x7] ss:$0 sm:$0xff] }
 0x8af   :  { %v6480_v59 = vpop.permute.xlu0 %2943  ;;  %v2926_v40 = vsel %vm805_vm6, %v2924_v60, %v2925_v28  ;;  %v2976_v3 = vmul.f32 %v2972_v12, %v6534_v35  ;;  %v2896_v36 = vmul.f32 %v6567_v50, %v6534_v35 }
 0x8b0   :  { %v6518_v20 = vadd.f32 %v4407_v61, %v2053_v38  ;;  %v2947_v42 = vmul.f32 %v6480_v59, %v6450_v13  ;;  %v2948_v10 = vmul.f32 %v6480_v59, %v6534_v35  ;;  %v2927_v23 = vrot.slane %v2920_v56, 3 }
 0x8b1   :  { %v2946_v27 = vmul.f32 %v6480_v59, %v6520_v45  ;;  %v6575_v38 = vmul.f32 %v6567_v50, %v6450_v13 }
 0x8b2   :  { %2827 = vrot.lane.b32.xlu1 %v2822_v2, %s4690_s16  ;;  %2825 = vrot.lane.b32.xlu0 %v2821_v51, %s4690_s16  ;;  %v2006_v51 = vadd.f32 %v6427_v33, %v1978_v53  ;;  %v4482_v33 = vld [vmem:[#allocation10 + $0x28] ss:$0 sm:$0xff]  ;;  %v2953_v8 = vrot.slane %v2947_v42, 3  ;;  %v2955_v32 = vrot.slane %v2948_v10, 3 }
 0x8b3   :  { %v6491_v49 = vpop.permute.xlu0 %2999  ;;  %v2952_v6 = vrot.slane %v2946_v27, 3 }
 0x8b4   :  { %v2054_v16 = vadd.f32 %v2050_v46, %v2006_v51  ;;  %v3002_v31 = vmul.f32 %v6491_v49, %v6520_v45  ;;  %v3003_v15 = vmul.f32 %v6491_v49, %v6450_v13  ;;  %v2956_v59 = vsel %vm805_vm6, %v2953_v8, %v2955_v32 }
 0x8b5   :  { %v2954_v41 = vsel %vm805_vm6, %v2952_v6, %v2953_v8 }
 0x8b6   :  { %3753 = vrot.lane.b32.xlu0 %v4478_v0, %s4680_s26  ;;  %2846 = vrot.lane.b32.xlu1 %v2842_v44, %s4692_s18  ;;  %v6547_v2 = vadd.f32 %v4407_v61, %v2054_v16  ;;  %v2980_v44 = vrot.slane %v2974_v63, 3  ;;  %v2928_v0 = vsel %vm805_vm6, %v2925_v28, %v2927_v23  ;;  %v3008_v54 = vrot.slane %v3002_v31, 3 }
 0x8b7   :  { %v6499_v43 = vpop.permute.xlu0 %3057  ;;  %v3009_v62 = vrot.slane %v3003_v15, 3  ;;  %v2903_v28 = vrot.slane %v2896_v36, 3 }
 0x8b8   :  { %v3063_v39 = vmul.f32 %v6499_v43, %v6513_v37  ;;  %v3065_v56 = vmul.f32 %v6499_v43, %v3050_v22  ;;  %v3060_v63 = vmul.f32 %v6499_v43, %v6520_v45  ;;  %v3062_v29 = vmul.f32 %v6499_v43, %v6450_v13 }
 0x8b9   :  { %v3010_v61 = vsel %vm805_vm6, %v3008_v54, %v3009_v62  ;;  %v3064_v6 = vmul.f32 %v6499_v43, %v6534_v35 }
 0x8ba   :  { %2848 = vrot.lane.b32.xlu0 %v2843_v57, %s4692_s18  ;;  %2873 = vrot.lane.b32.xlu1 %v2865_v4, %s4694_s20  ;;  %v3028_v4 = vpop.permute.xlu1 %3027  ;;  %v2982_v57 = vsel %vm805_vm6, %v2980_v44, %v2981_v26  ;;  %v3076_v16 = vrot.slane %v3063_v39, 3  ;;  %v3080_v32 = vrot.slane %v3065_v56, 3 }
 0x8bb   :  { %v6509_v9 = vpop.permute.xlu0 %3152  ;;  %v3031_v5 = vmul.f32 %v3028_v4, %v6450_v13  ;;  %v3032_v55 = vmul.f32 %v3028_v4, %v6534_v35 }
 0x8bc   :  { %v3081_v15 = vsel %vm805_vm6, %v3076_v16, %v3080_v32 }
 0x8bd   :  { %v3037_v17 = vrot.slane %v3031_v5, 3  ;;  %v3039_v53 = vrot.slane %v3032_v55, 3  ;;  %v4486_v5 = vld [vmem:[#allocation10 + $0x2c] ss:$0 sm:$0xff] }
 0x8be   :  { %2875 = vrot.lane.b32.xlu0 %v2866_v14, %s4694_s20  ;;  %2877 = vrot.lane.b32.xlu1 %v2867_v21, %s4694_s20  ;;  %v2983_v14 = vrot.slane %v2976_v3, 3  ;;  %v3004_v21 = vmul.f32 %v6491_v49, %v6534_v35  ;;  %v3030_v49 = vmul.f32 %v3028_v4, %v6520_v45  ;;  %v3125_v10 = vpop.permute.xlu1 %3124 }
 0x8bf   :  { %v2731_v48 = vpop.permute.xlu0 %2730  ;;  %v3040_v23 = vsel %vm805_vm6, %v3037_v17, %v3039_v53  ;;  %v3128_v4 = vmul.f32 %v3125_v10, %v6450_v13  ;;  %v3129_v55 = vmul.f32 %v3125_v10, %v6586_v19  ;;  %v4556_v53 = vld [vmem:[#allocation10 + $0x2e] ss:$0 sm:$0xff] }
 0x8c0   :  { %2737 = vst.msk [vmem:[#allocation3 + $0x30] sm:$0x1] %vm640_vm2, %v2731_v48  ;;  %v6582_v48 = vld [vmem:[#allocation10 + $0xe] ss:$0 sm:$0xff]  ;;  %v3011_v46 = vrot.slane %v3004_v21, 3  ;;  %v2984_v60 = vsel %vm805_vm6, %v2981_v26, %v2983_v14  ;;  %v3036_v42 = vrot.slane %v3030_v49, 3  ;;  %v3157_v14 = vmul.f32 %v6509_v9, %v6586_v19 }
 0x8c1   :  { %v3105_v51 = vmul.f32 %v6582_v48, %v6586_v19  ;;  %v3072_v26 = vrot.slane %v3060_v63, 3 }
 0x8c2   :  { %2879 = vrot.lane.b32.xlu0 %v2868_v24, %s4694_s20  ;;  %2066 = vrot.lane.b32.xlu1 %v6518_v20, %s4678_s3  ;;  %v3061_v24 = vmul.f32 %v6499_v43, %v3049_v58  ;;  %v3038_v44 = vsel %vm805_vm6, %v3036_v42, %v3037_v17  ;;  %v3181_v31 = vpop.permute.xlu1 %3180  ;;  %v4487_v43 = vld [vmem:[#allocation10 + $0x2d] ss:$0 sm:$0xff]  ;;  %v3156_v58 = vmul.f32 %v6509_v9, %v6450_v13  ;;  %v3164_v22 = vrot.slane %v3157_v14, 6 }
 0x8c3   :  { %v3237_v36 = vpop.permute.xlu0 %3236  ;;  %v3184_v39 = vmul.f32 %v3181_v31, %v6450_v13 }
 0x8c4   :  { %v3162_v17 = vrot.slane %v3156_v58, 6  ;;  %v6703_v58 = vld [vmem:[#allocation3 + $0x10] sm:$0xfe] }
 0x8c6   :  { %3809 = vrot.lane.b32.xlu0 %v4480_v52, %s4682_s28  ;;  %3781 = vrot.lane.b32.xlu1 %v4479_v7, %s4681_s27  ;;  %v2901_v52 = vrot.slane %v6575_v38, 3  ;;  %v6597_v7 = vmul.f32 %v6582_v48, %v6450_v13  ;;  %v3209_v35 = vpop.permute.xlu1 %3208  ;;  %v3165_v42 = vsel %vm1015_vm7, %v3162_v17, %v3164_v22  ;;  %v3888_v38 = vld [vmem:[#allocation3 + $0x38] sm:$0x7f] }
 0x8c8   :  { %v6610_v12 = vsel %vm805_vm6, %v2901_v52, %v2903_v28  ;;  %v3110_v47 = vrot.slane %v6597_v7, 6  ;;  %v3212_v28 = vmul.f32 %v3209_v35, %v6450_v13 }
 0x8ca   :  { %3837 = vrot.lane.b32.xlu1 %v4481_v30, %s4689_s15  ;;  %2929 = vrot.lane.b32.xlu0 %v2926_v40, %s4684_s30  ;;  %v3075_v30 = vrot.slane %v3061_v24, 3  ;;  %v3112_v40 = vrot.slane %v3105_v51, 6 }
 0x8cc   :  { %v6624_v27 = vsel %vm1015_vm7, %v3110_v47, %v3112_v40  ;;  %v3077_v8 = vsel %vm805_vm6, %v3075_v30, %v3076_v16  ;;  %v6664_v30 = vpop.permute.xlu0 %3334  ;;  %v3190_v16 = vrot.slane %v3184_v39, 6  ;;  %v3218_v40 = vrot.slane %v3212_v28, 6 }
 0x8ce   :  { %2068 = vrot.lane.b32.xlu1 %v6547_v2, %s4678_s3  ;;  %3865 = vrot.lane.b32.xlu0 %v4482_v33, %s4691_s17  ;;  %v3012_v33 = vsel %vm805_vm6, %v3009_v62, %v3011_v46  ;;  %v3078_v62 = vrot.slane %v3064_v6, 3 }
 0x8d0   :  { %v6677_v32 = vpop.permute.xlu0 %3390 }
 0x8d2   :  { %2931 = vrot.lane.b32.xlu1 %v2928_v0, %s4684_s30  ;;  %2959 = vrot.lane.b32.xlu0 %v2956_v59, %s4683_s29  ;;  %v3073_v0 = vrot.slane %v3062_v29, 3  ;;  %v6633_v59 = vld [vmem:[#allocation3] sm:$0xc0] }
 0x8d3   :  { %v3127_v3 = vmul.f32 %v3125_v10, %v6633_v59  ;;  %v3183_v24 = vmul.f32 %v3181_v31, %v6633_v59  ;;  %v3155_v49 = vmul.f32 %v6509_v9, %v6633_v59 }
 0x8d4   :  { %v3074_v54 = vsel %vm805_vm6, %v3072_v26, %v3073_v0 }
 0x8d5   :  { %v3189_v46 = vrot.slane %v3183_v24, 6  ;;  %v3161_v56 = vrot.slane %v3155_v49, 6 }
 0x8d6   :  { %2957 = vrot.lane.b32.xlu1 %v2954_v41, %s4683_s29  ;;  %2985 = vrot.lane.b32.xlu0 %v2982_v57, %s4685_s9  ;;  %v3133_v41 = vrot.slane %v3127_v3, 6  ;;  %v3134_v57 = vrot.slane %v3128_v4, 6 }
 0x8d7   :  { %v3163_v63 = vsel %vm1015_vm7, %v3161_v56, %v3162_v17  ;;  %v3191_v29 = vsel %vm1015_vm7, %v3189_v46, %v3190_v16  ;;  %v3259_v17 = vld [vmem:[#allocation3 + $0x28] sm:$0x3f]  ;;  %v6725_v56 = vld [vmem:[#allocation3 + $0x30] sm:$0x1] }
 0x8d8   :  { %v3135_v21 = vsel %vm1015_vm7, %v3133_v41, %v3134_v57  ;;  %v3241_v41 = vmul.f32 %v3237_v36, %v6586_v19 }
 0x8da   :  { %3895 = vrot.lane.b32.xlu1 %v4483_v18, %s4693_s19  ;;  %3013 = vrot.lane.b32.xlu0 %v3010_v61, %s4690_s16  ;;  %v3079_v18 = vsel %vm805_vm6, %v3073_v0, %v3078_v62  ;;  %v6649_v61 = vpop.permute.xlu1 %3266  ;;  %v6692_v62 = vpop.permute.xlu0 %3446  ;;  %v3248_v24 = vrot.slane %v3241_v41, 6 }
 0x8db   :  { %v3269_v26 = vmul.f32 %v6649_v61, %v6633_v59  ;;  %v3271_v0 = vmul.f32 %v6649_v61, %v6450_v13 }
 0x8de   :  { %2987 = vrot.lane.b32.xlu1 %v2984_v60, %s4685_s9  ;;  %3963 = vrot.lane.b32.xlu0 %v4485_v34, %s4680_s26  ;;  %v3136_v34 = vrot.slane %v3129_v55, 6  ;;  %v3211_v60 = vmul.f32 %v3209_v35, %v6633_v59  ;;  %v6662_v51 = vpop.permute.xlu1 %3362  ;;  %v3258_v55 = vld [vmem:[#allocation3 + $0x8] sm:$0xc0] }
 0x8e0   :  { %v3137_v9 = vsel %vm1015_vm7, %v3134_v57, %v3136_v34  ;;  %v3217_v10 = vrot.slane %v3211_v60, 6  ;;  %v3272_v34 = vmul.f32 %v6649_v61, %v6513_v37  ;;  %v3365_v37 = vmul.f32 %v6662_v51, %v6703_v58 }
 0x8e2   :  { %3015 = vrot.lane.b32.xlu1 %v3012_v33, %s4690_s16  ;;  %3043 = vrot.lane.b32.xlu0 %v3040_v23, %s4692_s18  ;;  %v3239_v33 = vmul.f32 %v3237_v36, %v6633_v59  ;;  %v3240_v23 = vmul.f32 %v3237_v36, %v6450_v13  ;;  %v3219_v3 = vsel %vm1015_vm7, %v3217_v10, %v3218_v40  ;;  %v3285_v28 = vrot.slane %v3272_v34, 6 }
 0x8e3   :  { %v3270_v36 = vmul.f32 %v6649_v61, %v3258_v55  ;;  %v3449_v34 = vmul.f32 %v6692_v62, %v6703_v58 }
 0x8e5   :  { %v3284_v60 = vrot.slane %v3270_v36, 6 }
 0x8e6   :  { %3084 = vrot.lane.b32.xlu0 %v3077_v8, %s4694_s20  ;;  %3041 = vrot.lane.b32.xlu1 %v3038_v44, %s4692_s18  ;;  %v6675_v8 = vpop.permute.xlu1 %3418  ;;  %v3213_v44 = vmul.f32 %v3209_v35, %v6586_v19  ;;  %v3282_v35 = vrot.slane %v3271_v0, 6 }
 0x8e8   :  { %v3220_v4 = vrot.slane %v3213_v44, 6  ;;  %v3393_v44 = vmul.f32 %v6677_v32, %v6703_v58 }
 0x8ea   :  { %3088 = vrot.lane.b32.xlu0 %v3081_v15, %s4694_s20  ;;  %3082 = vrot.lane.b32.xlu1 %v3074_v54, %s4694_s20  ;;  %v3246_v15 = vrot.slane %v3240_v23, 6  ;;  %v6690_v54 = vpop.permute.xlu1 %3477  ;;  %v3221_v14 = vsel %vm1015_vm7, %v3218_v40, %v3220_v4  ;;  %v3371_v40 = vrot.slane %v3365_v37, 1  ;;  %v3339_v23 = vmul.f32 %v6664_v30, %v6725_v56 }
 0x8eb   :  { %v3399_v41 = vrot.slane %v3393_v44, 1 }
 0x8ee   :  { %4019 = vrot.lane.b32.xlu0 %v4487_v43, %s4682_s28  ;;  %3086 = vrot.lane.b32.xlu1 %v3079_v18, %s4694_s20  ;;  %v3281_v43 = vrot.slane %v3269_v26, 6  ;;  %v6714_v22 = vpop.permute.xlu1 %3572 }
 0x8f2   :  { %3991 = vrot.lane.b32.xlu1 %v4486_v5, %s4681_s27  ;;  %3138 = vrot.lane.b32.xlu0 %v3135_v21, %s4684_s30  ;;  %v3273_v5 = vmul.f32 %v6649_v61, %v6586_v19  ;;  %v3283_v21 = vsel %vm1015_vm7, %v3281_v43, %v3282_v35 }
 0x8f4   :  { %v3287_v49 = vrot.slane %v3273_v5, 6 }
 0x8f6   :  { %4047 = vrot.lane.b32.xlu1 %v4556_v53, %s4689_s15  ;;  %4075 = vrot.lane.b32.xlu0 %v6266_v1, %s4691_s17  ;;  %v3185_v1 = vmul.f32 %v3181_v31, %v6586_v19  ;;  %v3245_v31 = vrot.slane %v3239_v33, 6  ;;  %v3337_v19 = vmul.f32 %v6664_v30, %v6703_v58  ;;  %v6716_v53 = vpop.permute.xlu0 %3544  ;;  %v3288_v10 = vsel %vm1015_vm7, %v3282_v35, %v3287_v49  ;;  %s4698_s15 = smov 2  }
 0x8f7   :  { %v3346_v35 = vrot.slane %v3339_v23, 1 }
 0x8f8   :  { %v3192_v6 = vrot.slane %v3185_v1, 6  ;;  %v3247_v18 = vsel %vm1015_vm7, %v3245_v31, %v3246_v15  ;;  %v3249_v1 = vsel %vm1015_vm7, %v3246_v15, %v3248_v24  ;;  %v3421_v31 = vmul.f32 %v6675_v8, %v6703_v58 }
 0x8fa   :  { %3140 = vrot.lane.b32.xlu1 %v3137_v9, %s4684_s30  ;;  %3168 = vrot.lane.b32.xlu0 %v3165_v42, %s4683_s29  ;;  %v3193_v57 = vsel %vm1015_vm7, %v3190_v16, %v3192_v6  ;;  %v3274_v16 = vmul.f32 %v6649_v61, %v3259_v17  ;;  %v3343_v9 = vrot.slane %v3337_v19, 1  ;;  %v6735_v61 = vpop.permute.xlu0 %3600  ;;  %v3427_v5 = vrot.slane %v3421_v31, 1 }
 0x8fc   :  { %v3289_v6 = vrot.slane %v3274_v16, 6 }
 0x8fe   :  { %3166 = vrot.lane.b32.xlu1 %v3163_v63, %s4683_s29  ;;  %3194 = vrot.lane.b32.xlu0 %v3191_v29, %s4685_s9  ;;  %v6733_v63 = vpop.permute.xlu1 %3628  ;;  %v3286_v29 = vsel %vm1015_vm7, %v3284_v60, %v3285_v28  ;;  %v3480_v60 = vmul.f32 %v6690_v54, %v6703_v58 }
 0x900   :  { %v3492_v44 = vrot.slane %v3480_v60, 1 }
 0x902   :  { %4106 = vrot.lane.b32.xlu1 %v6284_v25, %s4693_s19  ;;  %3222 = vrot.lane.b32.xlu0 %v3219_v3, %s4690_s16  ;;  %v6701_v25 = vld [vmem:[#allocation3 + $0x20] sm:$0xff] }
 0x903   :  { %v3338_v39 = vmul.f32 %v6664_v30, %v6701_v25  ;;  %v3366_v46 = vmul.f32 %v6662_v51, %v6701_v25  ;;  %v3394_v26 = vmul.f32 %v6677_v32, %v6701_v25  ;;  %v3367_v30 = vmul.f32 %v6662_v51, %v6725_v56 }
 0x904   :  { %v3422_v15 = vmul.f32 %v6675_v8, %v6701_v25  ;;  %v3450_v24 = vmul.f32 %v6692_v62, %v6701_v25 }
 0x905   :  { %v3344_v42 = vrot.slane %v3338_v39, 1  ;;  %v3372_v33 = vrot.slane %v3366_v46, 1  ;;  %v3374_v51 = vrot.slane %v3367_v30, 1 }
 0x906   :  { %3196 = vrot.lane.b32.xlu1 %v3193_v57, %s4685_s9  ;;  %3250 = vrot.lane.b32.xlu0 %v3247_v18, %s4692_s18  ;;  %v3400_v57 = vrot.slane %v3394_v26, 1  ;;  %v3290_v18 = vsel %vm1015_vm7, %v3285_v28, %v3289_v6  ;;  %v3428_v55 = vrot.slane %v3422_v15, 1  ;;  %v3455_v28 = vrot.slane %v3449_v34, 1  ;;  %v6797_v6 = vld [vmem:[#allocation3 + $0x28] sm:$0xff] }
 0x907   :  { %v3345_v0 = vsel %vm1226_vm8, %v3343_v9, %v3344_v42  ;;  %v3373_v43 = vsel %vm1226_vm8, %v3371_v40, %v3372_v33  ;;  %v3347_v19 = vsel %vm1226_vm8, %v3344_v42, %v3346_v35  ;;  %v3456_v16 = vrot.slane %v3450_v24, 1  ;;  %v6818_v24 = vld [vmem:[#allocation10] ss:$0 sm:$0xff] }
 0x908   :  { %v3401_v39 = vsel %vm1226_vm8, %v3399_v41, %v3400_v57  ;;  %v3429_v46 = vsel %vm1226_vm8, %v3427_v5, %v3428_v55  ;;  %v3375_v9 = vsel %vm1226_vm8, %v3372_v33, %v3374_v51  ;;  %v3482_v42 = vmul.f32 %v6690_v54, %v6701_v25 }
 0x909   :  { %v3484_v26 = vmul.f32 %v6690_v54, %v6725_v56  ;;  %v6805_v15 = vmul.f32 %v6716_v53, %v6701_v25  ;;  %v3483_v5 = vmul.f32 %v6690_v54, %v6797_v6 }
 0x90a   :  { %3224 = vrot.lane.b32.xlu1 %v3221_v14, %s4690_s16  ;;  %3291 = vrot.lane.b32.xlu0 %v3283_v21, %s4694_s20  ;;  %v3395_v14 = vmul.f32 %v6677_v32, %v6725_v56  ;;  %v3423_v32 = vmul.f32 %v6675_v8, %v6725_v56  ;;  %v3493_v33 = vrot.slane %v3482_v42, 1 }
 0x90c   :  { %v3402_v49 = vrot.slane %v3395_v14, 1  ;;  %v3430_v8 = vrot.slane %v3423_v32, 1  ;;  %v3470_v14 = vld [vmem:[#allocation3 + $0x38] sm:$0x1] }
 0x90d   :  { %v3485_v42 = vmul.f32 %v6690_v54, %v3470_v14 }
 0x90e   :  { %3252 = vrot.lane.b32.xlu1 %v3249_v1, %s4692_s18  ;;  %3295 = vrot.lane.b32.xlu0 %v3288_v10, %s4694_s20  ;;  %v3451_v1 = vmul.f32 %v6692_v62, %v6725_v56  ;;  %v3403_v23 = vsel %vm1226_vm8, %v3400_v57, %v3402_v49  ;;  %v6799_v62 = vld [vmem:[#allocation3 + $0x10] sm:$0xf0]  ;;  %v3431_v41 = vsel %vm1226_vm8, %v3428_v55, %v3430_v8 }
 0x90f   :  { %v3547_v31 = vmul.f32 %v6716_v53, %v6799_v62  ;;  %v3494_v57 = vsel %vm1226_vm8, %v3492_v44, %v3493_v33  ;;  %v3575_v34 = vmul.f32 %v6714_v22, %v6799_v62  ;;  %v6822_v55 = vmul.f32 %v6714_v22, %v6701_v25 }
 0x910   :  { %v3458_v30 = vrot.slane %v3451_v1, 1  ;;  %v2746_v8 = vmul.f32 %v6818_v24, %v6450_v13  ;;  %v6836_v1 = vld [vmem:[#allocation3 + $0x30] sm:$0xf]  ;;  %v3603_v44 = vmul.f32 %v6735_v61, %v6799_v62  ;;  %v3604_v13 = vmul.f32 %v6735_v61, %v6701_v25 }
 0x912   :  { %3293 = vrot.lane.b32.xlu1 %v3286_v29, %s4694_s20  ;;  %3348 = vrot.lane.b32.xlu0 %v3345_v0, %s4684_s30  ;;  %v3457_v29 = vsel %vm1226_vm8, %v3455_v28, %v3456_v16  ;;  %v3468_v0 = vld [vmem:[#allocation3 + $0x18] sm:$0xfe]  ;;  %v3610_v14 = vrot.slane %v3604_v13, 4 }
 0x913   :  { %v3481_v51 = vmul.f32 %v6690_v54, %v3468_v0 }
 0x914   :  { %v6751_v3 = vpop.permute.xlu0 %2762  ;;  %v6753_v4 = vpop.permute.xlu1 %2764 }
 0x915   :  { %v3495_v28 = vrot.slane %v3481_v51, 1  ;;  %v2769_v54 = vadd.f32 %v6753_v4, %v2746_v8  ;;  %v3631_v4 = vmul.f32 %v6733_v63, %v6799_v62 }
 0x916   :  { %3297 = vrot.lane.b32.xlu1 %v3290_v18, %s4694_s20  ;;  %3376 = vrot.lane.b32.xlu0 %v3373_v43, %s4683_s29  ;;  %v3498_v18 = vrot.slane %v3484_v26, 1 }
 0x918   :  { %v6761_v21 = vpop.permute.xlu0 %3656  ;;  %v6763_v36 = vpop.permute.xlu1 %2783  ;;  %v3499_v60 = vsel %vm1226_vm8, %v3493_v33, %v3498_v18 }
 0x91a   :  { %3350 = vrot.lane.b32.xlu1 %v3347_v19, %s4684_s30  ;;  %3404 = vrot.lane.b32.xlu0 %v3401_v39, %s4685_s9  ;;  %v3553_v19 = vrot.slane %v3547_v31, 4  ;;  %v3554_v39 = vrot.slane %v6805_v15, 4  ;;  %v3500_v31 = vrot.slane %v3485_v42, 1 }
 0x91c   :  { %v6775_v17 = vpop.permute.xlu0 %2785  ;;  %v6777_v37 = vpop.permute.xlu1 %3686 }
 0x91d   :  { %v2790_v15 = vadd.f32 %v6775_v17, %v2769_v54  ;;  %v3609_v17 = vrot.slane %v3603_v44, 4 }
 0x91e   :  { %3378 = vrot.lane.b32.xlu1 %v3375_v9, %s4683_s29  ;;  %3432 = vrot.lane.b32.xlu0 %v3429_v46, %s4690_s16  ;;  %v3459_v46 = vsel %vm1226_vm8, %v3456_v16, %v3458_v30  ;;  %v3496_v9 = vrot.slane %v3483_v5, 1  ;;  %v3549_v16 = vmul.f32 %v6716_v53, %v6836_v1  ;;  %v3555_v30 = vsel %vm1437_vm9, %v3553_v19, %v3554_v39 }
 0x91f   :  { %v3577_v53 = vmul.f32 %v6714_v22, %v6836_v1  ;;  %v3611_v44 = vsel %vm1437_vm9, %v3609_v17, %v3610_v14 }
 0x920   :  { %v6789_v10 = vpop.permute.xlu0 %2804  ;;  %v2807_v40 = vpop.permute.xlu1 %2806  ;;  %v3497_v0 = vsel %vm1226_vm8, %v3495_v28, %v3496_v9 }
 0x921   :  { %v2811_v18 = vadd.f32 %v2807_v40, %v2790_v15  ;;  %v3584_v22 = vrot.slane %v3577_v53, 4  ;;  %v3605_v40 = vmul.f32 %v6735_v61, %v6836_v1  ;;  %v3689_v53 = vmul.f32 %v6777_v37, %v6799_v62 }
 0x922   :  { %3406 = vrot.lane.b32.xlu1 %v3403_v23, %s4685_s9  ;;  %3460 = vrot.lane.b32.xlu0 %v3457_v29, %s4692_s18  ;;  %v3581_v23 = vrot.slane %v3575_v34, 4  ;;  %v3582_v29 = vrot.slane %v6822_v55, 4  ;;  %v3501_v34 = vsel %vm1226_vm8, %v3496_v9, %v3500_v31 }
 0x923   :  { %v3612_v61 = vrot.slane %v3605_v40, 4  ;;  %v3701_v17 = vrot.slane %v3689_v53, 4 }
 0x924   :  { %v6807_v43 = vpop.permute.xlu0 %2825  ;;  %v2828_v35 = vpop.permute.xlu1 %2827  ;;  %v3583_v55 = vsel %vm1437_vm9, %v3581_v23, %v3582_v29  ;;  %v6875_v23 = vmul.f32 %v6761_v21, %v6701_v25  ;;  %v3585_v13 = vsel %vm1437_vm9, %v3582_v29, %v3584_v22  ;;  %v3633_v29 = vmul.f32 %v6733_v63, %v6836_v1  ;;  %v6916_v22 = vld [vmem:[#allocation3 + $0x10] sm:$0x80] }
 0x925   :  { %v2832_v19 = vadd.f32 %v2828_v35, %v2811_v18  ;;  %v3659_v35 = vmul.f32 %v6761_v21, %v6799_v62  ;;  %v3613_v18 = vsel %vm1437_vm9, %v3610_v14, %v3612_v61 }
 0x926   :  { %3434 = vrot.lane.b32.xlu1 %v3431_v41, %s4690_s16  ;;  %3502 = vrot.lane.b32.xlu0 %v3494_v57, %s4694_s20  ;;  %v6859_v41 = vmul.f32 %v6733_v63, %v6701_v25  ;;  %v3556_v57 = vrot.slane %v3549_v16, 4  ;;  %v3666_v15 = vrot.slane %v6875_v23, 4  ;;  %v3661_v63 = vmul.f32 %v6761_v21, %v6836_v1 }
 0x927   :  { %v3665_v31 = vrot.slane %v3659_v35, 4  ;;  %v3678_v35 = vld [vmem:[#allocation3 + $0x18] sm:$0xf0] }
 0x928   :  { %v6825_v32 = vpop.permute.xlu0 %3753  ;;  %v6827_v49 = vpop.permute.xlu1 %2846  ;;  %v3557_v9 = vsel %vm1437_vm9, %v3554_v39, %v3556_v57  ;;  %v3668_v23 = vrot.slane %v3661_v63, 4 }
 0x929   :  { %v3756_v14 = vmul.f32 %v6825_v32, %v6916_v22 }
 0x92a   :  { %3462 = vrot.lane.b32.xlu1 %v3459_v46, %s4692_s18  ;;  %3506 = vrot.lane.b32.xlu0 %v3499_v60, %s4694_s20  ;;  %v3637_v46 = vrot.slane %v3631_v4, 4  ;;  %v3638_v60 = vrot.slane %v6859_v41, 4  ;;  %v3691_v4 = vmul.f32 %v6777_v37, %v6701_v25 }
 0x92c   :  { %v2849_v33 = vpop.permute.xlu0 %2848  ;;  %v6844_v26 = vpop.permute.xlu1 %2873 }
 0x92d   :  { %v2853_v28 = vadd.f32 %v2849_v33, %v2832_v19  ;;  %v3693_v19 = vmul.f32 %v6777_v37, %v6836_v1 }
 0x92e   :  { %3504 = vrot.lane.b32.xlu1 %v3497_v0, %s4694_s20  ;;  %3558 = vrot.lane.b32.xlu0 %v3555_v30, %s4684_s30  ;;  %v3639_v0 = vsel %vm1437_vm9, %v3637_v46, %v3638_v60  ;;  %v6922_v46 = vmul.f32 %v6825_v32, %v6701_v25 }
 0x930   :  { %v6861_v51 = vpop.permute.xlu0 %2875  ;;  %v2878_v5 = vpop.permute.xlu1 %2877 }
 0x932   :  { %3508 = vrot.lane.b32.xlu1 %v3501_v34, %s4694_s20  ;;  %3586 = vrot.lane.b32.xlu0 %v3583_v55, %s4683_s29  ;;  %v3702_v34 = vrot.slane %v3691_v4, 4 }
 0x934   :  { %v2880_v42 = vpop.permute.xlu0 %2879  ;;  %v2067_v8 = vpop.permute.xlu1 %2066  ;;  %v3703_v21 = vsel %vm1437_vm9, %v3701_v17, %v3702_v34 }
 0x935   :  { %v2882_v16 = vsel %vm785_vm11, %v2878_v5, %v2880_v42  ;;  %2073 = vst.msk [vmem:[#allocation4] sm:$0xff] %vm2072_vm14, %v2067_v8  ;;  %v3667_v5 = vsel %vm1437_vm9, %v3665_v31, %v3666_v15  ;;  %v3640_v8 = vrot.slane %v3633_v29, 4 }
 0x936   :  { %v2886_v54 = vadd.f32 %v2882_v16, %v2853_v28  ;;  %3560 = vrot.lane.b32.xlu1 %v3557_v9, %s4684_s30  ;;  %3614 = vrot.lane.b32.xlu0 %v3611_v44, %s4685_s9  ;;  %v3707_v9 = vrot.slane %v3693_v19, 4  ;;  %v3762_v16 = vrot.slane %v3756_v14, 7  ;;  %v3763_v44 = vrot.slane %v6922_v46, 7 }
 0x937   :  { %v3641_v29 = vsel %vm1437_vm9, %v3638_v60, %v3640_v8  ;;  %v3669_v19 = vsel %vm1437_vm9, %v3666_v15, %v3668_v23  ;;  %v6965_v8 = vld [vmem:[#allocation3 + $0x30] sm:$0x7f] }
 0x938   :  { %v6882_v39 = vpop.permute.xlu0 %3809  ;;  %v6884_v33 = vpop.permute.xlu1 %3781  ;;  %v6891_v30 = vadd.f32 %v6610_v12, %v2886_v54  ;;  %v3708_v4 = vsel %vm1437_vm9, %v3702_v34, %v3707_v9  ;;  %v3764_v34 = vsel %vm623_vm10, %v3762_v16, %v3763_v44 }
 0x939   :  { %v3784_v31 = vmul.f32 %v6884_v33, %v6916_v22  ;;  %v6942_v53 = vmul.f32 %v6884_v33, %v6701_v25 }
 0x93a   :  { %3588 = vrot.lane.b32.xlu1 %v3585_v13, %s4683_s29  ;;  %3642 = vrot.lane.b32.xlu0 %v3639_v0, %s4690_s16  ;;  %v3690_v13 = vmul.f32 %v6777_v37, %v3678_v35  ;;  %v3692_v0 = vmul.f32 %v6777_v37, %v6797_v6 }
 0x93b   :  { %v3791_v15 = vrot.slane %v6942_v53, 7 }
 0x93c   :  { %v6902_v57 = vpop.permute.xlu0 %2929  ;;  %v6904_v12 = vpop.permute.xlu1 %3837  ;;  %v6908_v55 = vld [vmem:[#allocation4] sm:$0xff]  ;;  %v3704_v46 = vrot.slane %v3690_v13, 4  ;;  %v3705_v41 = vrot.slane %v3692_v0, 4 }
 0x93d   :  { %v2102_v42 = vmul.f32 %v6446_v11, %v6908_v55  ;;  %v3840_v9 = vmul.f32 %v6904_v12, %v6916_v22  ;;  %v6976_v35 = vmul.f32 %v6904_v12, %v6701_v25 }
 0x93e   :  { %3616 = vrot.lane.b32.xlu1 %v3613_v18, %s4685_s9  ;;  %3670 = vrot.lane.b32.xlu0 %v3667_v5, %s4692_s18  ;;  %v3679_v18 = vld [vmem:[#allocation3 + $0x38] sm:$0xf]  ;;  %v4557_v5 = vld [vmem:[#allocation3] sm:$0xff]  ;;  %v3706_v53 = vsel %vm1437_vm9, %v3704_v46, %v3705_v41 }
 0x93f   :  { %v2745_v17 = vmul.f32 %v4557_v5, %v6818_v24  ;;  %v3694_v60 = vmul.f32 %v6777_v37, %v3679_v18  ;;  %v3790_v24 = vrot.slane %v3784_v31, 7  ;;  %v3786_v18 = vmul.f32 %v6884_v33, %v6965_v8 }
 0x940   :  { %v6924_v40 = vpop.permute.xlu0 %3865  ;;  %v2069_v28 = vpop.permute.xlu1 %2068  ;;  %v3846_v5 = vrot.slane %v3840_v9, 7 }
 0x941   :  { %2074 = vst.msk [vmem:[#allocation4 + $0x8] sm:$0xff] %vm2072_vm14, %v2069_v28  ;;  %v3812_v28 = vmul.f32 %v6882_v39, %v6916_v22  ;;  %v2768_v37 = vadd.f32 %v6751_v3, %v2745_v17  ;;  %v3709_v13 = vrot.slane %v3694_v60, 4  ;;  %v3847_v17 = vrot.slane %v6976_v35, 7 }
 0x942   :  { %3711 = vrot.lane.b32.xlu0 %v3703_v21, %s4694_s20  ;;  %2106 = vrot.lane.b32.xlu1 %v2102_v42, %s4696_s25  ;;  %v6962_v42 = vmul.f32 %v6882_v39, %v6701_v25  ;;  %v3758_v21 = vmul.f32 %v6825_v32, %v6965_v8  ;;  %v3792_v32 = vsel %vm623_vm10, %v3790_v24, %v3791_v15  ;;  %v3793_v24 = vrot.slane %v3786_v18, 7 }
 0x943   :  { %v3818_v0 = vrot.slane %v3812_v28, 7  ;;  %v2789_v3 = vadd.f32 %v6763_v36, %v2768_v37  ;;  %v3868_v46 = vmul.f32 %v6924_v40, %v6916_v22  ;;  %v6998_v36 = vmul.f32 %v6924_v40, %v6701_v25 }
 0x944   :  { %v6933_v54 = vpop.permute.xlu0 %2959  ;;  %v2932_v61 = vpop.permute.xlu1 %2931  ;;  %v3819_v31 = vrot.slane %v6962_v42, 7  ;;  %v3710_v60 = vsel %vm1437_vm9, %v3705_v41, %v3709_v13  ;;  %v3814_v42 = vmul.f32 %v6882_v39, %v6965_v8  ;;  %v3848_v41 = vsel %vm623_vm10, %v3846_v5, %v3847_v17 }
 0x945   :  { %v3874_v13 = vrot.slane %v3868_v46, 7  ;;  %v2894_v39 = vmul.f32 %v6567_v50, %v6520_v45  ;;  %v3794_v45 = vsel %vm623_vm10, %v3791_v15, %v3793_v24  ;;  %v7040_v46 = vld [vmem:[#allocation3 + $0x20] sm:$0xfc]  ;;  %v7042_v15 = vld [vmem:[#allocation3 + $0x30] sm:$0xff] }
 0x946   :  { %3715 = vrot.lane.b32.xlu0 %v3708_v4, %s4694_s20  ;;  %3644 = vrot.lane.b32.xlu1 %v3641_v29, %s4690_s16  ;;  %v3765_v4 = vrot.slane %v3758_v21, 7  ;;  %v2810_v29 = vadd.f32 %v6789_v10, %v2789_v3  ;;  %v3820_v10 = vsel %vm623_vm10, %v3818_v0, %v3819_v31  ;;  %v2936_v21 = vadd.f32 %v2932_v61, %v6891_v30 }
 0x947   :  { %v3875_v0 = vrot.slane %v6998_v36, 7  ;;  %v2881_v61 = vsel %vm785_vm11, %v6844_v26, %v6861_v51  ;;  %v2900_v26 = vrot.slane %v2894_v39, 3 }
 0x948   :  { %v6952_v63 = vpop.permute.xlu0 %2985  ;;  %v6954_v14 = vpop.permute.xlu1 %2957  ;;  %v2831_v33 = vadd.f32 %v6807_v43, %v2810_v29  ;;  %v3766_v28 = vsel %vm623_vm10, %v3763_v44, %v3765_v4  ;;  %v2964_v3 = vadd.f32 %v6933_v54, %v2936_v21  ;;  %v3870_v54 = vmul.f32 %v6924_v40, %v6965_v8 }
 0x949   :  { %v3876_v50 = vsel %vm623_vm10, %v3874_v13, %v3875_v0 }
 0x94a   :  { %3767 = vrot.lane.b32.xlu0 %v3764_v34, %s4684_s30  ;;  %3672 = vrot.lane.b32.xlu1 %v3669_v19, %s4692_s18  ;;  %v2852_v30 = vadd.f32 %v6827_v49, %v2831_v33 }
 0x94c   :  { %v6978_v23 = vpop.permute.xlu0 %3013  ;;  %v6980_v16 = vpop.permute.xlu1 %3895 }
 0x94d   :  { %v3898_v43 = vmul.f32 %v6980_v16, %v6916_v22  ;;  %v3900_v44 = vmul.f32 %v6980_v16, %v6701_v25  ;;  %v3902_v5 = vmul.f32 %v6980_v16, %v6965_v8 }
 0x94e   :  { %3713 = vrot.lane.b32.xlu1 %v3706_v53, %s4694_s20  ;;  %3795 = vrot.lane.b32.xlu0 %v3792_v32, %s4683_s29  ;;  %v3821_v53 = vrot.slane %v3814_v42, 7  ;;  %v3842_v32 = vmul.f32 %v6904_v12, %v6965_v8  ;;  %v2885_v12 = vadd.f32 %v2881_v61, %v2852_v30 }
 0x94f   :  { %v3910_v18 = vrot.slane %v3898_v43, 7  ;;  %v3911_v49 = vrot.slane %v3900_v44, 7  ;;  %v3916_v21 = vrot.slane %v3902_v5, 7 }
 0x950   :  { %v6992_v19 = vpop.permute.xlu0 %3963  ;;  %v2988_v34 = vpop.permute.xlu1 %2987  ;;  %v3849_v42 = vrot.slane %v3842_v32, 7  ;;  %v3822_v24 = vsel %vm623_vm10, %v3819_v31, %v3821_v53  ;;  %v3901_v53 = vmul.f32 %v6980_v16, %v6797_v6 }
 0x951   :  { %v2992_v51 = vadd.f32 %v2988_v34, %v2964_v3  ;;  %v3966_v36 = vmul.f32 %v6992_v19, %v7040_v46  ;;  %v3912_v40 = vsel %vm623_vm10, %v3910_v18, %v3911_v49  ;;  %v3903_v18 = vmul.f32 %v6980_v16, %v3888_v38 }
 0x952   :  { %3717 = vrot.lane.b32.xlu1 %v3710_v60, %s4694_s20  ;;  %3823 = vrot.lane.b32.xlu0 %v3820_v10, %s4685_s9  ;;  %v7048_v60 = vmul.f32 %v6992_v19, %v7042_v15  ;;  %v3850_v3 = vsel %vm623_vm10, %v3847_v17, %v3849_v42 }
 0x953   :  { %v3972_v44 = vrot.slane %v3966_v36, 2 }
 0x954   :  { %v3044_v37 = vpop.permute.xlu0 %3043  ;;  %v3016_v9 = vpop.permute.xlu1 %3015  ;;  %v3973_v39 = vrot.slane %v7048_v60, 2 }
 0x955   :  { %v3020_v34 = vadd.f32 %v3016_v9, %v2992_v51  ;;  %v3877_v9 = vrot.slane %v3870_v54, 7 }
 0x956   :  { %3769 = vrot.lane.b32.xlu1 %v3766_v28, %s4684_s30  ;;  %3851 = vrot.lane.b32.xlu0 %v3848_v41, %s4690_s16  ;;  %v3887_v28 = vld [vmem:[#allocation3 + $0x18] sm:$0x80]  ;;  %v2902_v41 = vsel %vm805_vm6, %v2900_v26, %v2901_v52  ;;  %v3974_v35 = vsel %vm1857_vm3, %v3972_v44, %v3973_v39  ;;  %vm2221_vm6 = vcmask 523264  }
 0x957   :  { %v2907_v13 = vadd.f32 %v2902_v41, %v2885_v12  ;;  %v3899_v43 = vmul.f32 %v6980_v16, %v3887_v28  ;;  %v3048_v30 = vadd.f32 %v3044_v37, %v3020_v34  ;;  %v3878_v6 = vsel %vm623_vm10, %v3875_v0, %v3877_v9  ;;  %v7091_v34 = vld [vmem:[#allocation3 + $0x40] sm:$0x3] }
 0x958   :  { %v7028_v4 = vpop.permute.xlu0 %3084  ;;  %v7030_v29 = vpop.permute.xlu1 %3041  ;;  %v3918_v28 = vrot.slane %v3903_v18, 7  ;;  %v3968_v42 = vmul.f32 %v6992_v19, %v7091_v34  ;;  %v3103_v19 = vmul.f32 %v6582_v48, %v6633_v59 }
 0x959   :  { %v2935_v52 = vadd.f32 %v6902_v57, %v2907_v13  ;;  %v3913_v17 = vrot.slane %v3899_v43, 7 }
 0x95a   :  { %3797 = vrot.lane.b32.xlu1 %v3794_v45, %s4683_s29  ;;  %3879 = vrot.lane.b32.xlu0 %v3876_v50, %s4692_s18  ;;  %v3917_v45 = vsel %vm623_vm10, %v3911_v49, %v3916_v21  ;;  %v3914_v49 = vrot.slane %v3901_v53, 7 }
 0x95b   :  { %v2963_v37 = vadd.f32 %v6954_v14, %v2935_v52 }
 0x95c   :  { %v3089_v10 = vpop.permute.xlu0 %3088  ;;  %v7050_v33 = vpop.permute.xlu1 %3082  ;;  %v3915_v21 = vsel %vm623_vm10, %v3913_v17, %v3914_v49  ;;  %v3919_v53 = vsel %vm623_vm10, %v3914_v49, %v3918_v28 }
 0x95d   :  { %v2991_v36 = vadd.f32 %v6952_v63, %v2963_v37  ;;  %v3090_v48 = vsel %vm785_vm11, %v7050_v33, %v7028_v4 }
 0x95e   :  { %3825 = vrot.lane.b32.xlu1 %v3822_v24, %s4685_s9  ;;  %3920 = vrot.lane.b32.xlu0 %v3912_v40, %s4694_s20 }
 0x95f   :  { %v3019_v9 = vadd.f32 %v6978_v23, %v2991_v36 }
 0x960   :  { %v4020_v31 = vpop.permute.xlu0 %4019  ;;  %v3087_v61 = vpop.permute.xlu1 %3086 }
 0x961   :  { %v3091_v32 = vsel %vm785_vm11, %v3087_v61, %v3089_v10  ;;  %v4022_v51 = vmul.f32 %v4020_v31, %v7040_v46  ;;  %v7084_v14 = vmul.f32 %v4020_v31, %v7042_v15  ;;  %v3047_v59 = vadd.f32 %v7030_v29, %v3019_v9  ;;  %v4097_v9 = vld [vmem:[#allocation3 + $0x28] sm:$0xfc] }
 0x962   :  { %v3095_v50 = vadd.f32 %v3091_v32, %v3048_v30  ;;  %3853 = vrot.lane.b32.xlu1 %v3850_v3, %s4690_s16  ;;  %3924 = vrot.lane.b32.xlu0 %v3917_v45, %s4694_s20  ;;  %v3975_v30 = vrot.slane %v3968_v42, 2  ;;  %v4024_v45 = vmul.f32 %v4020_v31, %v7091_v34 }
 0x963   :  { %v4028_v24 = vrot.slane %v4022_v51, 2  ;;  %v4029_v40 = vrot.slane %v7084_v14, 2 }
 0x964   :  { %v7074_v57 = vpop.permute.xlu0 %3138  ;;  %v3992_v5 = vpop.permute.xlu1 %3991  ;;  %v7080_v26 = vadd.f32 %v6624_v27, %v3095_v50  ;;  %v3109_v50 = vrot.slane %v3103_v19, 6  ;;  %v4031_v29 = vrot.slane %v4024_v45, 2  ;;  %v4098_v19 = vld [vmem:[#allocation3 + $0x38] sm:$0xff] }
 0x965   :  { %v3994_v0 = vmul.f32 %v3992_v5, %v7040_v46  ;;  %v3995_v16 = vmul.f32 %v3992_v5, %v7042_v15  ;;  %v3996_v61 = vmul.f32 %v3992_v5, %v7091_v34  ;;  %v4030_v38 = vsel %vm1857_vm3, %v4028_v24, %v4029_v40 }
 0x966   :  { %3881 = vrot.lane.b32.xlu1 %v3878_v6, %s4692_s18  ;;  %3977 = vrot.lane.b32.xlu0 %v3974_v35, %s4684_s30  ;;  %v3976_v5 = vsel %vm1857_vm3, %v3973_v39, %v3975_v30  ;;  %v3094_v35 = vadd.f32 %v3090_v48, %v3047_v59  ;;  %v3111_v33 = vsel %vm1015_vm7, %v3109_v50, %v3110_v47  ;;  %v4099_v48 = vld [vmem:[#allocation3 + $0x48] sm:$0x3] }
 0x967   :  { %v4000_v12 = vrot.slane %v3994_v0, 2  ;;  %v4001_v54 = vrot.slane %v3995_v16, 2  ;;  %v4003_v18 = vrot.slane %v3996_v61, 2 }
 0x968   :  { %v4076_v27 = vpop.permute.xlu0 %4075  ;;  %v4048_v10 = vpop.permute.xlu1 %4047  ;;  %v3116_v16 = vadd.f32 %v3111_v33, %v3094_v35 }
 0x969   :  { %v4050_v41 = vmul.f32 %v4048_v10, %v7040_v46  ;;  %v7099_v13 = vmul.f32 %v4048_v10, %v7042_v15  ;;  %v4002_v63 = vsel %vm1857_vm3, %v4000_v12, %v4001_v54  ;;  %v4078_v52 = vmul.f32 %v4076_v27, %v7040_v46 }
 0x96a   :  { %3922 = vrot.lane.b32.xlu1 %v3915_v21, %s4694_s20  ;;  %4005 = vrot.lane.b32.xlu0 %v4002_v63, %s4683_s29  ;;  %v7114_v32 = vmul.f32 %v4076_v27, %v7042_v15  ;;  %v4052_v60 = vmul.f32 %v4048_v10, %v7091_v34  ;;  %v4004_v39 = vsel %vm1857_vm3, %v4001_v54, %v4003_v18 }
 0x96b   :  { %v4056_v3 = vrot.slane %v4050_v41, 2  ;;  %v4057_v23 = vrot.slane %v7099_v13, 2  ;;  %v4084_v17 = vrot.slane %v4078_v52, 2  ;;  %v3144_v28 = vadd.f32 %v7074_v57, %v3116_v16  ;;  %v4463_v52 = vld [vmem:[#allocation10 + $0x15] ss:$0 sm:$0xff] }
 0x96c   :  { %v7107_v43 = vpop.permute.xlu0 %3168  ;;  %v3141_v44 = vpop.permute.xlu1 %3140  ;;  %v4085_v49 = vrot.slane %v7114_v32, 2  ;;  %v4080_v54 = vmul.f32 %v4076_v27, %v7091_v34  ;;  %v4059_v24 = vrot.slane %v4052_v60, 2  ;;  %v4032_v21 = vsel %vm1857_vm3, %v4029_v40, %v4031_v29 }
 0x96d   :  { %v4058_v4 = vsel %vm1857_vm3, %v4056_v3, %v4057_v23  ;;  %v3145_v40 = vadd.f32 %v3141_v44, %v7080_v26  ;;  %v3314_v59 = vmul.f32 %v4463_v52, %v6701_v25 }
 0x96e   :  { %3926 = vrot.lane.b32.xlu1 %v3919_v53, %s4694_s20  ;;  %4033 = vrot.lane.b32.xlu0 %v4030_v38, %s4685_s9  ;;  %v4086_v12 = vsel %vm1857_vm3, %v4084_v17, %v4085_v49  ;;  %v4087_v57 = vrot.slane %v4080_v54, 2  ;;  %v4060_v53 = vsel %vm1857_vm3, %v4057_v23, %v4059_v24  ;;  %v3315_v17 = vmul.f32 %v4463_v52, %v6725_v56 }
 0x96f   :  { %v3173_v44 = vadd.f32 %v7107_v43, %v3145_v40 }
 0x970   :  { %v3195_v37 = vpop.permute.xlu0 %3194  ;;  %v3167_v6 = vpop.permute.xlu1 %3166  ;;  %v4088_v23 = vsel %vm1857_vm3, %v4085_v49, %v4087_v57 }
 0x971   :  { %v3172_v13 = vadd.f32 %v3167_v6, %v3144_v28  ;;  %v3313_v6 = vmul.f32 %v4463_v52, %v6703_v58 }
 0x972   :  { %3979 = vrot.lane.b32.xlu1 %v3976_v5, %s4684_s30  ;;  %4061 = vrot.lane.b32.xlu0 %v4058_v4, %s4690_s16 }
 0x973   :  { %v3200_v32 = vadd.f32 %v3195_v37, %v3172_v13  ;;  %v3320_v37 = vrot.slane %v3314_v59, 1  ;;  %v3319_v49 = vrot.slane %v3313_v6, 1 }
 0x974   :  { %v3223_v31 = vpop.permute.xlu0 %3222  ;;  %v4107_v51 = vpop.permute.xlu1 %4106 }
 0x975   :  { %v4109_v14 = vmul.f32 %v4107_v51, %v7040_v46  ;;  %v4111_v0 = vmul.f32 %v4107_v51, %v7042_v15  ;;  %v4113_v36 = vmul.f32 %v4107_v51, %v7091_v34  ;;  %v4110_v38 = vmul.f32 %v4107_v51, %v4097_v9 }
 0x976   :  { %4007 = vrot.lane.b32.xlu1 %v4004_v39, %s4683_s29  ;;  %4089 = vrot.lane.b32.xlu0 %v4086_v12, %s4692_s18  ;;  %v4112_v27 = vmul.f32 %v4107_v51, %v4098_v19  ;;  %v4114_v35 = vmul.f32 %v4107_v51, %v4099_v48  ;;  %v3228_v26 = vadd.f32 %v3223_v31, %v3200_v32  ;;  %v3322_v31 = vrot.slane %v3315_v17, 1 }
 0x977   :  { %v4121_v7 = vrot.slane %v4109_v14, 2  ;;  %v4122_v47 = vrot.slane %v4111_v0, 2  ;;  %v4127_v63 = vrot.slane %v4113_v36, 2  ;;  %v4124_v18 = vrot.slane %v4110_v38, 2 }
 0x978   :  { %v3251_v10 = vpop.permute.xlu0 %3250  ;;  %v3197_v42 = vpop.permute.xlu1 %3196  ;;  %v4125_v5 = vrot.slane %v4112_v27, 2  ;;  %v4129_v14 = vrot.slane %v4114_v35, 2  ;;  %v3321_v43 = vsel %vm1226_vm8, %v3319_v49, %v3320_v37 }
 0x979   :  { %v4123_v41 = vsel %vm1857_vm3, %v4121_v7, %v4122_v47  ;;  %v4128_v3 = vsel %vm1857_vm3, %v4122_v47, %v4127_v63  ;;  %v3256_v4 = vadd.f32 %v3251_v10, %v3228_v26  ;;  %v3201_v29 = vadd.f32 %v3197_v42, %v3173_v44  ;;  %v7173_v26 = vld [vmem:[%s7275_s5] ss:$0 sm:$0xff] }
 0x97a   :  { %4035 = vrot.lane.b32.xlu1 %v4032_v21, %s4685_s9  ;;  %4131 = vrot.lane.b32.xlu0 %v4123_v41, %s4694_s20  ;;  %v4126_v58 = vsel %vm1857_vm3, %v4124_v18, %v4125_v5  ;;  %v4130_v47 = vsel %vm1857_vm3, %v4125_v5, %v4129_v14  ;;  %v3323_v10 = vsel %vm1226_vm8, %v3320_v37, %v3322_v31 }
 0x97c   :  { %v3292_v30 = vpop.permute.xlu0 %3291  ;;  %v3225_v61 = vpop.permute.xlu1 %3224 }
 0x97d   :  { %v3229_v0 = vadd.f32 %v3225_v61, %v3201_v29 }
 0x97e   :  { %4063 = vrot.lane.b32.xlu1 %v4060_v53, %s4690_s16  ;;  %4135 = vrot.lane.b32.xlu0 %v4128_v3, %s4694_s20  ;;  %v4470_v3 = vld [vmem:[#allocation10 + $0x1c] ss:$0 sm:$0xff] }
 0x980   :  { %v3296_v45 = vpop.permute.xlu0 %3295  ;;  %v3253_v50 = vpop.permute.xlu1 %3252 }
 0x981   :  { %v3257_v16 = vadd.f32 %v3253_v50, %v3229_v0 }
 0x982   :  { %4091 = vrot.lane.b32.xlu1 %v4088_v23, %s4692_s18  ;;  %v3523_v23 = vmul.f32 %v4470_v3, %v6799_v62  ;;  %v7180_v62 = vld [vmem:[%s7277_s7] ss:$0 sm:$0xff]  ;;  %s4699_s18 = smov 6  }
 0x984   :  { %v3349_v33 = vpop.permute.xlu0 %3348  ;;  %v3294_v60 = vpop.permute.xlu1 %3293  ;;  %v3529_v17 = vrot.slane %v3523_v23, 4 }
 0x985   :  { %v3299_v39 = vsel %vm785_vm11, %v3292_v30, %v3294_v60 }
 0x986   :  { %v3303_v51 = vadd.f32 %v3299_v39, %v3256_v4  ;;  %4133 = vrot.lane.b32.xlu1 %v4126_v58, %s4694_s20  ;;  %v2080_v4 = vmul.f32 %v7173_v26, %v6518_v20 }
 0x988   :  { %v3377_v12 = vpop.permute.xlu0 %3376  ;;  %v3326_v56 = vadd.f32 %v3321_v43, %v3303_v51  ;;  %v3298_v36 = vpop.permute.xlu1 %3297  ;;  %v2089_v39 = vadd.f32 %v7180_v62, %v2080_v4 }
 0x989   :  { %v3300_v7 = vsel %vm785_vm11, %v3296_v45, %v3298_v36  ;;  %v3524_v45 = vmul.f32 %v4470_v3, %v6701_v25 }
 0x98a   :  { %v3304_v28 = vadd.f32 %v3300_v7, %v3257_v16  ;;  %4137 = vrot.lane.b32.xlu1 %v4130_v47, %s4694_s20  ;;  %v3354_v57 = vadd.f32 %v3349_v33, %v3326_v56  ;;  %v3525_v7 = vmul.f32 %v4470_v3, %v6836_v1  ;;  %s4700_s20 = smov 1  }
 0x98b   :  { %v3530_v44 = vrot.slane %v3524_v45, 4 }
 0x98c   :  { %v3405_v42 = vpop.permute.xlu0 %3404  ;;  %v3327_v54 = vadd.f32 %v3323_v10, %v3304_v28  ;;  %v3351_v24 = vpop.permute.xlu1 %3350  ;;  %v3382_v27 = vadd.f32 %v3377_v12, %v3354_v57  ;;  %v3532_v57 = vrot.slane %v3525_v7, 4 }
 0x98d   :  { %v3531_v33 = vsel %vm1437_vm9, %v3529_v17, %v3530_v44 }
 0x98e   :  { %v3410_v32 = vadd.f32 %v3405_v42, %v3382_v27  ;;  %v3355_v0 = vadd.f32 %v3351_v24, %v3327_v54  ;;  %v4558_v54 = vld [vmem:[#allocation3 + $0x20] sm:$0xff] }
 0x990   :  { %v3433_v21 = vpop.permute.xlu0 %3432  ;;  %v3379_v41 = vpop.permute.xlu1 %3378 }
 0x991   :  { %v3438_v50 = vadd.f32 %v3433_v21, %v3410_v32  ;;  %v3383_v31 = vadd.f32 %v3379_v41, %v3355_v0 }
 0x994   :  { %v3461_v13 = vpop.permute.xlu0 %3460  ;;  %v3407_v63 = vpop.permute.xlu1 %3406 }
 0x995   :  { %v3466_v18 = vadd.f32 %v3461_v13, %v3438_v50  ;;  %v3411_v12 = vadd.f32 %v3407_v63, %v3383_v31  ;;  %v4477_v13 = vld [vmem:[#allocation10 + $0x23] ss:$0 sm:$0xff] }
 0x996   :  { %v3733_v24 = vmul.f32 %v4558_v54, %v4477_v13  ;;  %v3732_v41 = vmul.f32 %v4477_v13, %v6916_v22 }
 0x998   :  { %v3503_v9 = vpop.permute.xlu0 %3502  ;;  %v3435_v19 = vpop.permute.xlu1 %3434  ;;  %v3739_v32 = vrot.slane %v3733_v24, 7 }
 0x999   :  { %v3439_v47 = vadd.f32 %v3435_v19, %v3411_v12  ;;  %v3533_v19 = vsel %vm1437_vm9, %v3530_v44, %v3532_v57 }
 0x99c   :  { %v3507_v30 = vpop.permute.xlu0 %3506  ;;  %v3463_v61 = vpop.permute.xlu1 %3462 }
 0x99d   :  { %v3467_v42 = vadd.f32 %v3463_v61, %v3439_v47 }
 0x9a0   :  { %v3559_v53 = vpop.permute.xlu0 %3558  ;;  %v3505_v38 = vpop.permute.xlu1 %3504 }
 0x9a1   :  { %v3510_v6 = vsel %vm785_vm11, %v3503_v9, %v3505_v38 }
 0x9a2   :  { %v3514_v37 = vadd.f32 %v3510_v6, %v3466_v18 }
 0x9a4   :  { %v3587_v52 = vpop.permute.xlu0 %3586  ;;  %v3509_v40 = vpop.permute.xlu1 %3508  ;;  %v3536_v60 = vadd.f32 %v3531_v33, %v3514_v37 }
 0x9a5   :  { %v3511_v10 = vsel %vm785_vm11, %v3507_v30, %v3509_v40  ;;  %v3738_v40 = vrot.slane %v3732_v41, 7 }
 0x9a6   :  { %v3564_v51 = vadd.f32 %v3559_v53, %v3536_v60  ;;  %v3515_v53 = vadd.f32 %v3511_v10, %v3467_v42 }
 0x9a7   :  { %v3740_v45 = vsel %vm623_vm10, %v3738_v40, %v3739_v32 }
 0x9a8   :  { %v3615_v48 = vpop.permute.xlu0 %3614  ;;  %v3561_v59 = vpop.permute.xlu1 %3560  ;;  %v3592_v16 = vadd.f32 %v3587_v52, %v3564_v51  ;;  %v3537_v30 = vadd.f32 %v3533_v19, %v3515_v53 }
 0x9aa   :  { %v3620_v28 = vadd.f32 %v3615_v48, %v3592_v16  ;;  %v3565_v50 = vadd.f32 %v3561_v59, %v3537_v30 }
 0x9ac   :  { %v3643_v5 = vpop.permute.xlu0 %3642  ;;  %v3589_v35 = vpop.permute.xlu1 %3588 }
 0x9ad   :  { %v3648_v38 = vadd.f32 %v3643_v5, %v3620_v28  ;;  %v3593_v22 = vadd.f32 %v3589_v35, %v3565_v50 }
 0x9b0   :  { %v3671_v25 = vpop.permute.xlu0 %3670  ;;  %v3617_v29 = vpop.permute.xlu1 %3616 }
 0x9b1   :  { %v3676_v27 = vadd.f32 %v3671_v25, %v3648_v38  ;;  %v3621_v37 = vadd.f32 %v3617_v29, %v3593_v22  ;;  %v3734_v25 = vmul.f32 %v4477_v13, %v6965_v8 }
 0x9b3   :  { %v3741_v0 = vrot.slane %v3734_v25, 7 }
 0x9b4   :  { %v3712_v58 = vpop.permute.xlu0 %3711  ;;  %v2107_v49 = vpop.permute.xlu1 %2106 }
 0x9b5   :  { %v7184_v14 = vadd.f32 %v2107_v49, %v2089_v39  ;;  %v3742_v35 = vsel %vm623_vm10, %v3739_v32, %v3741_v0 }
 0x9b8   :  { %v3716_v43 = vpop.permute.xlu0 %3715  ;;  %v3645_v20 = vpop.permute.xlu1 %3644 }
 0x9b9   :  { %v3649_v44 = vadd.f32 %v3645_v20, %v3621_v37 }
 0x9bc   :  { %v3768_v56 = vpop.permute.xlu0 %3767  ;;  %v3673_v36 = vpop.permute.xlu1 %3672 }
 0x9bd   :  { %v3677_v39 = vadd.f32 %v3673_v36, %v3649_v44 }
 0x9c0   :  { %v3796_v21 = vpop.permute.xlu0 %3795  ;;  %v3714_v9 = vpop.permute.xlu1 %3713 }
 0x9c1   :  { %v3719_v63 = vsel %vm785_vm11, %v3712_v58, %v3714_v9 }
 0x9c2   :  { %v3723_v61 = vadd.f32 %v3719_v63, %v3676_v27 }
 0x9c4   :  { %v3824_v52 = vpop.permute.xlu0 %3823  ;;  %v3718_v1 = vpop.permute.xlu1 %3717  ;;  %v3745_v6 = vadd.f32 %v3740_v45, %v3723_v61 }
 0x9c5   :  { %v3720_v60 = vsel %vm785_vm11, %v3716_v43, %v3718_v1 }
 0x9c6   :  { %v3773_v5 = vadd.f32 %v3768_v56, %v3745_v6  ;;  %v3724_v59 = vadd.f32 %v3720_v60, %v3677_v39  ;;  %v4484_v56 = vld [vmem:[#allocation10 + $0x2a] ss:$0 sm:$0xff] }
 0x9c7   :  { %v3943_v7 = vmul.f32 %v4484_v56, %v7042_v15  ;;  %v3942_v20 = vmul.f32 %v4484_v56, %v7040_v46  ;;  %v3944_v15 = vmul.f32 %v4484_v56, %v7091_v34  ;;  %v4499_v56 = vld [vmem:[%s7276_s6 + $0x3] ss:$0 sm:$0xff] }
 0x9c8   :  { %v3852_v3 = vpop.permute.xlu0 %3851  ;;  %v3770_v48 = vpop.permute.xlu1 %3769  ;;  %v3801_v33 = vadd.f32 %v3796_v21, %v3773_v5  ;;  %v3746_v29 = vadd.f32 %v3742_v35, %v3724_v59  ;;  %v4494_v59 = vld [vmem:[%s7275_s5 + $0x1] ss:$0 sm:$0xff]  ;;  %v4496_v35 = vld [vmem:[%s7275_s5 + $0x2] ss:$0 sm:$0xff] }
 0x9c9   :  { %v3949_v10 = vrot.slane %v3943_v7, 2  ;;  %v3948_v13 = vrot.slane %v3942_v20, 2  ;;  %v3951_v1 = vrot.slane %v3944_v15, 2  ;;  %v7231_v7 = vld [vmem:[#allocation4 + $0x8] sm:$0xff] }
 0x9ca   :  { %v3829_v51 = vadd.f32 %v3824_v52, %v3801_v33  ;;  %v3774_v36 = vadd.f32 %v3770_v48, %v3746_v29  ;;  %v4498_v29 = vld [vmem:[%s7275_s5 + $0x3] ss:$0 sm:$0xff]  ;;  %s4702_s5 = smov 121  }
 0x9cb   :  { %v3950_v57 = vsel %vm1857_vm3, %v3948_v13, %v3949_v10  ;;  %v3952_v40 = vsel %vm1857_vm3, %v3949_v10, %v3951_v1 }
 0x9cc   :  { %v3880_v23 = vpop.permute.xlu0 %3879  ;;  %v3798_v18 = vpop.permute.xlu1 %3797  ;;  %v3857_v12 = vadd.f32 %v3852_v3, %v3829_v51 }
 0x9cd   :  { %v3802_v9 = vadd.f32 %v3798_v18, %v3774_v36 }
 0x9ce   :  { %v3885_v47 = vadd.f32 %v3880_v23, %v3857_v12  ;;  %v4497_v12 = vld [vmem:[%s7276_s6 + $0x2] ss:$0 sm:$0xff] }
 0x9d0   :  { %v3921_v17 = vpop.permute.xlu0 %3920  ;;  %v3826_v4 = vpop.permute.xlu1 %3825 }
 0x9d1   :  { %v3830_v54 = vadd.f32 %v3826_v4, %v3802_v9  ;;  %v4491_v4 = vld [vmem:[#allocation11] ss:$0 sm:$0xff] }
 0x9d4   :  { %v3925_v58 = vpop.permute.xlu0 %3924  ;;  %v3854_v49 = vpop.permute.xlu1 %3853 }
 0x9d5   :  { %v3858_v41 = vadd.f32 %v3854_v49, %v3830_v54 }
 0x9d8   :  { %v3978_v31 = vpop.permute.xlu0 %3977  ;;  %v3882_v16 = vpop.permute.xlu1 %3881 }
 0x9d9   :  { %v3886_v63 = vadd.f32 %v3882_v16, %v3858_v41  ;;  %v4495_v16 = vld [vmem:[%s7276_s6 + $0x1] ss:$0 sm:$0xff]  ;;  %s4703_s6 = smov 126  }
 0x9dc   :  { %v3923_v8 = vpop.permute.xlu1 %3922  ;;  %v4006_v28 = vpop.permute.xlu0 %4005 }
 0x9dd   :  { %v3928_v43 = vsel %vm785_vm11, %v3921_v17, %v3923_v8  ;;  %v2103_v8 = vmul.f32 %v6446_v11, %v7231_v7 }
 0x9de   :  { %v3932_v42 = vadd.f32 %v3928_v43, %v3885_v47 }
 0x9e0   :  { %v3927_v21 = vpop.permute.xlu1 %3926  ;;  %v3955_v24 = vadd.f32 %v3950_v57, %v3932_v42  ;;  %v4034_v53 = vpop.permute.xlu0 %4033 }
 0x9e1   :  { %v3929_v46 = vsel %vm785_vm11, %v3925_v58, %v3927_v21 }
 0x9e2   :  { %v3983_v27 = vadd.f32 %v3978_v31, %v3955_v24  ;;  %v3933_v19 = vadd.f32 %v3929_v46, %v3886_v63 }
 0x9e4   :  { %v3980_v38 = vpop.permute.xlu1 %3979  ;;  %v4062_v32 = vpop.permute.xlu0 %4061  ;;  %v4011_v30 = vadd.f32 %v4006_v28, %v3983_v27  ;;  %v3956_v3 = vadd.f32 %v3952_v40, %v3933_v19 }
 0x9e6   :  { %v4039_v48 = vadd.f32 %v4034_v53, %v4011_v30  ;;  %v3984_v6 = vadd.f32 %v3980_v38, %v3956_v3 }
 0x9e8   :  { %v4008_v52 = vpop.permute.xlu1 %4007  ;;  %v4090_v45 = vpop.permute.xlu0 %4089  ;;  %v4067_v23 = vadd.f32 %v4062_v32, %v4039_v48 }
 0x9e9   :  { %v4012_v18 = vadd.f32 %v4008_v52, %v3984_v6 }
 0x9ea   :  { %v4095_v5 = vadd.f32 %v4090_v45, %v4067_v23 }
 0x9ec   :  { %v4036_v61 = vpop.permute.xlu1 %4035  ;;  %v4132_v22 = vpop.permute.xlu0 %4131 }
 0x9ed   :  { %v4040_v37 = vadd.f32 %v4036_v61, %v4012_v18 }
 0x9f0   :  { %v4064_v50 = vpop.permute.xlu1 %4063  ;;  %v4136_v60 = vpop.permute.xlu0 %4135 }
 0x9f1   :  { %v4068_v44 = vadd.f32 %v4064_v50, %v4040_v37 }
 0x9f4   :  { %v4092_v34 = vpop.permute.xlu1 %4091 }
 0x9f5   :  { %v4096_v39 = vadd.f32 %v4092_v34, %v4068_v44 }
 0x9f8   :  { %v4134_v17 = vpop.permute.xlu1 %4133 }
 0x9f9   :  { %v4139_v25 = vsel %vm785_vm11, %v4132_v22, %v4134_v17 }
 0x9fa   :  { %v4143_v33 = vadd.f32 %v4139_v25, %v4095_v5 }
 0x9fc   :  { %v7203_v58 = vadd.f32 %v4491_v4, %v4143_v33  ;;  %v4138_v49 = vpop.permute.xlu1 %4137 }
 0x9fd   :  { %v4140_v0 = vsel %vm785_vm11, %v4136_v60, %v4138_v49 }
 0x9fe   :  { %v4144_v51 = vadd.f32 %v4140_v0, %v4096_v39  ;;  %4156 = vrot.lane.b32.xlu0 %v7203_v58, %s4678_s3 }
 0xa00   :  { %v7211_v31 = vadd.f32 %v4491_v4, %v4144_v51 }
 0xa02   :  { %4188 = vrot.lane.b32.xlu0 %v4494_v59, %s4695_s24  ;;  %4158 = vrot.lane.b32.xlu1 %v7211_v31, %s4678_s3  ;;  %v4169_v59 = vmul.f32 %v7173_v26, %v7203_v58  ;;  %s4707_s24 = smov [#allocation13]  }
 0xa06   :  { %4209 = vrot.lane.b32.xlu0 %v4495_v16, %s4697_s12  ;;  %2120 = vrot.lane.b32.xlu1 %v4495_v16, %s4697_s12 }
 0xa0a   :  { %4230 = vrot.lane.b32.xlu0 %v4496_v35, %s4698_s15  ;;  %2141 = vrot.lane.b32.xlu1 %v4496_v35, %s4698_s15  ;;  %v2081_v35 = vmul.f32 %v7173_v26, %v6547_v2 }
 0xa0e   :  { %4251 = vrot.lane.b32.xlu0 %v4497_v12, %s4699_s18  ;;  %2162 = vrot.lane.b32.xlu1 %v4497_v12, %s4699_s18 }
 0xa12   :  { %4272 = vrot.lane.b32.xlu0 %v4498_v29, %s4700_s20  ;;  %2183 = vrot.lane.b32.xlu1 %v4498_v29, %s4700_s20  ;;  %v4178_v29 = vadd.f32 %v7180_v62, %v4169_v59 }
 0xa16   :  { %4293 = vrot.lane.b32.xlu0 %v4499_v56, %s4701_s22  ;;  %2204 = vrot.lane.b32.xlu1 %v4499_v56, %s4701_s22 }
 0xa1a   :  { %2108 = vrot.lane.b32.xlu1 %v2103_v8, %s4696_s25  ;;  %v2090_v8 = vadd.f32 %v7180_v62, %v2081_v35 }
 0xa70   :  { %v4157_v20 = vpop.permute.xlu0 %4156 }
 0xa71   :  { %4162 = vst.msk [vmem:[#allocation4] sm:$0xff] %vm2072_vm14, %v4157_v20  ;;  %v4170_v20 = vmul.f32 %v7173_v26, %v7211_v31 }
 0xa73   :  { %v4179_v2 = vadd.f32 %v7180_v62, %v4170_v20 }
 0xa74   :  { %v4159_v43 = vpop.permute.xlu1 %4158  ;;  %v4189_v47 = vpop.permute.xlu0 %4188 }
 0xa75   :  { %4163 = vst.msk [vmem:[#allocation4 + $0x8] sm:$0xff] %vm2072_vm14, %v4159_v43 }
 0xa78   :  { %v4180_v36 = vld [vmem:[#allocation4] sm:$0xff]  ;;  %v2121_v10 = vpop.permute.xlu1 %2120  ;;  %v4210_v13 = vpop.permute.xlu0 %4209 }
 0xa79   :  { %v4191_v28 = vmul.f32 %v4189_v47, %v4180_v36  ;;  %v2123_v21 = vmul.f32 %v2121_v10, %v6908_v55  ;;  %v4212_v11 = vmul.f32 %v4210_v13, %v4180_v36  ;;  %v2124_v57 = vmul.f32 %v2121_v10, %v7231_v7 }
 0xa7b   :  { %4195 = vrot.lane.b32.xlu0 %v4191_v28, %s4696_s25 }
 0xa7c   :  { %v4181_v42 = vld [vmem:[#allocation4 + $0x8] sm:$0xff]  ;;  %v2142_v54 = vpop.permute.xlu1 %2141  ;;  %v4231_v38 = vpop.permute.xlu0 %4230 }
 0xa7d   :  { %v4192_v9 = vmul.f32 %v4189_v47, %v4181_v42  ;;  %v2144_v24 = vmul.f32 %v2142_v54, %v6908_v55  ;;  %v4213_v53 = vmul.f32 %v4210_v13, %v4181_v42  ;;  %v4233_v15 = vmul.f32 %v4231_v38, %v4180_v36 }
 0xa7e   :  { %v2145_v41 = vmul.f32 %v2142_v54, %v7231_v7  ;;  %v4234_v27 = vmul.f32 %v4231_v38, %v4181_v42 }
 0xa7f   :  { %2127 = vrot.lane.b32.xlu0 %v2123_v21, %s4702_s5  ;;  %4197 = vrot.lane.b32.xlu1 %v4192_v9, %s4696_s25  ;;  %s4318_s25 = sshll.u32 %s4707_s24, 4  ;;  %s4319_s25 = int_to_ptr.vmem [resolvable:$true] %s4318_s25 }
 0xa80   :  { %v2163_v46 = vpop.permute.xlu1 %2162  ;;  %v4252_v52 = vpop.permute.xlu0 %4251  ;;  %s4643_s4 = scalar_lea.vmem %s4319_s25, 512  ;;  %p4648_p7 = scmp.lt.s32.totalorder %s4319_s25, %s4319_s25 }
 0xa81   :  { %v2165_v63 = vmul.f32 %v2163_v46, %v6908_v55  ;;  %v4254_v1 = vmul.f32 %v4252_v52, %v4180_v36  ;;  %v2166_v19 = vmul.f32 %v2163_v46, %v7231_v7  ;;  %v4255_v61 = vmul.f32 %v4252_v52, %v4181_v42  ;;  %p4644_p6 = scmp.ne.s32.totalorder %s4319_s25, %s4643_s4  ;;  %p4649_p8 = scmp.lt.s32.totalorder %s4643_s4, %s4643_s4 }
 0xa83   :  { %4216 = vrot.lane.b32.xlu0 %v4212_v11, %s4702_s5  ;;  %2129 = vrot.lane.b32.xlu1 %v2124_v57, %s4702_s5  ;;  %p4650_p9 = por %p4649_p8, %p4648_p7 }
 0xa84   :  { %v2184_v32 = vpop.permute.xlu1 %2183  ;;  %v4273_v40 = vpop.permute.xlu0 %4272 }
 0xa85   :  { %v2186_v30 = vmul.f32 %v2184_v32, %v6908_v55  ;;  %v4275_v3 = vmul.f32 %v4273_v40, %v4180_v36  ;;  %v2187_v48 = vmul.f32 %v2184_v32, %v7231_v7  ;;  %v4276_v6 = vmul.f32 %v4273_v40, %v4181_v42  ;;  %v4560_v32 = vld [vmem:[#allocation5 + $0x10] sm:$0xff]  ;;  %v4561_v40 = vld [vmem:[#allocation5 + $0x8] sm:$0xff]  ;;  %p4651_p10 = pnand %p4650_p9, %p4644_p6 }
 0xa87   :  { %2148 = vrot.lane.b32.xlu0 %v2144_v24, %s4703_s6  ;;  %4218 = vrot.lane.b32.xlu1 %v4213_v53, %s4702_s5 }
 0xa88   :  { %v2205_v45 = vpop.permute.xlu1 %2204  ;;  %v4294_v23 = vpop.permute.xlu0 %4293 }
 0xa89   :  { %v2207_v50 = vmul.f32 %v2205_v45, %v6908_v55  ;;  %v4296_v34 = vmul.f32 %v4294_v23, %v4180_v36  ;;  %v2208_v18 = vmul.f32 %v2205_v45, %v7231_v7  ;;  %v4297_v22 = vmul.f32 %v4294_v23, %v4181_v42 }
 0xa8b   :  { %4237 = vrot.lane.b32.xlu0 %v4233_v15, %s4703_s6  ;;  %2150 = vrot.lane.b32.xlu1 %v2145_v41, %s4703_s6  ;;  %v4559_v15 = vld [vmem:[#allocation5] sm:$0xff] }
 0xa8c   :  { %v2109_v37 = vpop.permute.xlu1 %2108 }
 0xa8d   :  { %v2113_v47 = vadd.f32 %v2109_v37, %v2090_v8 }
 0xa8f   :  { %2169 = vrot.lane.b32.xlu0 %v2165_v63, %s4704_s0  ;;  %4239 = vrot.lane.b32.xlu1 %v4234_v27, %s4703_s6 }
 0xa93   :  { %4258 = vrot.lane.b32.xlu0 %v4254_v1, %s4704_s0  ;;  %2171 = vrot.lane.b32.xlu1 %v2166_v19, %s4704_s0 }
 0xa97   :  { %2190 = vrot.lane.b32.xlu0 %v2186_v30, %s4705_s2  ;;  %4260 = vrot.lane.b32.xlu1 %v4255_v61, %s4704_s0 }
 0xa9b   :  { %4279 = vrot.lane.b32.xlu0 %v4275_v3, %s4705_s2  ;;  %2192 = vrot.lane.b32.xlu1 %v2187_v48, %s4705_s2 }
 0xa9f   :  { %2211 = vrot.lane.b32.xlu0 %v2207_v50, %s4706_s23  ;;  %4281 = vrot.lane.b32.xlu1 %v4276_v6, %s4705_s2  ;;  %v4562_v50 = vld [vmem:[#allocation5 + $0x18] sm:$0xff] }
 0xaa3   :  { %4300 = vrot.lane.b32.xlu0 %v4296_v34, %s4706_s23  ;;  %2213 = vrot.lane.b32.xlu1 %v2208_v18, %s4706_s23 }
 0xaa7   :  { %4302 = vrot.lane.b32.xlu1 %v4297_v22, %s4706_s23 }
 0xaed   :  { %v4196_v5 = vpop.permute.xlu0 %4195 }
 0xaee   :  { %v4201_v43 = vadd.f32 %v4196_v5, %v4178_v29 }
 0xaf1   :  { %v2128_v17 = vpop.permute.xlu0 %2127  ;;  %v4198_v4 = vpop.permute.xlu1 %4197 }
 0xaf2   :  { %v2133_v56 = vadd.f32 %v2128_v17, %v7184_v14  ;;  %v4202_v11 = vadd.f32 %v4198_v4, %v4179_v2 }
 0xaf5   :  { %v4217_v25 = vpop.permute.xlu0 %4216  ;;  %v2130_v44 = vpop.permute.xlu1 %2129 }
 0xaf6   :  { %v4222_v58 = vadd.f32 %v4217_v25, %v4201_v43  ;;  %v2134_v21 = vadd.f32 %v2130_v44, %v2113_v47 }
 0xaf9   :  { %v2149_v33 = vpop.permute.xlu0 %2148  ;;  %v4219_v55 = vpop.permute.xlu1 %4218 }
 0xafa   :  { %v2154_v36 = vadd.f32 %v2149_v33, %v2133_v56  ;;  %v4223_v38 = vadd.f32 %v4219_v55, %v4202_v11 }
 0xafd   :  { %v4238_v60 = vpop.permute.xlu0 %4237  ;;  %v2151_v39 = vpop.permute.xlu1 %2150 }
 0xafe   :  { %v4243_v13 = vadd.f32 %v4238_v60, %v4222_v58  ;;  %v2155_v14 = vadd.f32 %v2151_v39, %v2134_v21 }
 0xb01   :  { %v2170_v49 = vpop.permute.xlu0 %2169  ;;  %v4240_v0 = vpop.permute.xlu1 %4239 }
 0xb02   :  { %v2175_v10 = vadd.f32 %v2170_v49, %v2154_v36  ;;  %v4244_v46 = vadd.f32 %v4240_v0, %v4223_v38 }
 0xb05   :  { %v4259_v51 = vpop.permute.xlu0 %4258  ;;  %v2172_v16 = vpop.permute.xlu1 %2171 }
 0xb06   :  { %v4264_v54 = vadd.f32 %v4259_v51, %v4243_v13  ;;  %v2176_v26 = vadd.f32 %v2172_v16, %v2155_v14 }
 0xb09   :  { %v2191_v12 = vpop.permute.xlu0 %2190  ;;  %v4261_v7 = vpop.permute.xlu1 %4260 }
 0xb0a   :  { %v2196_v9 = vadd.f32 %v2191_v12, %v2175_v10  ;;  %v4265_v1 = vadd.f32 %v4261_v7, %v4244_v46 }
 0xb0d   :  { %v4280_v28 = vpop.permute.xlu0 %4279  ;;  %v2193_v42 = vpop.permute.xlu1 %2192 }
 0xb0e   :  { %v4285_v31 = vadd.f32 %v4280_v28, %v4264_v54  ;;  %v2197_v63 = vadd.f32 %v2193_v42, %v2176_v26 }
 0xb11   :  { %v2212_v57 = vpop.permute.xlu0 %2211  ;;  %v4282_v53 = vpop.permute.xlu1 %4281 }
 0xb12   :  { %v2217_v24 = vadd.f32 %v2212_v57, %v2196_v9  ;;  %v4286_v61 = vadd.f32 %v4282_v53, %v4265_v1 }
 0xb14   :  { %v2219_v41 = vmul.f32 %v4559_v15, %v2217_v24 }
 0xb15   :  { %v4301_v27 = vpop.permute.xlu0 %4300  ;;  %v2214_v52 = vpop.permute.xlu1 %2213 }
 0xb16   :  { %2222 = vst.msk [vmem:[#allocation13] sm:$0xff] %vm2221_vm6, %v2219_v41  ;;  %v4306_v62 = vadd.f32 %v4301_v27, %v4285_v31  ;;  %v2218_v19 = vadd.f32 %v2214_v52, %v2197_v63 }
 0xb18   :  { %v4308_v30 = vmul.f32 %v4560_v32, %v4306_v62  ;;  %v2220_v3 = vmul.f32 %v4561_v40, %v2218_v19 }
 0xb19   :  { %v4303_v48 = vpop.permute.xlu1 %4302 }
 0xb1a   :  { %4311 = vst.msk [vmem:[#allocation13 + $0x10] sm:$0xff] %vm2221_vm6, %v4308_v30  ;;  %2223 = vst.msk [vmem:[#allocation13 + $0x8] sm:$0xff] %vm2221_vm6, %v2220_v3  ;;  %v4307_v45 = vadd.f32 %v4303_v48, %v4286_v61 }
 0xb1c   :  { %v4309_v6 = vmul.f32 %v4562_v50, %v4307_v45 }
 0xb1e   :  { %4312 = vst.msk [vmem:[#allocation13 + $0x18] sm:$0xff] %vm2221_vm6, %v4309_v6 }
 0xb1f   :  { %4654 = shalt.err (!%p4651_p10)
}
 0xb20   :  { %4324 = dma.vmem_to_hbm [thread:$0]  %s4319_s25, 512, %s7278_s8, [#allocation7], %s4673_s10, %s4673_s10, %s4674_s11  }
 0xb21   :  { %4669 = dma.done.wait [#allocation7], 512  }
 0xb22   :  { %4670 = vsyncadd [#allocation7], 4294966784 }
 0xb23   :  { %4328 = vsyncpa [#allocation6], 1 }
 0xb24   :  { %4329 = vsyncpa [#allocation9], 1 }
 0xb25   :  { %4330 = vsyncpa [#allocation12], 1 }
 0xb26   :  { %4331 = vsyncpa [#allocation7], 1 }

</bundles_post_ra>
